<compile_context>
chip_gen: v5e
topology: v5e:2x2
jax: 0.10.0
libtpu: 0.0.40
codegen_flags: <defaults>
</compile_context>

<pallas_src>
import functools

import jax
import jax.numpy as jnp
from jax import lax
from jax.experimental import pallas as pl
from jax.experimental.pallas import tpu as pltpu

# ---- module config (defaults of VanillaMLP with standard NeRF embeddings) ----
D = 8                     # number of xyz-encoding layers
W = 256                   # hidden width
SKIPS = (4,)              # skip connection layers
IN_XYZ = 63               # positional embedding of xyz: 3 + 3*2*10
IN_DIR = 27               # positional embedding of dir: 3 + 3*2*4
OUT_RGB = 3               # dim_rgb
IN_TOTAL = IN_XYZ + IN_DIR
OUT_TOTAL = OUT_RGB + 1   # rgb + sigma

# lane-aligned padded sizes used by the kernel
IN_PAD = 128              # merged input: xyz in lanes 0..62, dir in lanes 64..90
XYZ_PAD = 64              # lane offset where dir starts inside the merged input
FUSED_N = W + 128         # xyz_encoding_final (cols 0..255) || sigma (col 256) || pad
OUT_W = 8                 # narrow output slab; cols 0..2 = rgb, col 3 = sigma
SIGMA_COL = OUT_RGB
BF16 = jnp.bfloat16


def _round_up(n, m):
    return (n + m - 1) // m * m


def _choose_tiling(B, bt):
    """Pick a batch tile: multiple of 16, and an even grid (>=2 steps) when possible."""
    bt = max(16, min(_round_up(bt, 16), _round_up(B, 16)))
    B_pad = _round_up(B, bt)
    nb = B_pad // bt
    # Feed both v7x TensorCores: prefer an even step count by halving the tile
    # (keeps total work constant; only adds ~0.35us/step overhead).
    while nb % 2 == 1 and bt >= 64 and bt % 32 == 0:
        bt //= 2
        B_pad = _round_up(B, bt)
        nb = B_pad // bt
    return bt, B_pad, nb


# ------------------------- deterministic parameter init ----------------------
def init_params(key):
    """PyTorch-Linear-like init (uniform +-1/sqrt(fan_in)); weights stored (in, out).

    Skip / dir layers that consume a concatenated input are stored split into two
    operands, since concat([a, b]) @ Wfull == a @ Wfull[:na] + b @ Wfull[na:].
    """
    def linear(k, fan_in, fan_out):
        kw, kb = jax.random.split(k)
        bound = 1.0 / (fan_in ** 0.5)
        w = jax.random.uniform(kw, (fan_in, fan_out), jnp.float32, -bound, bound)
        b = jax.random.uniform(kb, (1, fan_out), jnp.float32, -bound, bound)
        return w, b

    keys = jax.random.split(key, D + 4)
    params = []
    for i in range(D):
        fan_in = IN_XYZ if i == 0 else (W + IN_XYZ if i in SKIPS else W)
        w, b = linear(keys[i], fan_in, W)
        if i in SKIPS:
            params += [w[:IN_XYZ], w[IN_XYZ:], b]   # xyz-part, hidden-part, bias
        else:
            params += [w, b]
    wf, bfin = linear(keys[D], W, W)                  # xyz_encoding_final
    ws, bs = linear(keys[D + 1], W, 1)                # sigma head
    wd, bd = linear(keys[D + 2], W + IN_DIR, W // 2)  # dir_encoding
    wr, br = linear(keys[D + 3], W // 2, OUT_RGB)     # rgb head (sigmoid)
    params += [wf, bfin, ws, bs, wd[:W], wd[W:], bd, wr, br]
    return params


# ------------------------ kernel-operand preparation --------------------------
def prepare_params(params):
    """Pad / fuse / cast the f32 module parameters into kernel operands (call ONCE).

    - weights -> bf16 (MXU operands); biases stay f32 (added to f32 accumulators).
    - weights consuming xyz / dir are zero-padded to 128 input rows so the kernel feeds
      the full lane-dense merged input block without slicing (padding rows are exact 0).
    - sigma head fused into xyz_encoding_final as one (W, W+128) matrix (col W = sigma).
    - rgb head padded to an 8-lane output slab (cols 0..2 = rgb).
    """
    out = []
    idx = 0
    for i in range(D):
        if i in SKIPS:
            wx, wh, b = params[idx:idx + 3]
            idx += 3
            wxf = jnp.zeros((IN_PAD, W), jnp.float32).at[:IN_XYZ].set(wx)
            out += [wxf.astype(BF16), wh.astype(BF16), b]
        elif i == 0:
            w, b = params[idx:idx + 2]
            idx += 2
            w0f = jnp.zeros((IN_PAD, W), jnp.float32).at[:IN_XYZ].set(w)
            out += [w0f.astype(BF16), b]
        else:
            w, b = params[idx:idx + 2]
            idx += 2
            out += [w.astype(BF16), b]

    wf, bfin, ws, bs, wdx, wdd, bd, wr, br = params[idx:]
    wfs = jnp.zeros((W, FUSED_N), jnp.float32).at[:, :W].set(wf).at[:, W:W + 1].set(ws)
    bfs = jnp.zeros((1, FUSED_N), jnp.float32).at[:, :W].set(bfin).at[:, W:W + 1].set(bs)
    wddf = jnp.zeros((IN_PAD, W // 2), jnp.float32).at[XYZ_PAD:XYZ_PAD + IN_DIR].set(wdd)
    wrp = jnp.zeros((W // 2, OUT_W), jnp.float32).at[:, :OUT_RGB].set(wr)
    brp = jnp.zeros((1, OUT_W), jnp.float32).at[:, :OUT_RGB].set(br)
    out += [wfs.astype(BF16), bfs,
            wdx.astype(BF16), wddf.astype(BF16), bd,
            wrp.astype(BF16), brp]
    return out


# --------------------------------- kernel ------------------------------------
def vanilla_mlp_kernel(x_ref, *rest):
    out_ref = rest[-1]
    p = rest[:-1]                       # parameter Refs; dereferenced at point of use

    def mm(a_bf16, w_ref):
        # bf16 x bf16 MXU matmul with f32 accumulation.
        return jnp.dot(a_bf16, w_ref[...], preferred_element_type=jnp.float32)

    xin = x_ref[...]                    # (bt, 128) bf16: xyz lanes 0..62, dir lanes 64..90

    idx = 0
    h = xin                             # bf16 throughout the unrolled layer loop
    for i in range(D):
        if i in SKIPS:
            # cat([input_xyz, h]) @ W == xin @ Wx(128-row, zero-padded) + h @ Wh  (exact)
            acc = mm(xin, p[idx]) + mm(h, p[idx + 1]) + p[idx + 2][...]
            idx += 3
        else:
            acc = mm(h, p[idx]) + p[idx + 1][...]
            idx += 2
        h = jnp.maximum(acc, 0.0).astype(BF16)   # bias/ReLU in f32, store bf16

    wfs, bfs, wdx, wdd, bd, wrp, brp = p[idx:]
    y = mm(h, wfs) + bfs[...]           # fused xyz_encoding_final || sigma head, f32
    feat = y[:, :W].astype(BF16)        # xyz_encoding_final (no activation)
    sigma = y[:, W:W + 1]               # (bt, 1) f32 (kept f32 through to the output)

    # dir_encoding: cat([feat, input_dir]) @ Wd == feat @ Wdx + xin @ Wdd(zero-padded rows)
    d = jnp.maximum(mm(feat, wdx) + mm(xin, wdd) + bd[...], 0.0).astype(BF16)

    # rgb head into an 8-lane slab (cols 0..2 = rgb), then inject sigma at col 3.
    rgb = jax.nn.sigmoid(mm(d, wrp) + brp[...])            # (bt, 8) f32
    lane = lax.broadcasted_iota(jnp.int32, rgb.shape, 1)
    out_ref[...] = jnp.where(lane == SIGMA_COL, sigma, rgb).astype(out_ref.dtype)


# -------------------------------- wrapper -------------------------------------
@functools.partial(jax.jit, static_argnames=("bt",))
def vanilla_mlp_forward(x, kparams, *, bt=1024):
    """Jitted forward. `kparams` must come from prepare_params() (hoist it out of the loop)."""
    B = x.shape[0]
    bt, B_pad, nb = _choose_tiling(B, bt)

    # Merge xyz / dir into one lane-dense 128-wide bf16 stream (single HBM pad/cast pass).
    xin = jnp.zeros((B_pad, IN_PAD), BF16)
    xin = xin.at[:B, :IN_XYZ].set(x[:, :IN_XYZ].astype(BF16))
    xin = xin.at[:B, XYZ_PAD:XYZ_PAD + IN_DIR].set(x[:, IN_XYZ:IN_TOTAL].astype(BF16))

    # Weights never change across grid steps -> single-buffer them in VMEM.
    param_specs = [
        pl.BlockSpec(p.shape, lambda i: (0, 0), pipeline_mode=pl.Buffered(1))
        for p in kparams
    ]

    out_slab = pl.pallas_call(
        vanilla_mlp_kernel,
        out_shape=jax.ShapeDtypeStruct((B_pad, OUT_W), jnp.float32),
        grid_spec=pltpu.PrefetchScalarGridSpec(
            num_scalar_prefetch=0,
            grid=(nb,),
            in_specs=[pl.BlockSpec((bt, IN_PAD), lambda i: (i, 0))] + param_specs,
            out_specs=pl.BlockSpec((bt, OUT_W), lambda i: (i, 0)),
        ),
        compiler_params=pltpu.CompilerParams(
            dimension_semantics=("parallel",),
            # Explicit limit on every generation: v5e's default scoped VMEM is 16 MiB,
            # and 32 MiB leaves headroom inside v7x's 64 MiB. Cap at 48 MiB for huge tiles.
            vmem_limit_bytes=(32 * 1024 * 1024 if bt <= 1024 else 48 * 1024 * 1024),
        ),
    )(xin, *kparams)

    # cols 0..2 = rgb, col 3 = sigma  ==  torch.cat([rgb, sigma], -1)
    return out_slab[:B, :OUT_TOTAL]


def vanilla_mlp(x, params, *, bt=1024):
    """Convenience wrapper (re-prepares params every call; prefer prepare_params once)."""
    return vanilla_mlp_forward(x, prepare_params(params), bt=bt)


# ------------------------------ pure-JAX reference ----------------------------
def vanilla_mlp_ref(x, params, *, use_bf16=True):
    """Reference of the original module. use_bf16=True mirrors the kernel's casts."""
    cast = (lambda a: a.astype(BF16)) if use_bf16 else (lambda a: a)

    def mm(a, w):
        return jnp.dot(cast(a), cast(w), preferred_element_type=jnp.float32)

    xyz = x[:, :IN_XYZ]
    dirv = x[:, IN_XYZ:]
    idx = 0
    h = xyz
    for i in range(D):
        if i in SKIPS:
            wx, wh, b = params[idx:idx + 3]
            idx += 3
            h = mm(xyz, wx) + mm(h, wh) + b
        else:
            w, b = params[idx:idx + 2]
            idx += 2
            h = mm(h, w) + b
        h = jnp.maximum(h, 0.0)
    wf, bfin, ws, bs, wdx, wdd, bd, wr, br = params[idx:]
    sigma = mm(h, ws) + bs
    feat = mm(h, wf) + bfin
    d = jnp.maximum(mm(feat, wdx) + mm(dirv, wdd) + bd, 0.0)
    rgb = jax.nn.sigmoid(mm(d, wr) + br)
    return jnp.concatenate([rgb, sigma], axis=-1)


if __name__ == "__main__":
    key = jax.random.PRNGKey(0)
    kx, kp = jax.random.split(key)
    B = 512                                            # small; tiling yields a 2-step grid
    x = jax.random.normal(kx, (B, IN_TOTAL), jnp.float32)
    params = init_params(kp)

    kparams = prepare_params(params)                   # one-time prep, hoisted out of hot path
    out = jax.block_until_ready(vanilla_mlp_forward(x, kparams))
    assert out.shape == (B, OUT_TOTAL)

    # Exact-semantics check against a bf16-matched JAX reference.
    ref_bf16 = vanilla_mlp_ref(x, params, use_bf16=True)
    assert jnp.allclose(out, ref_bf16, atol=1e-3, rtol=1e-3), "mismatch vs bf16 reference"

    # Loose sanity check against the full-f32 module semantics.
    # TODO(synk): if sigma precision matters end-to-end, keep the fused final/sigma matmul in f32.
    ref_f32 = vanilla_mlp_ref(x, params, use_bf16=False)
    assert jnp.allclose(out, ref_f32, atol=2e-1, rtol=2e-1), "mismatch vs f32 module reference"

    print("KERNEL_OK")
</pallas_src>

<mosaic_0001>
module attributes {stable_mosaic.version = 11 : i64} {
  func.func @vanilla_mlp_kernel(%arg0: i32, %arg1: memref<256x128xbf16, #tpu.memory_space<vmem>>, %arg2: memref<128x256xbf16, #tpu.memory_space<vmem>>, %arg3: memref<1x256xf32, #tpu.memory_space<vmem>>, %arg4: memref<256x256xbf16, #tpu.memory_space<vmem>>, %arg5: memref<1x256xf32, #tpu.memory_space<vmem>>, %arg6: memref<256x256xbf16, #tpu.memory_space<vmem>>, %arg7: memref<1x256xf32, #tpu.memory_space<vmem>>, %arg8: memref<256x256xbf16, #tpu.memory_space<vmem>>, %arg9: memref<1x256xf32, #tpu.memory_space<vmem>>, %arg10: memref<128x256xbf16, #tpu.memory_space<vmem>>, %arg11: memref<256x256xbf16, #tpu.memory_space<vmem>>, %arg12: memref<1x256xf32, #tpu.memory_space<vmem>>, %arg13: memref<256x256xbf16, #tpu.memory_space<vmem>>, %arg14: memref<1x256xf32, #tpu.memory_space<vmem>>, %arg15: memref<256x256xbf16, #tpu.memory_space<vmem>>, %arg16: memref<1x256xf32, #tpu.memory_space<vmem>>, %arg17: memref<256x256xbf16, #tpu.memory_space<vmem>>, %arg18: memref<1x256xf32, #tpu.memory_space<vmem>>, %arg19: memref<256x384xbf16, #tpu.memory_space<vmem>>, %arg20: memref<1x384xf32, #tpu.memory_space<vmem>>, %arg21: memref<256x128xbf16, #tpu.memory_space<vmem>>, %arg22: memref<128x128xbf16, #tpu.memory_space<vmem>>, %arg23: memref<1x128xf32, #tpu.memory_space<vmem>>, %arg24: memref<128x8xbf16, #tpu.memory_space<vmem>>, %arg25: memref<1x8xf32, #tpu.memory_space<vmem>>, %arg26: memref<256x8xf32, #tpu.memory_space<vmem>>) attributes {dimension_semantics = [#tpu.dimension_semantics<parallel>], iteration_bounds = array<i64: 2>, scalar_prefetch = 0 : i64, scratch_operands = 0 : i64, tpu.core_type = #tpu.core_type<tc>, window_params = [{transform_indices = @transform_0, window_bounds = array<i64: 256, 128>}, {pipeline_mode = #tpu.pipeline_mode<synchronous>, transform_indices = @transform_1, window_bounds = array<i64: 128, 256>}, {pipeline_mode = #tpu.pipeline_mode<synchronous>, transform_indices = @transform_2, window_bounds = array<i64: 1, 256>}, {pipeline_mode = #tpu.pipeline_mode<synchronous>, transform_indices = @transform_3, window_bounds = array<i64: 256, 256>}, {pipeline_mode = #tpu.pipeline_mode<synchronous>, transform_indices = @transform_4, window_bounds = array<i64: 1, 256>}, {pipeline_mode = #tpu.pipeline_mode<synchronous>, transform_indices = @transform_5, window_bounds = array<i64: 256, 256>}, {pipeline_mode = #tpu.pipeline_mode<synchronous>, transform_indices = @transform_6, window_bounds = array<i64: 1, 256>}, {pipeline_mode = #tpu.pipeline_mode<synchronous>, transform_indices = @transform_7, window_bounds = array<i64: 256, 256>}, {pipeline_mode = #tpu.pipeline_mode<synchronous>, transform_indices = @transform_8, window_bounds = array<i64: 1, 256>}, {pipeline_mode = #tpu.pipeline_mode<synchronous>, transform_indices = @transform_9, window_bounds = array<i64: 128, 256>}, {pipeline_mode = #tpu.pipeline_mode<synchronous>, transform_indices = @transform_10, window_bounds = array<i64: 256, 256>}, {pipeline_mode = #tpu.pipeline_mode<synchronous>, transform_indices = @transform_11, window_bounds = array<i64: 1, 256>}, {pipeline_mode = #tpu.pipeline_mode<synchronous>, transform_indices = @transform_12, window_bounds = array<i64: 256, 256>}, {pipeline_mode = #tpu.pipeline_mode<synchronous>, transform_indices = @transform_13, window_bounds = array<i64: 1, 256>}, {pipeline_mode = #tpu.pipeline_mode<synchronous>, transform_indices = @transform_14, window_bounds = array<i64: 256, 256>}, {pipeline_mode = #tpu.pipeline_mode<synchronous>, transform_indices = @transform_15, window_bounds = array<i64: 1, 256>}, {pipeline_mode = #tpu.pipeline_mode<synchronous>, transform_indices = @transform_16, window_bounds = array<i64: 256, 256>}, {pipeline_mode = #tpu.pipeline_mode<synchronous>, transform_indices = @transform_17, window_bounds = array<i64: 1, 256>}, {pipeline_mode = #tpu.pipeline_mode<synchronous>, transform_indices = @transform_18, window_bounds = array<i64: 256, 384>}, {pipeline_mode = #tpu.pipeline_mode<synchronous>, transform_indices = @transform_19, window_bounds = array<i64: 1, 384>}, {pipeline_mode = #tpu.pipeline_mode<synchronous>, transform_indices = @transform_20, window_bounds = array<i64: 256, 128>}, {pipeline_mode = #tpu.pipeline_mode<synchronous>, transform_indices = @transform_21, window_bounds = array<i64: 128, 128>}, {pipeline_mode = #tpu.pipeline_mode<synchronous>, transform_indices = @transform_22, window_bounds = array<i64: 1, 128>}, {pipeline_mode = #tpu.pipeline_mode<synchronous>, transform_indices = @transform_23, window_bounds = array<i64: 128, 8>}, {pipeline_mode = #tpu.pipeline_mode<synchronous>, transform_indices = @transform_24, window_bounds = array<i64: 1, 8>}, {transform_indices = @transform_25, window_bounds = array<i64: 256, 8>}]} {
    %c0 = arith.constant 0 : index
    %c0_0 = arith.constant 0 : index
    %0 = vector.load %arg1[%c0, %c0_0] : memref<256x128xbf16, #tpu.memory_space<vmem>>, vector<256x128xbf16>
    %c0_1 = arith.constant 0 : index
    %c0_2 = arith.constant 0 : index
    %1 = vector.load %arg2[%c0_1, %c0_2] : memref<128x256xbf16, #tpu.memory_space<vmem>>, vector<128x256xbf16>
    %cst = arith.constant dense<0.000000e+00> : vector<256x256xf32>
    %2 = tpu.matmul %0, %1, %cst {dimension_numbers = #tpu.dot_dimension_numbers<[1], [0], [0], [1], [0, 0, 1, 1], [], []>} : vector<256x128xbf16>, vector<128x256xbf16>, vector<256x256xf32> -> vector<256x256xf32>
    %c0_3 = arith.constant 0 : index
    %c0_4 = arith.constant 0 : index
    %3 = vector.load %arg3[%c0_3, %c0_4] : memref<1x256xf32, #tpu.memory_space<vmem>>, vector<1x256xf32>
    %4 = vector.broadcast %3 : vector<1x256xf32> to vector<256x256xf32>
    %5 = arith.addf %2, %4 : vector<256x256xf32>
    %cst_5 = arith.constant 0.000000e+00 : f32
    %6 = vector.broadcast %cst_5 : f32 to vector<256x256xf32>
    %7 = arith.maximumf %5, %6 : vector<256x256xf32>
    %8 = arith.truncf %7 : vector<256x256xf32> to vector<256x256xbf16>
    %c0_6 = arith.constant 0 : index
    %c0_7 = arith.constant 0 : index
    %9 = vector.load %arg4[%c0_6, %c0_7] : memref<256x256xbf16, #tpu.memory_space<vmem>>, vector<256x256xbf16>
    %cst_8 = arith.constant dense<0.000000e+00> : vector<256x256xf32>
    %10 = tpu.matmul %8, %9, %cst_8 {dimension_numbers = #tpu.dot_dimension_numbers<[1], [0], [0], [1], [0, 0, 1, 1], [], []>} : vector<256x256xbf16>, vector<256x256xbf16>, vector<256x256xf32> -> vector<256x256xf32>
    %c0_9 = arith.constant 0 : index
    %c0_10 = arith.constant 0 : index
    %11 = vector.load %arg5[%c0_9, %c0_10] : memref<1x256xf32, #tpu.memory_space<vmem>>, vector<1x256xf32>
    %12 = vector.broadcast %11 : vector<1x256xf32> to vector<256x256xf32>
    %13 = arith.addf %10, %12 : vector<256x256xf32>
    %cst_11 = arith.constant 0.000000e+00 : f32
    %14 = vector.broadcast %cst_11 : f32 to vector<256x256xf32>
    %15 = arith.maximumf %13, %14 : vector<256x256xf32>
    %16 = arith.truncf %15 : vector<256x256xf32> to vector<256x256xbf16>
    %c0_12 = arith.constant 0 : index
    %c0_13 = arith.constant 0 : index
    %17 = vector.load %arg6[%c0_12, %c0_13] : memref<256x256xbf16, #tpu.memory_space<vmem>>, vector<256x256xbf16>
    %cst_14 = arith.constant dense<0.000000e+00> : vector<256x256xf32>
    %18 = tpu.matmul %16, %17, %cst_14 {dimension_numbers = #tpu.dot_dimension_numbers<[1], [0], [0], [1], [0, 0, 1, 1], [], []>} : vector<256x256xbf16>, vector<256x256xbf16>, vector<256x256xf32> -> vector<256x256xf32>
    %c0_15 = arith.constant 0 : index
    %c0_16 = arith.constant 0 : index
    %19 = vector.load %arg7[%c0_15, %c0_16] : memref<1x256xf32, #tpu.memory_space<vmem>>, vector<1x256xf32>
    %20 = vector.broadcast %19 : vector<1x256xf32> to vector<256x256xf32>
    %21 = arith.addf %18, %20 : vector<256x256xf32>
    %cst_17 = arith.constant 0.000000e+00 : f32
    %22 = vector.broadcast %cst_17 : f32 to vector<256x256xf32>
    %23 = arith.maximumf %21, %22 : vector<256x256xf32>
    %24 = arith.truncf %23 : vector<256x256xf32> to vector<256x256xbf16>
    %c0_18 = arith.constant 0 : index
    %c0_19 = arith.constant 0 : index
    %25 = vector.load %arg8[%c0_18, %c0_19] : memref<256x256xbf16, #tpu.memory_space<vmem>>, vector<256x256xbf16>
    %cst_20 = arith.constant dense<0.000000e+00> : vector<256x256xf32>
    %26 = tpu.matmul %24, %25, %cst_20 {dimension_numbers = #tpu.dot_dimension_numbers<[1], [0], [0], [1], [0, 0, 1, 1], [], []>} : vector<256x256xbf16>, vector<256x256xbf16>, vector<256x256xf32> -> vector<256x256xf32>
    %c0_21 = arith.constant 0 : index
    %c0_22 = arith.constant 0 : index
    %27 = vector.load %arg9[%c0_21, %c0_22] : memref<1x256xf32, #tpu.memory_space<vmem>>, vector<1x256xf32>
    %28 = vector.broadcast %27 : vector<1x256xf32> to vector<256x256xf32>
    %29 = arith.addf %26, %28 : vector<256x256xf32>
    %cst_23 = arith.constant 0.000000e+00 : f32
    %30 = vector.broadcast %cst_23 : f32 to vector<256x256xf32>
    %31 = arith.maximumf %29, %30 : vector<256x256xf32>
    %32 = arith.truncf %31 : vector<256x256xf32> to vector<256x256xbf16>
    %c0_24 = arith.constant 0 : index
    %c0_25 = arith.constant 0 : index
    %33 = vector.load %arg10[%c0_24, %c0_25] : memref<128x256xbf16, #tpu.memory_space<vmem>>, vector<128x256xbf16>
    %cst_26 = arith.constant dense<0.000000e+00> : vector<256x256xf32>
    %34 = tpu.matmul %0, %33, %cst_26 {dimension_numbers = #tpu.dot_dimension_numbers<[1], [0], [0], [1], [0, 0, 1, 1], [], []>} : vector<256x128xbf16>, vector<128x256xbf16>, vector<256x256xf32> -> vector<256x256xf32>
    %c0_27 = arith.constant 0 : index
    %c0_28 = arith.constant 0 : index
    %35 = vector.load %arg11[%c0_27, %c0_28] : memref<256x256xbf16, #tpu.memory_space<vmem>>, vector<256x256xbf16>
    %cst_29 = arith.constant dense<0.000000e+00> : vector<256x256xf32>
    %36 = tpu.matmul %32, %35, %cst_29 {dimension_numbers = #tpu.dot_dimension_numbers<[1], [0], [0], [1], [0, 0, 1, 1], [], []>} : vector<256x256xbf16>, vector<256x256xbf16>, vector<256x256xf32> -> vector<256x256xf32>
    %37 = arith.addf %34, %36 : vector<256x256xf32>
    %c0_30 = arith.constant 0 : index
    %c0_31 = arith.constant 0 : index
    %38 = vector.load %arg12[%c0_30, %c0_31] : memref<1x256xf32, #tpu.memory_space<vmem>>, vector<1x256xf32>
    %39 = vector.broadcast %38 : vector<1x256xf32> to vector<256x256xf32>
    %40 = arith.addf %37, %39 : vector<256x256xf32>
    %cst_32 = arith.constant 0.000000e+00 : f32
    %41 = vector.broadcast %cst_32 : f32 to vector<256x256xf32>
    %42 = arith.maximumf %40, %41 : vector<256x256xf32>
    %43 = arith.truncf %42 : vector<256x256xf32> to vector<256x256xbf16>
    %c0_33 = arith.constant 0 : index
    %c0_34 = arith.constant 0 : index
    %44 = vector.load %arg13[%c0_33, %c0_34] : memref<256x256xbf16, #tpu.memory_space<vmem>>, vector<256x256xbf16>
    %cst_35 = arith.constant dense<0.000000e+00> : vector<256x256xf32>
    %45 = tpu.matmul %43, %44, %cst_35 {dimension_numbers = #tpu.dot_dimension_numbers<[1], [0], [0], [1], [0, 0, 1, 1], [], []>} : vector<256x256xbf16>, vector<256x256xbf16>, vector<256x256xf32> -> vector<256x256xf32>
    %c0_36 = arith.constant 0 : index
    %c0_37 = arith.constant 0 : index
    %46 = vector.load %arg14[%c0_36, %c0_37] : memref<1x256xf32, #tpu.memory_space<vmem>>, vector<1x256xf32>
    %47 = vector.broadcast %46 : vector<1x256xf32> to vector<256x256xf32>
    %48 = arith.addf %45, %47 : vector<256x256xf32>
    %cst_38 = arith.constant 0.000000e+00 : f32
    %49 = vector.broadcast %cst_38 : f32 to vector<256x256xf32>
    %50 = arith.maximumf %48, %49 : vector<256x256xf32>
    %51 = arith.truncf %50 : vector<256x256xf32> to vector<256x256xbf16>
    %c0_39 = arith.constant 0 : index
    %c0_40 = arith.constant 0 : index
    %52 = vector.load %arg15[%c0_39, %c0_40] : memref<256x256xbf16, #tpu.memory_space<vmem>>, vector<256x256xbf16>
    %cst_41 = arith.constant dense<0.000000e+00> : vector<256x256xf32>
    %53 = tpu.matmul %51, %52, %cst_41 {dimension_numbers = #tpu.dot_dimension_numbers<[1], [0], [0], [1], [0, 0, 1, 1], [], []>} : vector<256x256xbf16>, vector<256x256xbf16>, vector<256x256xf32> -> vector<256x256xf32>
    %c0_42 = arith.constant 0 : index
    %c0_43 = arith.constant 0 : index
    %54 = vector.load %arg16[%c0_42, %c0_43] : memref<1x256xf32, #tpu.memory_space<vmem>>, vector<1x256xf32>
    %55 = vector.broadcast %54 : vector<1x256xf32> to vector<256x256xf32>
    %56 = arith.addf %53, %55 : vector<256x256xf32>
    %cst_44 = arith.constant 0.000000e+00 : f32
    %57 = vector.broadcast %cst_44 : f32 to vector<256x256xf32>
    %58 = arith.maximumf %56, %57 : vector<256x256xf32>
    %59 = arith.truncf %58 : vector<256x256xf32> to vector<256x256xbf16>
    %c0_45 = arith.constant 0 : index
    %c0_46 = arith.constant 0 : index
    %60 = vector.load %arg17[%c0_45, %c0_46] : memref<256x256xbf16, #tpu.memory_space<vmem>>, vector<256x256xbf16>
    %cst_47 = arith.constant dense<0.000000e+00> : vector<256x256xf32>
    %61 = tpu.matmul %59, %60, %cst_47 {dimension_numbers = #tpu.dot_dimension_numbers<[1], [0], [0], [1], [0, 0, 1, 1], [], []>} : vector<256x256xbf16>, vector<256x256xbf16>, vector<256x256xf32> -> vector<256x256xf32>
    %c0_48 = arith.constant 0 : index
    %c0_49 = arith.constant 0 : index
    %62 = vector.load %arg18[%c0_48, %c0_49] : memref<1x256xf32, #tpu.memory_space<vmem>>, vector<1x256xf32>
    %63 = vector.broadcast %62 : vector<1x256xf32> to vector<256x256xf32>
    %64 = arith.addf %61, %63 : vector<256x256xf32>
    %cst_50 = arith.constant 0.000000e+00 : f32
    %65 = vector.broadcast %cst_50 : f32 to vector<256x256xf32>
    %66 = arith.maximumf %64, %65 : vector<256x256xf32>
    %67 = arith.truncf %66 : vector<256x256xf32> to vector<256x256xbf16>
    %c0_51 = arith.constant 0 : index
    %c0_52 = arith.constant 0 : index
    %68 = vector.load %arg19[%c0_51, %c0_52] : memref<256x384xbf16, #tpu.memory_space<vmem>>, vector<256x384xbf16>
    %cst_53 = arith.constant dense<0.000000e+00> : vector<256x384xf32>
    %69 = tpu.matmul %67, %68, %cst_53 {dimension_numbers = #tpu.dot_dimension_numbers<[1], [0], [0], [1], [0, 0, 1, 1], [], []>} : vector<256x256xbf16>, vector<256x384xbf16>, vector<256x384xf32> -> vector<256x384xf32>
    %c0_54 = arith.constant 0 : index
    %c0_55 = arith.constant 0 : index
    %70 = vector.load %arg20[%c0_54, %c0_55] : memref<1x384xf32, #tpu.memory_space<vmem>>, vector<1x384xf32>
    %71 = vector.broadcast %70 : vector<1x384xf32> to vector<256x384xf32>
    %72 = arith.addf %69, %71 : vector<256x384xf32>
    %73 = vector.extract_strided_slice %72 {offsets = [0, 0], sizes = [256, 256], strides = [1, 1]} : vector<256x384xf32> to vector<256x256xf32>
    %74 = arith.truncf %73 : vector<256x256xf32> to vector<256x256xbf16>
    %75 = vector.extract_strided_slice %72 {offsets = [0, 256], sizes = [256, 1], strides = [1, 1]} : vector<256x384xf32> to vector<256x1xf32>
    %c0_56 = arith.constant 0 : index
    %c0_57 = arith.constant 0 : index
    %76 = vector.load %arg21[%c0_56, %c0_57] : memref<256x128xbf16, #tpu.memory_space<vmem>>, vector<256x128xbf16>
    %cst_58 = arith.constant dense<0.000000e+00> : vector<256x128xf32>
    %77 = tpu.matmul %74, %76, %cst_58 {dimension_numbers = #tpu.dot_dimension_numbers<[1], [0], [0], [1], [0, 0, 1, 1], [], []>} : vector<256x256xbf16>, vector<256x128xbf16>, vector<256x128xf32> -> vector<256x128xf32>
    %c0_59 = arith.constant 0 : index
    %c0_60 = arith.constant 0 : index
    %78 = vector.load %arg22[%c0_59, %c0_60] : memref<128x128xbf16, #tpu.memory_space<vmem>>, vector<128x128xbf16>
    %cst_61 = arith.constant dense<0.000000e+00> : vector<256x128xf32>
    %79 = tpu.matmul %0, %78, %cst_61 {dimension_numbers = #tpu.dot_dimension_numbers<[1], [0], [0], [1], [0, 0, 1, 1], [], []>} : vector<256x128xbf16>, vector<128x128xbf16>, vector<256x128xf32> -> vector<256x128xf32>
    %80 = arith.addf %77, %79 : vector<256x128xf32>
    %c0_62 = arith.constant 0 : index
    %c0_63 = arith.constant 0 : index
    %81 = vector.load %arg23[%c0_62, %c0_63] : memref<1x128xf32, #tpu.memory_space<vmem>>, vector<1x128xf32>
    %82 = vector.broadcast %81 : vector<1x128xf32> to vector<256x128xf32>
    %83 = arith.addf %80, %82 : vector<256x128xf32>
    %cst_64 = arith.constant 0.000000e+00 : f32
    %84 = vector.broadcast %cst_64 : f32 to vector<256x128xf32>
    %85 = arith.maximumf %83, %84 : vector<256x128xf32>
    %86 = arith.truncf %85 : vector<256x128xf32> to vector<256x128xbf16>
    %c0_65 = arith.constant 0 : index
    %c0_66 = arith.constant 0 : index
    %87 = vector.load %arg24[%c0_65, %c0_66] : memref<128x8xbf16, #tpu.memory_space<vmem>>, vector<128x8xbf16>
    %cst_67 = arith.constant dense<0.000000e+00> : vector<256x8xf32>
    %88 = tpu.matmul %86, %87, %cst_67 {dimension_numbers = #tpu.dot_dimension_numbers<[1], [0], [0], [1], [0, 0, 1, 1], [], []>} : vector<256x128xbf16>, vector<128x8xbf16>, vector<256x8xf32> -> vector<256x8xf32>
    %c0_68 = arith.constant 0 : index
    %c0_69 = arith.constant 0 : index
    %89 = vector.load %arg25[%c0_68, %c0_69] : memref<1x8xf32, #tpu.memory_space<vmem>>, vector<1x8xf32>
    %90 = vector.broadcast %89 : vector<1x8xf32> to vector<256x8xf32>
    %91 = arith.addf %88, %90 : vector<256x8xf32>
    %92 = arith.negf %91 : vector<256x8xf32>
    %93 = math.exp %92 : vector<256x8xf32>
    %cst_70 = arith.constant 1.000000e+00 : f32
    %94 = vector.broadcast %cst_70 : f32 to vector<256x8xf32>
    %95 = arith.addf %94, %93 : vector<256x8xf32>
    %96 = arith.divf %94, %95 : vector<256x8xf32>
    %97 = tpu.iota {dimensions = array<i32: 1>} : vector<256x8xi32>
    %c3_i32 = arith.constant 3 : i32
    %98 = vector.broadcast %c3_i32 : i32 to vector<256x8xi32>
    %99 = arith.cmpi eq, %97, %98 : vector<256x8xi32>
    %100 = vector.shape_cast %75 : vector<256x1xf32> to vector<256x1xf32>
    %101 = vector.broadcast %100 : vector<256x1xf32> to vector<256x8xf32>
    %102 = arith.select %99, %101, %96 : vector<256x8xi1>, vector<256x8xf32>
    %c0_71 = arith.constant 0 : index
    %c0_72 = arith.constant 0 : index
    %103 = vector.load %arg26[%c0_71, %c0_72] : memref<256x8xf32, #tpu.memory_space<vmem>>, vector<256x8xf32>
    tpu.vector_store %arg26[%c0_71, %c0_72], %102 {strides = array<i32>} : memref<256x8xf32, #tpu.memory_space<vmem>>, vector<256x8xf32>,
    return
  }
  func.func @transform_0(%arg0: i32) -> (i32, i32) {
    %c0_i32 = arith.constant 0 : i32
    %c0_i32_0 = arith.constant 0 : i32
    return %arg0, %c0_i32 : i32, i32
  }
  func.func @transform_1(%arg0: i32) -> (i32, i32) {
    %c0_i32 = arith.constant 0 : i32
    %c0_i32_0 = arith.constant 0 : i32
    %c0_i32_1 = arith.constant 0 : i32
    return %c0_i32, %c0_i32_0 : i32, i32
  }
  func.func @transform_2(%arg0: i32) -> (i32, i32) {
    %c0_i32 = arith.constant 0 : i32
    %c0_i32_0 = arith.constant 0 : i32
    %c0_i32_1 = arith.constant 0 : i32
    return %c0_i32, %c0_i32_0 : i32, i32
  }
  func.func @transform_3(%arg0: i32) -> (i32, i32) {
    %c0_i32 = arith.constant 0 : i32
    %c0_i32_0 = arith.constant 0 : i32
    %c0_i32_1 = arith.constant 0 : i32
    return %c0_i32, %c0_i32_0 : i32, i32
  }
  func.func @transform_4(%arg0: i32) -> (i32, i32) {
    %c0_i32 = arith.constant 0 : i32
    %c0_i32_0 = arith.constant 0 : i32
    %c0_i32_1 = arith.constant 0 : i32
    return %c0_i32, %c0_i32_0 : i32, i32
  }
  func.func @transform_5(%arg0: i32) -> (i32, i32) {
    %c0_i32 = arith.constant 0 : i32
    %c0_i32_0 = arith.constant 0 : i32
    %c0_i32_1 = arith.constant 0 : i32
    return %c0_i32, %c0_i32_0 : i32, i32
  }
  func.func @transform_6(%arg0: i32) -> (i32, i32) {
    %c0_i32 = arith.constant 0 : i32
    %c0_i32_0 = arith.constant 0 : i32
    %c0_i32_1 = arith.constant 0 : i32
    return %c0_i32, %c0_i32_0 : i32, i32
  }
  func.func @transform_7(%arg0: i32) -> (i32, i32) {
    %c0_i32 = arith.constant 0 : i32
    %c0_i32_0 = arith.constant 0 : i32
    %c0_i32_1 = arith.constant 0 : i32
    return %c0_i32, %c0_i32_0 : i32, i32
  }
  func.func @transform_8(%arg0: i32) -> (i32, i32) {
    %c0_i32 = arith.constant 0 : i32
    %c0_i32_0 = arith.constant 0 : i32
    %c0_i32_1 = arith.constant 0 : i32
    return %c0_i32, %c0_i32_0 : i32, i32
  }
  func.func @transform_9(%arg0: i32) -> (i32, i32) {
    %c0_i32 = arith.constant 0 : i32
    %c0_i32_0 = arith.constant 0 : i32
    %c0_i32_1 = arith.constant 0 : i32
    return %c0_i32, %c0_i32_0 : i32, i32
  }
  func.func @transform_10(%arg0: i32) -> (i32, i32) {
    %c0_i32 = arith.constant 0 : i32
    %c0_i32_0 = arith.constant 0 : i32
    %c0_i32_1 = arith.constant 0 : i32
    return %c0_i32, %c0_i32_0 : i32, i32
  }
  func.func @transform_11(%arg0: i32) -> (i32, i32) {
    %c0_i32 = arith.constant 0 : i32
    %c0_i32_0 = arith.constant 0 : i32
    %c0_i32_1 = arith.constant 0 : i32
    return %c0_i32, %c0_i32_0 : i32, i32
  }
  func.func @transform_12(%arg0: i32) -> (i32, i32) {
    %c0_i32 = arith.constant 0 : i32
    %c0_i32_0 = arith.constant 0 : i32
    %c0_i32_1 = arith.constant 0 : i32
    return %c0_i32, %c0_i32_0 : i32, i32
  }
  func.func @transform_13(%arg0: i32) -> (i32, i32) {
    %c0_i32 = arith.constant 0 : i32
    %c0_i32_0 = arith.constant 0 : i32
    %c0_i32_1 = arith.constant 0 : i32
    return %c0_i32, %c0_i32_0 : i32, i32
  }
  func.func @transform_14(%arg0: i32) -> (i32, i32) {
    %c0_i32 = arith.constant 0 : i32
    %c0_i32_0 = arith.constant 0 : i32
    %c0_i32_1 = arith.constant 0 : i32
    return %c0_i32, %c0_i32_0 : i32, i32
  }
  func.func @transform_15(%arg0: i32) -> (i32, i32) {
    %c0_i32 = arith.constant 0 : i32
    %c0_i32_0 = arith.constant 0 : i32
    %c0_i32_1 = arith.constant 0 : i32
    return %c0_i32, %c0_i32_0 : i32, i32
  }
  func.func @transform_16(%arg0: i32) -> (i32, i32) {
    %c0_i32 = arith.constant 0 : i32
    %c0_i32_0 = arith.constant 0 : i32
    %c0_i32_1 = arith.constant 0 : i32
    return %c0_i32, %c0_i32_0 : i32, i32
  }
  func.func @transform_17(%arg0: i32) -> (i32, i32) {
    %c0_i32 = arith.constant 0 : i32
    %c0_i32_0 = arith.constant 0 : i32
    %c0_i32_1 = arith.constant 0 : i32
    return %c0_i32, %c0_i32_0 : i32, i32
  }
  func.func @transform_18(%arg0: i32) -> (i32, i32) {
    %c0_i32 = arith.constant 0 : i32
    %c0_i32_0 = arith.constant 0 : i32
    %c0_i32_1 = arith.constant 0 : i32
    return %c0_i32, %c0_i32_0 : i32, i32
  }
  func.func @transform_19(%arg0: i32) -> (i32, i32) {
    %c0_i32 = arith.constant 0 : i32
    %c0_i32_0 = arith.constant 0 : i32
    %c0_i32_1 = arith.constant 0 : i32
    return %c0_i32, %c0_i32_0 : i32, i32
  }
  func.func @transform_20(%arg0: i32) -> (i32, i32) {
    %c0_i32 = arith.constant 0 : i32
    %c0_i32_0 = arith.constant 0 : i32
    %c0_i32_1 = arith.constant 0 : i32
    return %c0_i32, %c0_i32_0 : i32, i32
  }
  func.func @transform_21(%arg0: i32) -> (i32, i32) {
    %c0_i32 = arith.constant 0 : i32
    %c0_i32_0 = arith.constant 0 : i32
    %c0_i32_1 = arith.constant 0 : i32
    return %c0_i32, %c0_i32_0 : i32, i32
  }
  func.func @transform_22(%arg0: i32) -> (i32, i32) {
    %c0_i32 = arith.constant 0 : i32
    %c0_i32_0 = arith.constant 0 : i32
    %c0_i32_1 = arith.constant 0 : i32
    return %c0_i32, %c0_i32_0 : i32, i32
  }
  func.func @transform_23(%arg0: i32) -> (i32, i32) {
    %c0_i32 = arith.constant 0 : i32
    %c0_i32_0 = arith.constant 0 : i32
    %c0_i32_1 = arith.constant 0 : i32
    return %c0_i32, %c0_i32_0 : i32, i32
  }
  func.func @transform_24(%arg0: i32) -> (i32, i32) {
    %c0_i32 = arith.constant 0 : i32
    %c0_i32_0 = arith.constant 0 : i32
    %c0_i32_1 = arith.constant 0 : i32
    return %c0_i32, %c0_i32_0 : i32, i32
  }
  func.func @transform_25(%arg0: i32) -> (i32, i32) {
    %c0_i32 = arith.constant 0 : i32
    %c0_i32_0 = arith.constant 0 : i32
    return %arg0, %c0_i32 : i32, i32
  }
}

</mosaic_0001>

<bundles_post_ra>
// kernel: vanilla_mlp_forward.1
= control target key start
LH: loop header
LB: loop body
LE: loop exit
PB: predicated region body
PF: predicated region fallthrough
CT: control target
= control target key end

     0   :  { %s10780_s29 = smov 0   ;;  %s15597_s0 = inlined_call_operand.vmem [shape: bf16[512,128], index: 0, kind: input, shape index: {}]   ;;  %s15598_s1 = inlined_call_operand.vmem [shape: bf16[128,256], index: 1, kind: input, shape index: {}]   ;;  %s15599_s2 = inlined_call_operand.vmem [shape: f32[1,256], index: 2, kind: input, shape index: {}]   ;;  %s15600_s3 = inlined_call_operand.vmem [shape: bf16[256,256], index: 3, kind: input, shape index: {}]   ;;  %s15601_s4 = inlined_call_operand.vmem [shape: f32[1,256], index: 4, kind: input, shape index: {}]   ;;  %s15602_s5 = inlined_call_operand.vmem [shape: bf16[256,256], index: 5, kind: input, shape index: {}]   ;;  %s15603_s6 = inlined_call_operand.vmem [shape: f32[1,256], index: 6, kind: input, shape index: {}]   ;;  %s15604_s7 = inlined_call_operand.vmem [shape: bf16[256,256], index: 7, kind: input, shape index: {}]   ;;  %s15605_s8 = inlined_call_operand.vmem [shape: f32[1,256], index: 8, kind: input, shape index: {}]   ;;  %s15606_s9 = inlined_call_operand.vmem [shape: bf16[128,256], index: 9, kind: input, shape index: {}]   ;;  %s15607_s10 = inlined_call_operand.vmem [shape: bf16[256,256], index: 10, kind: input, shape index: {}]   ;;  %s15608_s11 = inlined_call_operand.vmem [shape: f32[1,256], index: 11, kind: input, shape index: {}]   ;;  %s15609_s12 = inlined_call_operand.vmem [shape: bf16[256,256], index: 12, kind: input, shape index: {}]   ;;  %s15610_s13 = inlined_call_operand.vmem [shape: f32[1,256], index: 13, kind: input, shape index: {}]   ;;  %s15611_s14 = inlined_call_operand.vmem [shape: bf16[256,256], index: 14, kind: input, shape index: {}]   ;;  %s15612_s15 = inlined_call_operand.vmem [shape: f32[1,256], index: 15, kind: input, shape index: {}]   ;;  %s15613_s16 = inlined_call_operand.vmem [shape: bf16[256,256], index: 16, kind: input, shape index: {}]   ;;  %s15614_s17 = inlined_call_operand.vmem [shape: f32[1,256], index: 17, kind: input, shape index: {}]   ;;  %s15615_s18 = inlined_call_operand.vmem [shape: bf16[256,384], index: 18, kind: input, shape index: {}]   ;;  %s15616_s19 = inlined_call_operand.vmem [shape: f32[1,384], index: 19, kind: input, shape index: {}]   ;;  %s15617_s20 = inlined_call_operand.vmem [shape: bf16[256,128], index: 20, kind: input, shape index: {}]   ;;  %s15618_s21 = inlined_call_operand.vmem [shape: bf16[128,128], index: 21, kind: input, shape index: {}]   ;;  %s15619_s22 = inlined_call_operand.vmem [shape: f32[1,128], index: 22, kind: input, shape index: {}]   ;;  %s15620_s23 = inlined_call_operand.vmem [shape: bf16[128,8], index: 23, kind: input, shape index: {}]   ;;  %s15621_s24 = inlined_call_operand.vmem [shape: f32[1,8], index: 24, kind: input, shape index: {}]   ;;  %s15622_s25 = inlined_call_operand.vmem [shape: f32[512,8], index: 25, kind: output, shape index: {}]  }
   0x1   :  { %15644 = sst [smem:[#allocation30_spill]] %s15597_s0 }
   0x2   :  { %15645 = sst [smem:[#allocation31_spill]] %s15598_s1 }
   0x3   :  { %15646 = sst [smem:[#allocation32_spill]] %s15599_s2 }
   0x4   :  { %15647 = sst [smem:[#allocation33_spill]] %s15600_s3 }
   0x5   :  { %15648 = sst [smem:[#allocation34_spill]] %s15601_s4 }
   0x6   :  { %15649 = sst [smem:[#allocation35_spill]] %s15602_s5 }
   0x7   :  { %15650 = sst [smem:[#allocation36_spill]] %s15603_s6 }
   0x8   :  { %15651 = sst [smem:[#allocation37_spill]] %s15604_s7 }
   0x9   :  { %15652 = sst [smem:[#allocation38_spill]] %s15605_s8 }
   0xa   :  { %15653 = sst [smem:[#allocation39_spill]] %s15606_s9 }
   0xb   :  { %15654 = sst [smem:[#allocation40_spill]] %s15622_s25 }
   0xc LB: > { %15655 = sst [smem:[#allocation2_spill]] %s10647_s29  ;;  %s8646_s2 = sadd.s32 4294967295, %s10647_s29   ;;  %s10647_s29 = sphi %s10780_s29, %s35_s29  }
   0xd   : > { %p8650_p0 = scmp.ge.s32.totalorder %s10647_s29, 1  ;;  %p688_p1 = scmp.lt.s32.totalorder %s10647_s29, 3 }
   0xf   : > { %p689_p2 = pnand %p8650_p0, %p688_p1 }
  0x11   : > { %692 = sbr.rel (%p689_p2) target bundleno = 3202 (0xc82), region = 120 }
  0x16   : > { %s15656_s7 = sld [smem:[#allocation31_spill]]  ;;  %s8651_s6 = sshll.u32 %s8646_s2, 5  ;;  %vm8557_vm4 = vcmask 64512  }
  0x17   : > { %p757_p3 = scmp.lt.s32.totalorder %s8651_s6, 63  ;;  %s15657_s2 = sld [smem:[#allocation30_spill]] }
  0x18   : > { %s15658_s25 = sld [smem:[#allocation33_spill]] }
  0x19   : > { %s15774_s6 = smov (!%p757_p3, %s8651_s6), 63  ;;  %s15659_s4 = sld [smem:[#allocation35_spill]] }
  0x1a   : > { %s8652_s28 = sshll.u32 %s15774_s6, 2  ;;  %s15660_s30 = sld [smem:[#allocation32_spill]] }
  0x1b   : > { %s15661_s8 = sld [smem:[#allocation34_spill]]  ;;  %s8654_s27 = sshll.u32 %s15774_s6, 3 }
  0x1c   : > { %v8777_v0 = vld [vmem:[%s15656_s7 + $0x70] sm:$0xf]  ;;  %v10128_v1 = vld [vmem:[%s15656_s7 + $0x74] sm:$0xf0]  ;;  %v10127_v2 = vld [vmem:[%s15656_s7 + $0x74] sm:$0xf] }
  0x1d   : > { %v8778_v3 = vor.u32 %v10128_v1, %v8777_v0  ;;  %v8779_v4 = vld [vmem:[%s15656_s7 + $0x78] sm:$0xf0]  ;;  %v8769_v5 = vld [vmem:[%s15656_s7 + $0x60] sm:$0xf]  ;;  %v10126_v6 = vld [vmem:[%s15656_s7 + $0x64] sm:$0xf0]  ;;  %s10892_s29 = scalar_lea.vmem %s15657_s2, %s8652_s28 }
  0x1e   : > { %v8782_v7 = vor.u32 %v10127_v2, %v8779_v4  ;;  %v10125_v8 = vld [vmem:[%s15656_s7 + $0x64] sm:$0xf]  ;;  %v8771_v9 = vld [vmem:[%s15656_s7 + $0x68] sm:$0xf0]  ;;  %v8770_v10 = vor.u32 %v10126_v6, %v8769_v5  ;;  %v8761_v12 = vld [vmem:[%s15656_s7 + $0x50] sm:$0xf] }
  0x1f   : > { %998 = vmatpush.bf16.msra.mxu0 %v8778_v3  ;;  %10449 = vmatpush.bf16.msra.mxu2 %v8778_v3  ;;  %v8774_v11 = vor.u32 %v10125_v8, %v8771_v9  ;;  %v10124_v13 = vld [vmem:[%s15656_s7 + $0x54] sm:$0xf0]  ;;  %v10123_v14 = vld [vmem:[%s15656_s7 + $0x54] sm:$0xf]  ;;  %v8763_v15 = vld [vmem:[%s15656_s7 + $0x58] sm:$0xf0] }
  0x20   : > { %1087 = vmatpush.bf16.msra.mxu1 %v8782_v7  ;;  %10457 = vmatpush.bf16.msra.mxu3 %v8782_v7  ;;  %v8762_v16 = vor.u32 %v10124_v13, %v8761_v12  ;;  %v8766_v17 = vor.u32 %v10123_v14, %v8763_v15  ;;  %v8753_v18 = vld [vmem:[%s15656_s7 + $0x40] sm:$0xf]  ;;  %v10122_v19 = vld [vmem:[%s15656_s7 + $0x44] sm:$0xf0]  ;;  %v10121_v20 = vld [vmem:[%s15656_s7 + $0x44] sm:$0xf] }
  0x21   : > { %v8755_v21 = vld [vmem:[%s15656_s7 + $0x48] sm:$0xf0]  ;;  %v8754_v22 = vor.u32 %v10122_v19, %v8753_v18  ;;  %v8745_v23 = vld [vmem:[%s15656_s7 + $0x30] sm:$0xf]  ;;  %v10120_v24 = vld [vmem:[%s15656_s7 + $0x34] sm:$0xf0] }
  0x22   : > { %v8758_v25 = vor.u32 %v10121_v20, %v8755_v21  ;;  %v10119_v26 = vld [vmem:[%s15656_s7 + $0x34] sm:$0xf]  ;;  %v8747_v27 = vld [vmem:[%s15656_s7 + $0x38] sm:$0xf0]  ;;  %v8746_v28 = vor.u32 %v10120_v24, %v8745_v23  ;;  %v8737_v30 = vld [vmem:[%s15656_s7 + $0x20] sm:$0xf] }
  0x23   : > { %999 = vmatpush.bf16.msra.mxu0 %v8770_v10  ;;  %10450 = vmatpush.bf16.msra.mxu2 %v8770_v10  ;;  %v8750_v29 = vor.u32 %v10119_v26, %v8747_v27  ;;  %v10118_v31 = vld [vmem:[%s15656_s7 + $0x24] sm:$0xf0]  ;;  %v10117_v32 = vld [vmem:[%s15656_s7 + $0x24] sm:$0xf]  ;;  %v8739_v33 = vld [vmem:[%s15656_s7 + $0x28] sm:$0xf0] }
  0x24   : > { %1088 = vmatpush.bf16.msra.mxu1 %v8774_v11  ;;  %10458 = vmatpush.bf16.msra.mxu3 %v8774_v11  ;;  %v8738_v34 = vor.u32 %v10118_v31, %v8737_v30  ;;  %v8742_v35 = vor.u32 %v10117_v32, %v8739_v33  ;;  %v8729_v36 = vld [vmem:[%s15656_s7 + $0x10] sm:$0xf]  ;;  %v10116_v37 = vld [vmem:[%s15656_s7 + $0x14] sm:$0xf0]  ;;  %v10115_v38 = vld [vmem:[%s15656_s7 + $0x14] sm:$0xf] }
  0x25   : > { %v8731_v39 = vld [vmem:[%s15656_s7 + $0x18] sm:$0xf0]  ;;  %v8730_v40 = vor.u32 %v10116_v37, %v8729_v36  ;;  %v8721_v42 = vld [vmem:[%s15656_s7] sm:$0xf]  ;;  %v10114_v43 = vld [vmem:[%s15656_s7 + $0x4] sm:$0xf0] }
  0x26   : > { %v8734_v41 = vor.u32 %v10115_v38, %v8731_v39  ;;  %v10113_v44 = vld [vmem:[%s15656_s7 + $0x4] sm:$0xf]  ;;  %v8723_v45 = vld [vmem:[%s15656_s7 + $0x8] sm:$0xf0]  ;;  %v8841_v46 = vld [vmem:[%s15658_s25 + $0x70] sm:$0xf]  ;;  %v8722_v48 = vor.u32 %v10114_v43, %v8721_v42 }
  0x27   : > { %1000 = vmatpush.bf16.msra.mxu0 %v8762_v16  ;;  %10451 = vmatpush.bf16.msra.mxu2 %v8762_v16  ;;  %v10144_v47 = vld [vmem:[%s15658_s25 + $0x74] sm:$0xf0]  ;;  %v8726_v49 = vor.u32 %v10113_v44, %v8723_v45  ;;  %v10097_v50 = vld [vmem:[%s10892_s29] sm:$0xff]  ;;  %v10142_v54 = vld [vmem:[%s15658_s25 + $0x64] sm:$0xf0]  ;;  %s15662_s5 = sld [smem:[#allocation37_spill]] }
  0x28   : > { %1089 = vmatpush.bf16.msra.mxu1 %v8766_v17  ;;  %10459 = vmatpush.bf16.msra.mxu3 %v8766_v17  ;;  %v8842_v51 = vor.u32 %v10144_v47, %v8841_v46  ;;  %v10105_v52 = vld [vmem:[%s10892_s29 + $0x40] sm:$0xff]  ;;  %v8825_v56 = vld [vmem:[%s15658_s25 + $0x50] sm:$0xf]  ;;  %v10140_v57 = vld [vmem:[%s15658_s25 + $0x54] sm:$0xf0]  ;;  %s15663_s2 = sld [smem:[#allocation36_spill]] }
  0x29   : > { %v8833_v53 = vld [vmem:[%s15658_s25 + $0x60] sm:$0xf]  ;;  %v8826_v58 = vor.u32 %v10140_v57, %v8825_v56  ;;  %v10098_v59 = vld [vmem:[%s10892_s29 + $0x8] sm:$0xff]  ;;  %v10099_v0 = vld [vmem:[%s10892_s29 + $0x10] sm:$0xff]  ;;  %s15664_s1 = sld [smem:[#allocation38_spill]] }
  0x2a   : > { %v8834_v55 = vor.u32 %v10142_v54, %v8833_v53  ;;  %v10106_v60 = vld [vmem:[%s10892_s29 + $0x48] sm:$0xff]  ;;  %v8817_v61 = vld [vmem:[%s15658_s25 + $0x40] sm:$0xf]  ;;  %v10107_v1 = vld [vmem:[%s10892_s29 + $0x50] sm:$0xff]  ;;  %s15665_s28 = sld [smem:[#allocation39_spill]] }
  0x2b   : > { %1001 = vmatpush.bf16.msra.mxu0 %v8754_v22  ;;  %10452 = vmatpush.bf16.msra.mxu2 %v8754_v22  ;;  %v10138_v62 = vld [vmem:[%s15658_s25 + $0x44] sm:$0xf0]  ;;  %v8809_v2 = vld [vmem:[%s15658_s25 + $0x30] sm:$0xf]  ;;  %v10136_v3 = vld [vmem:[%s15658_s25 + $0x34] sm:$0xf0] }
  0x2c   : > { %1090 = vmatpush.bf16.msra.mxu1 %v8758_v25  ;;  %10460 = vmatpush.bf16.msra.mxu3 %v8758_v25  ;;  %v8818_v63 = vor.u32 %v10138_v62, %v8817_v61  ;;  %v8810_v4 = vor.u32 %v10136_v3, %v8809_v2  ;;  %v10100_v5 = vld [vmem:[%s10892_s29 + $0x18] sm:$0xff]  ;;  %v8801_v7 = vld [vmem:[%s15658_s25 + $0x20] sm:$0xf]  ;;  %v10134_v8 = vld [vmem:[%s15658_s25 + $0x24] sm:$0xf0]  ;;  %s15771_s6 = sld [smem:[#allocation40_spill]] }
  0x2d   : > { %v10108_v6 = vld [vmem:[%s10892_s29 + $0x58] sm:$0xff]  ;;  %v8802_v9 = vor.u32 %v10134_v8, %v8801_v7  ;;  %v10101_v10 = vld [vmem:[%s10892_s29 + $0x20] sm:$0xff]  ;;  %v8793_v12 = vld [vmem:[%s15658_s25 + $0x10] sm:$0xf] }
  0x2e   : > { %v10109_v11 = vld [vmem:[%s10892_s29 + $0x60] sm:$0xff]  ;;  %v10132_v13 = vld [vmem:[%s15658_s25 + $0x14] sm:$0xf0]  ;;  %v8905_v15 = vld [vmem:[%s15658_s25 + $0xf0] sm:$0xf] }
  0x2f   : > { %1002 = vmatpush.bf16.msra.mxu0 %v8746_v28  ;;  %10453 = vmatpush.bf16.msra.mxu2 %v8746_v28  ;;  %v8794_v14 = vor.u32 %v10132_v13, %v8793_v12  ;;  %v10160_v16 = vld [vmem:[%s15658_s25 + $0xf4] sm:$0xf0]  ;;  %v10143_v17 = vld [vmem:[%s15658_s25 + $0x74] sm:$0xf]  ;;  %v8843_v19 = vld [vmem:[%s15658_s25 + $0x78] sm:$0xf0] }
  0x30   : > { %1091 = vmatpush.bf16.msra.mxu1 %v8750_v29  ;;  %10461 = vmatpush.bf16.msra.mxu3 %v8750_v29  ;;  %v8906_v18 = vor.u32 %v10160_v16, %v8905_v15  ;;  %v10159_v20 = vld [vmem:[%s15658_s25 + $0xf4] sm:$0xf]  ;;  %v8907_v21 = vld [vmem:[%s15658_s25 + $0xf8] sm:$0xf0]  ;;  %v8846_v22 = vor.u32 %v10143_v17, %v8843_v19  ;;  %v10102_v24 = vld [vmem:[%s10892_s29 + $0x28] sm:$0xff] }
  0x31   : > { %v8910_v23 = vor.u32 %v10159_v20, %v8907_v21  ;;  %v10110_v25 = vld [vmem:[%s10892_s29 + $0x68] sm:$0xff]  ;;  %v8897_v26 = vld [vmem:[%s15658_s25 + $0xe0] sm:$0xf]  ;;  %v10141_v28 = vld [vmem:[%s15658_s25 + $0x64] sm:$0xf] }
  0x32   : > { %v10158_v27 = vld [vmem:[%s15658_s25 + $0xe4] sm:$0xf0]  ;;  %v8835_v30 = vld [vmem:[%s15658_s25 + $0x68] sm:$0xf0]  ;;  %v10157_v31 = vld [vmem:[%s15658_s25 + $0xe4] sm:$0xf]  ;;  %s15331_s0 = scalar_lea.vmem %s15771_s6, %s8654_s27 }
  0x33   : > { %1003 = vmatpush.bf16.msra.mxu0 %v8738_v34  ;;  %10454 = vmatpush.bf16.msra.mxu2 %v8738_v34  ;;  %v8898_v29 = vor.u32 %v10158_v27, %v8897_v26  ;;  %v8899_v32 = vld [vmem:[%s15658_s25 + $0xe8] sm:$0xf0]  ;;  %v8838_v33 = vor.u32 %v10141_v28, %v8835_v30  ;;  %v10156_v36 = vld [vmem:[%s15658_s25 + $0xd4] sm:$0xf0]  ;;  %v10139_v38 = vld [vmem:[%s15658_s25 + $0x54] sm:$0xf] }
  0x34   : > { %1092 = vmatpush.bf16.msra.mxu1 %v8742_v35  ;;  %10462 = vmatpush.bf16.msra.mxu3 %v8742_v35  ;;  %v8902_v34 = vor.u32 %v10157_v31, %v8899_v32  ;;  %v8889_v35 = vld [vmem:[%s15658_s25 + $0xd0] sm:$0xf]  ;;  %v8827_v39 = vld [vmem:[%s15658_s25 + $0x58] sm:$0xf0]  ;;  %v8881_v43 = vld [vmem:[%s15658_s25 + $0xc0] sm:$0xf] }
  0x35   : > { %v8890_v37 = vor.u32 %v10156_v36, %v8889_v35  ;;  %v8891_v42 = vld [vmem:[%s15658_s25 + $0xd8] sm:$0xf0]  ;;  %v10154_v44 = vld [vmem:[%s15658_s25 + $0xc4] sm:$0xf0]  ;;  %v10137_v46 = vld [vmem:[%s15658_s25 + $0x44] sm:$0xf] }
  0x36   : > { %v8819_v47 = vld [vmem:[%s15658_s25 + $0x48] sm:$0xf0]  ;;  %v10103_v56 = vld [vmem:[%s10892_s29 + $0x30] sm:$0xff]  ;;  %v8811_v62 = vld [vmem:[%s15658_s25 + $0x38] sm:$0xf0] }
  0x37   : > { %1004 = vmatpush.bf16.msra.mxu0 %v8730_v40  ;;  %10455 = vmatpush.bf16.msra.mxu2 %v8730_v40  ;;  %v10155_v40 = vld [vmem:[%s15658_s25 + $0xd4] sm:$0xf]  ;;  %v8822_v54 = vor.u32 %v10137_v46, %v8819_v47  ;;  %v8865_v3 = vld [vmem:[%s15658_s25 + $0xa0] sm:$0xf]  ;;  %v8803_v7 = vld [vmem:[%s15658_s25 + $0x28] sm:$0xf0] }
  0x38   : > { %1093 = vmatpush.bf16.msra.mxu1 %v8734_v41  ;;  %10463 = vmatpush.bf16.msra.mxu3 %v8734_v41  ;;  %v8830_v41 = vor.u32 %v10139_v38, %v8827_v39  ;;  %v8894_v45 = vor.u32 %v10155_v40, %v8891_v42  ;;  %v10111_v57 = vld [vmem:[%s10892_s29 + $0x70] sm:$0xff]  ;;  %v10149_v8 = vld [vmem:[%s15658_s25 + $0xa4] sm:$0xf]  ;;  %v10148_v13 = vld [vmem:[%s15658_s25 + $0x94] sm:$0xf0] }
  0x39   : > { %v8857_v12 = vld [vmem:[%s15658_s25 + $0x90] sm:$0xf]  ;;  %v8795_v16 = vld [vmem:[%s15658_s25 + $0x18] sm:$0xf0]  ;;  %v10147_v17 = vld [vmem:[%s15658_s25 + $0x94] sm:$0xf] }
  0x3a   : > { %v8858_v15 = vor.u32 %v10148_v13, %v8857_v12  ;;  %v8849_v21 = vld [vmem:[%s15658_s25 + $0x80] sm:$0xf]  ;;  %v10145_v26 = vld [vmem:[%s15658_s25 + $0x84] sm:$0xf]  ;;  %v8851_v27 = vld [vmem:[%s15658_s25 + $0x88] sm:$0xf0] }
  0x3b   : > { %1005 = vmatpush.bf16.msra.mxu0 %v8722_v48  ;;  %10456 = vmatpush.bf16.msra.mxu2 %v8722_v48  ;;  %v10153_v48 = vld [vmem:[%s15658_s25 + $0xc4] sm:$0xf]  ;;  %v10104_v30 = vld [vmem:[%s10892_s29 + $0x38] sm:$0xff]  ;;  %v8969_v32 = vld [vmem:[%s15659_s4 + $0x70] sm:$0xf] }
  0x3c   : > { %1094 = vmatpush.bf16.msra.mxu1 %v8726_v49  ;;  %10464 = vmatpush.bf16.msra.mxu3 %v8726_v49  ;;  %v8883_v49 = vld [vmem:[%s15658_s25 + $0xc8] sm:$0xf0]  ;;  %v10112_v31 = vld [vmem:[%s10892_s29 + $0x78] sm:$0xff]  ;;  %v816_v35 = vld [vmem:[%s15660_s30] sm:$0x3] }
  0x3d   : > { %v11111_v38 = vperm.slane %v816_v35, 1  ;;  %v11113_v39 = vperm.slane %v816_v35, 0 }
  0x3e   : > { %1006 = vmatmul.bf16.vlgmr.msra.gmra.mxu0 %v10097_v50  ;;  %1046 = vmatmul.bf16.vlgmr.msra.gmra.mxu2 %v10105_v52 }
  0x3f   : > { %1470 = vmatpush.bf16.msrb.mxu2 %v8842_v51  ;;  %1095 = vmatmul.bf16.vlgmr.msra.gmra.mxu1 %v10097_v50  ;;  %v8785_v50 = vld [vmem:[%s15658_s25] sm:$0xf]  ;;  %v10130_v51 = vld [vmem:[%s15658_s25 + $0x4] sm:$0xf0] }
  0x40   : > { %1135 = vmatmul.bf16.vlgmr.msra.gmra.mxu3 %v10105_v52  ;;  %1648 = vmatpush.bf16.msrb.mxu0 %v8846_v22  ;;  %v8882_v52 = vor.u32 %v10154_v44, %v8881_v43  ;;  %v8786_v53 = vor.u32 %v10130_v51, %v8785_v50  ;;  %v10146_v22 = vld [vmem:[%s15658_s25 + $0x84] sm:$0xf0] }
  0x41   : > { %1559 = vmatpush.bf16.msrb.mxu3 %v8906_v18  ;;  %1737 = vmatpush.bf16.msrb.mxu1 %v8910_v23  ;;  %v8859_v18 = vld [vmem:[%s15658_s25 + $0x98] sm:$0xf0]  ;;  %v10129_v23 = vld [vmem:[%s15658_s25 + $0x4] sm:$0xf] }
  0x42   : > { %v8862_v20 = vor.u32 %v10147_v17, %v8859_v18 }
  0x43   : > { %1471 = vmatpush.bf16.msrb.mxu2 %v8834_v55  ;;  %v8886_v55 = vor.u32 %v10153_v48, %v8883_v49 }
  0x44   : > { %1649 = vmatpush.bf16.msrb.mxu0 %v8838_v33  ;;  %v10176_v33 = vld [vmem:[%s15659_s4 + $0x74] sm:$0xf0] }
  0x45   : > { %1560 = vmatpush.bf16.msrb.mxu3 %v8898_v29  ;;  %1738 = vmatpush.bf16.msrb.mxu1 %v8902_v34  ;;  %v8854_v29 = vor.u32 %v10145_v26, %v8851_v27  ;;  %v8970_v34 = vor.u32 %v10176_v33, %v8969_v32 }
  0x47   : > { %1472 = vmatpush.bf16.msrb.mxu2 %v8826_v58  ;;  %v8873_v58 = vld [vmem:[%s15658_s25 + $0xb0] sm:$0xf] }
  0x48   : > { %1650 = vmatpush.bf16.msrb.mxu0 %v8830_v41 }
  0x49   : > { %1561 = vmatpush.bf16.msrb.mxu3 %v8890_v37  ;;  %1739 = vmatpush.bf16.msrb.mxu1 %v8894_v45 }
  0x4b   : > { %1473 = vmatpush.bf16.msrb.mxu2 %v8818_v63  ;;  %v10151_v63 = vld [vmem:[%s15658_s25 + $0xb4] sm:$0xf] }
  0x4c   : > { %1651 = vmatpush.bf16.msrb.mxu0 %v8822_v54 }
  0x4d   : > { %1562 = vmatpush.bf16.msrb.mxu3 %v8882_v52  ;;  %1740 = vmatpush.bf16.msrb.mxu1 %v8886_v55 }
  0x4e   : > { %1011 = vmatmul.bf16.gmra.mxu0 %v10098_v59  ;;  %1051 = vmatmul.bf16.gmra.mxu2 %v10106_v60 }
  0x4f   : > { %1100 = vmatmul.bf16.gmra.mxu1 %v10098_v59  ;;  %1474 = vmatpush.bf16.msrb.mxu2 %v8810_v4  ;;  %v10152_v59 = vld [vmem:[%s15658_s25 + $0xb4] sm:$0xf0]  ;;  %v10150_v4 = vld [vmem:[%s15658_s25 + $0xa4] sm:$0xf0] }
  0x50   : > { %1140 = vmatmul.bf16.gmra.mxu3 %v10106_v60  ;;  %v10135_v60 = vld [vmem:[%s15658_s25 + $0x34] sm:$0xf]  ;;  %v8874_v61 = vor.u32 %v10152_v59, %v8873_v58 }
  0x52   : > { %1563 = vmatpush.bf16.msrb.mxu3 %v8874_v61  ;;  %v10174_v61 = vld [vmem:[%s15659_s4 + $0x64] sm:$0xf0] }
  0x53   : > { %1475 = vmatpush.bf16.msrb.mxu2 %v8802_v9 }
  0x57   : > { %1476 = vmatpush.bf16.msrb.mxu2 %v8794_v14  ;;  %v10131_v14 = vld [vmem:[%s15658_s25 + $0x14] sm:$0xf] }
  0x58   : > { %v8798_v19 = vor.u32 %v10131_v14, %v8795_v16 }
  0x5b   : > { %1477 = vmatpush.bf16.msrb.mxu2 %v8786_v53 }
  0x5e   : > { %1016 = vmatmul.bf16.gmra.mxu0 %v10099_v0  ;;  %1056 = vmatmul.bf16.gmra.mxu2 %v10107_v1 }
  0x5f   : > { %1105 = vmatmul.bf16.gmra.mxu1 %v10099_v0  ;;  %v8875_v0 = vld [vmem:[%s15658_s25 + $0xb8] sm:$0xf0]  ;;  %2120 = vmatpush.bf16.msra.mxu2 %v8970_v34 }
  0x60   : > { %1145 = vmatmul.bf16.gmra.mxu3 %v10107_v1  ;;  %v8814_v1 = vor.u32 %v10135_v60, %v8811_v62  ;;  %v8878_v2 = vor.u32 %v10151_v63, %v8875_v0  ;;  %v8961_v60 = vld [vmem:[%s15659_s4 + $0x60] sm:$0xf] }
  0x61   : > { %v8962_v0 = vor.u32 %v10174_v61, %v8961_v60 }
  0x62   : > { %1652 = vmatpush.bf16.msrb.mxu0 %v8814_v1  ;;  %1741 = vmatpush.bf16.msrb.mxu1 %v8878_v2 }
  0x63   : > { %2121 = vmatpush.bf16.msra.mxu2 %v8962_v0 }
  0x6e   : > { %1021 = vmatmul.bf16.gmra.mxu0 %v10100_v5  ;;  %1061 = vmatmul.bf16.gmra.mxu2 %v10108_v6 }
  0x6f   : > { %1110 = vmatmul.bf16.gmra.mxu1 %v10100_v5  ;;  %v10133_v5 = vld [vmem:[%s15658_s25 + $0x24] sm:$0xf] }
  0x70   : > { %1150 = vmatmul.bf16.gmra.mxu3 %v10108_v6  ;;  %v8866_v6 = vor.u32 %v10150_v4, %v8865_v3  ;;  %v8806_v9 = vor.u32 %v10133_v5, %v8803_v7 }
  0x72   : > { %1564 = vmatpush.bf16.msrb.mxu3 %v8866_v6  ;;  %1653 = vmatpush.bf16.msrb.mxu0 %v8806_v9 }
  0x76   : > { %1565 = vmatpush.bf16.msrb.mxu3 %v8858_v15  ;;  %1654 = vmatpush.bf16.msrb.mxu0 %v8798_v19 }
  0x7e   : > { %1026 = vmatmul.bf16.gmra.mxu0 %v10101_v10  ;;  %1066 = vmatmul.bf16.gmra.mxu2 %v10109_v11 }
  0x7f   : > { %1115 = vmatmul.bf16.gmra.mxu1 %v10101_v10  ;;  %v8867_v10 = vld [vmem:[%s15658_s25 + $0xa8] sm:$0xf0] }
  0x80   : > { %1155 = vmatmul.bf16.gmra.mxu3 %v10109_v11  ;;  %v8870_v11 = vor.u32 %v10149_v8, %v8867_v10 }
  0x82   : > { %1742 = vmatpush.bf16.msrb.mxu1 %v8870_v11 }
  0x86   : > { %1743 = vmatpush.bf16.msrb.mxu1 %v8862_v20 }
  0x8a   : > { %1744 = vmatpush.bf16.msrb.mxu1 %v8854_v29 }
  0x8e   : > { %1031 = vmatmul.bf16.gmra.mxu0 %v10102_v24  ;;  %1071 = vmatmul.bf16.gmra.mxu2 %v10110_v25 }
  0x8f   : > { %1120 = vmatmul.bf16.gmra.mxu1 %v10102_v24  ;;  %v8850_v24 = vor.u32 %v10146_v22, %v8849_v21 }
  0x90   : > { %1160 = vmatmul.bf16.gmra.mxu3 %v10110_v25  ;;  %v8787_v25 = vld [vmem:[%s15658_s25 + $0x8] sm:$0xf0] }
  0x91   : > { %v8790_v28 = vor.u32 %v10129_v23, %v8787_v25  ;;  %1566 = vmatpush.bf16.msrb.mxu3 %v8850_v24 }
  0x93   : > { %1655 = vmatpush.bf16.msrb.mxu0 %v8790_v28 }
  0x9e   : > { %1036 = vmatmul.bf16.gmra.mxu0 %v10103_v56  ;;  %1076 = vmatmul.bf16.gmra.mxu2 %v10111_v57 }
  0x9f   : > { %1125 = vmatmul.bf16.gmra.mxu1 %v10103_v56 }
  0xa0   : > { %1165 = vmatmul.bf16.gmra.mxu3 %v10111_v57 }
  0xae   : > { %1041 = vmatmul.bf16.gmra.mxu0 %v10104_v30  ;;  %1081 = vmatmul.bf16.gmra.mxu2 %v10112_v31 }
  0xaf   : > { %1130 = vmatmul.bf16.gmra.mxu1 %v10104_v30 }
  0xb0   : > { %1170 = vmatmul.bf16.gmra.mxu3 %v10112_v31 }
  0xbb   : > { %v1007_v36 = vpop.f32.mrf.mxu0 }
  0xbc   : > { %v1096_v37 = vpop.f32.mrf.mxu1  ;;  %v1008_v42 = vadd.f32 %v1007_v36, %v11113_v39 }
  0xbd   : > { %v1097_v40 = vadd.f32 %v1096_v37, %v11111_v38 }
  0xbe   : > { %v1176_v49 = vmax.f32 %v1008_v42, 0.0 }
  0xbf   : > { %v1177_v47 = vmax.f32 %v1097_v40, 0.0 }
  0xc1   : > { %v1047_v41 = vpop.f32.mrf.mxu2 }
  0xc2   : > { %v1048_v51 = vadd.f32 %v1047_v41, %v11113_v39 }
  0xc3   : > { %v11117_v43 = vpop.f32.mrf.mxu3  ;;  %v1009_v44 = vpop.f32.mrf.mxu0 }
  0xc4   : > { %v1010_v45 = vadd.f32 %v1009_v44, %v11113_v39  ;;  %v1098_v46 = vpop.f32.mrf.mxu1  ;;  %v1208_v56 = vmax.f32 %v1048_v51, 0.0 }
  0xc5   : > { %v1099_v48 = vadd.f32 %v1098_v46, %v11111_v38 }
  0xc6   : > { %v1178_v50 = vmax.f32 %v1010_v45, 0.0 }
  0xc7   : > { %v1179_v52 = vmax.f32 %v1099_v48, 0.0  ;;  %v8953_v48 = vld [vmem:[%s15659_s4 + $0x50] sm:$0xf] }
  0xc8   : > { %v1240_v53 = vpack.c.bf16 %v1178_v50, %v1176_v49  ;;  %v10172_v49 = vld [vmem:[%s15659_s4 + $0x54] sm:$0xf0] }
  0xc9   : > { %v1241_v54 = vpack.c.bf16 %v1179_v52, %v1177_v47  ;;  %v1049_v55 = vpop.f32.mrf.mxu2  ;;  %v8954_v52 = vor.u32 %v10172_v49, %v8953_v48 }
  0xca   : > { %1478 = vmatmul.bf16.vlgmr.msrb.gmra.mxu2 %v1240_v53  ;;  %1656 = vmatmul.bf16.vlgmr.msrb.gmra.mxu0 %v1240_v53  ;;  %v1050_v57 = vadd.f32 %v1049_v55, %v11113_v39 }
  0xcb   : > { %v11123_v58 = vpop.f32.mrf.mxu3  ;;  %1567 = vmatmul.bf16.vlgmr.msrb.gmra.mxu3 %v1241_v54  ;;  %1745 = vmatmul.bf16.vlgmr.msrb.gmra.mxu1 %v1241_v54  ;;  %v1012_v59 = vpop.f32.mrf.mxu0 }
  0xcc   : > { %v1101_v62 = vpop.f32.mrf.mxu1  ;;  %v1210_v63 = vmax.f32 %v1050_v57, 0.0  ;;  %v1013_v4 = vadd.f32 %v1012_v59, %v11113_v39  ;;  %2122 = vmatpush.bf16.msra.mxu2 %v8954_v52 }
  0xcd   : > { %v1102_v2 = vadd.f32 %v1101_v62, %v11111_v38 }
  0xce   : > { %v11131_v1 = vpack.c.bf16 %v1210_v63, %v1208_v56  ;;  %v1180_v11 = vmax.f32 %v1013_v4, 0.0 }
  0xcf   : > { %v1181_v9 = vmax.f32 %v1102_v2, 0.0 }
  0xd1   : > { %v1052_v3 = vpop.f32.mrf.mxu2 }
  0xd2   : > { %v1053_v13 = vadd.f32 %v1052_v3, %v11113_v39 }
  0xd3   : > { %v11135_v5 = vpop.f32.mrf.mxu3  ;;  %v1014_v6 = vpop.f32.mrf.mxu0 }
  0xd4   : > { %v1015_v7 = vadd.f32 %v1014_v6, %v11113_v39  ;;  %v1103_v8 = vpop.f32.mrf.mxu1  ;;  %v1212_v18 = vmax.f32 %v1053_v13, 0.0 }
  0xd5   : > { %v1104_v10 = vadd.f32 %v1103_v8, %v11111_v38 }
  0xd6   : > { %v1182_v12 = vmax.f32 %v1015_v7, 0.0 }
  0xd7   : > { %v1183_v14 = vmax.f32 %v1104_v10, 0.0 }
  0xd8   : > { %v1242_v15 = vpack.c.bf16 %v1182_v12, %v1180_v11 }
  0xd9   : > { %v1243_v16 = vpack.c.bf16 %v1183_v14, %v1181_v9  ;;  %v1054_v17 = vpop.f32.mrf.mxu2 }
  0xda   : > { %1483 = vmatmul.bf16.gmra.mxu2 %v1242_v15  ;;  %1661 = vmatmul.bf16.gmra.mxu0 %v1242_v15  ;;  %v1055_v19 = vadd.f32 %v1054_v17, %v11113_v39 }
  0xdb   : > { %v11141_v20 = vpop.f32.mrf.mxu3  ;;  %1572 = vmatmul.bf16.gmra.mxu3 %v1243_v16  ;;  %1750 = vmatmul.bf16.gmra.mxu1 %v1243_v16  ;;  %v1017_v21 = vpop.f32.mrf.mxu0 }
  0xdc   : > { %v1106_v22 = vpop.f32.mrf.mxu1  ;;  %v1214_v23 = vmax.f32 %v1055_v19, 0.0  ;;  %v1018_v27 = vadd.f32 %v1017_v21, %v11113_v39 }
  0xdd   : > { %v1107_v25 = vadd.f32 %v1106_v22, %v11111_v38 }
  0xde   : > { %v11143_v24 = vpack.c.bf16 %v1214_v23, %v1212_v18  ;;  %v1184_v34 = vmax.f32 %v1018_v27, 0.0 }
  0xdf   : > { %v1185_v32 = vmax.f32 %v1107_v25, 0.0 }
  0xe1   : > { %v1057_v26 = vpop.f32.mrf.mxu2 }
  0xe2   : > { %v1058_v36 = vadd.f32 %v1057_v26, %v11113_v39 }
  0xe3   : > { %v11147_v28 = vpop.f32.mrf.mxu3  ;;  %v1019_v29 = vpop.f32.mrf.mxu0 }
  0xe4   : > { %v1020_v30 = vadd.f32 %v1019_v29, %v11113_v39  ;;  %v1108_v31 = vpop.f32.mrf.mxu1  ;;  %v1216_v44 = vmax.f32 %v1058_v36, 0.0 }
  0xe5   : > { %v1109_v33 = vadd.f32 %v1108_v31, %v11111_v38 }
  0xe6   : > { %v1186_v35 = vmax.f32 %v1020_v30, 0.0 }
  0xe7   : > { %v1187_v37 = vmax.f32 %v1109_v33, 0.0 }
  0xe8   : > { %v1244_v40 = vpack.c.bf16 %v1186_v35, %v1184_v34 }
  0xe9   : > { %v1245_v41 = vpack.c.bf16 %v1187_v37, %v1185_v32  ;;  %v1059_v42 = vpop.f32.mrf.mxu2 }
  0xea   : > { %1488 = vmatmul.bf16.gmra.mxu2 %v1244_v40  ;;  %1666 = vmatmul.bf16.gmra.mxu0 %v1244_v40  ;;  %v1060_v45 = vadd.f32 %v1059_v42, %v11113_v39  ;;  %v10170_v42 = vld [vmem:[%s15659_s4 + $0x44] sm:$0xf0] }
  0xeb   : > { %v11153_v46 = vpop.f32.mrf.mxu3  ;;  %1577 = vmatmul.bf16.gmra.mxu3 %v1245_v41  ;;  %1755 = vmatmul.bf16.gmra.mxu1 %v1245_v41  ;;  %v1022_v47 = vpop.f32.mrf.mxu0  ;;  %v8945_v41 = vld [vmem:[%s15659_s4 + $0x40] sm:$0xf] }
  0xec   : > { %v1111_v50 = vpop.f32.mrf.mxu1  ;;  %v1218_v51 = vmax.f32 %v1060_v45, 0.0  ;;  %v1023_v56 = vadd.f32 %v1022_v47, %v11113_v39  ;;  %v8946_v47 = vor.u32 %v10170_v42, %v8945_v41  ;;  %v1142_v42 = vadd.f32 %v11135_v5, %v11111_v38  ;;  %v10168_v5 = vld [vmem:[%s15659_s4 + $0x34] sm:$0xf0] }
  0xed   : > { %v1112_v54 = vadd.f32 %v1111_v50, %v11111_v38 }
  0xee   : > { %v11161_v53 = vpack.c.bf16 %v1218_v51, %v1216_v44  ;;  %v1188_v0 = vmax.f32 %v1023_v56, 0.0  ;;  %2123 = vmatpush.bf16.msra.mxu2 %v8946_v47 }
  0xef   : > { %v1189_v62 = vmax.f32 %v1112_v54, 0.0 }
  0xf1   : > { %v1062_v55 = vpop.f32.mrf.mxu2 }
  0xf2   : > { %v1063_v3 = vadd.f32 %v1062_v55, %v11113_v39 }
  0xf3   : > { %v11165_v57 = vpop.f32.mrf.mxu3  ;;  %v1024_v59 = vpop.f32.mrf.mxu0 }
  0xf4   : > { %v1025_v60 = vadd.f32 %v1024_v59, %v11113_v39  ;;  %v1113_v61 = vpop.f32.mrf.mxu1  ;;  %v1220_v9 = vmax.f32 %v1063_v3, 0.0  ;;  %v10192_v3 = vld [vmem:[%s15659_s4 + $0xf4] sm:$0xf0] }
  0xf5   : > { %v1114_v63 = vadd.f32 %v1113_v61, %v11111_v38 }
  0xf6   : > { %v1190_v2 = vmax.f32 %v1025_v60, 0.0 }
  0xf7   : > { %v1191_v4 = vmax.f32 %v1114_v63, 0.0 }
  0xf8   : > { %v1246_v6 = vpack.c.bf16 %v1190_v2, %v1188_v0  ;;  %v9033_v2 = vld [vmem:[%s15659_s4 + $0xf0] sm:$0xf] }
  0xf9   : > { %v1247_v7 = vpack.c.bf16 %v1191_v4, %v1189_v62  ;;  %v1064_v8 = vpop.f32.mrf.mxu2 }
  0xfa   : > { %1493 = vmatmul.bf16.gmra.mxu2 %v1246_v6  ;;  %1671 = vmatmul.bf16.gmra.mxu0 %v1246_v6  ;;  %v1065_v10 = vadd.f32 %v1064_v8, %v11113_v39  ;;  %v9034_v6 = vor.u32 %v10192_v3, %v9033_v2  ;;  %v1139_v8 = vadd.f32 %v11123_v58, %v11111_v38 }
  0xfb   : > { %v11171_v11 = vpop.f32.mrf.mxu3  ;;  %1582 = vmatmul.bf16.gmra.mxu3 %v1247_v7  ;;  %1760 = vmatmul.bf16.gmra.mxu1 %v1247_v7  ;;  %v1027_v12 = vpop.f32.mrf.mxu0  ;;  %v1137_v7 = vadd.f32 %v11117_v43, %v11111_v38 }
  0xfc   : > { %v1116_v13 = vpop.f32.mrf.mxu1  ;;  %v1222_v14 = vmax.f32 %v1065_v10, 0.0  ;;  %v1028_v18 = vadd.f32 %v1027_v12, %v11113_v39  ;;  %2209 = vmatpush.bf16.msra.mxu3 %v9034_v6  ;;  %v1211_v43 = vmax.f32 %v1139_v8, 0.0 }
  0xfd   : > { %v1117_v16 = vadd.f32 %v1116_v13, %v11111_v38 }
  0xfe   : > { %v11173_v15 = vpack.c.bf16 %v1222_v14, %v1220_v9  ;;  %v1192_v27 = vmax.f32 %v1028_v18, 0.0 }
  0xff   : > { %v1193_v25 = vmax.f32 %v1117_v16, 0.0 }
 0x101   : > { %v1067_v17 = vpop.f32.mrf.mxu2 }
 0x102   : > { %v1068_v30 = vadd.f32 %v1067_v17, %v11113_v39 }
 0x103   : > { %v11177_v19 = vpop.f32.mrf.mxu3  ;;  %v1029_v21 = vpop.f32.mrf.mxu0 }
 0x104   : > { %v1030_v22 = vadd.f32 %v1029_v21, %v11113_v39  ;;  %v1118_v23 = vpop.f32.mrf.mxu1  ;;  %v1224_v35 = vmax.f32 %v1068_v30, 0.0  ;;  %v1209_v21 = vmax.f32 %v1137_v7, 0.0 }
 0x105   : > { %v1119_v26 = vadd.f32 %v1118_v23, %v11111_v38 }
 0x106   : > { %v1194_v29 = vmax.f32 %v1030_v22, 0.0 }
 0x107   : > { %v1195_v31 = vmax.f32 %v1119_v26, 0.0 }
 0x108   : > { %v1248_v32 = vpack.c.bf16 %v1194_v29, %v1192_v27 }
 0x109   : > { %v1249_v33 = vpack.c.bf16 %v1195_v31, %v1193_v25  ;;  %v1069_v34 = vpop.f32.mrf.mxu2  ;;  %v11216_v25 = vpack.c.bf16 %v1211_v43, %v1209_v21  ;;  %v1149_v21 = vadd.f32 %v11153_v46, %v11111_v38 }
 0x10a   : > { %1498 = vmatmul.bf16.gmra.mxu2 %v1248_v32  ;;  %1676 = vmatmul.bf16.gmra.mxu0 %v1248_v32  ;;  %v1070_v36 = vadd.f32 %v1069_v34, %v11113_v39 }
 0x10b   : > { %v11183_v37 = vpop.f32.mrf.mxu3  ;;  %1587 = vmatmul.bf16.gmra.mxu3 %v1249_v33  ;;  %1765 = vmatmul.bf16.gmra.mxu1 %v1249_v33  ;;  %v1032_v40 = vpop.f32.mrf.mxu0 }
 0x10c   : > { %v1121_v44 = vpop.f32.mrf.mxu1  ;;  %v1226_v45 = vmax.f32 %v1070_v36, 0.0  ;;  %v1033_v51 = vadd.f32 %v1032_v40, %v11113_v39 }
 0x10d   : > { %v1122_v49 = vadd.f32 %v1121_v44, %v11111_v38  ;;  %v1144_v44 = vadd.f32 %v11141_v20, %v11111_v38  ;;  %v1213_v20 = vmax.f32 %v1142_v42, 0.0 }
 0x10e   : > { %v11191_v48 = vpack.c.bf16 %v1226_v45, %v1224_v35  ;;  %v1196_v61 = vmax.f32 %v1033_v51, 0.0 }
 0x10f   : > { %v1197_v59 = vmax.f32 %v1122_v49, 0.0 }
 0x111   : > { %v1072_v50 = vpop.f32.mrf.mxu2 }
 0x112   : > { %v1073_v63 = vadd.f32 %v1072_v50, %v11113_v39 }
 0x113   : > { %v11195_v52 = vpop.f32.mrf.mxu3  ;;  %v1034_v54 = vpop.f32.mrf.mxu0 }
 0x114   : > { %v1035_v55 = vadd.f32 %v1034_v54, %v11113_v39  ;;  %v1123_v56 = vpop.f32.mrf.mxu1  ;;  %v1228_v12 = vmax.f32 %v1073_v63, 0.0 }
 0x115   : > { %v1124_v60 = vadd.f32 %v1123_v56, %v11111_v38  ;;  %v8937_v56 = vld [vmem:[%s15659_s4 + $0x30] sm:$0xf] }
 0x116   : > { %v1198_v62 = vmax.f32 %v1035_v55, 0.0 }
 0x117   : > { %v1199_v0 = vmax.f32 %v1124_v60, 0.0  ;;  %v8938_v60 = vor.u32 %v10168_v5, %v8937_v56  ;;  %v8929_v56 = vld [vmem:[%s15659_s4 + $0x20] sm:$0xf] }
 0x118   : > { %v1250_v4 = vpack.c.bf16 %v1198_v62, %v1196_v61 }
 0x119   : > { %v1251_v9 = vpack.c.bf16 %v1199_v0, %v1197_v59  ;;  %v1074_v10 = vpop.f32.mrf.mxu2  ;;  %v1215_v59 = vmax.f32 %v1144_v44, 0.0  ;;  %2124 = vmatpush.bf16.msra.mxu2 %v8938_v60 }
 0x11a   : > { %1503 = vmatmul.bf16.gmra.mxu2 %v1250_v4  ;;  %1681 = vmatmul.bf16.gmra.mxu0 %v1250_v4  ;;  %v1075_v13 = vadd.f32 %v1074_v10, %v11113_v39 }
 0x11b   : > { %1592 = vmatmul.bf16.gmra.mxu3 %v1251_v9  ;;  %1770 = vmatmul.bf16.gmra.mxu1 %v1251_v9  ;;  %v1037_v14 = vpop.f32.mrf.mxu0  ;;  %v11211_v18 = vpop.f32.mrf.mxu3  ;;  %v11240_v2 = vpack.c.bf16 %v1215_v59, %v1213_v20 }
 0x11c   : > { %v1126_v16 = vpop.f32.mrf.mxu1  ;;  %v1230_v17 = vmax.f32 %v1075_v13, 0.0  ;;  %v1038_v26 = vadd.f32 %v1037_v14, %v11113_v39 }
 0x11d   : > { %v1127_v58 = vadd.f32 %v1126_v16, %v11111_v38 }
 0x11e   : > { %v11213_v22 = vpack.c.bf16 %v1230_v17, %v1228_v12  ;;  %v1200_v33 = vmax.f32 %v1038_v26, 0.0  ;;  %v1147_v17 = vadd.f32 %v11147_v28, %v11111_v38  ;;  %v10190_v28 = vld [vmem:[%s15659_s4 + $0xe4] sm:$0xf0] }
 0x11f   : > { %v1201_v31 = vmax.f32 %v1127_v58, 0.0 }
 0x120   : > { %v1217_v46 = vmax.f32 %v1147_v17, 0.0 }
 0x121   : > { %v1077_v23 = vpop.f32.mrf.mxu2 }
 0x122   : > { %v1078_v35 = vadd.f32 %v1077_v23, %v11113_v39 }
 0x123   : > { %v1039_v27 = vpop.f32.mrf.mxu0  ;;  %v11222_v36 = vpop.f32.mrf.mxu3 }
 0x124   : > { %v1040_v29 = vadd.f32 %v1039_v27, %v11113_v39  ;;  %v1128_v30 = vpop.f32.mrf.mxu1  ;;  %v1232_v49 = vmax.f32 %v1078_v35, 0.0  ;;  %v10175_v35 = vld [vmem:[%s15659_s4 + $0x74] sm:$0xf] }
 0x125   : > { %v1129_v32 = vadd.f32 %v1128_v30, %v11111_v38  ;;  %v9025_v30 = vld [vmem:[%s15659_s4 + $0xe0] sm:$0xf] }
 0x126   : > { %v1202_v34 = vmax.f32 %v1040_v29, 0.0 }
 0x127   : > { %v1203_v40 = vmax.f32 %v1129_v32, 0.0  ;;  %v9026_v32 = vor.u32 %v10190_v28, %v9025_v30 }
 0x128   : > { %v1252_v41 = vpack.c.bf16 %v1202_v34, %v1200_v33 }
 0x129   : > { %v1253_v45 = vpack.c.bf16 %v1203_v40, %v1201_v31  ;;  %v1079_v47 = vpop.f32.mrf.mxu2  ;;  %v1219_v31 = vmax.f32 %v1149_v21, 0.0  ;;  %2210 = vmatpush.bf16.msra.mxu3 %v9026_v32  ;;  %v8971_v40 = vld [vmem:[%s15659_s4 + $0x78] sm:$0xf0]  ;;  %v10173_v32 = vld [vmem:[%s15659_s4 + $0x64] sm:$0xf] }
 0x12a   : > { %1508 = vmatmul.bf16.gmra.mxu2 %v1252_v41  ;;  %1686 = vmatmul.bf16.gmra.mxu0 %v1252_v41  ;;  %v1080_v50 = vadd.f32 %v1079_v47, %v11113_v39  ;;  %v8974_v41 = vor.u32 %v10175_v35, %v8971_v40 }
 0x12b   : > { %1597 = vmatmul.bf16.gmra.mxu3 %v1253_v45  ;;  %1775 = vmatmul.bf16.gmra.mxu1 %v1253_v45  ;;  %v1042_v51 = vpop.f32.mrf.mxu0  ;;  %v11237_v62 = vpop.f32.mrf.mxu3  ;;  %v11264_v34 = vpack.c.bf16 %v1219_v31, %v1217_v46 }
 0x12c   : > { %v1131_v54 = vpop.f32.mrf.mxu1  ;;  %v1234_v55 = vmax.f32 %v1080_v50, 0.0  ;;  %v1043_v3 = vadd.f32 %v1042_v51, %v11113_v39  ;;  %2298 = vmatpush.bf16.msra.mxu0 %v8974_v41  ;;  %v1152_v50 = vadd.f32 %v11165_v57, %v11111_v38  ;;  %v1154_v51 = vadd.f32 %v11171_v11, %v11111_v38  ;;  %v10166_v57 = vld [vmem:[%s15659_s4 + $0x24] sm:$0xf0] }
 0x12d   : > { %v1132_v63 = vadd.f32 %v1131_v54, %v11111_v38  ;;  %v8930_v59 = vor.u32 %v10166_v57, %v8929_v56  ;;  %v1162_v56 = vadd.f32 %v11195_v52, %v11111_v38  ;;  %v1164_v57 = vadd.f32 %v11211_v18, %v11111_v38  ;;  %v10164_v52 = vld [vmem:[%s15659_s4 + $0x14] sm:$0xf0] }
 0x12e   : > { %v11235_v61 = vpack.c.bf16 %v1234_v55, %v1232_v49  ;;  %v1204_v10 = vmax.f32 %v1043_v3, 0.0  ;;  %v1221_v11 = vmax.f32 %v1152_v50, 0.0  ;;  %v1223_v5 = vmax.f32 %v1154_v51, 0.0 }
 0x12f   : > { %v1205_v8 = vmax.f32 %v1132_v63, 0.0  ;;  %2125 = vmatpush.bf16.msra.mxu2 %v8930_v59  ;;  %v8921_v59 = vld [vmem:[%s15659_s4 + $0x10] sm:$0xf] }
 0x130   : > { %v11300_v3 = vpack.c.bf16 %v1223_v5, %v1221_v11 }
 0x131   : > { %v1082_v0 = vpop.f32.mrf.mxu2 }
 0x132   : > { %v1083_v13 = vadd.f32 %v1082_v0, %v11113_v39 }
 0x133   : > { %v1044_v4 = vpop.f32.mrf.mxu0  ;;  %v11251_v27 = vpop.f32.mrf.mxu3 }
 0x134   : > { %v1045_v6 = vadd.f32 %v1044_v4, %v11113_v39  ;;  %v1133_v7 = vpop.f32.mrf.mxu1  ;;  %v1236_v23 = vmax.f32 %v1083_v13, 0.0  ;;  %v1157_v13 = vadd.f32 %v11177_v19, %v11111_v38  ;;  %v9017_v19 = vld [vmem:[%s15659_s4 + $0xd0] sm:$0xf] }
 0x135   : > { %v1134_v9 = vadd.f32 %v1133_v7, %v11111_v38 }
 0x136   : > { %v1206_v12 = vmax.f32 %v1045_v6, 0.0 }
 0x137   : > { %v1207_v14 = vmax.f32 %v1134_v9, 0.0 }
 0x138   : > { %v1254_v16 = vpack.c.bf16 %v1206_v12, %v1204_v10 }
 0x139   : > { %v1255_v43 = vpack.c.bf16 %v1207_v14, %v1205_v8  ;;  %v1084_v58 = vpop.f32.mrf.mxu2  ;;  %v1159_v14 = vadd.f32 %v11183_v37, %v11111_v38  ;;  %v10188_v37 = vld [vmem:[%s15659_s4 + $0xd4] sm:$0xf0] }
 0x13a   : > { %1513 = vmatmul.bf16.gmra.mxu2 %v1254_v16  ;;  %1691 = vmatmul.bf16.gmra.mxu0 %v1254_v16  ;;  %v1085_v26 = vadd.f32 %v1084_v58, %v11113_v39  ;;  %v1304_v39 = vld [vmem:[%s15661_s8] sm:$0x3]  ;;  %v1225_v58 = vmax.f32 %v1157_v13, 0.0 }
 0x13b   : > { %1602 = vmatmul.bf16.gmra.mxu3 %v1255_v43  ;;  %1780 = vmatmul.bf16.gmra.mxu1 %v1255_v43  ;;  %v11272_v42 = vpop.f32.mrf.mxu3  ;;  %v11274_v44 = vperm.slane %v1304_v39, 1  ;;  %v11285_v55 = vperm.slane %v1304_v39, 0  ;;  %v8963_v39 = vld [vmem:[%s15659_s4 + $0x68] sm:$0xf0] }
 0x13c   : > { %v1238_v29 = vmax.f32 %v1085_v26, 0.0  ;;  %v8966_v35 = vor.u32 %v10173_v32, %v8963_v39 }
 0x13e   : > { %v11259_v33 = vpack.c.bf16 %v1238_v29, %v1236_v23  ;;  %v1227_v23 = vmax.f32 %v1159_v14, 0.0  ;;  %v9018_v29 = vor.u32 %v10188_v37, %v9017_v19  ;;  %2299 = vmatpush.bf16.msra.mxu0 %v8966_v35  ;;  %v1167_v37 = vadd.f32 %v11222_v36, %v11111_v38  ;;  %v10186_v36 = vld [vmem:[%s15659_s4 + $0xc4] sm:$0xf0] }
 0x140   : > { %2211 = vmatpush.bf16.msra.mxu3 %v9018_v29  ;;  %v11327_v31 = vpack.c.bf16 %v1227_v23, %v1225_v58  ;;  %v1169_v58 = vadd.f32 %v11237_v62, %v11111_v38 }
 0x147   : > { %v1657_v45 = vpop.f32.mrf.mxu0 }
 0x148   : > { %v1658_v47 = vadd.f32 %v1657_v45, %v11274_v44  ;;  %v1746_v49 = vpop.f32.mrf.mxu1 }
 0x14a   : > { %v11281_v54 = vadd.f32 %v1746_v49, %v1658_v47  ;;  %1518 = vmatmul.bf16.gmra.mxu2 %v11131_v1  ;;  %1696 = vmatmul.bf16.gmra.mxu0 %v11131_v1 }
 0x14b   : > { %1607 = vmatmul.bf16.gmra.mxu3 %v11216_v25  ;;  %1785 = vmatmul.bf16.gmra.mxu1 %v11216_v25 }
 0x14d   : > { %v1479_v20 = vpop.f32.mrf.mxu2 }
 0x14e   : > { %v1480_v1 = vadd.f32 %v1479_v20, %v11285_v55  ;;  %v1568_v60 = vpop.f32.mrf.mxu3 }
 0x14f   : > { %v11296_v63 = vpop.f32.mrf.mxu0 }
 0x150   : > { %v1569_v0 = vadd.f32 %v1568_v60, %v1480_v1  ;;  %v11298_v25 = vpop.f32.mrf.mxu1  ;;  %v1229_v1 = vmax.f32 %v1162_v56, 0.0  ;;  %v1231_v60 = vmax.f32 %v1164_v57, 0.0 }
 0x152   : > { %v1826_v16 = vmax.f32 %v1569_v0, 0.0 }
 0x155   : > { %v1481_v4 = vpop.f32.mrf.mxu2 }
 0x156   : > { %v1482_v6 = vadd.f32 %v1481_v4, %v11285_v55  ;;  %v1570_v7 = vpop.f32.mrf.mxu3  ;;  %v8922_v4 = vor.u32 %v10164_v52, %v8921_v59 }
 0x157   : > { %v1662_v8 = vpop.f32.mrf.mxu0 }
 0x158   : > { %v1571_v9 = vadd.f32 %v1570_v7, %v1482_v6  ;;  %v1663_v10 = vadd.f32 %v1662_v8, %v11274_v44  ;;  %v1751_v12 = vpop.f32.mrf.mxu1  ;;  %2126 = vmatpush.bf16.msra.mxu2 %v8922_v4  ;;  %v9035_v4 = vld [vmem:[%s15659_s4 + $0xf8] sm:$0xf0] }
 0x15a   : > { %v1828_v17 = vmax.f32 %v1571_v9, 0.0  ;;  %v11308_v21 = vadd.f32 %v1751_v12, %v1663_v10  ;;  %1523 = vmatmul.bf16.gmra.mxu2 %v11143_v24  ;;  %1701 = vmatmul.bf16.gmra.mxu0 %v11143_v24  ;;  %v11360_v9 = vpack.c.bf16 %v1231_v60, %v1229_v1  ;;  %v1172_v1 = vadd.f32 %v11251_v27, %v11111_v38 }
 0x15b   : > { %1612 = vmatmul.bf16.gmra.mxu3 %v11240_v2  ;;  %1790 = vmatmul.bf16.gmra.mxu1 %v11240_v2  ;;  %v1174_v60 = vadd.f32 %v11272_v42, %v11111_v38  ;;  %v8913_v38 = vld [vmem:[%s15659_s4] sm:$0xf]  ;;  %v10162_v42 = vld [vmem:[%s15659_s4 + $0x4] sm:$0xf0] }
 0x15c   : > { %v11314_v43 = vpack.c.bf16 %v1828_v17, %v1826_v16 }
 0x15d   : > { %v1484_v26 = vpop.f32.mrf.mxu2 }
 0x15e   : > { %v1485_v24 = vadd.f32 %v1484_v26, %v11285_v55  ;;  %v1573_v30 = vpop.f32.mrf.mxu3 }
 0x15f   : > { %v11323_v28 = vpop.f32.mrf.mxu0 }
 0x160   : > { %v1574_v2 = vadd.f32 %v1573_v30, %v1485_v24  ;;  %v11325_v46 = vpop.f32.mrf.mxu1  ;;  %v9009_v24 = vld [vmem:[%s15659_s4 + $0xc0] sm:$0xf]  ;;  %v1233_v30 = vmax.f32 %v1167_v37, 0.0 }
 0x161   : > { %v9010_v39 = vor.u32 %v10186_v36, %v9009_v24  ;;  %v10187_v24 = vld [vmem:[%s15659_s4 + $0xd4] sm:$0xf]  ;;  %v9019_v36 = vld [vmem:[%s15659_s4 + $0xd8] sm:$0xf0] }
 0x162   : > { %v1830_v11 = vmax.f32 %v1574_v2, 0.0  ;;  %v1235_v2 = vmax.f32 %v1169_v58, 0.0 }
 0x163   : > { %2212 = vmatpush.bf16.msra.mxu3 %v9010_v39  ;;  %v10169_v39 = vld [vmem:[%s15659_s4 + $0x44] sm:$0xf] }
 0x165   : > { %v1486_v40 = vpop.f32.mrf.mxu2 }
 0x166   : > { %v1487_v41 = vadd.f32 %v1486_v40, %v11285_v55  ;;  %v1575_v45 = vpop.f32.mrf.mxu3 }
 0x167   : > { %v1667_v47 = vpop.f32.mrf.mxu0 }
 0x168   : > { %v1576_v49 = vadd.f32 %v1575_v45, %v1487_v41  ;;  %v1668_v50 = vadd.f32 %v1667_v47, %v11274_v44  ;;  %v1756_v51 = vpop.f32.mrf.mxu1  ;;  %v11387_v45 = vpack.c.bf16 %v1235_v2, %v1233_v30  ;;  %v10171_v47 = vld [vmem:[%s15659_s4 + $0x54] sm:$0xf]  ;;  %v9022_v2 = vor.u32 %v10187_v24, %v9019_v36 }
 0x16a   : > { %v1832_v5 = vmax.f32 %v1576_v49, 0.0  ;;  %v11341_v20 = vadd.f32 %v1756_v51, %v1668_v50  ;;  %1528 = vmatmul.bf16.gmra.mxu2 %v11161_v53  ;;  %1706 = vmatmul.bf16.gmra.mxu0 %v11161_v53  ;;  %v8955_v49 = vld [vmem:[%s15659_s4 + $0x58] sm:$0xf0] }
 0x16b   : > { %1617 = vmatmul.bf16.gmra.mxu3 %v11264_v34  ;;  %1795 = vmatmul.bf16.gmra.mxu1 %v11264_v34  ;;  %v8958_v50 = vor.u32 %v10171_v47, %v8955_v49 }
 0x16c   : > { %v11353_v18 = vpack.c.bf16 %v1832_v5, %v1830_v11 }
 0x16d   : > { %v1489_v0 = vpop.f32.mrf.mxu2  ;;  %2300 = vmatpush.bf16.msra.mxu0 %v8958_v50  ;;  %v9011_v50 = vld [vmem:[%s15659_s4 + $0xc8] sm:$0xf0] }
 0x16e   : > { %v1490_v53 = vadd.f32 %v1489_v0, %v11285_v55  ;;  %v1578_v6 = vpop.f32.mrf.mxu3  ;;  %v10191_v0 = vld [vmem:[%s15659_s4 + $0xf4] sm:$0xf] }
 0x16f   : > { %v11356_v7 = vpop.f32.mrf.mxu0  ;;  %v9038_v27 = vor.u32 %v10191_v0, %v9035_v4 }
 0x170   : > { %v1579_v34 = vadd.f32 %v1578_v6, %v1490_v53  ;;  %v11358_v8 = vpop.f32.mrf.mxu1 }
 0x171   : > { %2387 = vmatpush.bf16.msra.mxu1 %v9038_v27  ;;  %v10183_v27 = vld [vmem:[%s15659_s4 + $0xb4] sm:$0xf] }
 0x172   : > { %v1834_v23 = vmax.f32 %v1579_v34, 0.0 }
 0x175   : > { %v1491_v10 = vpop.f32.mrf.mxu2 }
 0x176   : > { %v1492_v12 = vadd.f32 %v1491_v10, %v11285_v55  ;;  %v1580_v13 = vpop.f32.mrf.mxu3 }
 0x177   : > { %v1672_v14 = vpop.f32.mrf.mxu0 }
 0x178   : > { %v1581_v16 = vadd.f32 %v1580_v13, %v1492_v12  ;;  %v1673_v17 = vadd.f32 %v1672_v14, %v11274_v44  ;;  %v1761_v19 = vpop.f32.mrf.mxu1  ;;  %v1237_v12 = vmax.f32 %v1172_v1, 0.0  ;;  %v1239_v13 = vmax.f32 %v1174_v60, 0.0  ;;  %v10167_v1 = vld [vmem:[%s15659_s4 + $0x34] sm:$0xf] }
 0x17a   : > { %v1836_v26 = vmax.f32 %v1581_v16, 0.0  ;;  %v11368_v29 = vadd.f32 %v1761_v19, %v1673_v17  ;;  %1533 = vmatmul.bf16.gmra.mxu2 %v11173_v15  ;;  %1711 = vmatmul.bf16.gmra.mxu0 %v11173_v15  ;;  %v10189_v16 = vld [vmem:[%s15659_s4 + $0xe4] sm:$0xf]  ;;  %v11438_v30 = vpack.c.bf16 %v1239_v13, %v1237_v12 }
 0x17b   : > { %1622 = vmatmul.bf16.gmra.mxu3 %v11300_v3  ;;  %1800 = vmatmul.bf16.gmra.mxu1 %v11300_v3 }
 0x17c   : > { %v11380_v62 = vpack.c.bf16 %v1836_v26, %v1834_v23 }
 0x17d   : > { %v1494_v32 = vpop.f32.mrf.mxu2 }
 0x17e   : > { %v1495_v15 = vadd.f32 %v1494_v32, %v11285_v55  ;;  %v1583_v35 = vpop.f32.mrf.mxu3 }
 0x17f   : > { %v11383_v40 = vpop.f32.mrf.mxu0 }
 0x180   : > { %v1584_v3 = vadd.f32 %v1583_v35, %v1495_v15  ;;  %v11385_v41 = vpop.f32.mrf.mxu1  ;;  %v8947_v15 = vld [vmem:[%s15659_s4 + $0x48] sm:$0xf0]  ;;  %v10185_v35 = vld [vmem:[%s15659_s4 + $0xc4] sm:$0xf] }
 0x181   : > { %v8950_v49 = vor.u32 %v10169_v39, %v8947_v15  ;;  %v8985_v15 = vld [vmem:[%s15659_s4 + $0x90] sm:$0xf] }
 0x182   : > { %v1838_v53 = vmax.f32 %v1584_v3, 0.0 }
 0x183   : > { %2301 = vmatpush.bf16.msra.mxu0 %v8950_v49  ;;  %v8923_v49 = vld [vmem:[%s15659_s4 + $0x18] sm:$0xf0] }
 0x185   : > { %v1496_v51 = vpop.f32.mrf.mxu2 }
 0x186   : > { %v1497_v56 = vadd.f32 %v1496_v51, %v11285_v55  ;;  %v1585_v57 = vpop.f32.mrf.mxu3 }
 0x187   : > { %v1677_v11 = vpop.f32.mrf.mxu0 }
 0x188   : > { %v1586_v5 = vadd.f32 %v1585_v57, %v1497_v56  ;;  %v1678_v59 = vadd.f32 %v1677_v11, %v11274_v44  ;;  %v1766_v52 = vpop.f32.mrf.mxu1  ;;  %v9014_v56 = vor.u32 %v10185_v35, %v9011_v50  ;;  %v10180_v35 = vld [vmem:[%s15659_s4 + $0x94] sm:$0xf0]  ;;  %v10179_v50 = vld [vmem:[%s15659_s4 + $0x94] sm:$0xf] }
 0x18a   : > { %v1840_v6 = vmax.f32 %v1586_v5, 0.0  ;;  %v11407_v34 = vadd.f32 %v1766_v52, %v1678_v59  ;;  %1538 = vmatmul.bf16.gmra.mxu2 %v11191_v48  ;;  %1716 = vmatmul.bf16.gmra.mxu0 %v11191_v48  ;;  %v8914_v48 = vor.u32 %v10162_v42, %v8913_v38  ;;  %v9001_v59 = vld [vmem:[%s15659_s4 + $0xb0] sm:$0xf]  ;;  %v10184_v52 = vld [vmem:[%s15659_s4 + $0xb4] sm:$0xf0] }
 0x18b   : > { %1627 = vmatmul.bf16.gmra.mxu3 %v11327_v31  ;;  %1805 = vmatmul.bf16.gmra.mxu1 %v11327_v31  ;;  %v9027_v31 = vld [vmem:[%s15659_s4 + $0xe8] sm:$0xf0]  ;;  %v9003_v42 = vld [vmem:[%s15659_s4 + $0xb8] sm:$0xf0] }
 0x18c   : > { %v11419_v10 = vpack.c.bf16 %v1840_v6, %v1838_v53  ;;  %v9030_v37 = vor.u32 %v10189_v16, %v9027_v31  ;;  %2127 = vmatpush.bf16.msra.mxu2 %v8914_v48  ;;  %v9002_v53 = vor.u32 %v10184_v52, %v9001_v59  ;;  %v8939_v6 = vld [vmem:[%s15659_s4 + $0x38] sm:$0xf0]  ;;  %v10182_v48 = vld [vmem:[%s15659_s4 + $0xa4] sm:$0xf0]  ;;  %v10161_v52 = vld [vmem:[%s15659_s4 + $0x4] sm:$0xf] }
 0x18d   : > { %v1499_v14 = vpop.f32.mrf.mxu2  ;;  %v8942_v38 = vor.u32 %v10167_v1, %v8939_v6  ;;  %v10178_v59 = vld [vmem:[%s15659_s4 + $0x84] sm:$0xf0]  ;;  %v10177_v6 = vld [vmem:[%s15659_s4 + $0x84] sm:$0xf] }
 0x18e   : > { %v1500_v17 = vadd.f32 %v1499_v14, %v11285_v55  ;;  %v1588_v19 = vpop.f32.mrf.mxu3  ;;  %2388 = vmatpush.bf16.msra.mxu1 %v9030_v37  ;;  %2213 = vmatpush.bf16.msra.mxu3 %v9002_v53  ;;  %v8993_v14 = vld [vmem:[%s15659_s4 + $0xa0] sm:$0xf]  ;;  %v10181_v37 = vld [vmem:[%s15659_s4 + $0xa4] sm:$0xf]  ;;  %v8915_v53 = vld [vmem:[%s15659_s4 + $0x8] sm:$0xf0] }
 0x18f   : > { %v11428_v58 = vpop.f32.mrf.mxu0  ;;  %2302 = vmatpush.bf16.msra.mxu0 %v8942_v38 }
 0x190   : > { %v1589_v23 = vadd.f32 %v1588_v19, %v1500_v17  ;;  %v11430_v26 = vpop.f32.mrf.mxu1  ;;  %v8994_v17 = vor.u32 %v10182_v48, %v8993_v14  ;;  %v8931_v19 = vld [vmem:[%s15659_s4 + $0x28] sm:$0xf0] }
 0x192   : > { %2389 = vmatpush.bf16.msra.mxu1 %v9022_v2  ;;  %v1842_v60 = vmax.f32 %v1589_v23, 0.0  ;;  %v8995_v23 = vld [vmem:[%s15659_s4 + $0xa8] sm:$0xf0]  ;;  %2214 = vmatpush.bf16.msra.mxu3 %v8994_v17  ;;  %v9097_v17 = vld [vmem:[%s15662_s5 + $0x70] sm:$0xf] }
 0x193   : > { %v8998_v2 = vor.u32 %v10181_v37, %v8995_v23 }
 0x195   : > { %v1501_v32 = vpop.f32.mrf.mxu2 }
 0x196   : > { %v1502_v3 = vadd.f32 %v1501_v32, %v11285_v55  ;;  %v1590_v47 = vpop.f32.mrf.mxu3  ;;  %2390 = vmatpush.bf16.msra.mxu1 %v9014_v56  ;;  %v8987_v56 = vld [vmem:[%s15659_s4 + $0x98] sm:$0xf0] }
 0x197   : > { %v1682_v51 = vpop.f32.mrf.mxu0 }
 0x198   : > { %v1591_v57 = vadd.f32 %v1590_v47, %v1502_v3  ;;  %v1683_v11 = vadd.f32 %v1682_v51, %v11274_v44  ;;  %v1771_v5 = vpop.f32.mrf.mxu1  ;;  %v10163_v3 = vld [vmem:[%s15659_s4 + $0x14] sm:$0xf]  ;;  %v8986_v47 = vor.u32 %v10180_v35, %v8985_v15 }
 0x199   : > { %v8926_v51 = vor.u32 %v10163_v3, %v8923_v49 }
 0x19a   : > { %v1844_v0 = vmax.f32 %v1591_v57, 0.0  ;;  %v11463_v4 = vadd.f32 %v1771_v5, %v1683_v11  ;;  %1543 = vmatmul.bf16.gmra.mxu2 %v11213_v22  ;;  %1721 = vmatmul.bf16.gmra.mxu0 %v11213_v22  ;;  %v9006_v22 = vor.u32 %v10183_v27, %v9003_v42  ;;  %v8990_v57 = vor.u32 %v10179_v50, %v8987_v56  ;;  %v8977_v5 = vld [vmem:[%s15659_s4 + $0x80] sm:$0xf]  ;;  %v8979_v27 = vld [vmem:[%s15659_s4 + $0x88] sm:$0xf0] }
 0x19b   : > { %1632 = vmatmul.bf16.gmra.mxu3 %v11360_v9  ;;  %1810 = vmatmul.bf16.gmra.mxu1 %v11360_v9  ;;  %v10165_v9 = vld [vmem:[%s15659_s4 + $0x24] sm:$0xf]  ;;  %v8918_v42 = vor.u32 %v10161_v52, %v8915_v53  ;;  %v8982_v48 = vor.u32 %v10177_v6, %v8979_v27  ;;  %v1660_v52 = vadd.f32 %v11296_v63, %v11274_v44 }
 0x19c   : > { %v11478_v12 = vpack.c.bf16 %v1844_v0, %v1842_v60  ;;  %2391 = vmatpush.bf16.msra.mxu1 %v9006_v22  ;;  %v8934_v36 = vor.u32 %v10165_v9, %v8931_v19  ;;  %2215 = vmatpush.bf16.msra.mxu3 %v8986_v47  ;;  %v8978_v0 = vor.u32 %v10178_v59, %v8977_v5  ;;  %v10208_v19 = vld [vmem:[%s15662_s5 + $0x74] sm:$0xf0] }
 0x19d   : > { %v1504_v13 = vpop.f32.mrf.mxu2 }
 0x19e   : > { %v1505_v16 = vadd.f32 %v1504_v13, %v11285_v55  ;;  %v1593_v31 = vpop.f32.mrf.mxu3  ;;  %2303 = vmatpush.bf16.msra.mxu0 %v8934_v36  ;;  %v9098_v36 = vor.u32 %v10208_v19, %v9097_v17 }
 0x19f   : > { %v11499_v24 = vpop.f32.mrf.mxu0 }
 0x1a0   : > { %v1594_v32 = vadd.f32 %v1593_v31, %v1505_v16  ;;  %v11501_v39 = vpop.f32.mrf.mxu1  ;;  %2392 = vmatpush.bf16.msra.mxu1 %v8998_v2  ;;  %2216 = vmatpush.bf16.msra.mxu3 %v8978_v0 }
 0x1a1   : > { %2770 = vmatpush.bf16.msrb.mxu2 %v9098_v36 }
 0x1a2   : > { %2304 = vmatpush.bf16.msra.mxu0 %v8926_v51  ;;  %v1846_v9 = vmax.f32 %v1594_v32, 0.0 }
 0x1a4   : > { %2393 = vmatpush.bf16.msra.mxu1 %v8990_v57 }
 0x1a5   : > { %v1506_v11 = vpop.f32.mrf.mxu2 }
 0x1a6   : > { %v1507_v1 = vadd.f32 %v1506_v11, %v11285_v55  ;;  %v1595_v60 = vpop.f32.mrf.mxu3  ;;  %2305 = vmatpush.bf16.msra.mxu0 %v8918_v42 }
 0x1a7   : > { %v1687_v38 = vpop.f32.mrf.mxu0 }
 0x1a8   : > { %v1596_v22 = vadd.f32 %v1595_v60, %v1507_v1  ;;  %v1688_v13 = vadd.f32 %v1687_v38, %v11274_v44  ;;  %v1776_v14 = vpop.f32.mrf.mxu1  ;;  %2394 = vmatpush.bf16.msra.mxu1 %v8982_v48 }
 0x1aa   : > { %v1848_v16 = vmax.f32 %v1596_v22, 0.0  ;;  %v11541_v31 = vadd.f32 %v1776_v14, %v1688_v13  ;;  %1548 = vmatmul.bf16.gmra.mxu2 %v11235_v61  ;;  %1726 = vmatmul.bf16.gmra.mxu0 %v11235_v61  ;;  %v1827_v13 = vmax.f32 %v11281_v54, 0.0  ;;  %v9089_v54 = vld [vmem:[%s15662_s5 + $0x60] sm:$0xf] }
 0x1ab   : > { %1637 = vmatmul.bf16.gmra.mxu3 %v11387_v45  ;;  %1815 = vmatmul.bf16.gmra.mxu1 %v11387_v45 }
 0x1ac   : > { %v11553_v37 = vpack.c.bf16 %v1848_v16, %v1846_v9 }
 0x1ad   : > { %v1509_v23 = vpop.f32.mrf.mxu2 }
 0x1ae   : > { %v1510_v2 = vadd.f32 %v1509_v23, %v11285_v55  ;;  %v1598_v61 = vpop.f32.mrf.mxu3 }
 0x1af   : > { %v11556_v32 = vpop.f32.mrf.mxu0 }
 0x1b0   : > { %v1599_v45 = vadd.f32 %v1598_v61, %v1510_v2  ;;  %v11558_v15 = vpop.f32.mrf.mxu1  ;;  %v1665_v2 = vadd.f32 %v11323_v28, %v11274_v44  ;;  %v1831_v28 = vmax.f32 %v11308_v21, 0.0  ;;  %v1670_v21 = vadd.f32 %v11356_v7, %v11274_v44 }
 0x1b2   : > { %v1850_v57 = vmax.f32 %v1599_v45, 0.0 }
 0x1b5   : > { %v1511_v35 = vpop.f32.mrf.mxu2 }
 0x1b6   : > { %v1512_v3 = vadd.f32 %v1511_v35, %v11285_v55  ;;  %v1600_v47 = vpop.f32.mrf.mxu3 }
 0x1b7   : > { %v1692_v49 = vpop.f32.mrf.mxu0 }
 0x1b8   : > { %v1601_v50 = vadd.f32 %v1600_v47, %v1512_v3  ;;  %v1693_v51 = vadd.f32 %v1692_v49, %v11274_v44  ;;  %v1781_v56 = vpop.f32.mrf.mxu1 }
 0x1ba   : > { %v1852_v11 = vmax.f32 %v1601_v50, 0.0  ;;  %v11562_v5 = vadd.f32 %v1781_v56, %v1693_v51  ;;  %1553 = vmatmul.bf16.gmra.mxu2 %v11259_v33  ;;  %1731 = vmatmul.bf16.gmra.mxu0 %v11259_v33  ;;  %v1749_v33 = vadd.f32 %v11298_v25, %v1660_v52  ;;  %v10206_v25 = vld [vmem:[%s15662_s5 + $0x64] sm:$0xf0]  ;;  %v1754_v50 = vadd.f32 %v11325_v46, %v1665_v2 }
 0x1bb   : > { %1642 = vmatmul.bf16.gmra.mxu3 %v11438_v30  ;;  %1820 = vmatmul.bf16.gmra.mxu1 %v11438_v30  ;;  %v9090_v45 = vor.u32 %v10206_v25, %v9089_v54  ;;  %v1835_v54 = vmax.f32 %v11341_v20, 0.0  ;;  %v9081_v20 = vld [vmem:[%s15662_s5 + $0x50] sm:$0xf] }
 0x1bc   : > { %v11568_v59 = vpack.c.bf16 %v1852_v11, %v1850_v57  ;;  %v1829_v38 = vmax.f32 %v1749_v33, 0.0  ;;  %v1833_v51 = vmax.f32 %v1754_v50, 0.0 }
 0x1bd   : > { %v1514_v1 = vpop.f32.mrf.mxu2  ;;  %2771 = vmatpush.bf16.msrb.mxu2 %v9090_v45 }
 0x1be   : > { %v1515_v60 = vadd.f32 %v1514_v1, %v11285_v55  ;;  %v1603_v0 = vpop.f32.mrf.mxu3  ;;  %v1891_v16 = vpack.c.bf16 %v1829_v38, %v1827_v13 }
 0x1bf   : > { %v11573_v53 = vpop.f32.mrf.mxu0 }
 0x1c0   : > { %v1604_v6 = vadd.f32 %v1603_v0, %v1515_v60  ;;  %v11575_v27 = vpop.f32.mrf.mxu1 }
 0x1c2   : > { %v1854_v17 = vmax.f32 %v1604_v6, 0.0  ;;  %v1893_v6 = vpack.c.bf16 %v1833_v51, %v1831_v28  ;;  %v1675_v51 = vadd.f32 %v11383_v40, %v11274_v44  ;;  %v1839_v40 = vmax.f32 %v11368_v29, 0.0 }
 0x1c3   : > { %v1680_v29 = vadd.f32 %v11428_v58, %v11274_v44 }
 0x1c5   : > { %v1516_v42 = vpop.f32.mrf.mxu2 }
 0x1c6   : > { %v1517_v30 = vadd.f32 %v1516_v42, %v11285_v55  ;;  %v1605_v22 = vpop.f32.mrf.mxu3 }
 0x1c7   : > { %v1697_v14 = vpop.f32.mrf.mxu0 }
 0x1c8   : > { %v1606_v63 = vadd.f32 %v1605_v22, %v1517_v30  ;;  %v1698_v48 = vadd.f32 %v1697_v14, %v11274_v44  ;;  %v1786_v9 = vpop.f32.mrf.mxu1 }
 0x1ca   : > { %v1856_v19 = vmax.f32 %v1606_v63, 0.0  ;;  %v11581_v23 = vadd.f32 %v1786_v9, %v1698_v48  ;;  %2128 = vmatmul.bf16.vlgmr.msra.gmra.mxu2 %v11314_v43  ;;  %2306 = vmatmul.bf16.vlgmr.msra.gmra.mxu0 %v11314_v43  ;;  %v1759_v9 = vadd.f32 %v11358_v8, %v1670_v21  ;;  %v10204_v8 = vld [vmem:[%s15662_s5 + $0x54] sm:$0xf0] }
 0x1cb   : > { %2217 = vmatmul.bf16.vlgmr.msra.gmra.mxu3 %v1891_v16  ;;  %2395 = vmatmul.bf16.vlgmr.msra.gmra.mxu1 %v1891_v16 }
 0x1cc   : > { %v11591_v36 = vpack.c.bf16 %v1856_v19, %v1854_v17  ;;  %v1837_v16 = vmax.f32 %v1759_v9, 0.0 }
 0x1cd   : > { %v1519_v61 = vpop.f32.mrf.mxu2 }
 0x1ce   : > { %v1520_v35 = vadd.f32 %v1519_v61, %v11285_v55  ;;  %v1608_v43 = vpop.f32.mrf.mxu3  ;;  %v1895_v45 = vpack.c.bf16 %v1837_v16, %v1835_v54 }
 0x1cf   : > { %v11596_v3 = vpop.f32.mrf.mxu0 }
 0x1d0   : > { %v1609_v47 = vadd.f32 %v1608_v43, %v1520_v35  ;;  %v11598_v49 = vpop.f32.mrf.mxu1 }
 0x1d2   : > { %v1858_v33 = vmax.f32 %v1609_v47, 0.0 }
 0x1d5   : > { %v1521_v56 = vpop.f32.mrf.mxu2 }
 0x1d6   : > { %v1522_v57 = vadd.f32 %v1521_v56, %v11285_v55  ;;  %v1610_v11 = vpop.f32.mrf.mxu3 }
 0x1d7   : > { %v1702_v52 = vpop.f32.mrf.mxu0 }
 0x1d8   : > { %v1611_v1 = vadd.f32 %v1610_v11, %v1522_v57  ;;  %v1703_v60 = vadd.f32 %v1702_v52, %v11274_v44  ;;  %v1791_v0 = vpop.f32.mrf.mxu1  ;;  %v9082_v57 = vor.u32 %v10204_v8, %v9081_v20  ;;  %v1843_v20 = vmax.f32 %v11407_v34, 0.0  ;;  %v9073_v34 = vld [vmem:[%s15662_s5 + $0x40] sm:$0xf] }
 0x1da   : > { %v1860_v38 = vmax.f32 %v1611_v1, 0.0  ;;  %v11604_v42 = vadd.f32 %v1791_v0, %v1703_v60  ;;  %2133 = vmatmul.bf16.gmra.mxu2 %v11353_v18  ;;  %2311 = vmatmul.bf16.gmra.mxu0 %v11353_v18  ;;  %v1764_v60 = vadd.f32 %v11385_v41, %v1675_v51 }
 0x1db   : > { %2222 = vmatmul.bf16.gmra.mxu3 %v1893_v6  ;;  %2400 = vmatmul.bf16.gmra.mxu1 %v1893_v6 }
 0x1dc   : > { %v11608_v46 = vpack.c.bf16 %v1860_v38, %v1858_v33  ;;  %2772 = vmatpush.bf16.msrb.mxu2 %v9082_v57  ;;  %v1841_v0 = vmax.f32 %v1764_v60, 0.0 }
 0x1dd   : > { %v1524_v30 = vpop.f32.mrf.mxu2 }
 0x1de   : > { %v1525_v22 = vadd.f32 %v1524_v30, %v11285_v55  ;;  %v1613_v13 = vpop.f32.mrf.mxu3 }
 0x1df   : > { %v11613_v14 = vpop.f32.mrf.mxu0 }
 0x1e0   : > { %v1614_v63 = vadd.f32 %v1613_v13, %v1525_v22  ;;  %v11615_v48 = vpop.f32.mrf.mxu1 }
 0x1e2   : > { %v1862_v35 = vmax.f32 %v1614_v63, 0.0  ;;  %v1897_v63 = vpack.c.bf16 %v1841_v0, %v1839_v40  ;;  %v1685_v0 = vadd.f32 %v11499_v24, %v11274_v44  ;;  %v1847_v24 = vmax.f32 %v11463_v4, 0.0  ;;  %v9161_v4 = vld [vmem:[%s15662_s5 + $0xf0] sm:$0xf] }
 0x1e5   : > { %v1526_v18 = vpop.f32.mrf.mxu2 }
 0x1e6   : > { %v1527_v17 = vadd.f32 %v1526_v18, %v11285_v55  ;;  %v1615_v19 = vpop.f32.mrf.mxu3 }
 0x1e7   : > { %v1707_v25 = vpop.f32.mrf.mxu0 }
 0x1e8   : > { %v1616_v7 = vadd.f32 %v1615_v19, %v1527_v17  ;;  %v1708_v2 = vadd.f32 %v1707_v25, %v11274_v44  ;;  %v1796_v61 = vpop.f32.mrf.mxu1 }
 0x1ea   : > { %v1864_v43 = vmax.f32 %v1616_v7, 0.0  ;;  %v11621_v47 = vadd.f32 %v1796_v61, %v1708_v2  ;;  %2138 = vmatmul.bf16.gmra.mxu2 %v11380_v62  ;;  %2316 = vmatmul.bf16.gmra.mxu0 %v11380_v62  ;;  %v1769_v61 = vadd.f32 %v11430_v26, %v1680_v29  ;;  %v10202_v26 = vld [vmem:[%s15662_s5 + $0x44] sm:$0xf0] }
 0x1eb   : > { %2227 = vmatmul.bf16.gmra.mxu3 %v1895_v45  ;;  %2405 = vmatmul.bf16.gmra.mxu1 %v1895_v45 }
 0x1ec   : > { %v11631_v50 = vpack.c.bf16 %v1864_v43, %v1862_v35  ;;  %v1845_v45 = vmax.f32 %v1769_v61, 0.0 }
 0x1ed   : > { %v1529_v56 = vpop.f32.mrf.mxu2 }
 0x1ee   : > { %v1530_v11 = vadd.f32 %v1529_v56, %v11285_v55  ;;  %v1618_v62 = vpop.f32.mrf.mxu3  ;;  %v1899_v57 = vpack.c.bf16 %v1845_v45, %v1843_v20 }
 0x1ef   : > { %v11636_v28 = vpop.f32.mrf.mxu0 }
 0x1f0   : > { %v1619_v52 = vadd.f32 %v1618_v62, %v1530_v11  ;;  %v11638_v1 = vpop.f32.mrf.mxu1 }
 0x1f2   : > { %v1866_v9 = vmax.f32 %v1619_v52, 0.0 }
 0x1f5   : > { %v1531_v6 = vpop.f32.mrf.mxu2 }
 0x1f6   : > { %v1532_v33 = vadd.f32 %v1531_v6, %v11285_v55  ;;  %v1620_v38 = vpop.f32.mrf.mxu3 }
 0x1f7   : > { %v1712_v21 = vpop.f32.mrf.mxu0 }
 0x1f8   : > { %v1621_v30 = vadd.f32 %v1620_v38, %v1532_v33  ;;  %v1713_v22 = vadd.f32 %v1712_v21, %v11274_v44  ;;  %v1801_v13 = vpop.f32.mrf.mxu1  ;;  %v9074_v33 = vor.u32 %v10202_v26, %v9073_v34 }
 0x1fa   : > { %v1868_v16 = vmax.f32 %v1621_v30, 0.0  ;;  %v11644_v18 = vadd.f32 %v1801_v13, %v1713_v22  ;;  %2143 = vmatmul.bf16.gmra.mxu2 %v11419_v10  ;;  %2321 = vmatmul.bf16.gmra.mxu0 %v11419_v10  ;;  %v1774_v22 = vadd.f32 %v11501_v39, %v1685_v0  ;;  %v10224_v39 = vld [vmem:[%s15662_s5 + $0xf4] sm:$0xf0] }
 0x1fb   : > { %2232 = vmatmul.bf16.gmra.mxu3 %v1897_v63  ;;  %2410 = vmatmul.bf16.gmra.mxu1 %v1897_v63 }
 0x1fc   : > { %v11648_v41 = vpack.c.bf16 %v1868_v16, %v1866_v9  ;;  %2773 = vmatpush.bf16.msrb.mxu2 %v9074_v33  ;;  %v1849_v13 = vmax.f32 %v1774_v22, 0.0 }
 0x1fd   : > { %v1534_v17 = vpop.f32.mrf.mxu2 }
 0x1fe   : > { %v1535_v19 = vadd.f32 %v1534_v17, %v11285_v55  ;;  %v1623_v54 = vpop.f32.mrf.mxu3 }
 0x1ff   : > { %v11653_v25 = vpop.f32.mrf.mxu0 }
 0x200   : > { %v1624_v7 = vadd.f32 %v1623_v54, %v1535_v19  ;;  %v11655_v2 = vpop.f32.mrf.mxu1 }
 0x202   : > { %v1870_v11 = vmax.f32 %v1624_v7, 0.0  ;;  %v1901_v7 = vpack.c.bf16 %v1849_v13, %v1847_v24 }
 0x205   : > { %v1536_v10 = vpop.f32.mrf.mxu2 }
 0x206   : > { %v1537_v35 = vadd.f32 %v1536_v10, %v11285_v55  ;;  %v1625_v43 = vpop.f32.mrf.mxu3 }
 0x207   : > { %v1717_v8 = vpop.f32.mrf.mxu0 }
 0x208   : > { %v1626_v58 = vadd.f32 %v1625_v43, %v1537_v35  ;;  %v1718_v51 = vadd.f32 %v1717_v8, %v11274_v44  ;;  %v1806_v56 = vpop.f32.mrf.mxu1  ;;  %v1690_v43 = vadd.f32 %v11556_v32, %v11274_v44  ;;  %v9162_v8 = vor.u32 %v10224_v39, %v9161_v4 }
 0x209   : > { %v1851_v32 = vmax.f32 %v11541_v31, 0.0  ;;  %v9065_v31 = vld [vmem:[%s15662_s5 + $0x30] sm:$0xf] }
 0x20a   : > { %v1872_v62 = vmax.f32 %v1626_v58, 0.0  ;;  %v11661_v52 = vadd.f32 %v1806_v56, %v1718_v51  ;;  %2148 = vmatmul.bf16.gmra.mxu2 %v11478_v12  ;;  %2326 = vmatmul.bf16.gmra.mxu0 %v11478_v12 }
 0x20b   : > { %2237 = vmatmul.bf16.gmra.mxu3 %v1899_v57  ;;  %2415 = vmatmul.bf16.gmra.mxu1 %v1899_v57 }
 0x20c   : > { %v11671_v60 = vpack.c.bf16 %v1872_v62, %v1870_v11  ;;  %2859 = vmatpush.bf16.msrb.mxu3 %v9162_v8  ;;  %v1779_v11 = vadd.f32 %v11558_v15, %v1690_v43  ;;  %v10200_v15 = vld [vmem:[%s15662_s5 + $0x34] sm:$0xf0] }
 0x20d   : > { %v1539_v6 = vpop.f32.mrf.mxu2 }
 0x20e   : > { %v1540_v38 = vadd.f32 %v1539_v6, %v11285_v55  ;;  %v1628_v12 = vpop.f32.mrf.mxu3  ;;  %v1853_v62 = vmax.f32 %v1779_v11, 0.0 }
 0x20f   : > { %v11676_v40 = vpop.f32.mrf.mxu0 }
 0x210   : > { %v1629_v21 = vadd.f32 %v1628_v12, %v1540_v38  ;;  %v11678_v30 = vpop.f32.mrf.mxu1 }
 0x212   : > { %v1874_v61 = vmax.f32 %v1629_v21, 0.0  ;;  %v1903_v21 = vpack.c.bf16 %v1853_v62, %v1851_v32 }
 0x215   : > { %v1541_v63 = vpop.f32.mrf.mxu2 }
 0x216   : > { %v1542_v9 = vadd.f32 %v1541_v63, %v11285_v55  ;;  %v1630_v16 = vpop.f32.mrf.mxu3 }
 0x217   : > { %v1722_v29 = vpop.f32.mrf.mxu0 }
 0x218   : > { %v1631_v17 = vadd.f32 %v1630_v16, %v1542_v9  ;;  %v1723_v19 = vadd.f32 %v1722_v29, %v11274_v44  ;;  %v1811_v54 = vpop.f32.mrf.mxu1  ;;  %v1695_v16 = vadd.f32 %v11573_v53, %v11274_v44  ;;  %v9066_v29 = vor.u32 %v10200_v15, %v9065_v31  ;;  %v9099_v31 = vld [vmem:[%s15662_s5 + $0x78] sm:$0xf0] }
 0x219   : > { %v1855_v53 = vmax.f32 %v11562_v5, 0.0  ;;  %v9153_v5 = vld [vmem:[%s15662_s5 + $0xe0] sm:$0xf] }
 0x21a   : > { %v1876_v45 = vmax.f32 %v1631_v17, 0.0  ;;  %v11684_v10 = vadd.f32 %v1811_v54, %v1723_v19  ;;  %2153 = vmatmul.bf16.gmra.mxu2 %v11553_v37  ;;  %2331 = vmatmul.bf16.gmra.mxu0 %v11553_v37 }
 0x21b   : > { %2242 = vmatmul.bf16.gmra.mxu3 %v1901_v7  ;;  %2420 = vmatmul.bf16.gmra.mxu1 %v1901_v7 }
 0x21c   : > { %v11694_v35 = vpack.c.bf16 %v1876_v45, %v1874_v61  ;;  %2774 = vmatpush.bf16.msrb.mxu2 %v9066_v29  ;;  %v1784_v61 = vadd.f32 %v11575_v27, %v1695_v16  ;;  %v10222_v27 = vld [vmem:[%s15662_s5 + $0xe4] sm:$0xf0] }
 0x21d   : > { %v1544_v20 = vpop.f32.mrf.mxu2 }
 0x21e   : > { %v1545_v58 = vadd.f32 %v1544_v20, %v11285_v55  ;;  %v1633_v37 = vpop.f32.mrf.mxu3  ;;  %v1857_v45 = vmax.f32 %v1784_v61, 0.0 }
 0x21f   : > { %v11699_v51 = vpop.f32.mrf.mxu0 }
 0x220   : > { %v1634_v56 = vadd.f32 %v1633_v37, %v1545_v58  ;;  %v11701_v57 = vpop.f32.mrf.mxu1 }
 0x222   : > { %v1878_v22 = vmax.f32 %v1634_v56, 0.0  ;;  %v1905_v56 = vpack.c.bf16 %v1857_v45, %v1855_v53 }
 0x225   : > { %v1546_v34 = vpop.f32.mrf.mxu2 }
 0x226   : > { %v1547_v26 = vadd.f32 %v1546_v34, %v11285_v55  ;;  %v1635_v0 = vpop.f32.mrf.mxu3 }
 0x227   : > { %v1727_v6 = vpop.f32.mrf.mxu0 }
 0x228   : > { %v1636_v33 = vadd.f32 %v1635_v0, %v1547_v26  ;;  %v1728_v38 = vadd.f32 %v1727_v6, %v11274_v44  ;;  %v1816_v12 = vpop.f32.mrf.mxu1  ;;  %v1700_v0 = vadd.f32 %v11596_v3, %v11274_v44  ;;  %v9154_v6 = vor.u32 %v10222_v27, %v9153_v5  ;;  %v10207_v3 = vld [vmem:[%s15662_s5 + $0x74] sm:$0xf] }
 0x229   : > { %v9102_v15 = vor.u32 %v10207_v3, %v9099_v31 }
 0x22a   : > { %v1880_v13 = vmax.f32 %v1636_v33, 0.0  ;;  %v11707_v63 = vadd.f32 %v1816_v12, %v1728_v38  ;;  %2158 = vmatmul.bf16.gmra.mxu2 %v11568_v59  ;;  %2336 = vmatmul.bf16.gmra.mxu0 %v11568_v59 }
 0x22b   : > { %2247 = vmatmul.bf16.gmra.mxu3 %v1903_v21  ;;  %2425 = vmatmul.bf16.gmra.mxu1 %v1903_v21 }
 0x22c   : > { %v11717_v9 = vpack.c.bf16 %v1880_v13, %v1878_v22  ;;  %2860 = vmatpush.bf16.msrb.mxu3 %v9154_v6  ;;  %v1789_v22 = vadd.f32 %v11598_v49, %v1700_v0  ;;  %v1954_v13 = vld [vmem:[%s15663_s2] sm:$0x3]  ;;  %2948 = vmatpush.bf16.msrb.mxu0 %v9102_v15 }
 0x22d   : > { %v1549_v24 = vpop.f32.mrf.mxu2  ;;  %v11759_v16 = vperm.slane %v1954_v13, 1 }
 0x22e   : > { %v1550_v17 = vadd.f32 %v1549_v24, %v11285_v55  ;;  %v1638_v59 = vpop.f32.mrf.mxu3  ;;  %v1861_v24 = vmax.f32 %v1789_v22, 0.0 }
 0x22f   : > { %v11722_v19 = vpop.f32.mrf.mxu0 }
 0x230   : > { %v1639_v54 = vadd.f32 %v1638_v59, %v1550_v17  ;;  %v11724_v7 = vpop.f32.mrf.mxu1  ;;  %v1859_v59 = vmax.f32 %v11581_v23, 0.0  ;;  %v10198_v23 = vld [vmem:[%s15662_s5 + $0x24] sm:$0xf0] }
 0x232   : > { %v1882_v11 = vmax.f32 %v1639_v54, 0.0 }
 0x235   : > { %v1551_v4 = vpop.f32.mrf.mxu2 }
 0x236   : > { %v1552_v39 = vadd.f32 %v1551_v4, %v11285_v55  ;;  %v1640_v43 = vpop.f32.mrf.mxu3 }
 0x237   : > { %v1732_v20 = vpop.f32.mrf.mxu0 }
 0x238   : > { %v1641_v8 = vadd.f32 %v1640_v43, %v1552_v39  ;;  %v1733_v58 = vadd.f32 %v1732_v20, %v11274_v44  ;;  %v1821_v37 = vpop.f32.mrf.mxu1  ;;  %v1907_v39 = vpack.c.bf16 %v1861_v24, %v1859_v59  ;;  %v1710_v59 = vadd.f32 %v11636_v28, %v11274_v44  ;;  %v9091_v28 = vld [vmem:[%s15662_s5 + $0x68] sm:$0xf0] }
 0x23a   : > { %v1884_v62 = vmax.f32 %v1641_v8, 0.0  ;;  %v11730_v34 = vadd.f32 %v1821_v37, %v1733_v58  ;;  %2163 = vmatmul.bf16.gmra.mxu2 %v11591_v36  ;;  %2341 = vmatmul.bf16.gmra.mxu0 %v11591_v36  ;;  %v11768_v8 = vperm.slane %v1954_v13, 0  ;;  %v1705_v37 = vadd.f32 %v11613_v14, %v11274_v44 }
 0x23b   : > { %2252 = vmatmul.bf16.gmra.mxu3 %v1905_v56  ;;  %2430 = vmatmul.bf16.gmra.mxu1 %v1905_v56  ;;  %v1863_v14 = vmax.f32 %v11604_v42, 0.0  ;;  %v9145_v42 = vld [vmem:[%s15662_s5 + $0xd0] sm:$0xf] }
 0x23c   : > { %v11740_v26 = vpack.c.bf16 %v1884_v62, %v1882_v11 }
 0x23d   : > { %v1554_v32 = vpop.f32.mrf.mxu2 }
 0x23e   : > { %v1555_v33 = vadd.f32 %v1554_v32, %v11285_v55  ;;  %v1643_v36 = vpop.f32.mrf.mxu3  ;;  %v1794_v32 = vadd.f32 %v11615_v48, %v1705_v37 }
 0x23f   : > { %v11745_v38 = vpop.f32.mrf.mxu0 }
 0x240   : > { %v1644_v12 = vadd.f32 %v1643_v36, %v1555_v33  ;;  %v11747_v21 = vpop.f32.mrf.mxu1  ;;  %v1865_v6 = vmax.f32 %v1794_v32, 0.0 }
 0x242   : > { %v1886_v43 = vmax.f32 %v1644_v12, 0.0  ;;  %v1909_v15 = vpack.c.bf16 %v1865_v6, %v1863_v14 }
 0x245   : > { %v1556_v29 = vpop.f32.mrf.mxu2 }
 0x246   : > { %v1557_v49 = vadd.f32 %v1556_v29, %v11285_v55  ;;  %v1645_v17 = vpop.f32.mrf.mxu3  ;;  %v9057_v55 = vld [vmem:[%s15662_s5 + $0x20] sm:$0xf] }
 0x247   : > { %v2307_v54 = vpop.f32.mrf.mxu0  ;;  %v9058_v11 = vor.u32 %v10198_v23, %v9057_v55  ;;  %v10205_v55 = vld [vmem:[%s15662_s5 + $0x64] sm:$0xf] }
 0x248   : > { %v1646_v61 = vadd.f32 %v1645_v17, %v1557_v49  ;;  %v2308_v45 = vadd.f32 %v2307_v54, %v11759_v16  ;;  %v2396_v4 = vpop.f32.mrf.mxu1  ;;  %v10220_v17 = vld [vmem:[%s15662_s5 + $0xd4] sm:$0xf0]  ;;  %v9094_v23 = vor.u32 %v10205_v55, %v9091_v28 }
 0x249   : > { %2775 = vmatpush.bf16.msrb.mxu2 %v9058_v11 }
 0x24a   : > { %v1888_v53 = vmax.f32 %v1646_v61, 0.0  ;;  %v11764_v20 = vadd.f32 %v2396_v4, %v2308_v45  ;;  %2168 = vmatmul.bf16.gmra.mxu2 %v11608_v46  ;;  %2346 = vmatmul.bf16.gmra.mxu0 %v11608_v46  ;;  %v9146_v61 = vor.u32 %v10220_v17, %v9145_v42 }
 0x24b   : > { %2257 = vmatmul.bf16.gmra.mxu3 %v1907_v39  ;;  %2435 = vmatmul.bf16.gmra.mxu1 %v1907_v39 }
 0x24c   : > { %v11776_v58 = vpack.c.bf16 %v1888_v53, %v1886_v43  ;;  %2861 = vmatpush.bf16.msrb.mxu3 %v9146_v61  ;;  %v1799_v53 = vadd.f32 %v11638_v1, %v1710_v59  ;;  %2949 = vmatpush.bf16.msrb.mxu0 %v9094_v23 }
 0x24d   : > { %v2129_v56 = vpop.f32.mrf.mxu2 }
 0x24e   : > { %v2130_v46 = vadd.f32 %v2129_v56, %v11768_v8  ;;  %v2218_v62 = vpop.f32.mrf.mxu3  ;;  %v1869_v37 = vmax.f32 %v1799_v53, 0.0 }
 0x24f   : > { %v11781_v5 = vpop.f32.mrf.mxu0 }
 0x250   : > { %v2219_v27 = vadd.f32 %v2218_v62, %v2130_v46  ;;  %v11783_v0 = vpop.f32.mrf.mxu1  ;;  %v1867_v62 = vmax.f32 %v11621_v47, 0.0  ;;  %v9049_v47 = vld [vmem:[%s15662_s5 + $0x10] sm:$0xf] }
 0x252   : > { %v2476_v24 = vmax.f32 %v2219_v27, 0.0 }
 0x255   : > { %v2131_v33 = vpop.f32.mrf.mxu2 }
 0x256   : > { %v2132_v36 = vadd.f32 %v2131_v33, %v11768_v8  ;;  %v2220_v12 = vpop.f32.mrf.mxu3  ;;  %v1911_v33 = vpack.c.bf16 %v1869_v37, %v1867_v62  ;;  %v1720_v62 = vadd.f32 %v11676_v40, %v11274_v44  ;;  %v9083_v40 = vld [vmem:[%s15662_s5 + $0x58] sm:$0xf0] }
 0x257   : > { %v2312_v22 = vpop.f32.mrf.mxu0 }
 0x258   : > { %v2221_v13 = vadd.f32 %v2220_v12, %v2132_v36  ;;  %v2313_v3 = vadd.f32 %v2312_v22, %v11759_v16  ;;  %v2401_v31 = vpop.f32.mrf.mxu1  ;;  %v10196_v22 = vld [vmem:[%s15662_s5 + $0x14] sm:$0xf0] }
 0x25a   : > { %v2478_v29 = vmax.f32 %v2221_v13, 0.0  ;;  %v11789_v49 = vadd.f32 %v2401_v31, %v2313_v3  ;;  %2173 = vmatmul.bf16.gmra.mxu2 %v11631_v50  ;;  %2351 = vmatmul.bf16.gmra.mxu0 %v11631_v50  ;;  %v1715_v3 = vadd.f32 %v11653_v25, %v11274_v44  ;;  %v1871_v25 = vmax.f32 %v11644_v18, 0.0  ;;  %v9137_v18 = vld [vmem:[%s15662_s5 + $0xc0] sm:$0xf] }
 0x25b   : > { %2262 = vmatmul.bf16.gmra.mxu3 %v1909_v15  ;;  %2440 = vmatmul.bf16.gmra.mxu1 %v1909_v15  ;;  %v9050_v15 = vor.u32 %v10196_v22, %v9049_v47  ;;  %v10203_v47 = vld [vmem:[%s15662_s5 + $0x54] sm:$0xf] }
 0x25c   : > { %v11793_v48 = vpack.c.bf16 %v2478_v29, %v2476_v24  ;;  %v1804_v59 = vadd.f32 %v11655_v2, %v1715_v3  ;;  %v10218_v2 = vld [vmem:[%s15662_s5 + $0xc4] sm:$0xf0]  ;;  %v9086_v22 = vor.u32 %v10203_v47, %v9083_v40  ;;  %v9147_v47 = vld [vmem:[%s15662_s5 + $0xd8] sm:$0xf0] }
 0x25d   : > { %v2134_v54 = vpop.f32.mrf.mxu2  ;;  %2776 = vmatpush.bf16.msrb.mxu2 %v9050_v15 }
 0x25e   : > { %v2135_v45 = vadd.f32 %v2134_v54, %v11768_v8  ;;  %v2223_v50 = vpop.f32.mrf.mxu3  ;;  %v1873_v54 = vmax.f32 %v1804_v59, 0.0  ;;  %2950 = vmatpush.bf16.msrb.mxu0 %v9086_v22 }
 0x25f   : > { %v11804_v4 = vpop.f32.mrf.mxu0 }
 0x260   : > { %v2224_v39 = vadd.f32 %v2223_v50, %v2135_v45  ;;  %v11806_v43 = vpop.f32.mrf.mxu1  ;;  %v1913_v23 = vpack.c.bf16 %v1873_v54, %v1871_v25 }
 0x262   : > { %v2480_v36 = vmax.f32 %v2224_v39, 0.0 }
 0x265   : > { %v2136_v56 = vpop.f32.mrf.mxu2 }
 0x266   : > { %v2137_v11 = vadd.f32 %v2136_v56, %v11768_v8  ;;  %v2225_v46 = vpop.f32.mrf.mxu3 }
 0x267   : > { %v2317_v27 = vpop.f32.mrf.mxu0 }
 0x268   : > { %v2226_v32 = vadd.f32 %v2225_v46, %v2137_v11  ;;  %v2318_v1 = vadd.f32 %v2317_v27, %v11759_v16  ;;  %v2406_v6 = vpop.f32.mrf.mxu1 }
 0x26a   : > { %v2482_v12 = vmax.f32 %v2226_v32, 0.0  ;;  %v11818_v14 = vadd.f32 %v2406_v6, %v2318_v1  ;;  %2178 = vmatmul.bf16.gmra.mxu2 %v11648_v41  ;;  %2356 = vmatmul.bf16.gmra.mxu0 %v11648_v41  ;;  %v9138_v32 = vor.u32 %v10218_v2, %v9137_v18 }
 0x26b   : > { %2267 = vmatmul.bf16.gmra.mxu3 %v1911_v33  ;;  %2445 = vmatmul.bf16.gmra.mxu1 %v1911_v33 }
 0x26c   : > { %v11828_v13 = vpack.c.bf16 %v2482_v12, %v2480_v36  ;;  %2862 = vmatpush.bf16.msrb.mxu3 %v9138_v32  ;;  %v1809_v12 = vadd.f32 %v11678_v30, %v1720_v62 }
 0x26d   : > { %v2139_v31 = vpop.f32.mrf.mxu2 }
 0x26e   : > { %v2140_v24 = vadd.f32 %v2139_v31, %v11768_v8  ;;  %v2228_v41 = vpop.f32.mrf.mxu3  ;;  %v1877_v3 = vmax.f32 %v1809_v12, 0.0  ;;  %v10219_v12 = vld [vmem:[%s15662_s5 + $0xd4] sm:$0xf] }
 0x26f   : > { %v11833_v29 = vpop.f32.mrf.mxu0  ;;  %v9150_v40 = vor.u32 %v10219_v12, %v9147_v47  ;;  %v9121_v12 = vld [vmem:[%s15662_s5 + $0xa0] sm:$0xf]  ;;  %v10214_v47 = vld [vmem:[%s15662_s5 + $0xa4] sm:$0xf0] }
 0x270   : > { %v2229_v42 = vadd.f32 %v2228_v41, %v2140_v24  ;;  %v11835_v17 = vpop.f32.mrf.mxu1  ;;  %v1875_v41 = vmax.f32 %v11661_v52, 0.0 }
 0x272   : > { %v2484_v37 = vmax.f32 %v2229_v42, 0.0 }
 0x275   : > { %v2141_v61 = vpop.f32.mrf.mxu2 }
 0x276   : > { %v2142_v45 = vadd.f32 %v2141_v61, %v11768_v8  ;;  %v2230_v50 = vpop.f32.mrf.mxu3  ;;  %v1915_v61 = vpack.c.bf16 %v1877_v3, %v1875_v41 }
 0x277   : > { %v2322_v39 = vpop.f32.mrf.mxu0 }
 0x278   : > { %v2231_v53 = vadd.f32 %v2230_v50, %v2142_v45  ;;  %v2323_v55 = vadd.f32 %v2322_v39, %v11759_v16  ;;  %v2411_v28 = vpop.f32.mrf.mxu1  ;;  %v10223_v45 = vld [vmem:[%s15662_s5 + $0xf4] sm:$0xf]  ;;  %v9163_v50 = vld [vmem:[%s15662_s5 + $0xf8] sm:$0xf0] }
 0x279   : > { %v9166_v52 = vor.u32 %v10223_v45, %v9163_v50 }
 0x27a   : > { %v2486_v56 = vmax.f32 %v2231_v53, 0.0  ;;  %v11841_v11 = vadd.f32 %v2411_v28, %v2323_v55  ;;  %2183 = vmatmul.bf16.gmra.mxu2 %v11671_v60  ;;  %2361 = vmatmul.bf16.gmra.mxu0 %v11671_v60  ;;  %v1725_v55 = vadd.f32 %v11699_v51, %v11274_v44  ;;  %v9041_v28 = vld [vmem:[%s15662_s5] sm:$0xf]  ;;  %v9155_v51 = vld [vmem:[%s15662_s5 + $0xe8] sm:$0xf0] }
 0x27b   : > { %2272 = vmatmul.bf16.gmra.mxu3 %v1913_v23  ;;  %2450 = vmatmul.bf16.gmra.mxu1 %v1913_v23  ;;  %v10194_v23 = vld [vmem:[%s15662_s5 + $0x4] sm:$0xf0] }
 0x27c   : > { %v11851_v46 = vpack.c.bf16 %v2486_v56, %v2484_v37  ;;  %3037 = vmatpush.bf16.msrb.mxu1 %v9166_v52  ;;  %v9042_v18 = vor.u32 %v10194_v23, %v9041_v28  ;;  %v9129_v52 = vld [vmem:[%s15662_s5 + $0xb0] sm:$0xf] }
 0x27d   : > { %v2144_v27 = vpop.f32.mrf.mxu2 }
 0x27e   : > { %v2145_v1 = vadd.f32 %v2144_v27, %v11768_v8  ;;  %v2233_v60 = vpop.f32.mrf.mxu3  ;;  %2777 = vmatpush.bf16.msrb.mxu2 %v9042_v18 }
 0x27f   : > { %v11856_v6 = vpop.f32.mrf.mxu0 }
 0x280   : > { %v2234_v33 = vadd.f32 %v2233_v60, %v2145_v1  ;;  %v11858_v36 = vpop.f32.mrf.mxu1  ;;  %v1814_v1 = vadd.f32 %v11701_v57, %v1725_v55  ;;  %v10201_v57 = vld [vmem:[%s15662_s5 + $0x44] sm:$0xf]  ;;  %v10216_v55 = vld [vmem:[%s15662_s5 + $0xb4] sm:$0xf0] }
 0x281   : > { %v9130_v18 = vor.u32 %v10216_v55, %v9129_v52  ;;  %v9115_v55 = vld [vmem:[%s15662_s5 + $0x98] sm:$0xf0] }
 0x282   : > { %v2488_v25 = vmax.f32 %v2234_v33, 0.0  ;;  %v1881_v22 = vmax.f32 %v1814_v1, 0.0 }
 0x283   : > { %2863 = vmatpush.bf16.msrb.mxu3 %v9130_v18  ;;  %v9105_v18 = vld [vmem:[%s15662_s5 + $0x80] sm:$0xf] }
 0x285   : > { %v2146_v31 = vpop.f32.mrf.mxu2 }
 0x286   : > { %v2147_v15 = vadd.f32 %v2146_v31, %v11768_v8  ;;  %v2235_v24 = vpop.f32.mrf.mxu3  ;;  %v9075_v31 = vld [vmem:[%s15662_s5 + $0x48] sm:$0xf0] }
 0x287   : > { %v2327_v42 = vpop.f32.mrf.mxu0 }
 0x288   : > { %v2236_v59 = vadd.f32 %v2235_v24, %v2147_v15  ;;  %v2328_v30 = vadd.f32 %v2327_v42, %v11759_v16  ;;  %v2416_v54 = vpop.f32.mrf.mxu1  ;;  %v10217_v15 = vld [vmem:[%s15662_s5 + $0xc4] sm:$0xf]  ;;  %v9078_v42 = vor.u32 %v10201_v57, %v9075_v31  ;;  %v9059_v57 = vld [vmem:[%s15662_s5 + $0x28] sm:$0xf0] }
 0x289   : > { %v10213_v31 = vld [vmem:[%s15662_s5 + $0xa4] sm:$0xf] }
 0x28a   : > { %v2490_v39 = vmax.f32 %v2236_v59, 0.0  ;;  %v11876_v53 = vadd.f32 %v2416_v54, %v2328_v30  ;;  %2188 = vmatmul.bf16.gmra.mxu2 %v11694_v35  ;;  %2366 = vmatmul.bf16.gmra.mxu0 %v11694_v35  ;;  %v10221_v35 = vld [vmem:[%s15662_s5 + $0xe4] sm:$0xf]  ;;  %v9139_v59 = vld [vmem:[%s15662_s5 + $0xc8] sm:$0xf0]  ;;  %v1879_v30 = vmax.f32 %v11684_v10, 0.0 }
 0x28b   : > { %2277 = vmatmul.bf16.gmra.mxu3 %v1915_v61  ;;  %2455 = vmatmul.bf16.gmra.mxu1 %v1915_v61  ;;  %v9158_v27 = vor.u32 %v10221_v35, %v9155_v51  ;;  %v9142_v61 = vor.u32 %v10217_v15, %v9139_v59  ;;  %v10199_v10 = vld [vmem:[%s15662_s5 + $0x34] sm:$0xf]  ;;  %v9067_v35 = vld [vmem:[%s15662_s5 + $0x38] sm:$0xf0]  ;;  %v9123_v15 = vld [vmem:[%s15662_s5 + $0xa8] sm:$0xf0] }
 0x28c   : > { %v11888_v37 = vpack.c.bf16 %v2490_v39, %v2488_v25  ;;  %2951 = vmatpush.bf16.msrb.mxu0 %v9078_v42  ;;  %v1917_v39 = vpack.c.bf16 %v1881_v22, %v1879_v30  ;;  %v10215_v51 = vld [vmem:[%s15662_s5 + $0xb4] sm:$0xf]  ;;  %v9126_v42 = vor.u32 %v10213_v31, %v9123_v15 }
 0x28d   : > { %v2149_v56 = vpop.f32.mrf.mxu2  ;;  %3038 = vmatpush.bf16.msrb.mxu1 %v9158_v27  ;;  %v1730_v27 = vadd.f32 %v11722_v19, %v11274_v44 }
 0x28e   : > { %v2150_v2 = vadd.f32 %v2149_v56, %v11768_v8  ;;  %v2238_v62 = vpop.f32.mrf.mxu3 }
 0x28f   : > { %v11897_v32 = vpop.f32.mrf.mxu0  ;;  %v1819_v59 = vadd.f32 %v11724_v7, %v1730_v27  ;;  %v9051_v7 = vld [vmem:[%s15662_s5 + $0x18] sm:$0xf0] }
 0x290   : > { %v2239_v60 = vadd.f32 %v2238_v62, %v2150_v2  ;;  %v11900_v33 = vpop.f32.mrf.mxu1  ;;  %v9070_v2 = vor.u32 %v10199_v10, %v9067_v35  ;;  %v9131_v62 = vld [vmem:[%s15662_s5 + $0xb8] sm:$0xf0]  ;;  %v10210_v35 = vld [vmem:[%s15662_s5 + $0x84] sm:$0xf0] }
 0x291   : > { %3039 = vmatpush.bf16.msrb.mxu1 %v9150_v40  ;;  %v10197_v40 = vld [vmem:[%s15662_s5 + $0x24] sm:$0xf]  ;;  %v1885_v10 = vmax.f32 %v1819_v59, 0.0  ;;  %v9106_v27 = vor.u32 %v10210_v35, %v9105_v18 }
 0x292   : > { %v2492_v28 = vmax.f32 %v2239_v60, 0.0  ;;  %2952 = vmatpush.bf16.msrb.mxu0 %v9070_v2 }
 0x295   : > { %v2151_v3 = vpop.f32.mrf.mxu2  ;;  %3040 = vmatpush.bf16.msrb.mxu1 %v9142_v61  ;;  %v9113_v61 = vld [vmem:[%s15662_s5 + $0x90] sm:$0xf] }
 0x296   : > { %v2152_v24 = vadd.f32 %v2151_v3, %v11768_v8  ;;  %v2240_v41 = vpop.f32.mrf.mxu3  ;;  %v9122_v3 = vor.u32 %v10214_v47, %v9121_v12  ;;  %v9107_v12 = vld [vmem:[%s15662_s5 + $0x88] sm:$0xf0]  ;;  %v1883_v47 = vmax.f32 %v11707_v63, 0.0  ;;  %v9225_v63 = vld [vmem:[%s15607_s10 + $0x70] sm:$0xf] }
 0x297   : > { %v2332_v54 = vpop.f32.mrf.mxu0 }
 0x298   : > { %v2241_v45 = vadd.f32 %v2240_v41, %v2152_v24  ;;  %v2333_v50 = vadd.f32 %v2332_v54, %v11759_v16  ;;  %v2421_v25 = vpop.f32.mrf.mxu1  ;;  %v9062_v41 = vor.u32 %v10197_v40, %v9059_v57  ;;  %2864 = vmatpush.bf16.msrb.mxu3 %v9122_v3  ;;  %v1919_v15 = vpack.c.bf16 %v1885_v10, %v1883_v47 }
 0x29a   : > { %v2494_v23 = vmax.f32 %v2241_v45, 0.0  ;;  %v11932_v56 = vadd.f32 %v2421_v25, %v2333_v50  ;;  %2193 = vmatmul.bf16.gmra.mxu2 %v11717_v9  ;;  %2371 = vmatmul.bf16.gmra.mxu0 %v11717_v9  ;;  %v9134_v9 = vor.u32 %v10215_v51, %v9131_v62  ;;  %v10212_v45 = vld [vmem:[%s15662_s5 + $0x94] sm:$0xf0]  ;;  %v10195_v50 = vld [vmem:[%s15662_s5 + $0x14] sm:$0xf] }
 0x29b   : > { %2282 = vmatmul.bf16.gmra.mxu3 %v1917_v39  ;;  %2460 = vmatmul.bf16.gmra.mxu1 %v1917_v39  ;;  %v9114_v25 = vor.u32 %v10212_v45, %v9113_v61  ;;  %v10211_v39 = vld [vmem:[%s15662_s5 + $0x94] sm:$0xf]  ;;  %v9054_v52 = vor.u32 %v10195_v50, %v9051_v7  ;;  %v10193_v51 = vld [vmem:[%s15662_s5 + $0x4] sm:$0xf]  ;;  %v10256_v61 = vld [vmem:[%s15607_s10 + $0x74] sm:$0xf0] }
 0x29c   : > { %v11947_v1 = vpack.c.bf16 %v2494_v23, %v2492_v28  ;;  %3041 = vmatpush.bf16.msrb.mxu1 %v9134_v9  ;;  %2953 = vmatpush.bf16.msrb.mxu0 %v9062_v41  ;;  %v9118_v28 = vor.u32 %v10211_v39, %v9115_v55  ;;  %v9043_v9 = vld [vmem:[%s15662_s5 + $0x8] sm:$0xf0] }
 0x29d   : > { %v2154_v60 = vpop.f32.mrf.mxu2  ;;  %2865 = vmatpush.bf16.msrb.mxu3 %v9114_v25  ;;  %v9226_v25 = vor.u32 %v10256_v61, %v9225_v63  ;;  %v2477_v63 = vmax.f32 %v11764_v20, 0.0  ;;  %v9217_v20 = vld [vmem:[%s15607_s10 + $0x60] sm:$0xf] }
 0x29e   : > { %v2155_v19 = vadd.f32 %v2154_v60, %v11768_v8  ;;  %v2243_v22 = vpop.f32.mrf.mxu3  ;;  %v10209_v60 = vld [vmem:[%s15662_s5 + $0x84] sm:$0xf] }
 0x29f   : > { %v11968_v24 = vpop.f32.mrf.mxu0  ;;  %v9110_v31 = vor.u32 %v10209_v60, %v9107_v12  ;;  %3430 = vmatpush.bf16.msra.mxu2 %v9226_v25 }
 0x2a0   : > { %v2244_v30 = vadd.f32 %v2243_v22, %v2155_v19  ;;  %v11971_v54 = vpop.f32.mrf.mxu1  ;;  %3042 = vmatpush.bf16.msrb.mxu1 %v9126_v42  ;;  %2954 = vmatpush.bf16.msrb.mxu0 %v9054_v52  ;;  %v9046_v19 = vor.u32 %v10193_v51, %v9043_v9 }
 0x2a1   : > { %2866 = vmatpush.bf16.msrb.mxu3 %v9106_v27 }
 0x2a2   : > { %v2496_v41 = vmax.f32 %v2244_v30, 0.0  ;;  %v1735_v30 = vadd.f32 %v11745_v38, %v11274_v44  ;;  %v1887_v44 = vmax.f32 %v11730_v34, 0.0  ;;  %v2310_v34 = vadd.f32 %v11781_v5, %v11759_v16 }
 0x2a4   : > { %3043 = vmatpush.bf16.msrb.mxu1 %v9118_v28  ;;  %2955 = vmatpush.bf16.msrb.mxu0 %v9046_v19  ;;  %v1824_v10 = vadd.f32 %v11747_v21, %v1735_v30 }
 0x2a5   : > { %v2156_v23 = vpop.f32.mrf.mxu2 }
 0x2a6   : > { %v2157_v2 = vadd.f32 %v2156_v23, %v11768_v8  ;;  %v2245_v62 = vpop.f32.mrf.mxu3  ;;  %v1889_v28 = vmax.f32 %v1824_v10, 0.0 }
 0x2a7   : > { %v2337_v40 = vpop.f32.mrf.mxu0 }
 0x2a8   : > { %v2246_v22 = vadd.f32 %v2245_v62, %v2157_v2  ;;  %v2338_v3 = vadd.f32 %v2337_v40, %v11759_v16  ;;  %v2426_v57 = vpop.f32.mrf.mxu1  ;;  %3044 = vmatpush.bf16.msrb.mxu1 %v9110_v31  ;;  %v1921_v27 = vpack.c.bf16 %v1889_v28, %v1887_v44  ;;  %v2399_v31 = vadd.f32 %v11783_v0, %v2310_v34  ;;  %v10254_v0 = vld [vmem:[%s15607_s10 + $0x64] sm:$0xf0] }
 0x2a9   : > { %v2315_v28 = vadd.f32 %v11804_v4, %v11759_v16  ;;  %v2481_v4 = vmax.f32 %v11789_v49, 0.0  ;;  %v2320_v49 = vadd.f32 %v11833_v29, %v11759_v16 }
 0x2aa   : > { %v2498_v42 = vmax.f32 %v2246_v22, 0.0  ;;  %v12012_v59 = vadd.f32 %v2426_v57, %v2338_v3  ;;  %2198 = vmatmul.bf16.gmra.mxu2 %v11740_v26  ;;  %2376 = vmatmul.bf16.gmra.mxu0 %v11740_v26 }
 0x2ab   : > { %2287 = vmatmul.bf16.gmra.mxu3 %v1919_v15  ;;  %2465 = vmatmul.bf16.gmra.mxu1 %v1919_v15  ;;  %v2479_v15 = vmax.f32 %v2399_v31, 0.0 }
 0x2ac   : > { %v12022_v45 = vpack.c.bf16 %v2498_v42, %v2496_v41 }
 0x2ad   : > { %v2159_v50 = vpop.f32.mrf.mxu2  ;;  %v2541_v25 = vpack.c.bf16 %v2479_v15, %v2477_v63 }
 0x2ae   : > { %v2160_v26 = vadd.f32 %v2159_v50, %v11768_v8  ;;  %v2248_v7 = vpop.f32.mrf.mxu3 }
 0x2af   : > { %v12027_v39 = vpop.f32.mrf.mxu0 }
 0x2b0   : > { %v2249_v52 = vadd.f32 %v2248_v7, %v2160_v26  ;;  %v12029_v55 = vpop.f32.mrf.mxu1 }
 0x2b2   : > { %v2500_v9 = vmax.f32 %v2249_v52, 0.0 }
 0x2b5   : > { %v2161_v23 = vpop.f32.mrf.mxu2 }
 0x2b6   : > { %v2162_v18 = vadd.f32 %v2161_v23, %v11768_v8  ;;  %v2250_v35 = vpop.f32.mrf.mxu3 }
 0x2b7   : > { %v2342_v38 = vpop.f32.mrf.mxu0 }
 0x2b8   : > { %v2251_v51 = vadd.f32 %v2250_v35, %v2162_v18  ;;  %v2343_v2 = vadd.f32 %v2342_v38, %v11759_v16  ;;  %v2431_v62 = vpop.f32.mrf.mxu1  ;;  %v9218_v18 = vor.u32 %v10254_v0, %v9217_v20  ;;  %v2485_v20 = vmax.f32 %v11818_v14, 0.0  ;;  %v9209_v14 = vld [vmem:[%s15607_s10 + $0x50] sm:$0xf] }
 0x2ba   : > { %v2502_v60 = vmax.f32 %v2251_v51, 0.0  ;;  %v12035_v12 = vadd.f32 %v2431_v62, %v2343_v2  ;;  %2203 = vmatmul.bf16.gmra.mxu2 %v11776_v58  ;;  %2381 = vmatmul.bf16.gmra.mxu0 %v11776_v58  ;;  %v2404_v2 = vadd.f32 %v11806_v43, %v2315_v28 }
 0x2bb   : > { %2292 = vmatmul.bf16.gmra.mxu3 %v1921_v27  ;;  %2470 = vmatmul.bf16.gmra.mxu1 %v1921_v27 }
 0x2bc   : > { %v12039_v21 = vpack.c.bf16 %v2502_v60, %v2500_v9  ;;  %3431 = vmatpush.bf16.msra.mxu2 %v9218_v18  ;;  %v2483_v62 = vmax.f32 %v2404_v2, 0.0 }
 0x2bd   : > { %v2164_v47 = vpop.f32.mrf.mxu2 }
 0x2be   : > { %v2165_v40 = vadd.f32 %v2164_v47, %v11768_v8  ;;  %v2253_v19 = vpop.f32.mrf.mxu3 }
 0x2bf   : > { %v12044_v22 = vpop.f32.mrf.mxu0 }
 0x2c0   : > { %v2254_v3 = vadd.f32 %v2253_v19, %v2165_v40  ;;  %v12046_v57 = vpop.f32.mrf.mxu1 }
 0x2c2   : > { %v2504_v26 = vmax.f32 %v2254_v3, 0.0  ;;  %v2543_v3 = vpack.c.bf16 %v2483_v62, %v2481_v4  ;;  %v2325_v62 = vadd.f32 %v11856_v6, %v11759_v16  ;;  %v2489_v6 = vmax.f32 %v11841_v11, 0.0 }
 0x2c3   : > { %v2330_v11 = vadd.f32 %v11897_v32, %v11759_v16 }
 0x2c5   : > { %v2166_v58 = vpop.f32.mrf.mxu2 }
 0x2c6   : > { %v2167_v41 = vadd.f32 %v2166_v58, %v11768_v8  ;;  %v2255_v42 = vpop.f32.mrf.mxu3 }
 0x2c7   : > { %v2347_v61 = vpop.f32.mrf.mxu0 }
 0x2c8   : > { %v2256_v5 = vadd.f32 %v2255_v42, %v2167_v41  ;;  %v2348_v30 = vadd.f32 %v2347_v61, %v11759_v16  ;;  %v2436_v50 = vpop.f32.mrf.mxu1 }
 0x2ca   : > { %v2506_v7 = vmax.f32 %v2256_v5, 0.0  ;;  %v12052_v52 = vadd.f32 %v2436_v50, %v2348_v30  ;;  %2778 = vmatmul.bf16.vlgmr.msrb.gmra.mxu2 %v11793_v48  ;;  %2956 = vmatmul.bf16.vlgmr.msrb.gmra.mxu0 %v11793_v48  ;;  %v2409_v50 = vadd.f32 %v11835_v17, %v2320_v49  ;;  %v10252_v17 = vld [vmem:[%s15607_s10 + $0x54] sm:$0xf0] }
 0x2cb   : > { %2867 = vmatmul.bf16.vlgmr.msrb.gmra.mxu3 %v2541_v25  ;;  %3045 = vmatmul.bf16.vlgmr.msrb.gmra.mxu1 %v2541_v25 }
 0x2cc   : > { %v12062_v10 = vpack.c.bf16 %v2506_v7, %v2504_v26  ;;  %v2487_v25 = vmax.f32 %v2409_v50, 0.0 }
 0x2cd   : > { %v2169_v23 = vpop.f32.mrf.mxu2 }
 0x2ce   : > { %v2170_v35 = vadd.f32 %v2169_v23, %v11768_v8  ;;  %v2258_v48 = vpop.f32.mrf.mxu3  ;;  %v2545_v18 = vpack.c.bf16 %v2487_v25, %v2485_v20 }
 0x2cf   : > { %v12067_v44 = vpop.f32.mrf.mxu0 }
 0x2d0   : > { %v2259_v38 = vadd.f32 %v2258_v48, %v2170_v35  ;;  %v12069_v51 = vpop.f32.mrf.mxu1 }
 0x2d2   : > { %v2508_v31 = vmax.f32 %v2259_v38, 0.0 }
 0x2d5   : > { %v2171_v27 = vpop.f32.mrf.mxu2 }
 0x2d6   : > { %v2172_v9 = vadd.f32 %v2171_v27, %v11768_v8  ;;  %v2260_v60 = vpop.f32.mrf.mxu3 }
 0x2d7   : > { %v2352_v34 = vpop.f32.mrf.mxu0 }
 0x2d8   : > { %v2261_v47 = vadd.f32 %v2260_v60, %v2172_v9  ;;  %v2353_v40 = vadd.f32 %v2352_v34, %v11759_v16  ;;  %v2441_v19 = vpop.f32.mrf.mxu1  ;;  %v9210_v9 = vor.u32 %v10252_v17, %v9209_v14  ;;  %v2493_v14 = vmax.f32 %v11876_v53, 0.0  ;;  %v9201_v53 = vld [vmem:[%s15607_s10 + $0x40] sm:$0xf] }
 0x2da   : > { %v2510_v15 = vmax.f32 %v2261_v47, 0.0  ;;  %v12075_v58 = vadd.f32 %v2441_v19, %v2353_v40  ;;  %2783 = vmatmul.bf16.gmra.mxu2 %v11828_v13  ;;  %2961 = vmatmul.bf16.gmra.mxu0 %v11828_v13  ;;  %v2414_v40 = vadd.f32 %v11858_v36, %v2325_v62 }
 0x2db   : > { %2872 = vmatmul.bf16.gmra.mxu3 %v2543_v3  ;;  %3050 = vmatmul.bf16.gmra.mxu1 %v2543_v3 }
 0x2dc   : > { %v12079_v43 = vpack.c.bf16 %v2510_v15, %v2508_v31  ;;  %3432 = vmatpush.bf16.msra.mxu2 %v9210_v9  ;;  %v2491_v19 = vmax.f32 %v2414_v40, 0.0 }
 0x2dd   : > { %v2174_v41 = vpop.f32.mrf.mxu2 }
 0x2de   : > { %v2175_v42 = vadd.f32 %v2174_v41, %v11768_v8  ;;  %v2263_v63 = vpop.f32.mrf.mxu3 }
 0x2df   : > { %v12084_v61 = vpop.f32.mrf.mxu0 }
 0x2e0   : > { %v2264_v5 = vadd.f32 %v2263_v63, %v2175_v42  ;;  %v12086_v30 = vpop.f32.mrf.mxu1 }
 0x2e2   : > { %v2512_v35 = vmax.f32 %v2264_v5, 0.0  ;;  %v2547_v5 = vpack.c.bf16 %v2491_v19, %v2489_v6  ;;  %v2335_v19 = vadd.f32 %v11968_v24, %v11759_v16  ;;  %v2497_v24 = vmax.f32 %v11932_v56, 0.0 }
 0x2e3   : > { %v2340_v56 = vadd.f32 %v12027_v39, %v11759_v16 }
 0x2e5   : > { %v2176_v13 = vpop.f32.mrf.mxu2 }
 0x2e6   : > { %v2177_v26 = vadd.f32 %v2176_v13, %v11768_v8  ;;  %v2265_v7 = vpop.f32.mrf.mxu3 }
 0x2e7   : > { %v2357_v0 = vpop.f32.mrf.mxu0 }
 0x2e8   : > { %v2266_v29 = vadd.f32 %v2265_v7, %v2177_v26  ;;  %v2358_v28 = vadd.f32 %v2357_v0, %v11759_v16  ;;  %v2446_v23 = vpop.f32.mrf.mxu1 }
 0x2ea   : > { %v2514_v48 = vmax.f32 %v2266_v29, 0.0  ;;  %v12092_v38 = vadd.f32 %v2446_v23, %v2358_v28  ;;  %2788 = vmatmul.bf16.gmra.mxu2 %v11851_v46  ;;  %2966 = vmatmul.bf16.gmra.mxu0 %v11851_v46  ;;  %v2419_v23 = vadd.f32 %v11900_v33, %v2330_v11  ;;  %v10250_v33 = vld [vmem:[%s15607_s10 + $0x44] sm:$0xf0] }
 0x2eb   : > { %2877 = vmatmul.bf16.gmra.mxu3 %v2545_v18  ;;  %3055 = vmatmul.bf16.gmra.mxu1 %v2545_v18 }
 0x2ec   : > { %v12102_v2 = vpack.c.bf16 %v2514_v48, %v2512_v35  ;;  %v2495_v18 = vmax.f32 %v2419_v23, 0.0 }
 0x2ed   : > { %v2179_v27 = vpop.f32.mrf.mxu2 }
 0x2ee   : > { %v2180_v60 = vadd.f32 %v2179_v27, %v11768_v8  ;;  %v2268_v46 = vpop.f32.mrf.mxu3  ;;  %v2549_v9 = vpack.c.bf16 %v2495_v18, %v2493_v14 }
 0x2ef   : > { %v12107_v4 = vpop.f32.mrf.mxu0 }
 0x2f0   : > { %v2269_v34 = vadd.f32 %v2268_v46, %v2180_v60  ;;  %v12109_v47 = vpop.f32.mrf.mxu1 }
 0x2f2   : > { %v2516_v50 = vmax.f32 %v2269_v34, 0.0 }
 0x2f5   : > { %v2181_v3 = vpop.f32.mrf.mxu2 }
 0x2f6   : > { %v2182_v31 = vadd.f32 %v2181_v3, %v11768_v8  ;;  %v2270_v15 = vpop.f32.mrf.mxu3 }
 0x2f7   : > { %v2362_v49 = vpop.f32.mrf.mxu0 }
 0x2f8   : > { %v2271_v41 = vadd.f32 %v2270_v15, %v2182_v31  ;;  %v2363_v42 = vadd.f32 %v2362_v49, %v11759_v16  ;;  %v2451_v63 = vpop.f32.mrf.mxu1  ;;  %v9202_v31 = vor.u32 %v10250_v33, %v9201_v53 }
 0x2fa   : > { %v2518_v25 = vmax.f32 %v2271_v41, 0.0  ;;  %v12115_v13 = vadd.f32 %v2451_v63, %v2363_v42  ;;  %2793 = vmatmul.bf16.gmra.mxu2 %v11888_v37  ;;  %2971 = vmatmul.bf16.gmra.mxu0 %v11888_v37  ;;  %v2424_v42 = vadd.f32 %v11971_v54, %v2335_v19  ;;  %v2501_v19 = vmax.f32 %v12012_v59, 0.0  ;;  %v9193_v59 = vld [vmem:[%s15607_s10 + $0x30] sm:$0xf] }
 0x2fb   : > { %2882 = vmatmul.bf16.gmra.mxu3 %v2547_v5  ;;  %3060 = vmatmul.bf16.gmra.mxu1 %v2547_v5 }
 0x2fc   : > { %v12119_v36 = vpack.c.bf16 %v2518_v25, %v2516_v50  ;;  %3433 = vmatpush.bf16.msra.mxu2 %v9202_v31  ;;  %v2499_v63 = vmax.f32 %v2424_v42, 0.0 }
 0x2fd   : > { %v2184_v26 = vpop.f32.mrf.mxu2 }
 0x2fe   : > { %v2185_v7 = vadd.f32 %v2184_v26, %v11768_v8  ;;  %v2273_v20 = vpop.f32.mrf.mxu3 }
 0x2ff   : > { %v12124_v0 = vpop.f32.mrf.mxu0 }
 0x300   : > { %v2274_v29 = vadd.f32 %v2273_v20, %v2185_v7  ;;  %v12126_v28 = vpop.f32.mrf.mxu1 }
 0x302   : > { %v2520_v60 = vmax.f32 %v2274_v29, 0.0  ;;  %v2551_v29 = vpack.c.bf16 %v2499_v63, %v2497_v24 }
 0x305   : > { %v2186_v37 = vpop.f32.mrf.mxu2 }
 0x306   : > { %v2187_v35 = vadd.f32 %v2186_v37, %v11768_v8  ;;  %v2275_v48 = vpop.f32.mrf.mxu3 }
 0x307   : > { %v2367_v17 = vpop.f32.mrf.mxu0 }
 0x308   : > { %v2276_v32 = vadd.f32 %v2275_v48, %v2187_v35  ;;  %v2368_v62 = vadd.f32 %v2367_v17, %v11759_v16  ;;  %v2456_v27 = vpop.f32.mrf.mxu1 }
 0x30a   : > { %v2522_v46 = vmax.f32 %v2276_v32, 0.0  ;;  %v12132_v34 = vadd.f32 %v2456_v27, %v2368_v62  ;;  %2798 = vmatmul.bf16.gmra.mxu2 %v11947_v1  ;;  %2976 = vmatmul.bf16.gmra.mxu0 %v11947_v1  ;;  %v2429_v27 = vadd.f32 %v12029_v55, %v2340_v56 }
 0x30b   : > { %2887 = vmatmul.bf16.gmra.mxu3 %v2549_v9  ;;  %3065 = vmatmul.bf16.gmra.mxu1 %v2549_v9  ;;  %v10272_v9 = vld [vmem:[%s15607_s10 + $0xf4] sm:$0xf0] }
 0x30c   : > { %v12142_v40 = vpack.c.bf16 %v2522_v46, %v2520_v60  ;;  %v2503_v60 = vmax.f32 %v2429_v27, 0.0 }
 0x30d   : > { %v2189_v3 = vpop.f32.mrf.mxu2 }
 0x30e   : > { %v2190_v15 = vadd.f32 %v2189_v3, %v11768_v8  ;;  %v2278_v1 = vpop.f32.mrf.mxu3 }
 0x30f   : > { %v12147_v6 = vpop.f32.mrf.mxu0 }
 0x310   : > { %v2279_v49 = vadd.f32 %v2278_v1, %v2190_v15  ;;  %v12149_v41 = vpop.f32.mrf.mxu1  ;;  %v2553_v1 = vpack.c.bf16 %v2503_v60, %v2501_v19 }
 0x312   : > { %v2524_v23 = vmax.f32 %v2279_v49, 0.0 }
 0x315   : > { %v2191_v5 = vpop.f32.mrf.mxu2 }
 0x316   : > { %v2192_v50 = vadd.f32 %v2191_v5, %v11768_v8  ;;  %v2280_v25 = vpop.f32.mrf.mxu3  ;;  %v10248_v5 = vld [vmem:[%s15607_s10 + $0x34] sm:$0xf0] }
 0x317   : > { %v2372_v11 = vpop.f32.mrf.mxu0 }
 0x318   : > { %v2281_v26 = vadd.f32 %v2280_v25, %v2192_v50  ;;  %v2373_v7 = vadd.f32 %v2372_v11, %v11759_v16  ;;  %v2461_v20 = vpop.f32.mrf.mxu1  ;;  %v2345_v25 = vadd.f32 %v12044_v22, %v11759_v16  ;;  %v9194_v11 = vor.u32 %v10248_v5, %v9193_v59 }
 0x319   : > { %v2505_v22 = vmax.f32 %v12035_v12, 0.0  ;;  %v2350_v12 = vadd.f32 %v12067_v44, %v11759_v16  ;;  %v10270_v44 = vld [vmem:[%s15607_s10 + $0xe4] sm:$0xf0] }
 0x31a   : > { %v2526_v18 = vmax.f32 %v2281_v26, 0.0  ;;  %v12155_v37 = vadd.f32 %v2461_v20, %v2373_v7  ;;  %2803 = vmatmul.bf16.gmra.mxu2 %v12022_v45  ;;  %2981 = vmatmul.bf16.gmra.mxu0 %v12022_v45  ;;  %v9289_v45 = vld [vmem:[%s15607_s10 + $0xf0] sm:$0xf] }
 0x31b   : > { %2892 = vmatmul.bf16.gmra.mxu3 %v2551_v29  ;;  %3070 = vmatmul.bf16.gmra.mxu1 %v2551_v29  ;;  %v9290_v39 = vor.u32 %v10272_v9, %v9289_v45 }
 0x31c   : > { %v12159_v54 = vpack.c.bf16 %v2526_v18, %v2524_v23  ;;  %3434 = vmatpush.bf16.msra.mxu2 %v9194_v11  ;;  %v2434_v23 = vadd.f32 %v12046_v57, %v2345_v25 }
 0x31d   : > { %v2194_v35 = vpop.f32.mrf.mxu2  ;;  %3519 = vmatpush.bf16.msra.mxu3 %v9290_v39 }
 0x31e   : > { %v2195_v48 = vadd.f32 %v2194_v35, %v11768_v8  ;;  %v2283_v14 = vpop.f32.mrf.mxu3  ;;  %v2507_v18 = vmax.f32 %v2434_v23, 0.0 }
 0x31f   : > { %v12164_v17 = vpop.f32.mrf.mxu0 }
 0x320   : > { %v2284_v32 = vadd.f32 %v2283_v14, %v2195_v48  ;;  %v12166_v62 = vpop.f32.mrf.mxu1  ;;  %v2555_v9 = vpack.c.bf16 %v2507_v18, %v2505_v22 }
 0x322   : > { %v2528_v49 = vmax.f32 %v2284_v32, 0.0 }
 0x325   : > { %v2196_v46 = vpop.f32.mrf.mxu2 }
 0x326   : > { %v2197_v53 = vadd.f32 %v2196_v46, %v11768_v8  ;;  %v2285_v33 = vpop.f32.mrf.mxu3 }
 0x327   : > { %v2377_v3 = vpop.f32.mrf.mxu0 }
 0x328   : > { %v2286_v31 = vadd.f32 %v2285_v33, %v2197_v53  ;;  %v2378_v55 = vadd.f32 %v2377_v3, %v11759_v16  ;;  %v2466_v15 = vpop.f32.mrf.mxu1 }
 0x32a   : > { %v2530_v42 = vmax.f32 %v2286_v31, 0.0  ;;  %v12178_v63 = vadd.f32 %v2466_v15, %v2378_v55  ;;  %2808 = vmatmul.bf16.gmra.mxu2 %v12039_v21  ;;  %2986 = vmatmul.bf16.gmra.mxu0 %v12039_v21  ;;  %v2439_v15 = vadd.f32 %v12069_v51, %v2350_v12  ;;  %v9227_v51 = vld [vmem:[%s15607_s10 + $0x78] sm:$0xf0] }
 0x32b   : > { %2897 = vmatmul.bf16.gmra.mxu3 %v2553_v1  ;;  %3075 = vmatmul.bf16.gmra.mxu1 %v2553_v1  ;;  %v9281_v1 = vld [vmem:[%s15607_s10 + $0xe0] sm:$0xf] }
 0x32c   : > { %v12188_v50 = vpack.c.bf16 %v2530_v42, %v2528_v49  ;;  %v9282_v49 = vor.u32 %v10270_v44, %v9281_v1  ;;  %v10255_v42 = vld [vmem:[%s15607_s10 + $0x74] sm:$0xf]  ;;  %v2511_v25 = vmax.f32 %v2439_v15, 0.0 }
 0x32d   : > { %v2199_v24 = vpop.f32.mrf.mxu2  ;;  %v9230_v5 = vor.u32 %v10255_v42, %v9227_v51 }
 0x32e   : > { %v2200_v26 = vadd.f32 %v2199_v24, %v11768_v8  ;;  %v2288_v21 = vpop.f32.mrf.mxu3  ;;  %3520 = vmatpush.bf16.msra.mxu3 %v9282_v49 }
 0x32f   : > { %v12193_v7 = vpop.f32.mrf.mxu0  ;;  %3608 = vmatpush.bf16.msra.mxu0 %v9230_v5 }
 0x330   : > { %v2289_v20 = vadd.f32 %v2288_v21, %v2200_v26  ;;  %v12195_v29 = vpop.f32.mrf.mxu1  ;;  %v2509_v21 = vmax.f32 %v12052_v52, 0.0  ;;  %v10246_v52 = vld [vmem:[%s15607_s10 + $0x24] sm:$0xf0] }
 0x332   : > { %v2532_v39 = vmax.f32 %v2289_v20, 0.0 }
 0x335   : > { %v2201_v56 = vpop.f32.mrf.mxu2 }
 0x336   : > { %v2202_v35 = vadd.f32 %v2201_v56, %v11768_v8  ;;  %v2290_v48 = vpop.f32.mrf.mxu3 }
 0x337   : > { %v2382_v14 = vpop.f32.mrf.mxu0 }
 0x338   : > { %v2291_v32 = vadd.f32 %v2290_v48, %v2202_v35  ;;  %v2383_v27 = vadd.f32 %v2382_v14, %v11759_v16  ;;  %v2471_v45 = vpop.f32.mrf.mxu1  ;;  %v2557_v35 = vpack.c.bf16 %v2511_v25, %v2509_v21 }
 0x33a   : > { %v2534_v60 = vmax.f32 %v2291_v32, 0.0  ;;  %v12201_v46 = vadd.f32 %v2471_v45, %v2383_v27  ;;  %2813 = vmatmul.bf16.gmra.mxu2 %v12062_v10  ;;  %2991 = vmatmul.bf16.gmra.mxu0 %v12062_v10  ;;  %v2604_v10 = vld [vmem:[%s15664_s1] sm:$0x3]  ;;  %v2355_v45 = vadd.f32 %v12084_v61, %v11759_v16  ;;  %v2513_v61 = vmax.f32 %v12075_v58, 0.0 }
 0x33b   : > { %2902 = vmatmul.bf16.gmra.mxu3 %v2555_v9  ;;  %3080 = vmatmul.bf16.gmra.mxu1 %v2555_v9  ;;  %v12230_v59 = vperm.slane %v2604_v10, 1  ;;  %v12239_v32 = vperm.slane %v2604_v10, 0  ;;  %v2360_v58 = vadd.f32 %v12107_v4, %v11759_v16 }
 0x33c   : > { %v12205_v57 = vpack.c.bf16 %v2534_v60, %v2532_v39 }
 0x33d   : > { %v2204_v53 = vpop.f32.mrf.mxu2 }
 0x33e   : > { %v2205_v33 = vadd.f32 %v2204_v53, %v11768_v8  ;;  %v2293_v19 = vpop.f32.mrf.mxu3 }
 0x33f   : > { %v12210_v3 = vpop.f32.mrf.mxu0 }
 0x340   : > { %v2294_v31 = vadd.f32 %v2293_v19, %v2205_v33  ;;  %v12212_v55 = vpop.f32.mrf.mxu1  ;;  %v2444_v19 = vadd.f32 %v12086_v30, %v2355_v45 }
 0x342   : > { %v2536_v48 = vmax.f32 %v2294_v31, 0.0  ;;  %v2515_v31 = vmax.f32 %v2444_v19, 0.0 }
 0x344   : > { %v2559_v5 = vpack.c.bf16 %v2515_v31, %v2513_v61 }
 0x345   : > { %v2206_v24 = vpop.f32.mrf.mxu2 }
 0x346   : > { %v2207_v11 = vadd.f32 %v2206_v24, %v11768_v8  ;;  %v2295_v26 = vpop.f32.mrf.mxu3  ;;  %v9185_v8 = vld [vmem:[%s15607_s10 + $0x20] sm:$0xf] }
 0x347   : > { %v2957_v20 = vpop.f32.mrf.mxu0  ;;  %v9186_v39 = vor.u32 %v10246_v52, %v9185_v8  ;;  %v9219_v8 = vld [vmem:[%s15607_s10 + $0x68] sm:$0xf0] }
 0x348   : > { %v2296_v23 = vadd.f32 %v2295_v26, %v2207_v11  ;;  %v2958_v18 = vadd.f32 %v2957_v20, %v12230_v59  ;;  %v3046_v56 = vpop.f32.mrf.mxu1 }
 0x349   : > { %3435 = vmatpush.bf16.msra.mxu2 %v9186_v39 }
 0x34a   : > { %v2538_v22 = vmax.f32 %v2296_v23, 0.0  ;;  %v12235_v14 = vadd.f32 %v3046_v56, %v2958_v18  ;;  %2818 = vmatmul.bf16.gmra.mxu2 %v12079_v43  ;;  %2996 = vmatmul.bf16.gmra.mxu0 %v12079_v43 }
 0x34b   : > { %2907 = vmatmul.bf16.gmra.mxu3 %v2557_v35  ;;  %3085 = vmatmul.bf16.gmra.mxu1 %v2557_v35  ;;  %v2449_v35 = vadd.f32 %v12109_v47, %v2360_v58 }
 0x34c   : > { %v12247_v27 = vpack.c.bf16 %v2538_v22, %v2536_v48  ;;  %v10268_v48 = vld [vmem:[%s15607_s10 + $0xd4] sm:$0xf0]  ;;  %v10253_v22 = vld [vmem:[%s15607_s10 + $0x64] sm:$0xf] }
 0x34d   : > { %v2779_v9 = vpop.f32.mrf.mxu2  ;;  %v9222_v52 = vor.u32 %v10253_v22, %v9219_v8  ;;  %v2519_v45 = vmax.f32 %v2449_v35, 0.0 }
 0x34e   : > { %v2780_v43 = vadd.f32 %v2779_v9, %v12239_v32  ;;  %v2868_v60 = vpop.f32.mrf.mxu3 }
 0x34f   : > { %v12252_v12 = vpop.f32.mrf.mxu0  ;;  %3609 = vmatpush.bf16.msra.mxu0 %v9222_v52 }
 0x350   : > { %v2869_v53 = vadd.f32 %v2868_v60, %v2780_v43  ;;  %v12254_v33 = vpop.f32.mrf.mxu1  ;;  %v2517_v43 = vmax.f32 %v12092_v38, 0.0  ;;  %v9177_v38 = vld [vmem:[%s15607_s10 + $0x10] sm:$0xf] }
 0x352   : > { %v3126_v25 = vmax.f32 %v2869_v53, 0.0 }
 0x355   : > { %v2781_v15 = vpop.f32.mrf.mxu2 }
 0x356   : > { %v2782_v10 = vadd.f32 %v2781_v15, %v12239_v32  ;;  %v2870_v1 = vpop.f32.mrf.mxu3  ;;  %v2561_v15 = vpack.c.bf16 %v2519_v45, %v2517_v43 }
 0x357   : > { %v2962_v44 = vpop.f32.mrf.mxu0 }
 0x358   : > { %v2871_v49 = vadd.f32 %v2870_v1, %v2782_v10  ;;  %v2963_v42 = vadd.f32 %v2962_v44, %v12230_v59  ;;  %v3051_v51 = vpop.f32.mrf.mxu1  ;;  %v10244_v44 = vld [vmem:[%s15607_s10 + $0x14] sm:$0xf0] }
 0x35a   : > { %v3128_v24 = vmax.f32 %v2871_v49, 0.0  ;;  %v12260_v11 = vadd.f32 %v3051_v51, %v2963_v42  ;;  %2823 = vmatmul.bf16.gmra.mxu2 %v12102_v2  ;;  %3001 = vmatmul.bf16.gmra.mxu0 %v12102_v2  ;;  %v9273_v2 = vld [vmem:[%s15607_s10 + $0xd0] sm:$0xf]  ;;  %v2365_v42 = vadd.f32 %v12124_v0, %v11759_v16  ;;  %v2521_v0 = vmax.f32 %v12115_v13, 0.0 }
 0x35b   : > { %2912 = vmatmul.bf16.gmra.mxu3 %v2559_v5  ;;  %3090 = vmatmul.bf16.gmra.mxu1 %v2559_v5  ;;  %v9274_v4 = vor.u32 %v10268_v48, %v9273_v2  ;;  %v9178_v5 = vor.u32 %v10244_v44, %v9177_v38  ;;  %v2370_v13 = vadd.f32 %v12147_v6, %v11759_v16  ;;  %v9211_v38 = vld [vmem:[%s15607_s10 + $0x58] sm:$0xf0] }
 0x35c   : > { %v12264_v30 = vpack.c.bf16 %v3128_v24, %v3126_v25 }
 0x35d   : > { %v2784_v26 = vpop.f32.mrf.mxu2  ;;  %3521 = vmatpush.bf16.msra.mxu3 %v9274_v4  ;;  %3436 = vmatpush.bf16.msra.mxu2 %v9178_v5 }
 0x35e   : > { %v2785_v21 = vadd.f32 %v2784_v26, %v12239_v32  ;;  %v2873_v20 = vpop.f32.mrf.mxu3 }
 0x35f   : > { %v12269_v23 = vpop.f32.mrf.mxu0 }
 0x360   : > { %v2874_v18 = vadd.f32 %v2873_v20, %v2785_v21  ;;  %v12271_v56 = vpop.f32.mrf.mxu1  ;;  %v2454_v21 = vadd.f32 %v12126_v28, %v2365_v42 }
 0x362   : > { %v3130_v10 = vmax.f32 %v2874_v18, 0.0  ;;  %v2523_v20 = vmax.f32 %v2454_v21, 0.0 }
 0x364   : > { %v2563_v52 = vpack.c.bf16 %v2523_v20, %v2521_v0 }
 0x365   : > { %v2786_v47 = vpop.f32.mrf.mxu2 }
 0x366   : > { %v2787_v9 = vadd.f32 %v2786_v47, %v12239_v32  ;;  %v2875_v39 = vpop.f32.mrf.mxu3 }
 0x367   : > { %v2967_v60 = vpop.f32.mrf.mxu0 }
 0x368   : > { %v2876_v53 = vadd.f32 %v2875_v39, %v2787_v9  ;;  %v2968_v19 = vadd.f32 %v2967_v60, %v12230_v59  ;;  %v3056_v31 = vpop.f32.mrf.mxu1 }
 0x36a   : > { %v3132_v1 = vmax.f32 %v2876_v53, 0.0  ;;  %v12289_v61 = vadd.f32 %v3056_v31, %v2968_v19  ;;  %2828 = vmatmul.bf16.gmra.mxu2 %v12119_v36  ;;  %3006 = vmatmul.bf16.gmra.mxu0 %v12119_v36 }
 0x36b   : > { %2917 = vmatmul.bf16.gmra.mxu3 %v2561_v15  ;;  %3095 = vmatmul.bf16.gmra.mxu1 %v2561_v15  ;;  %v2459_v15 = vadd.f32 %v12149_v41, %v2370_v13 }
 0x36c   : > { %v12299_v49 = vpack.c.bf16 %v3132_v1, %v3130_v10  ;;  %v10266_v10 = vld [vmem:[%s15607_s10 + $0xc4] sm:$0xf0]  ;;  %v10251_v1 = vld [vmem:[%s15607_s10 + $0x54] sm:$0xf] }
 0x36d   : > { %v2789_v51 = vpop.f32.mrf.mxu2  ;;  %v9214_v44 = vor.u32 %v10251_v1, %v9211_v38  ;;  %v2527_v42 = vmax.f32 %v2459_v15, 0.0  ;;  %v9275_v1 = vld [vmem:[%s15607_s10 + $0xd8] sm:$0xf0] }
 0x36e   : > { %v2790_v25 = vadd.f32 %v2789_v51, %v12239_v32  ;;  %v2878_v36 = vpop.f32.mrf.mxu3 }
 0x36f   : > { %v12304_v24 = vpop.f32.mrf.mxu0  ;;  %3610 = vmatpush.bf16.msra.mxu0 %v9214_v44 }
 0x370   : > { %v2879_v58 = vadd.f32 %v2878_v36, %v2790_v25  ;;  %v12306_v26 = vpop.f32.mrf.mxu1  ;;  %v2525_v25 = vmax.f32 %v12132_v34, 0.0 }
 0x372   : > { %v3134_v45 = vmax.f32 %v2879_v58, 0.0 }
 0x375   : > { %v2791_v18 = vpop.f32.mrf.mxu2 }
 0x376   : > { %v2792_v35 = vadd.f32 %v2791_v18, %v12239_v32  ;;  %v2880_v2 = vpop.f32.mrf.mxu3  ;;  %v2565_v18 = vpack.c.bf16 %v2527_v42, %v2525_v25 }
 0x377   : > { %v2972_v48 = vpop.f32.mrf.mxu0 }
 0x378   : > { %v2881_v4 = vadd.f32 %v2880_v2, %v2792_v35  ;;  %v2973_v22 = vadd.f32 %v2972_v48, %v12230_v59  ;;  %v3061_v8 = vpop.f32.mrf.mxu1  ;;  %v10271_v35 = vld [vmem:[%s15607_s10 + $0xf4] sm:$0xf]  ;;  %v9291_v2 = vld [vmem:[%s15607_s10 + $0xf8] sm:$0xf0] }
 0x379   : > { %v9294_v34 = vor.u32 %v10271_v35, %v9291_v2 }
 0x37a   : > { %v3136_v47 = vmax.f32 %v2881_v4, 0.0  ;;  %v12312_v9 = vadd.f32 %v3061_v8, %v2973_v22  ;;  %2833 = vmatmul.bf16.gmra.mxu2 %v12142_v40  ;;  %3011 = vmatmul.bf16.gmra.mxu0 %v12142_v40  ;;  %v9265_v40 = vld [vmem:[%s15607_s10 + $0xc0] sm:$0xf]  ;;  %v2375_v22 = vadd.f32 %v12164_v17, %v11759_v16  ;;  %v9283_v17 = vld [vmem:[%s15607_s10 + $0xe8] sm:$0xf0] }
 0x37b   : > { %2922 = vmatmul.bf16.gmra.mxu3 %v2563_v52  ;;  %3100 = vmatmul.bf16.gmra.mxu1 %v2563_v52  ;;  %v9266_v6 = vor.u32 %v10266_v10, %v9265_v40  ;;  %v9169_v8 = vld [vmem:[%s15607_s10] sm:$0xf]  ;;  %v10242_v52 = vld [vmem:[%s15607_s10 + $0x4] sm:$0xf0] }
 0x37c   : > { %v12316_v28 = vpack.c.bf16 %v3136_v47, %v3134_v45  ;;  %3697 = vmatpush.bf16.msra.mxu1 %v9294_v34  ;;  %v9170_v13 = vor.u32 %v10242_v52, %v9169_v8  ;;  %v2464_v15 = vadd.f32 %v12166_v62, %v2375_v22  ;;  %v10249_v62 = vld [vmem:[%s15607_s10 + $0x44] sm:$0xf]  ;;  %v9257_v34 = vld [vmem:[%s15607_s10 + $0xb0] sm:$0xf]  ;;  %v10264_v22 = vld [vmem:[%s15607_s10 + $0xb4] sm:$0xf0] }
 0x37d   : > { %v2794_v39 = vpop.f32.mrf.mxu2  ;;  %3522 = vmatpush.bf16.msra.mxu3 %v9266_v6  ;;  %v10267_v6 = vld [vmem:[%s15607_s10 + $0xd4] sm:$0xf] }
 0x37e   : > { %v2795_v43 = vadd.f32 %v2794_v39, %v12239_v32  ;;  %v2883_v60 = vpop.f32.mrf.mxu3  ;;  %3437 = vmatpush.bf16.msra.mxu2 %v9170_v13  ;;  %v9278_v38 = vor.u32 %v10267_v6, %v9275_v1  ;;  %v2531_v44 = vmax.f32 %v2464_v15, 0.0  ;;  %v9258_v13 = vor.u32 %v10264_v22, %v9257_v34  ;;  %v9249_v6 = vld [vmem:[%s15607_s10 + $0xa0] sm:$0xf]  ;;  %v10262_v1 = vld [vmem:[%s15607_s10 + $0xa4] sm:$0xf0] }
 0x37f   : > { %v12321_v53 = vpop.f32.mrf.mxu0  ;;  %v9243_v22 = vld [vmem:[%s15607_s10 + $0x98] sm:$0xf0] }
 0x380   : > { %v2884_v19 = vadd.f32 %v2883_v60, %v2795_v43  ;;  %v12323_v31 = vpop.f32.mrf.mxu1 }
 0x381   : > { %3523 = vmatpush.bf16.msra.mxu3 %v9258_v13  ;;  %v9233_v13 = vld [vmem:[%s15607_s10 + $0x80] sm:$0xf] }
 0x382   : > { %v3138_v0 = vmax.f32 %v2884_v19, 0.0 }
 0x385   : > { %v2796_v41 = vpop.f32.mrf.mxu2 }
 0x386   : > { %v2797_v51 = vadd.f32 %v2796_v41, %v12239_v32  ;;  %v2885_v5 = vpop.f32.mrf.mxu3  ;;  %v9203_v41 = vld [vmem:[%s15607_s10 + $0x48] sm:$0xf0] }
 0x387   : > { %v2977_v36 = vpop.f32.mrf.mxu0 }
 0x388   : > { %v2886_v58 = vadd.f32 %v2885_v5, %v2797_v51  ;;  %v2978_v21 = vadd.f32 %v2977_v36, %v12230_v59  ;;  %v3066_v20 = vpop.f32.mrf.mxu1  ;;  %v10265_v51 = vld [vmem:[%s15607_s10 + $0xc4] sm:$0xf]  ;;  %v9206_v36 = vor.u32 %v10249_v62, %v9203_v41  ;;  %v9187_v62 = vld [vmem:[%s15607_s10 + $0x28] sm:$0xf0] }
 0x389   : > { %v10261_v41 = vld [vmem:[%s15607_s10 + $0xa4] sm:$0xf] }
 0x38a   : > { %v3140_v48 = vmax.f32 %v2886_v58, 0.0  ;;  %v12347_v4 = vadd.f32 %v3066_v20, %v2978_v21  ;;  %2838 = vmatmul.bf16.gmra.mxu2 %v12159_v54  ;;  %3016 = vmatmul.bf16.gmra.mxu0 %v12159_v54  ;;  %v10269_v54 = vld [vmem:[%s15607_s10 + $0xe4] sm:$0xf]  ;;  %v9267_v58 = vld [vmem:[%s15607_s10 + $0xc8] sm:$0xf0]  ;;  %v2529_v21 = vmax.f32 %v12155_v37, 0.0 }
 0x38b   : > { %2927 = vmatmul.bf16.gmra.mxu3 %v2565_v18  ;;  %3105 = vmatmul.bf16.gmra.mxu1 %v2565_v18  ;;  %v9286_v60 = vor.u32 %v10269_v54, %v9283_v17  ;;  %v9270_v18 = vor.u32 %v10265_v51, %v9267_v58  ;;  %v10247_v37 = vld [vmem:[%s15607_s10 + $0x34] sm:$0xf]  ;;  %v9195_v54 = vld [vmem:[%s15607_s10 + $0x38] sm:$0xf0]  ;;  %v9251_v51 = vld [vmem:[%s15607_s10 + $0xa8] sm:$0xf0] }
 0x38c   : > { %v12359_v45 = vpack.c.bf16 %v3140_v48, %v3138_v0  ;;  %3611 = vmatpush.bf16.msra.mxu0 %v9206_v36  ;;  %v2567_v48 = vpack.c.bf16 %v2531_v44, %v2529_v21  ;;  %v10263_v17 = vld [vmem:[%s15607_s10 + $0xb4] sm:$0xf]  ;;  %v9254_v36 = vor.u32 %v10261_v41, %v9251_v51 }
 0x38d   : > { %v2799_v47 = vpop.f32.mrf.mxu2  ;;  %3698 = vmatpush.bf16.msra.mxu1 %v9286_v60  ;;  %v2380_v60 = vadd.f32 %v12193_v7, %v11759_v16 }
 0x38e   : > { %v2800_v39 = vadd.f32 %v2799_v47, %v12239_v32  ;;  %v2888_v43 = vpop.f32.mrf.mxu3 }
 0x38f   : > { %v12368_v19 = vpop.f32.mrf.mxu0  ;;  %v2469_v58 = vadd.f32 %v12195_v29, %v2380_v60  ;;  %v9179_v29 = vld [vmem:[%s15607_s10 + $0x18] sm:$0xf0] }
 0x390   : > { %v2889_v40 = vadd.f32 %v2888_v43, %v2800_v39  ;;  %v12371_v10 = vpop.f32.mrf.mxu1  ;;  %v9198_v39 = vor.u32 %v10247_v37, %v9195_v54  ;;  %v9259_v43 = vld [vmem:[%s15607_s10 + $0xb8] sm:$0xf0]  ;;  %v10258_v54 = vld [vmem:[%s15607_s10 + $0x84] sm:$0xf0] }
 0x391   : > { %3699 = vmatpush.bf16.msra.mxu1 %v9278_v38  ;;  %v10245_v38 = vld [vmem:[%s15607_s10 + $0x24] sm:$0xf]  ;;  %v2535_v37 = vmax.f32 %v2469_v58, 0.0  ;;  %v9234_v60 = vor.u32 %v10258_v54, %v9233_v13 }
 0x392   : > { %v3142_v8 = vmax.f32 %v2889_v40, 0.0  ;;  %3612 = vmatpush.bf16.msra.mxu0 %v9198_v39 }
 0x395   : > { %v2801_v42 = vpop.f32.mrf.mxu2  ;;  %3700 = vmatpush.bf16.msra.mxu1 %v9270_v18  ;;  %v9241_v18 = vld [vmem:[%s15607_s10 + $0x90] sm:$0xf] }
 0x396   : > { %v2802_v5 = vadd.f32 %v2801_v42, %v12239_v32  ;;  %v2890_v25 = vpop.f32.mrf.mxu3  ;;  %v9250_v42 = vor.u32 %v10262_v1, %v9249_v6  ;;  %v9235_v6 = vld [vmem:[%s15607_s10 + $0x88] sm:$0xf0]  ;;  %v2533_v1 = vmax.f32 %v12178_v63, 0.0  ;;  %v9353_v63 = vld [vmem:[%s15665_s28 + $0x70] sm:$0xf] }
 0x397   : > { %v2982_v20 = vpop.f32.mrf.mxu0 }
 0x398   : > { %v2891_v35 = vadd.f32 %v2890_v25, %v2802_v5  ;;  %v2983_v2 = vadd.f32 %v2982_v20, %v12230_v59  ;;  %v3071_v0 = vpop.f32.mrf.mxu1  ;;  %v9190_v25 = vor.u32 %v10245_v38, %v9187_v62  ;;  %3524 = vmatpush.bf16.msra.mxu3 %v9250_v42  ;;  %v2569_v51 = vpack.c.bf16 %v2535_v37, %v2533_v1 }
 0x39a   : > { %v3144_v52 = vmax.f32 %v2891_v35, 0.0  ;;  %v12403_v47 = vadd.f32 %v3071_v0, %v2983_v2  ;;  %2843 = vmatmul.bf16.gmra.mxu2 %v12188_v50  ;;  %3021 = vmatmul.bf16.gmra.mxu0 %v12188_v50  ;;  %v9262_v50 = vor.u32 %v10263_v17, %v9259_v43  ;;  %v10260_v35 = vld [vmem:[%s15607_s10 + $0x94] sm:$0xf0]  ;;  %v10243_v2 = vld [vmem:[%s15607_s10 + $0x14] sm:$0xf] }
 0x39b   : > { %2932 = vmatmul.bf16.gmra.mxu3 %v2567_v48  ;;  %3110 = vmatmul.bf16.gmra.mxu1 %v2567_v48  ;;  %v9242_v0 = vor.u32 %v10260_v35, %v9241_v18  ;;  %v10259_v48 = vld [vmem:[%s15607_s10 + $0x94] sm:$0xf]  ;;  %v9182_v34 = vor.u32 %v10243_v2, %v9179_v29  ;;  %v10241_v17 = vld [vmem:[%s15607_s10 + $0x4] sm:$0xf]  ;;  %v10240_v18 = vld [vmem:[%s15665_s28 + $0x74] sm:$0xf0] }
 0x39c   : > { %v12418_v15 = vpack.c.bf16 %v3144_v52, %v3142_v8  ;;  %3701 = vmatpush.bf16.msra.mxu1 %v9262_v50  ;;  %3613 = vmatpush.bf16.msra.mxu0 %v9190_v25  ;;  %v9246_v8 = vor.u32 %v10259_v48, %v9243_v22  ;;  %v9171_v50 = vld [vmem:[%s15607_s10 + $0x8] sm:$0xf0] }
 0x39d   : > { %v2804_v40 = vpop.f32.mrf.mxu2  ;;  %3525 = vmatpush.bf16.msra.mxu3 %v9242_v0  ;;  %v9354_v0 = vor.u32 %v10240_v18, %v9353_v63  ;;  %v3127_v63 = vmax.f32 %v12235_v14, 0.0  ;;  %v9345_v14 = vld [vmem:[%s15665_s28 + $0x60] sm:$0xf] }
 0x39e   : > { %v2805_v7 = vadd.f32 %v2804_v40, %v12239_v32  ;;  %v2893_v44 = vpop.f32.mrf.mxu3  ;;  %v10257_v40 = vld [vmem:[%s15607_s10 + $0x84] sm:$0xf] }
 0x39f   : > { %v12439_v5 = vpop.f32.mrf.mxu0  ;;  %v9238_v41 = vor.u32 %v10257_v40, %v9235_v6  ;;  %3866 = vmatpush.bf16.msrb.mxu2 %v9354_v0 }
 0x3a0   : > { %v2894_v21 = vadd.f32 %v2893_v44, %v2805_v7  ;;  %v12442_v20 = vpop.f32.mrf.mxu1  ;;  %3702 = vmatpush.bf16.msra.mxu1 %v9254_v36  ;;  %3614 = vmatpush.bf16.msra.mxu0 %v9182_v34  ;;  %v9174_v7 = vor.u32 %v10241_v17, %v9171_v50 }
 0x3a1   : > { %3526 = vmatpush.bf16.msra.mxu3 %v9234_v60 }
 0x3a2   : > { %v3146_v25 = vmax.f32 %v2894_v21, 0.0  ;;  %v2385_v21 = vadd.f32 %v12210_v3, %v11759_v16  ;;  %v2537_v16 = vmax.f32 %v12201_v46, 0.0  ;;  %v2960_v46 = vadd.f32 %v12252_v12, %v12230_v59 }
 0x3a4   : > { %3703 = vmatpush.bf16.msra.mxu1 %v9246_v8  ;;  %3615 = vmatpush.bf16.msra.mxu0 %v9174_v7  ;;  %v2474_v37 = vadd.f32 %v12212_v55, %v2385_v21 }
 0x3a5   : > { %v2806_v52 = vpop.f32.mrf.mxu2 }
 0x3a6   : > { %v2807_v39 = vadd.f32 %v2806_v52, %v12239_v32  ;;  %v2895_v43 = vpop.f32.mrf.mxu3  ;;  %v2539_v8 = vmax.f32 %v2474_v37, 0.0 }
 0x3a7   : > { %v2987_v38 = vpop.f32.mrf.mxu0 }
 0x3a8   : > { %v2896_v44 = vadd.f32 %v2895_v43, %v2807_v39  ;;  %v2988_v42 = vadd.f32 %v2987_v38, %v12230_v59  ;;  %v3076_v62 = vpop.f32.mrf.mxu1  ;;  %3704 = vmatpush.bf16.msra.mxu1 %v9238_v41  ;;  %v2571_v60 = vpack.c.bf16 %v2539_v8, %v2537_v16  ;;  %v3049_v41 = vadd.f32 %v12254_v33, %v2960_v46  ;;  %v10238_v33 = vld [vmem:[%s15665_s28 + $0x64] sm:$0xf0] }
 0x3a9   : > { %v2965_v8 = vadd.f32 %v12269_v23, %v12230_v59  ;;  %v3131_v23 = vmax.f32 %v12260_v11, 0.0  ;;  %v2970_v11 = vadd.f32 %v12304_v24, %v12230_v59 }
 0x3aa   : > { %v3148_v36 = vmax.f32 %v2896_v44, 0.0  ;;  %v12483_v58 = vadd.f32 %v3076_v62, %v2988_v42  ;;  %2848 = vmatmul.bf16.gmra.mxu2 %v12205_v57  ;;  %3026 = vmatmul.bf16.gmra.mxu0 %v12205_v57 }
 0x3ab   : > { %2937 = vmatmul.bf16.gmra.mxu3 %v2569_v51  ;;  %3115 = vmatmul.bf16.gmra.mxu1 %v2569_v51  ;;  %v3129_v51 = vmax.f32 %v3049_v41, 0.0 }
 0x3ac   : > { %v12493_v35 = vpack.c.bf16 %v3148_v36, %v3146_v25 }
 0x3ad   : > { %v2809_v2 = vpop.f32.mrf.mxu2  ;;  %v3191_v0 = vpack.c.bf16 %v3129_v51, %v3127_v63 }
 0x3ae   : > { %v2810_v57 = vadd.f32 %v2809_v2, %v12239_v32  ;;  %v2898_v29 = vpop.f32.mrf.mxu3 }
 0x3af   : > { %v12498_v48 = vpop.f32.mrf.mxu0 }
 0x3b0   : > { %v2899_v34 = vadd.f32 %v2898_v29, %v2810_v57  ;;  %v12500_v22 = vpop.f32.mrf.mxu1 }
 0x3b2   : > { %v3150_v50 = vmax.f32 %v2899_v34, 0.0 }
 0x3b5   : > { %v2811_v52 = vpop.f32.mrf.mxu2 }
 0x3b6   : > { %v2812_v13 = vadd.f32 %v2811_v52, %v12239_v32  ;;  %v2900_v54 = vpop.f32.mrf.mxu3 }
 0x3b7   : > { %v2992_v3 = vpop.f32.mrf.mxu0 }
 0x3b8   : > { %v2901_v17 = vadd.f32 %v2900_v54, %v2812_v13  ;;  %v2993_v39 = vadd.f32 %v2992_v3, %v12230_v59  ;;  %v3081_v43 = vpop.f32.mrf.mxu1  ;;  %v9346_v13 = vor.u32 %v10238_v33, %v9345_v14  ;;  %v3135_v14 = vmax.f32 %v12289_v61, 0.0  ;;  %v9337_v61 = vld [vmem:[%s15665_s28 + $0x50] sm:$0xf] }
 0x3ba   : > { %v3152_v40 = vmax.f32 %v2901_v17, 0.0  ;;  %v12506_v6 = vadd.f32 %v3081_v43, %v2993_v39  ;;  %2853 = vmatmul.bf16.gmra.mxu2 %v12247_v27  ;;  %3031 = vmatmul.bf16.gmra.mxu0 %v12247_v27  ;;  %v3054_v39 = vadd.f32 %v12271_v56, %v2965_v8 }
 0x3bb   : > { %2942 = vmatmul.bf16.gmra.mxu3 %v2571_v60  ;;  %3120 = vmatmul.bf16.gmra.mxu1 %v2571_v60 }
 0x3bc   : > { %v12510_v55 = vpack.c.bf16 %v3152_v40, %v3150_v50  ;;  %3867 = vmatpush.bf16.msrb.mxu2 %v9346_v13  ;;  %v3133_v43 = vmax.f32 %v3054_v39, 0.0 }
 0x3bd   : > { %v2814_v1 = vpop.f32.mrf.mxu2 }
 0x3be   : > { %v2815_v38 = vadd.f32 %v2814_v1, %v12239_v32  ;;  %v2903_v7 = vpop.f32.mrf.mxu3 }
 0x3bf   : > { %v12515_v44 = vpop.f32.mrf.mxu0 }
 0x3c0   : > { %v2904_v42 = vadd.f32 %v2903_v7, %v2815_v38  ;;  %v12517_v62 = vpop.f32.mrf.mxu1 }
 0x3c2   : > { %v3154_v57 = vmax.f32 %v2904_v42, 0.0  ;;  %v3193_v42 = vpack.c.bf16 %v3133_v43, %v3131_v23  ;;  %v2975_v43 = vadd.f32 %v12321_v53, %v12230_v59  ;;  %v3139_v53 = vmax.f32 %v12312_v9, 0.0 }
 0x3c3   : > { %v2980_v9 = vadd.f32 %v12368_v19, %v12230_v59 }
 0x3c5   : > { %v2816_v27 = vpop.f32.mrf.mxu2 }
 0x3c6   : > { %v2817_v25 = vadd.f32 %v2816_v27, %v12239_v32  ;;  %v2905_v36 = vpop.f32.mrf.mxu3 }
 0x3c7   : > { %v2997_v18 = vpop.f32.mrf.mxu0 }
 0x3c8   : > { %v2906_v12 = vadd.f32 %v2905_v36, %v2817_v25  ;;  %v2998_v21 = vadd.f32 %v2997_v18, %v12230_v59  ;;  %v3086_v2 = vpop.f32.mrf.mxu1 }
 0x3ca   : > { %v3156_v29 = vmax.f32 %v2906_v12, 0.0  ;;  %v12523_v34 = vadd.f32 %v3086_v2, %v2998_v21  ;;  %3438 = vmatmul.bf16.vlgmr.msra.gmra.mxu2 %v12264_v30  ;;  %3616 = vmatmul.bf16.vlgmr.msra.gmra.mxu0 %v12264_v30  ;;  %v3059_v2 = vadd.f32 %v12306_v26, %v2970_v11  ;;  %v10236_v26 = vld [vmem:[%s15665_s28 + $0x54] sm:$0xf0] }
 0x3cb   : > { %3527 = vmatmul.bf16.vlgmr.msra.gmra.mxu3 %v3191_v0  ;;  %3705 = vmatmul.bf16.vlgmr.msra.gmra.mxu1 %v3191_v0 }
 0x3cc   : > { %v12533_v37 = vpack.c.bf16 %v3156_v29, %v3154_v57  ;;  %v3137_v0 = vmax.f32 %v3059_v2, 0.0 }
 0x3cd   : > { %v2819_v52 = vpop.f32.mrf.mxu2 }
 0x3ce   : > { %v2820_v54 = vadd.f32 %v2819_v52, %v12239_v32  ;;  %v2908_v30 = vpop.f32.mrf.mxu3  ;;  %v3195_v13 = vpack.c.bf16 %v3137_v0, %v3135_v14 }
 0x3cf   : > { %v12538_v16 = vpop.f32.mrf.mxu0 }
 0x3d0   : > { %v2909_v3 = vadd.f32 %v2908_v30, %v2820_v54  ;;  %v12540_v17 = vpop.f32.mrf.mxu1 }
 0x3d2   : > { %v3158_v41 = vmax.f32 %v2909_v3, 0.0 }
 0x3d5   : > { %v2821_v60 = vpop.f32.mrf.mxu2 }
 0x3d6   : > { %v2822_v50 = vadd.f32 %v2821_v60, %v12239_v32  ;;  %v2910_v40 = vpop.f32.mrf.mxu3 }
 0x3d7   : > { %v3002_v46 = vpop.f32.mrf.mxu0 }
 0x3d8   : > { %v2911_v1 = vadd.f32 %v2910_v40, %v2822_v50  ;;  %v3003_v38 = vadd.f32 %v3002_v46, %v12230_v59  ;;  %v3091_v7 = vpop.f32.mrf.mxu1  ;;  %v9338_v50 = vor.u32 %v10236_v26, %v9337_v61  ;;  %v3143_v61 = vmax.f32 %v12347_v4, 0.0  ;;  %v9329_v4 = vld [vmem:[%s15665_s28 + $0x40] sm:$0xf] }
 0x3da   : > { %v3160_v51 = vmax.f32 %v2911_v1, 0.0  ;;  %v12546_v27 = vadd.f32 %v3091_v7, %v3003_v38  ;;  %3443 = vmatmul.bf16.gmra.mxu2 %v12299_v49  ;;  %3621 = vmatmul.bf16.gmra.mxu0 %v12299_v49  ;;  %v3064_v38 = vadd.f32 %v12323_v31, %v2975_v43 }
 0x3db   : > { %3532 = vmatmul.bf16.gmra.mxu3 %v3193_v42  ;;  %3710 = vmatmul.bf16.gmra.mxu1 %v3193_v42 }
 0x3dc   : > { %v12550_v56 = vpack.c.bf16 %v3160_v51, %v3158_v41  ;;  %3868 = vmatpush.bf16.msrb.mxu2 %v9338_v50  ;;  %v3141_v7 = vmax.f32 %v3064_v38, 0.0 }
 0x3dd   : > { %v2824_v25 = vpop.f32.mrf.mxu2 }
 0x3de   : > { %v2825_v36 = vadd.f32 %v2824_v25, %v12239_v32  ;;  %v2913_v63 = vpop.f32.mrf.mxu3 }
 0x3df   : > { %v12555_v18 = vpop.f32.mrf.mxu0 }
 0x3e0   : > { %v2914_v12 = vadd.f32 %v2913_v63, %v2825_v36  ;;  %v12557_v21 = vpop.f32.mrf.mxu1 }
 0x3e2   : > { %v3162_v54 = vmax.f32 %v2914_v12, 0.0  ;;  %v3197_v12 = vpack.c.bf16 %v3141_v7, %v3139_v53  ;;  %v2985_v7 = vadd.f32 %v12439_v5, %v12230_v59  ;;  %v3147_v5 = vmax.f32 %v12403_v47, 0.0 }
 0x3e3   : > { %v2990_v47 = vadd.f32 %v12498_v48, %v12230_v59 }
 0x3e5   : > { %v2826_v49 = vpop.f32.mrf.mxu2 }
 0x3e6   : > { %v2827_v57 = vadd.f32 %v2826_v49, %v12239_v32  ;;  %v2915_v29 = vpop.f32.mrf.mxu3 }
 0x3e7   : > { %v3007_v33 = vpop.f32.mrf.mxu0 }
 0x3e8   : > { %v2916_v24 = vadd.f32 %v2915_v29, %v2827_v57  ;;  %v3008_v8 = vadd.f32 %v3007_v33, %v12230_v59  ;;  %v3096_v52 = vpop.f32.mrf.mxu1 }
 0x3ea   : > { %v3164_v30 = vmax.f32 %v2916_v24, 0.0  ;;  %v12563_v3 = vadd.f32 %v3096_v52, %v3008_v8  ;;  %3448 = vmatmul.bf16.gmra.mxu2 %v12316_v28  ;;  %3626 = vmatmul.bf16.gmra.mxu0 %v12316_v28  ;;  %v3069_v52 = vadd.f32 %v12371_v10, %v2980_v9  ;;  %v10234_v10 = vld [vmem:[%s15665_s28 + $0x44] sm:$0xf0] }
 0x3eb   : > { %3537 = vmatmul.bf16.gmra.mxu3 %v3195_v13  ;;  %3715 = vmatmul.bf16.gmra.mxu1 %v3195_v13 }
 0x3ec   : > { %v12573_v39 = vpack.c.bf16 %v3164_v30, %v3162_v54  ;;  %v3145_v13 = vmax.f32 %v3069_v52, 0.0 }
 0x3ed   : > { %v2829_v60 = vpop.f32.mrf.mxu2 }
 0x3ee   : > { %v2830_v40 = vadd.f32 %v2829_v60, %v12239_v32  ;;  %v2918_v28 = vpop.f32.mrf.mxu3  ;;  %v3199_v50 = vpack.c.bf16 %v3145_v13, %v3143_v61 }
 0x3ef   : > { %v12578_v23 = vpop.f32.mrf.mxu0 }
 0x3f0   : > { %v2919_v46 = vadd.f32 %v2918_v28, %v2830_v40  ;;  %v12580_v1 = vpop.f32.mrf.mxu1 }
 0x3f2   : > { %v3166_v2 = vmax.f32 %v2919_v46, 0.0 }
 0x3f5   : > { %v2831_v42 = vpop.f32.mrf.mxu2 }
 0x3f6   : > { %v2832_v41 = vadd.f32 %v2831_v42, %v12239_v32  ;;  %v2920_v51 = vpop.f32.mrf.mxu3 }
 0x3f7   : > { %v3012_v11 = vpop.f32.mrf.mxu0 }
 0x3f8   : > { %v2921_v25 = vadd.f32 %v2920_v51, %v2832_v41  ;;  %v3013_v36 = vadd.f32 %v3012_v11, %v12230_v59  ;;  %v3101_v63 = vpop.f32.mrf.mxu1  ;;  %v9330_v41 = vor.u32 %v10234_v10, %v9329_v4 }
 0x3fa   : > { %v3168_v0 = vmax.f32 %v2921_v25, 0.0  ;;  %v12586_v49 = vadd.f32 %v3101_v63, %v3013_v36  ;;  %3453 = vmatmul.bf16.gmra.mxu2 %v12359_v45  ;;  %3631 = vmatmul.bf16.gmra.mxu0 %v12359_v45  ;;  %v3074_v36 = vadd.f32 %v12442_v20, %v2985_v7  ;;  %v3151_v7 = vmax.f32 %v12483_v58, 0.0  ;;  %v9321_v58 = vld [vmem:[%s15665_s28 + $0x30] sm:$0xf] }
 0x3fb   : > { %3542 = vmatmul.bf16.gmra.mxu3 %v3197_v12  ;;  %3720 = vmatmul.bf16.gmra.mxu1 %v3197_v12 }
 0x3fc   : > { %v12590_v31 = vpack.c.bf16 %v3168_v0, %v3166_v2  ;;  %3869 = vmatpush.bf16.msrb.mxu2 %v9330_v41  ;;  %v3149_v63 = vmax.f32 %v3074_v36, 0.0 }
 0x3fd   : > { %v2834_v57 = vpop.f32.mrf.mxu2 }
 0x3fe   : > { %v2835_v29 = vadd.f32 %v2834_v57, %v12239_v32  ;;  %v2923_v14 = vpop.f32.mrf.mxu3 }
 0x3ff   : > { %v12595_v33 = vpop.f32.mrf.mxu0 }
 0x400   : > { %v2924_v24 = vadd.f32 %v2923_v14, %v2835_v29  ;;  %v12597_v8 = vpop.f32.mrf.mxu1 }
 0x402   : > { %v3170_v40 = vmax.f32 %v2924_v24, 0.0  ;;  %v3201_v24 = vpack.c.bf16 %v3149_v63, %v3147_v5  ;;  %v2995_v5 = vadd.f32 %v12515_v44, %v12230_v59 }
 0x405   : > { %v2836_v45 = vpop.f32.mrf.mxu2 }
 0x406   : > { %v2837_v54 = vadd.f32 %v2836_v45, %v12239_v32  ;;  %v2925_v30 = vpop.f32.mrf.mxu3 }
 0x407   : > { %v3017_v26 = vpop.f32.mrf.mxu0 }
 0x408   : > { %v2926_v19 = vadd.f32 %v2925_v30, %v2837_v54  ;;  %v3018_v43 = vadd.f32 %v3017_v26, %v12230_v59  ;;  %v3106_v60 = vpop.f32.mrf.mxu1 }
 0x40a   : > { %v3172_v28 = vmax.f32 %v2926_v19, 0.0  ;;  %v12603_v46 = vadd.f32 %v3106_v60, %v3018_v43  ;;  %3458 = vmatmul.bf16.gmra.mxu2 %v12418_v15  ;;  %3636 = vmatmul.bf16.gmra.mxu0 %v12418_v15  ;;  %v3079_v60 = vadd.f32 %v12500_v22, %v2990_v47 }
 0x40b   : > { %3547 = vmatmul.bf16.gmra.mxu3 %v3199_v50  ;;  %3725 = vmatmul.bf16.gmra.mxu1 %v3199_v50  ;;  %v9355_v50 = vld [vmem:[%s15665_s28 + $0x78] sm:$0xf0] }
 0x40c   : > { %v12613_v38 = vpack.c.bf16 %v3172_v28, %v3170_v40  ;;  %v3153_v40 = vmax.f32 %v3079_v60, 0.0 }
 0x40d   : > { %v2839_v42 = vpop.f32.mrf.mxu2 }
 0x40e   : > { %v2840_v51 = vadd.f32 %v2839_v42, %v12239_v32  ;;  %v2928_v15 = vpop.f32.mrf.mxu3 }
 0x40f   : > { %v12618_v53 = vpop.f32.mrf.mxu0 }
 0x410   : > { %v2929_v11 = vadd.f32 %v2928_v15, %v2840_v51  ;;  %v12620_v25 = vpop.f32.mrf.mxu1  ;;  %v3203_v15 = vpack.c.bf16 %v3153_v40, %v3151_v7 }
 0x412   : > { %v3174_v52 = vmax.f32 %v2929_v11, 0.0 }
 0x415   : > { %v2841_v12 = vpop.f32.mrf.mxu2 }
 0x416   : > { %v2842_v2 = vadd.f32 %v2841_v12, %v12239_v32  ;;  %v2930_v0 = vpop.f32.mrf.mxu3  ;;  %v10232_v12 = vld [vmem:[%s15665_s28 + $0x34] sm:$0xf0] }
 0x417   : > { %v3022_v9 = vpop.f32.mrf.mxu0 }
 0x418   : > { %v2931_v57 = vadd.f32 %v2930_v0, %v2842_v2  ;;  %v3023_v29 = vadd.f32 %v3022_v9, %v12230_v59  ;;  %v3111_v14 = vpop.f32.mrf.mxu1  ;;  %v9322_v2 = vor.u32 %v10232_v12, %v9321_v58 }
 0x41a   : > { %v3176_v13 = vmax.f32 %v2931_v57, 0.0  ;;  %v12626_v45 = vadd.f32 %v3111_v14, %v3023_v29  ;;  %3463 = vmatmul.bf16.gmra.mxu2 %v12493_v35  ;;  %3641 = vmatmul.bf16.gmra.mxu0 %v12493_v35  ;;  %v10239_v35 = vld [vmem:[%s15665_s28 + $0x74] sm:$0xf] }
 0x41b   : > { %3552 = vmatmul.bf16.gmra.mxu3 %v3201_v24  ;;  %3730 = vmatmul.bf16.gmra.mxu1 %v3201_v24  ;;  %v9358_v48 = vor.u32 %v10239_v35, %v9355_v50 }
 0x41c   : > { %v12630_v20 = vpack.c.bf16 %v3176_v13, %v3174_v52  ;;  %3870 = vmatpush.bf16.msrb.mxu2 %v9322_v2  ;;  %v3084_v52 = vadd.f32 %v12517_v62, %v2995_v5 }
 0x41d   : > { %v2844_v54 = vpop.f32.mrf.mxu2  ;;  %3955 = vmatpush.bf16.msrb.mxu3 %v9358_v48 }
 0x41e   : > { %v2845_v30 = vadd.f32 %v2844_v54, %v12239_v32  ;;  %v2933_v61 = vpop.f32.mrf.mxu3  ;;  %v3157_v13 = vmax.f32 %v3084_v52, 0.0 }
 0x41f   : > { %v12635_v26 = vpop.f32.mrf.mxu0 }
 0x420   : > { %v2934_v19 = vadd.f32 %v2933_v61, %v2845_v30  ;;  %v12637_v43 = vpop.f32.mrf.mxu1  ;;  %v3155_v61 = vmax.f32 %v12506_v6, 0.0  ;;  %v3000_v6 = vadd.f32 %v12538_v16, %v12230_v59 }
 0x422   : > { %v3178_v11 = vmax.f32 %v2934_v19, 0.0  ;;  %v3205_v50 = vpack.c.bf16 %v3157_v13, %v3155_v61 }
 0x425   : > { %v2846_v28 = vpop.f32.mrf.mxu2 }
 0x426   : > { %v2847_v4 = vadd.f32 %v2846_v28, %v12239_v32  ;;  %v2935_v10 = vpop.f32.mrf.mxu3 }
 0x427   : > { %v3027_v42 = vpop.f32.mrf.mxu0 }
 0x428   : > { %v2936_v41 = vadd.f32 %v2935_v10, %v2847_v4  ;;  %v3028_v22 = vadd.f32 %v3027_v42, %v12230_v59  ;;  %v3116_v51 = vpop.f32.mrf.mxu1 }
 0x42a   : > { %v3180_v36 = vmax.f32 %v2936_v41, 0.0  ;;  %v12649_v63 = vadd.f32 %v3116_v51, %v3028_v22  ;;  %3468 = vmatmul.bf16.gmra.mxu2 %v12510_v55  ;;  %3646 = vmatmul.bf16.gmra.mxu0 %v12510_v55  ;;  %v10237_v41 = vld [vmem:[%s15665_s28 + $0x64] sm:$0xf]  ;;  %v9417_v22 = vld [vmem:[%s15609_s12 + $0x70] sm:$0xf] }
 0x42b   : > { %3557 = vmatmul.bf16.gmra.mxu3 %v3203_v15  ;;  %3735 = vmatmul.bf16.gmra.mxu1 %v3203_v15 }
 0x42c   : > { %v12659_v0 = vpack.c.bf16 %v3180_v36, %v3178_v11  ;;  %v10288_v11 = vld [vmem:[%s15609_s12 + $0x74] sm:$0xf0]  ;;  %v3089_v36 = vadd.f32 %v12540_v17, %v3000_v6 }
 0x42d   : > { %v2849_v9 = vpop.f32.mrf.mxu2  ;;  %v9418_v58 = vor.u32 %v10288_v11, %v9417_v22 }
 0x42e   : > { %v2850_v57 = vadd.f32 %v2849_v9, %v12239_v32  ;;  %v2938_v55 = vpop.f32.mrf.mxu3  ;;  %v3161_v12 = vmax.f32 %v3089_v36, 0.0 }
 0x42f   : > { %v12664_v29 = vpop.f32.mrf.mxu0  ;;  %4408 = vmatpush.bf16.msrb.mxu0 %v9418_v58  ;;  %v10235_v58 = vld [vmem:[%s15665_s28 + $0x54] sm:$0xf] }
 0x430   : > { %v2939_v14 = vadd.f32 %v2938_v55, %v2850_v57  ;;  %v12666_v24 = vpop.f32.mrf.mxu1  ;;  %v3159_v57 = vmax.f32 %v12523_v34, 0.0  ;;  %v10230_v34 = vld [vmem:[%s15665_s28 + $0x24] sm:$0xf0] }
 0x432   : > { %v3182_v48 = vmax.f32 %v2939_v14, 0.0 }
 0x435   : > { %v2851_v47 = vpop.f32.mrf.mxu2 }
 0x436   : > { %v2852_v54 = vadd.f32 %v2851_v47, %v12239_v32  ;;  %v2940_v30 = vpop.f32.mrf.mxu3  ;;  %v3207_v47 = vpack.c.bf16 %v3161_v12, %v3159_v57  ;;  %v9339_v12 = vld [vmem:[%s15665_s28 + $0x58] sm:$0xf0] }
 0x437   : > { %v3032_v44 = vpop.f32.mrf.mxu0 }
 0x438   : > { %v2941_v19 = vadd.f32 %v2940_v30, %v2852_v54  ;;  %v3033_v60 = vadd.f32 %v3032_v44, %v12230_v59  ;;  %v3121_v35 = vpop.f32.mrf.mxu1  ;;  %v3005_v44 = vadd.f32 %v12555_v18, %v12230_v59 }
 0x43a   : > { %v3184_v40 = vmax.f32 %v2941_v19, 0.0  ;;  %v12672_v28 = vadd.f32 %v3121_v35, %v3033_v60  ;;  %3473 = vmatmul.bf16.gmra.mxu2 %v12533_v37  ;;  %3651 = vmatmul.bf16.gmra.mxu0 %v12533_v37  ;;  %v9347_v37 = vld [vmem:[%s15665_s28 + $0x68] sm:$0xf0] }
 0x43b   : > { %3562 = vmatmul.bf16.gmra.mxu3 %v3205_v50  ;;  %3740 = vmatmul.bf16.gmra.mxu1 %v3205_v50  ;;  %v9350_v15 = vor.u32 %v10237_v41, %v9347_v37 }
 0x43c   : > { %v12676_v62 = vpack.c.bf16 %v3184_v40, %v3182_v48  ;;  %v3094_v48 = vadd.f32 %v12557_v21, %v3005_v44  ;;  %v3010_v21 = vadd.f32 %v12578_v23, %v12230_v59  ;;  %v10286_v23 = vld [vmem:[%s15609_s12 + $0x64] sm:$0xf0] }
 0x43d   : > { %v2854_v4 = vpop.f32.mrf.mxu2  ;;  %3956 = vmatpush.bf16.msrb.mxu3 %v9350_v15 }
 0x43e   : > { %v2855_v10 = vadd.f32 %v2854_v4, %v12239_v32  ;;  %v2943_v7 = vpop.f32.mrf.mxu3  ;;  %v3165_v6 = vmax.f32 %v3094_v48, 0.0 }
 0x43f   : > { %v12681_v42 = vpop.f32.mrf.mxu0 }
 0x440   : > { %v2944_v51 = vadd.f32 %v2943_v7, %v2855_v10  ;;  %v12692_v16 = vpop.f32.mrf.mxu1  ;;  %v3163_v7 = vmax.f32 %v12546_v27, 0.0 }
 0x442   : > { %v3186_v54 = vmax.f32 %v2944_v51, 0.0  ;;  %v3209_v51 = vpack.c.bf16 %v3165_v6, %v3163_v7 }
 0x445   : > { %v2856_v2 = vpop.f32.mrf.mxu2 }
 0x446   : > { %v2857_v5 = vadd.f32 %v2856_v2, %v12239_v32  ;;  %v2945_v9 = vpop.f32.mrf.mxu3  ;;  %v9313_v32 = vld [vmem:[%s15665_s28 + $0x20] sm:$0xf] }
 0x447   : > { %v3617_v55 = vpop.f32.mrf.mxu0  ;;  %v9314_v17 = vor.u32 %v10230_v34, %v9313_v32 }
 0x448   : > { %v2946_v14 = vadd.f32 %v2945_v9, %v2857_v5  ;;  %v3706_v52 = vpop.f32.mrf.mxu1  ;;  %v9342_v5 = vor.u32 %v10235_v58, %v9339_v12  ;;  %v3099_v9 = vadd.f32 %v12580_v1, %v3010_v21  ;;  %v9305_v1 = vld [vmem:[%s15665_s28 + $0x10] sm:$0xf] }
 0x449   : > { %v12700_v13 = vadd.f32 %v3706_v52, %v3617_v55  ;;  %3871 = vmatpush.bf16.msrb.mxu2 %v9314_v17 }
 0x44a   : > { %v3188_v30 = vmax.f32 %v2946_v14, 0.0  ;;  %3478 = vmatmul.bf16.gmra.mxu2 %v12550_v56  ;;  %3656 = vmatmul.bf16.gmra.mxu0 %v12550_v56  ;;  %v3169_v14 = vmax.f32 %v3099_v9, 0.0 }
 0x44b   : > { %3567 = vmatmul.bf16.gmra.mxu3 %v3207_v47  ;;  %3745 = vmatmul.bf16.gmra.mxu1 %v3207_v47 }
 0x44c   : > { %v12710_v61 = vpack.c.bf16 %v3188_v30, %v3186_v54  ;;  %3957 = vmatpush.bf16.msrb.mxu3 %v9342_v5  ;;  %v3167_v54 = vmax.f32 %v12563_v3, 0.0  ;;  %v10228_v3 = vld [vmem:[%s15665_s28 + $0x14] sm:$0xf0]  ;;  %v9331_v5 = vld [vmem:[%s15665_s28 + $0x48] sm:$0xf0] }
 0x44d   : > { %v3439_v19 = vpop.f32.mrf.mxu2 }
 0x44e   : > { %v3528_v60 = vpop.f32.mrf.mxu3  ;;  %v3211_v44 = vpack.c.bf16 %v3169_v14, %v3167_v54 }
 0x44f   : > { %v12714_v56 = vadd.f32 %v3528_v60, %v3439_v19  ;;  %v3619_v35 = vpop.f32.mrf.mxu0  ;;  %v9306_v19 = vor.u32 %v10228_v3, %v9305_v1  ;;  %v3015_v60 = vadd.f32 %v12595_v33, %v12230_v59 }
 0x450   : > { %v3708_v50 = vpop.f32.mrf.mxu1 }
 0x451   : > { %v12717_v40 = vadd.f32 %v3708_v50, %v3619_v35  ;;  %3872 = vmatpush.bf16.msrb.mxu2 %v9306_v19 }
 0x455   : > { %v3441_v4 = vpop.f32.mrf.mxu2 }
 0x456   : > { %v3530_v10 = vpop.f32.mrf.mxu3 }
 0x457   : > { %v12720_v41 = vadd.f32 %v3530_v10, %v3441_v4  ;;  %v3622_v37 = vpop.f32.mrf.mxu0  ;;  %v3104_v4 = vadd.f32 %v12597_v8, %v3015_v60  ;;  %v3020_v8 = vadd.f32 %v12618_v53, %v12230_v59  ;;  %v10284_v53 = vld [vmem:[%s15609_s12 + $0x54] sm:$0xf0] }
 0x458   : > { %v3711_v18 = vpop.f32.mrf.mxu1 }
 0x459   : > { %v12722_v22 = vadd.f32 %v3711_v18, %v3622_v37  ;;  %v3173_v7 = vmax.f32 %v3104_v4, 0.0 }
 0x45a   : > { %3483 = vmatmul.bf16.gmra.mxu2 %v12573_v39  ;;  %3661 = vmatmul.bf16.gmra.mxu0 %v12573_v39  ;;  %v9409_v39 = vld [vmem:[%s15609_s12 + $0x60] sm:$0xf] }
 0x45b   : > { %3572 = vmatmul.bf16.gmra.mxu3 %v3209_v51  ;;  %3750 = vmatmul.bf16.gmra.mxu1 %v3209_v51  ;;  %v9410_v55 = vor.u32 %v10286_v23, %v9409_v39  ;;  %v3171_v51 = vmax.f32 %v12586_v49, 0.0 }
 0x45d   : > { %v3444_v15 = vpop.f32.mrf.mxu2  ;;  %4409 = vmatpush.bf16.msrb.mxu0 %v9410_v55  ;;  %v3109_v55 = vadd.f32 %v12620_v25, %v3020_v8  ;;  %v9297_v25 = vld [vmem:[%s15665_s28] sm:$0xf] }
 0x45e   : > { %v3533_v11 = vpop.f32.mrf.mxu3 }
 0x45f   : > { %v12728_v36 = vadd.f32 %v3533_v11, %v3444_v15  ;;  %v3624_v27 = vpop.f32.mrf.mxu0 }
 0x460   : > { %v3713_v2 = vpop.f32.mrf.mxu1 }
 0x461   : > { %v12743_v57 = vadd.f32 %v3713_v2, %v3624_v27  ;;  %v3213_v27 = vpack.c.bf16 %v3173_v7, %v3171_v51  ;;  %v10233_v2 = vld [vmem:[%s15665_s28 + $0x44] sm:$0xf] }
 0x462   : > { %v9334_v9 = vor.u32 %v10233_v2, %v9331_v5  ;;  %v3030_v2 = vadd.f32 %v12664_v29, %v12230_v59  ;;  %v10282_v29 = vld [vmem:[%s15609_s12 + $0x44] sm:$0xf0] }
 0x464   : > { %3958 = vmatpush.bf16.msrb.mxu3 %v9334_v9 }
 0x465   : > { %v3446_v52 = vpop.f32.mrf.mxu2 }
 0x466   : > { %v3535_v47 = vpop.f32.mrf.mxu3 }
 0x467   : > { %v12746_v30 = vadd.f32 %v3535_v47, %v3446_v52  ;;  %v3627_v32 = vpop.f32.mrf.mxu0  ;;  %v3177_v47 = vmax.f32 %v3109_v55, 0.0 }
 0x468   : > { %v3716_v34 = vpop.f32.mrf.mxu1 }
 0x469   : > { %v12748_v17 = vadd.f32 %v3716_v34, %v3627_v32  ;;  %v3175_v34 = vmax.f32 %v12603_v46, 0.0  ;;  %v10226_v46 = vld [vmem:[%s15665_s28 + $0x4] sm:$0xf0] }
 0x46a   : > { %3488 = vmatmul.bf16.gmra.mxu2 %v12590_v31  ;;  %3666 = vmatmul.bf16.gmra.mxu0 %v12590_v31 }
 0x46b   : > { %3577 = vmatmul.bf16.gmra.mxu3 %v3211_v44  ;;  %3755 = vmatmul.bf16.gmra.mxu1 %v3211_v44  ;;  %v3215_v60 = vpack.c.bf16 %v3177_v47, %v3175_v34  ;;  %v10227_v34 = vld [vmem:[%s15665_s28 + $0x14] sm:$0xf] }
 0x46d   : > { %v3449_v35 = vpop.f32.mrf.mxu2 }
 0x46e   : > { %v3538_v50 = vpop.f32.mrf.mxu3 }
 0x46f   : > { %v12760_v48 = vadd.f32 %v3538_v50, %v3449_v35  ;;  %v3629_v31 = vpop.f32.mrf.mxu0  ;;  %v9298_v35 = vor.u32 %v10226_v46, %v9297_v25  ;;  %v3025_v50 = vadd.f32 %v12635_v26, %v12230_v59  ;;  %v10225_v46 = vld [vmem:[%s15665_s28 + $0x4] sm:$0xf] }
 0x470   : > { %v3718_v6 = vpop.f32.mrf.mxu1 }
 0x471   : > { %v12763_v10 = vadd.f32 %v3718_v6, %v3629_v31  ;;  %3873 = vmatpush.bf16.msrb.mxu2 %v9298_v35 }
 0x475   : > { %v3451_v37 = vpop.f32.mrf.mxu2 }
 0x476   : > { %v3540_v18 = vpop.f32.mrf.mxu3 }
 0x477   : > { %v12766_v21 = vadd.f32 %v3540_v18, %v3451_v37  ;;  %v3632_v15 = vpop.f32.mrf.mxu0  ;;  %v3114_v37 = vadd.f32 %v12637_v43, %v3025_v50  ;;  %v9323_v43 = vld [vmem:[%s15665_s28 + $0x38] sm:$0xf0] }
 0x478   : > { %v3721_v33 = vpop.f32.mrf.mxu1 }
 0x479   : > { %v12768_v11 = vadd.f32 %v3721_v33, %v3632_v15  ;;  %v3181_v18 = vmax.f32 %v3114_v37, 0.0  ;;  %v3179_v33 = vmax.f32 %v12626_v45, 0.0 }
 0x47a   : > { %3493 = vmatmul.bf16.gmra.mxu2 %v12613_v38  ;;  %3671 = vmatmul.bf16.gmra.mxu0 %v12613_v38  ;;  %v9401_v38 = vld [vmem:[%s15609_s12 + $0x50] sm:$0xf] }
 0x47b   : > { %3582 = vmatmul.bf16.gmra.mxu3 %v3213_v27  ;;  %3760 = vmatmul.bf16.gmra.mxu1 %v3213_v27  ;;  %v9402_v52 = vor.u32 %v10284_v53, %v9401_v38  ;;  %v10229_v38 = vld [vmem:[%s15665_s28 + $0x24] sm:$0xf] }
 0x47d   : > { %v3454_v58 = vpop.f32.mrf.mxu2  ;;  %4410 = vmatpush.bf16.msrb.mxu0 %v9402_v52  ;;  %v9393_v52 = vld [vmem:[%s15609_s12 + $0x40] sm:$0xf] }
 0x47e   : > { %v3543_v12 = vpop.f32.mrf.mxu3 }
 0x47f   : > { %v12774_v39 = vadd.f32 %v3543_v12, %v3454_v58  ;;  %v3634_v49 = vpop.f32.mrf.mxu0  ;;  %v3217_v12 = vpack.c.bf16 %v3181_v18, %v3179_v33  ;;  %v3035_v33 = vadd.f32 %v12681_v42, %v12230_v59 }
 0x480   : > { %v3723_v23 = vpop.f32.mrf.mxu1 }
 0x481   : > { %v12789_v14 = vadd.f32 %v3723_v23, %v3634_v49  ;;  %v10231_v49 = vld [vmem:[%s15665_s28 + $0x34] sm:$0xf]  ;;  %v9315_v23 = vld [vmem:[%s15665_s28 + $0x28] sm:$0xf0] }
 0x482   : > { %v9326_v45 = vor.u32 %v10231_v49, %v9323_v43  ;;  %v9318_v53 = vor.u32 %v10229_v38, %v9315_v23  ;;  %v3124_v43 = vadd.f32 %v12692_v16, %v3035_v33  ;;  %v3187_v38 = vmax.f32 %v12672_v28, 0.0  ;;  %v9385_v28 = vld [vmem:[%s15609_s12 + $0x30] sm:$0xf] }
 0x484   : > { %3959 = vmatpush.bf16.msrb.mxu3 %v9326_v45  ;;  %v9481_v45 = vld [vmem:[%s15609_s12 + $0xf0] sm:$0xf]  ;;  %v3189_v59 = vmax.f32 %v3124_v43, 0.0  ;;  %v10302_v43 = vld [vmem:[%s15609_s12 + $0xe4] sm:$0xf0] }
 0x485   : > { %v3456_v54 = vpop.f32.mrf.mxu2 }
 0x486   : > { %v3545_v32 = vpop.f32.mrf.mxu3 }
 0x487   : > { %v12792_v44 = vadd.f32 %v3545_v32, %v3456_v54  ;;  %v3637_v1 = vpop.f32.mrf.mxu0  ;;  %v9394_v54 = vor.u32 %v10282_v29, %v9393_v52  ;;  %v3119_v32 = vadd.f32 %v12666_v24, %v3030_v2  ;;  %v9299_v24 = vld [vmem:[%s15665_s28 + $0x8] sm:$0xf0]  ;;  %v3221_v52 = vpack.c.bf16 %v3189_v59, %v3187_v38 }
 0x488   : > { %v3726_v3 = vpop.f32.mrf.mxu1  ;;  %3960 = vmatpush.bf16.msrb.mxu3 %v9318_v53  ;;  %v9302_v50 = vor.u32 %v10225_v46, %v9299_v24 }
 0x489   : > { %v12794_v19 = vadd.f32 %v3726_v3, %v3637_v1  ;;  %v9307_v1 = vld [vmem:[%s15665_s28 + $0x18] sm:$0xf0]  ;;  %4411 = vmatpush.bf16.msrb.mxu0 %v9394_v54 }
 0x48a   : > { %3498 = vmatmul.bf16.gmra.mxu2 %v12630_v20  ;;  %3676 = vmatmul.bf16.gmra.mxu0 %v12630_v20  ;;  %v9310_v3 = vor.u32 %v10227_v34, %v9307_v1  ;;  %v10280_v1 = vld [vmem:[%s15609_s12 + $0x34] sm:$0xf0] }
 0x48b   : > { %3587 = vmatmul.bf16.gmra.mxu3 %v3215_v60  ;;  %3765 = vmatmul.bf16.gmra.mxu1 %v3215_v60  ;;  %v3185_v60 = vmax.f32 %v3119_v32, 0.0 }
 0x48c   : > { %3961 = vmatpush.bf16.msrb.mxu3 %v9310_v3 }
 0x48d   : > { %v3459_v31 = vpop.f32.mrf.mxu2 }
 0x48e   : > { %v3548_v6 = vpop.f32.mrf.mxu3 }
 0x48f   : > { %v12806_v4 = vadd.f32 %v3548_v6, %v3459_v31  ;;  %v12808_v20 = vpop.f32.mrf.mxu0  ;;  %v3183_v31 = vmax.f32 %v12649_v63, 0.0 }
 0x490   : > { %v12810_v7 = vpop.f32.mrf.mxu1  ;;  %3962 = vmatpush.bf16.msrb.mxu3 %v9302_v50 }
 0x495   : > { %v3461_v51 = vpop.f32.mrf.mxu2 }
 0x496   : > { %v3550_v15 = vpop.f32.mrf.mxu3 }
 0x497   : > { %v12814_v27 = vadd.f32 %v3550_v15, %v3461_v51  ;;  %v3642_v8 = vpop.f32.mrf.mxu0  ;;  %v3219_v15 = vpack.c.bf16 %v3185_v60, %v3183_v31  ;;  %v10607_v31 = vld [vmem:[%s10892_s29] sm:$0xff] }
 0x498   : > { %v3731_v26 = vpop.f32.mrf.mxu1 }
 0x499   : > { %v12816_v58 = vadd.f32 %v3731_v26, %v3642_v8 }
 0x49a   : > { %3503 = vmatmul.bf16.gmra.mxu2 %v12659_v0  ;;  %3681 = vmatmul.bf16.gmra.mxu0 %v12659_v0 }
 0x49b   : > { %3592 = vmatmul.bf16.gmra.mxu3 %v3217_v12  ;;  %3770 = vmatmul.bf16.gmra.mxu1 %v3217_v12 }
 0x49d   : > { %v3464_v5 = vpop.f32.mrf.mxu2 }
 0x49e   : > { %v3553_v9 = vpop.f32.mrf.mxu3 }
 0x49f   : > { %v12834_v55 = vadd.f32 %v3553_v9, %v3464_v5  ;;  %v12836_v0 = vpop.f32.mrf.mxu0 }
 0x4a0   : > { %v12844_v47 = vpop.f32.mrf.mxu1 }
 0x4a5   : > { %v3466_v25 = vpop.f32.mrf.mxu2 }
 0x4a6   : > { %v3555_v35 = vpop.f32.mrf.mxu3 }
 0x4a7   : > { %v12860_v6 = vadd.f32 %v3555_v35, %v3466_v25  ;;  %v3647_v37 = vpop.f32.mrf.mxu0 }
 0x4a8   : > { %v3736_v18 = vpop.f32.mrf.mxu1 }
 0x4a9   : > { %v12862_v51 = vadd.f32 %v3736_v18, %v3647_v37 }
 0x4aa   : > { %3508 = vmatmul.bf16.gmra.mxu2 %v12676_v62  ;;  %3686 = vmatmul.bf16.gmra.mxu0 %v12676_v62  ;;  %v10304_v62 = vld [vmem:[%s15609_s12 + $0xf4] sm:$0xf0] }
 0x4ab   : > { %3597 = vmatmul.bf16.gmra.mxu3 %v3219_v15  ;;  %3775 = vmatmul.bf16.gmra.mxu1 %v3219_v15  ;;  %v9482_v2 = vor.u32 %v10304_v62, %v9481_v45 }
 0x4ad   : > { %v3469_v8 = vpop.f32.mrf.mxu2  ;;  %4497 = vmatpush.bf16.msrb.mxu1 %v9482_v2 }
 0x4ae   : > { %v3558_v26 = vpop.f32.mrf.mxu3 }
 0x4af   : > { %v12868_v63 = vadd.f32 %v3558_v26, %v3469_v8  ;;  %v12870_v12 = vpop.f32.mrf.mxu0  ;;  %v9473_v26 = vld [vmem:[%s15609_s12 + $0xe0] sm:$0xf] }
 0x4b0   : > { %v12872_v49 = vpop.f32.mrf.mxu1  ;;  %v9474_v45 = vor.u32 %v10302_v43, %v9473_v26  ;;  %v10609_v26 = vld [vmem:[%s10892_s29 + $0x10] sm:$0xff] }
 0x4b2   : > { %4498 = vmatpush.bf16.msrb.mxu1 %v9474_v45 }
 0x4b5   : > { %v3471_v42 = vpop.f32.mrf.mxu2 }
 0x4b6   : > { %v3560_v5 = vpop.f32.mrf.mxu3 }
 0x4b7   : > { %v12882_v23 = vadd.f32 %v3560_v5, %v3471_v42  ;;  %v3652_v9 = vpop.f32.mrf.mxu0 }
 0x4b8   : > { %v3741_v53 = vpop.f32.mrf.mxu1 }
 0x4b9   : > { %v12884_v16 = vadd.f32 %v3741_v53, %v3652_v9  ;;  %v10608_v9 = vld [vmem:[%s10892_s29 + $0x8] sm:$0xff] }
 0x4ba   : > { %3513 = vmatmul.bf16.gmra.mxu2 %v12710_v61  ;;  %3691 = vmatmul.bf16.gmra.mxu0 %v12710_v61  ;;  %v9386_v61 = vor.u32 %v10280_v1, %v9385_v28  ;;  %v9377_v28 = vld [vmem:[%s15609_s12 + $0x20] sm:$0xf]  ;;  %v10278_v1 = vld [vmem:[%s15609_s12 + $0x24] sm:$0xf0] }
 0x4bb   : > { %3602 = vmatmul.bf16.gmra.mxu3 %v3221_v52  ;;  %3780 = vmatmul.bf16.gmra.mxu1 %v3221_v52 }
 0x4bc   : > { %4412 = vmatpush.bf16.msrb.mxu0 %v9386_v61 }
 0x4bd   : > { %v3474_v29 = vpop.f32.mrf.mxu2 }
 0x4be   : > { %v3563_v54 = vpop.f32.mrf.mxu3 }
 0x4bf   : > { %v12888_v32 = vadd.f32 %v3563_v54, %v3474_v29  ;;  %v12890_v34 = vpop.f32.mrf.mxu0 }
 0x4c0   : > { %v12898_v3 = vpop.f32.mrf.mxu1 }
 0x4c5   : > { %v3476_v60 = vpop.f32.mrf.mxu2 }
 0x4c6   : > { %v3565_v25 = vpop.f32.mrf.mxu3 }
 0x4c7   : > { %v12900_v46 = vadd.f32 %v3565_v25, %v3476_v60  ;;  %v3657_v24 = vpop.f32.mrf.mxu0  ;;  %v9378_v60 = vor.u32 %v10278_v1, %v9377_v28 }
 0x4c8   : > { %v3746_v35 = vpop.f32.mrf.mxu1 }
 0x4c9   : > { %v12902_v50 = vadd.f32 %v3746_v35, %v3657_v24  ;;  %4413 = vmatpush.bf16.msrb.mxu0 %v9378_v60 }
 0x4ca   : > { %3874 = vmatmul.bf16.vlgmr.msrb.gmra.mxu2 %v10607_v31 }
 0x4cb   : > { %3963 = vmatmul.bf16.vlgmr.msrb.gmra.mxu3 %v10607_v31 }
 0x4cd   : > { %v3479_v37 = vpop.f32.mrf.mxu2 }
 0x4ce   : > { %v3568_v18 = vpop.f32.mrf.mxu3 }
 0x4cf   : > { %v12905_v15 = vadd.f32 %v3568_v18, %v3479_v37  ;;  %v12907_v33 = vpop.f32.mrf.mxu0 }
 0x4d0   : > { %v12909_v8 = vpop.f32.mrf.mxu1 }
 0x4d5   : > { %v3481_v62 = vpop.f32.mrf.mxu2 }
 0x4d6   : > { %v3570_v2 = vpop.f32.mrf.mxu3 }
 0x4d7   : > { %v12917_v59 = vadd.f32 %v3570_v2, %v3481_v62  ;;  %v3662_v42 = vpop.f32.mrf.mxu0 }
 0x4d8   : > { %v3751_v5 = vpop.f32.mrf.mxu1 }
 0x4d9   : > { %v12919_v38 = vadd.f32 %v3751_v5, %v3662_v42  ;;  %v9465_v5 = vld [vmem:[%s15609_s12 + $0xd0] sm:$0xf] }
 0x4da   : > { %3879 = vmatmul.bf16.gmra.mxu2 %v10608_v9 }
 0x4db   : > { %3968 = vmatmul.bf16.gmra.mxu3 %v10608_v9  ;;  %v10300_v9 = vld [vmem:[%s15609_s12 + $0xd4] sm:$0xf0] }
 0x4dd   : > { %v3484_v53 = vpop.f32.mrf.mxu2 }
 0x4de   : > { %v3573_v52 = vpop.f32.mrf.mxu3 }
 0x4df   : > { %v12922_v29 = vadd.f32 %v3573_v52, %v3484_v53  ;;  %v12924_v54 = vpop.f32.mrf.mxu0  ;;  %v9466_v53 = vor.u32 %v10300_v9, %v9465_v5  ;;  %v9369_v5 = vld [vmem:[%s15609_s12 + $0x10] sm:$0xf]  ;;  %v10276_v9 = vld [vmem:[%s15609_s12 + $0x14] sm:$0xf0] }
 0x4e0   : > { %v12932_v61 = vpop.f32.mrf.mxu1 }
 0x4e1   : > { %4499 = vmatpush.bf16.msrb.mxu1 %v9466_v53 }
 0x4e5   : > { %v3486_v25 = vpop.f32.mrf.mxu2 }
 0x4e6   : > { %v3575_v24 = vpop.f32.mrf.mxu3 }
 0x4e7   : > { %v12934_v35 = vadd.f32 %v3575_v24, %v3486_v25  ;;  %v3667_v31 = vpop.f32.mrf.mxu0 }
 0x4e8   : > { %v3756_v37 = vpop.f32.mrf.mxu1 }
 0x4e9   : > { %v12936_v18 = vadd.f32 %v3756_v37, %v3667_v31  ;;  %v10610_v31 = vld [vmem:[%s10892_s29 + $0x18] sm:$0xff] }
 0x4ea   : > { %3884 = vmatmul.bf16.gmra.mxu2 %v10609_v26 }
 0x4eb   : > { %15666 = vst [vmem:[#allocation3_spill] sm:$0xff] %v12936_v18  ;;  %3973 = vmatmul.bf16.gmra.mxu3 %v10609_v26 }
 0x4ed   : > { %v3489_v43 = vpop.f32.mrf.mxu2 }
 0x4ee   : > { %v3578_v45 = vpop.f32.mrf.mxu3 }
 0x4ef   : > { %v12939_v62 = vadd.f32 %v3578_v45, %v3489_v43  ;;  %v12941_v2 = vpop.f32.mrf.mxu0 }
 0x4f0   : > { %15667 = vst [vmem:[#allocation4_spill] sm:$0xff] %v12941_v2  ;;  %v12943_v42 = vpop.f32.mrf.mxu1  ;;  %v10616_v2 = vld [vmem:[%s10892_s29 + $0x48] sm:$0xff] }
 0x4f1   : > { %15668 = vst [vmem:[#allocation5_spill] sm:$0xff] %v12943_v42 }
 0x4f5   : > { %v3491_v52 = vpop.f32.mrf.mxu2 }
 0x4f6   : > { %v3580_v28 = vpop.f32.mrf.mxu3 }
 0x4f7   : > { %v12951_v1 = vadd.f32 %v3580_v28, %v3491_v52  ;;  %v3672_v60 = vpop.f32.mrf.mxu0  ;;  %v9370_v52 = vor.u32 %v10276_v9, %v9369_v5  ;;  %v9457_v9 = vld [vmem:[%s15609_s12 + $0xc0] sm:$0xf] }
 0x4f8   : > { %v3761_v25 = vpop.f32.mrf.mxu1 }
 0x4f9   : > { %15669 = vst [vmem:[#allocation6_spill] sm:$0xff] %v12951_v1  ;;  %v12953_v24 = vadd.f32 %v3761_v25, %v3672_v60  ;;  %4414 = vmatpush.bf16.msrb.mxu0 %v9370_v52  ;;  %v10298_v52 = vld [vmem:[%s15609_s12 + $0xc4] sm:$0xf0] }
 0x4fa   : > { %3889 = vmatmul.bf16.gmra.mxu2 %v10610_v31 }
 0x4fb   : > { %15670 = vst [vmem:[#allocation7_spill] sm:$0xff] %v12953_v24  ;;  %3978 = vmatmul.bf16.gmra.mxu3 %v10610_v31 }
 0x4fd   : > { %v3494_v37 = vpop.f32.mrf.mxu2 }
 0x4fe   : > { %v3583_v26 = vpop.f32.mrf.mxu3 }
 0x4ff   : > { %v12956_v43 = vadd.f32 %v3583_v26, %v3494_v37  ;;  %v12958_v45 = vpop.f32.mrf.mxu0 }
 0x500   : > { %15672 = vst [vmem:[#allocation9_spill] sm:$0xff] %v12958_v45  ;;  %v12966_v53 = vpop.f32.mrf.mxu1  ;;  %v10611_v45 = vld [vmem:[%s10892_s29 + $0x20] sm:$0xff] }
 0x501   : > { %15671 = vst [vmem:[#allocation8_spill] sm:$0xff] %v12956_v43 }
 0x502   : > { %15673 = vst [vmem:[#allocation10_spill] sm:$0xff] %v12966_v53 }
 0x505   : > { %v3496_v28 = vpop.f32.mrf.mxu2 }
 0x506   : > { %v3585_v60 = vpop.f32.mrf.mxu3 }
 0x507   : > { %v12968_v25 = vadd.f32 %v3585_v60, %v3496_v28  ;;  %v3677_v31 = vpop.f32.mrf.mxu0  ;;  %v9458_v28 = vor.u32 %v10298_v52, %v9457_v9  ;;  %v9361_v9 = vld [vmem:[%s15609_s12] sm:$0xf]  ;;  %v10274_v52 = vld [vmem:[%s15609_s12 + $0x4] sm:$0xf0] }
 0x508   : > { %v3766_v37 = vpop.f32.mrf.mxu1 }
 0x509   : > { %15674 = vst [vmem:[#allocation11_spill] sm:$0xff] %v12968_v25  ;;  %v12970_v26 = vadd.f32 %v3766_v37, %v3677_v31  ;;  %4500 = vmatpush.bf16.msrb.mxu1 %v9458_v28  ;;  %v10287_v28 = vld [vmem:[%s15609_s12 + $0x74] sm:$0xf] }
 0x50a   : > { %3894 = vmatmul.bf16.gmra.mxu2 %v10611_v45 }
 0x50b   : > { %15675 = vst [vmem:[#allocation12_spill] sm:$0xff] %v12970_v26  ;;  %3983 = vmatmul.bf16.gmra.mxu3 %v10611_v45 }
 0x50d   : > { %v3499_v24 = vpop.f32.mrf.mxu2 }
 0x50e   : > { %v3588_v43 = vpop.f32.mrf.mxu3 }
 0x50f   : > { %v12973_v1 = vadd.f32 %v3588_v43, %v3499_v24  ;;  %v12975_v42 = vpop.f32.mrf.mxu0 }
 0x510   : > { %15677 = vst [vmem:[#allocation14_spill] sm:$0xff] %v12975_v42  ;;  %v12977_v5 = vpop.f32.mrf.mxu1  ;;  %v10612_v42 = vld [vmem:[%s10892_s29 + $0x28] sm:$0xff] }
 0x511   : > { %15676 = vst [vmem:[#allocation13_spill] sm:$0xff] %v12973_v1 }
 0x512   : > { %15678 = vst [vmem:[#allocation15_spill] sm:$0xff] %v12977_v5 }
 0x515   : > { %v3501_v45 = vpop.f32.mrf.mxu2 }
 0x516   : > { %v3590_v60 = vpop.f32.mrf.mxu3 }
 0x517   : > { %v12985_v31 = vadd.f32 %v3590_v60, %v3501_v45  ;;  %v3682_v24 = vpop.f32.mrf.mxu0  ;;  %v10303_v60 = vld [vmem:[%s15609_s12 + $0xf4] sm:$0xf] }
 0x518   : > { %v3771_v43 = vpop.f32.mrf.mxu1 }
 0x519   : > { %15679 = vst [vmem:[#allocation16_spill] sm:$0xff] %v12985_v31  ;;  %v12987_v37 = vadd.f32 %v3771_v43, %v3682_v24  ;;  %v9483_v24 = vld [vmem:[%s15609_s12 + $0xf8] sm:$0xf0]  ;;  %v9449_v31 = vld [vmem:[%s15609_s12 + $0xb0] sm:$0xf] }
 0x51a   : > { %3899 = vmatmul.bf16.gmra.mxu2 %v10612_v42  ;;  %v9486_v43 = vor.u32 %v10303_v60, %v9483_v24  ;;  %v9441_v24 = vld [vmem:[%s15609_s12 + $0xa0] sm:$0xf] }
 0x51b   : > { %15680 = vst [vmem:[#allocation17_spill] sm:$0xff] %v12987_v37  ;;  %3988 = vmatmul.bf16.gmra.mxu3 %v10612_v42  ;;  %v9362_v42 = vor.u32 %v10274_v52, %v9361_v9 }
 0x51c   : > { %4675 = vmatpush.bf16.msra.mxu3 %v9486_v43  ;;  %v10294_v43 = vld [vmem:[%s15609_s12 + $0xa4] sm:$0xf0] }
 0x51d   : > { %v3504_v5 = vpop.f32.mrf.mxu2  ;;  %4415 = vmatpush.bf16.msrb.mxu0 %v9362_v42  ;;  %v10296_v42 = vld [vmem:[%s15609_s12 + $0xb4] sm:$0xf0] }
 0x51e   : > { %v3593_v26 = vpop.f32.mrf.mxu3  ;;  %v9450_v60 = vor.u32 %v10296_v42, %v9449_v31  ;;  %v9433_v31 = vld [vmem:[%s15609_s12 + $0x90] sm:$0xf] }
 0x51f   : > { %v12990_v1 = vadd.f32 %v3593_v26, %v3504_v5  ;;  %v12992_v25 = vpop.f32.mrf.mxu0  ;;  %v9419_v26 = vld [vmem:[%s15609_s12 + $0x78] sm:$0xf0] }
 0x520   : > { %15682 = vst [vmem:[#allocation19_spill] sm:$0xff] %v12992_v25  ;;  %v13003_v45 = vpop.f32.mrf.mxu1  ;;  %v9422_v5 = vor.u32 %v10287_v28, %v9419_v26  ;;  %v10613_v28 = vld [vmem:[%s10892_s29 + $0x30] sm:$0xff]  ;;  %4501 = vmatpush.bf16.msrb.mxu1 %v9450_v60 }
 0x521   : > { %15681 = vst [vmem:[#allocation18_spill] sm:$0xff] %v12990_v1 }
 0x522   : > { %15683 = vst [vmem:[#allocation20_spill] sm:$0xff] %v13003_v45  ;;  %4586 = vmatpush.bf16.msra.mxu2 %v9422_v5 }
 0x525   : > { %v3506_v45 = vpop.f32.mrf.mxu2 }
 0x526   : > { %v3595_v25 = vpop.f32.mrf.mxu3 }
 0x527   : > { %v13014_v9 = vadd.f32 %v3595_v25, %v3506_v45  ;;  %v3687_v52 = vpop.f32.mrf.mxu0 }
 0x528   : > { %v3776_v37 = vpop.f32.mrf.mxu1 }
 0x529   : > { %15684 = vst [vmem:[#allocation21_spill] sm:$0xff] %v13014_v9  ;;  %v13016_v1 = vadd.f32 %v3776_v37, %v3687_v52  ;;  %v9442_v52 = vor.u32 %v10294_v43, %v9441_v24  ;;  %v9425_v24 = vld [vmem:[%s15609_s12 + $0x80] sm:$0xf]  ;;  %v10290_v43 = vld [vmem:[%s15609_s12 + $0x84] sm:$0xf0] }
 0x52a   : > { %3904 = vmatmul.bf16.gmra.mxu2 %v10613_v28  ;;  %v4044_v9 = vld [vmem:[%s15608_s11] sm:$0x3] }
 0x52b   : > { %15685 = vst [vmem:[#allocation22_spill] sm:$0xff] %v13016_v1  ;;  %3993 = vmatmul.bf16.gmra.mxu3 %v10613_v28  ;;  %4502 = vmatpush.bf16.msrb.mxu1 %v9442_v52  ;;  %v10614_v52 = vld [vmem:[%s10892_s29 + $0x38] sm:$0xff] }
 0x52d   : > { %v3509_v26 = vpop.f32.mrf.mxu2 }
 0x52e   : > { %v3598_v5 = vpop.f32.mrf.mxu3 }
 0x52f   : > { %v13025_v25 = vadd.f32 %v3598_v5, %v3509_v26  ;;  %v13027_v45 = vpop.f32.mrf.mxu0  ;;  %v10292_v26 = vld [vmem:[%s15609_s12 + $0x94] sm:$0xf0] }
 0x530   : > { %15687 = vst [vmem:[#allocation24_spill] sm:$0xff] %v13027_v45  ;;  %v13029_v37 = vpop.f32.mrf.mxu1  ;;  %v9434_v5 = vor.u32 %v10292_v26, %v9433_v31 }
 0x531   : > { %15686 = vst [vmem:[#allocation23_spill] sm:$0xff] %v13025_v25  ;;  %v9426_v25 = vor.u32 %v10290_v43, %v9425_v24  ;;  %v10301_v24 = vld [vmem:[%s15609_s12 + $0xe4] sm:$0xf]  ;;  %v9475_v43 = vld [vmem:[%s15609_s12 + $0xe8] sm:$0xf0] }
 0x532   : > { %15688 = vst [vmem:[#allocation25_spill] sm:$0xff] %v13029_v37  ;;  %4503 = vmatpush.bf16.msrb.mxu1 %v9434_v5 }
 0x535   : > { %v3511_v28 = vpop.f32.mrf.mxu2 }
 0x536   : > { %v3600_v42 = vpop.f32.mrf.mxu3  ;;  %4504 = vmatpush.bf16.msrb.mxu1 %v9426_v25  ;;  %v10320_v25 = vld [vmem:[%s15611_s14 + $0x74] sm:$0xf0] }
 0x537   : > { %v13043_v60 = vadd.f32 %v3600_v42, %v3511_v28  ;;  %v3692_v37 = vpop.f32.mrf.mxu0  ;;  %v9545_v42 = vld [vmem:[%s15611_s14 + $0x70] sm:$0xf] }
 0x538   : > { %v3781_v45 = vpop.f32.mrf.mxu1 }
 0x539   : > { %15689 = vst [vmem:[#allocation26_spill] sm:$0xff] %v13043_v60  ;;  %v13045_v1 = vadd.f32 %v3781_v45, %v3692_v37  ;;  %v10285_v45 = vld [vmem:[%s15609_s12 + $0x64] sm:$0xf]  ;;  %v9411_v37 = vld [vmem:[%s15609_s12 + $0x68] sm:$0xf0] }
 0x53a   : > { %3909 = vmatmul.bf16.gmra.mxu2 %v10614_v52  ;;  %v9414_v5 = vor.u32 %v10285_v45, %v9411_v37  ;;  %v10615_v45 = vld [vmem:[%s10892_s29 + $0x40] sm:$0xff] }
 0x53b   : > { %15690 = vst [vmem:[#allocation27_spill] sm:$0xff] %v13045_v1  ;;  %3998 = vmatmul.bf16.gmra.mxu3 %v10614_v52 }
 0x53c   : > { %4587 = vmatpush.bf16.msra.mxu2 %v9414_v5 }
 0x53d   : > { %v3514_v28 = vpop.f32.mrf.mxu2 }
 0x53e   : > { %v3603_v31 = vpop.f32.mrf.mxu3 }
 0x53f   : > { %v13054_v26 = vadd.f32 %v3603_v31, %v3514_v28  ;;  %v9546_v28 = vor.u32 %v10320_v25, %v9545_v42  ;;  %v9478_v31 = vor.u32 %v10301_v24, %v9475_v43  ;;  %v13081_v42 = vperm.slane %v4044_v9, 0 }
 0x541   : > { %15691 = vst [vmem:[#allocation28_spill] sm:$0xff] %v13054_v26  ;;  %5058 = vmatpush.bf16.msra.mxu0 %v9546_v28  ;;  %4676 = vmatpush.bf16.msra.mxu3 %v9478_v31 }
 0x545   : > { %v3516_v52 = vpop.f32.mrf.mxu2 }
 0x546   : > { %v3605_v1 = vpop.f32.mrf.mxu3 }
 0x547   : > { %v13074_v26 = vadd.f32 %v3605_v1, %v3516_v52  ;;  %v13084_v1 = vperm.slane %v4044_v9, 1 }
 0x549   : > { %15692 = vst [vmem:[#allocation29_spill] sm:$0xff] %v13074_v26 }
 0x54a   : > { %3914 = vmatmul.bf16.gmra.mxu2 %v10615_v45 }
 0x54b   : > { %4003 = vmatmul.bf16.gmra.mxu3 %v10615_v45 }
 0x54d   : > { %v3875_v37 = vpop.f32.mrf.mxu2 }
 0x54e   : > { %v3964_v60 = vpop.f32.mrf.mxu3  ;;  %v3876_v53 = vadd.f32 %v3875_v37, %v12714_v56 }
 0x54f   : > { %v3965_v5 = vadd.f32 %v3964_v60, %v12700_v13 }
 0x550   : > { %v4050_v24 = vadd.f32 %v13081_v42, %v3876_v53 }
 0x551   : > { %v4051_v28 = vadd.f32 %v13084_v1, %v3965_v5 }
 0x552   : > { %v4114_v37 = vmax.f32 %v4050_v24, 0.0  ;;  %v10283_v24 = vld [vmem:[%s15609_s12 + $0x54] sm:$0xf] }
 0x553   : > { %v4115_v13 = vmax.f32 %v4051_v28, 0.0 }
 0x555   : > { %v3877_v25 = vpop.f32.mrf.mxu2 }
 0x556   : > { %v3878_v43 = vadd.f32 %v3877_v25, %v12720_v41  ;;  %v3966_v52 = vpop.f32.mrf.mxu3 }
 0x557   : > { %v3967_v31 = vadd.f32 %v3966_v52, %v12717_v40  ;;  %v10318_v52 = vld [vmem:[%s15611_s14 + $0x64] sm:$0xf0] }
 0x558   : > { %v4052_v45 = vadd.f32 %v13081_v42, %v3878_v43  ;;  %v9537_v43 = vld [vmem:[%s15611_s14 + $0x60] sm:$0xf] }
 0x559   : > { %v4053_v56 = vadd.f32 %v13084_v1, %v3967_v31  ;;  %v9538_v28 = vor.u32 %v10318_v52, %v9537_v43  ;;  %v9467_v31 = vld [vmem:[%s15609_s12 + $0xd8] sm:$0xf0]  ;;  %v10617_v52 = vld [vmem:[%s10892_s29 + $0x50] sm:$0xff] }
 0x55a   : > { %v4116_v26 = vmax.f32 %v4052_v45, 0.0  ;;  %3919 = vmatmul.bf16.gmra.mxu2 %v10616_v2 }
 0x55b   : > { %v4117_v9 = vmax.f32 %v4053_v56, 0.0  ;;  %4008 = vmatmul.bf16.gmra.mxu3 %v10616_v2  ;;  %v9403_v2 = vld [vmem:[%s15609_s12 + $0x58] sm:$0xf0]  ;;  %5059 = vmatpush.bf16.msra.mxu0 %v9538_v28 }
 0x55c   : > { %v13093_v60 = vpack.c.bf16 %v4116_v26, %v4114_v37  ;;  %v9406_v26 = vor.u32 %v10283_v24, %v9403_v2 }
 0x55d   : > { %v13095_v53 = vpack.c.bf16 %v4117_v9, %v4115_v13  ;;  %v3880_v41 = vpop.f32.mrf.mxu2 }
 0x55e   : > { %v3969_v25 = vpop.f32.mrf.mxu3  ;;  %4416 = vmatmul.bf16.vlgmr.msrb.gmra.mxu0 %v13093_v60  ;;  %v3881_v40 = vadd.f32 %v3880_v41, %v12728_v36  ;;  %4588 = vmatpush.bf16.msra.mxu2 %v9406_v26 }
 0x55f   : > { %4505 = vmatmul.bf16.vlgmr.msrb.gmra.mxu1 %v13095_v53  ;;  %v3970_v5 = vadd.f32 %v3969_v25, %v12722_v22  ;;  %v10299_v22 = vld [vmem:[%s15609_s12 + $0xd4] sm:$0xf] }
 0x560   : > { %v4054_v45 = vadd.f32 %v13081_v42, %v3881_v40  ;;  %v9470_v13 = vor.u32 %v10299_v22, %v9467_v31 }
 0x561   : > { %v4055_v9 = vadd.f32 %v13084_v1, %v3970_v5 }
 0x562   : > { %4677 = vmatpush.bf16.msra.mxu3 %v9470_v13  ;;  %v4118_v2 = vmax.f32 %v4054_v45, 0.0 }
 0x563   : > { %v4119_v40 = vmax.f32 %v4055_v9, 0.0 }
 0x565   : > { %v3882_v36 = vpop.f32.mrf.mxu2 }
 0x566   : > { %v3883_v56 = vadd.f32 %v3882_v36, %v12746_v30  ;;  %v3971_v37 = vpop.f32.mrf.mxu3 }
 0x567   : > { %v3972_v41 = vadd.f32 %v3971_v37, %v12743_v57 }
 0x568   : > { %v4056_v25 = vadd.f32 %v13081_v42, %v3883_v56 }
 0x569   : > { %v4057_v24 = vadd.f32 %v13084_v1, %v3972_v41 }
 0x56a   : > { %v4120_v43 = vmax.f32 %v4056_v25, 0.0  ;;  %3924 = vmatmul.bf16.gmra.mxu2 %v10617_v52 }
 0x56b   : > { %v4121_v18 = vmax.f32 %v4057_v24, 0.0  ;;  %4013 = vmatmul.bf16.gmra.mxu3 %v10617_v52  ;;  %v10618_v24 = vld [vmem:[%s10892_s29 + $0x58] sm:$0xff] }
 0x56c   : > { %v13126_v30 = vpack.c.bf16 %v4120_v43, %v4118_v2 }
 0x56d   : > { %v3885_v26 = vpop.f32.mrf.mxu2  ;;  %v13128_v22 = vpack.c.bf16 %v4121_v18, %v4119_v40 }
 0x56e   : > { %v3974_v57 = vpop.f32.mrf.mxu3  ;;  %4421 = vmatmul.bf16.gmra.mxu0 %v13126_v30  ;;  %v3886_v5 = vadd.f32 %v3885_v26, %v12760_v48  ;;  %v10281_v26 = vld [vmem:[%s15609_s12 + $0x44] sm:$0xf] }
 0x56f   : > { %4510 = vmatmul.bf16.gmra.mxu1 %v13128_v22  ;;  %v3975_v36 = vadd.f32 %v3974_v57, %v12748_v17  ;;  %v9395_v57 = vld [vmem:[%s15609_s12 + $0x48] sm:$0xf0] }
 0x570   : > { %v4058_v31 = vadd.f32 %v13081_v42, %v3886_v5  ;;  %v9398_v5 = vor.u32 %v10281_v26, %v9395_v57 }
 0x571   : > { %v4059_v37 = vadd.f32 %v13084_v1, %v3975_v36  ;;  %v9529_v36 = vld [vmem:[%s15611_s14 + $0x50] sm:$0xf] }
 0x572   : > { %v4122_v41 = vmax.f32 %v4058_v31, 0.0  ;;  %4589 = vmatpush.bf16.msra.mxu2 %v9398_v5 }
 0x573   : > { %v4123_v48 = vmax.f32 %v4059_v37, 0.0 }
 0x575   : > { %v3887_v28 = vpop.f32.mrf.mxu2 }
 0x576   : > { %v3888_v45 = vadd.f32 %v3887_v28, %v12766_v21  ;;  %v3976_v56 = vpop.f32.mrf.mxu3  ;;  %v10316_v28 = vld [vmem:[%s15611_s14 + $0x54] sm:$0xf0] }
 0x577   : > { %v3977_v18 = vadd.f32 %v3976_v56, %v12763_v10  ;;  %v9530_v31 = vor.u32 %v10316_v28, %v9529_v36  ;;  %v3729_v36 = vadd.f32 %v12810_v7, %v12808_v20  ;;  %v10295_v20 = vld [vmem:[%s15609_s12 + $0xb4] sm:$0xf] }
 0x578   : > { %v4060_v13 = vadd.f32 %v13081_v42, %v3888_v45  ;;  %v9459_v45 = vld [vmem:[%s15609_s12 + $0xc8] sm:$0xf0] }
 0x579   : > { %v4061_v9 = vadd.f32 %v13084_v1, %v3977_v18  ;;  %5060 = vmatpush.bf16.msra.mxu0 %v9530_v31 }
 0x57a   : > { %v4124_v25 = vmax.f32 %v4060_v13, 0.0  ;;  %3929 = vmatmul.bf16.gmra.mxu2 %v10618_v24 }
 0x57b   : > { %v4125_v17 = vmax.f32 %v4061_v9, 0.0  ;;  %4018 = vmatmul.bf16.gmra.mxu3 %v10618_v24 }
 0x57c   : > { %v13141_v2 = vpack.c.bf16 %v4124_v25, %v4122_v41 }
 0x57d   : > { %v3890_v43 = vpop.f32.mrf.mxu2  ;;  %v13143_v21 = vpack.c.bf16 %v4125_v17, %v4123_v48 }
 0x57e   : > { %v3979_v52 = vpop.f32.mrf.mxu3  ;;  %4426 = vmatmul.bf16.gmra.mxu0 %v13141_v2  ;;  %v3891_v10 = vadd.f32 %v3890_v43, %v12774_v39  ;;  %v10619_v43 = vld [vmem:[%s10892_s29 + $0x60] sm:$0xff] }
 0x57f   : > { %4515 = vmatmul.bf16.gmra.mxu1 %v13143_v21  ;;  %v3980_v40 = vadd.f32 %v3979_v52, %v12768_v11  ;;  %v10297_v11 = vld [vmem:[%s15609_s12 + $0xc4] sm:$0xf] }
 0x580   : > { %v4062_v56 = vadd.f32 %v13081_v42, %v3891_v10  ;;  %v9462_v13 = vor.u32 %v10297_v11, %v9459_v45 }
 0x581   : > { %v4063_v9 = vadd.f32 %v13084_v1, %v3980_v40 }
 0x582   : > { %4678 = vmatpush.bf16.msra.mxu3 %v9462_v13  ;;  %v4126_v48 = vmax.f32 %v4062_v56, 0.0  ;;  %v10620_v13 = vld [vmem:[%s10892_s29 + $0x68] sm:$0xff] }
 0x583   : > { %v4127_v52 = vmax.f32 %v4063_v9, 0.0 }
 0x585   : > { %v3892_v39 = vpop.f32.mrf.mxu2 }
 0x586   : > { %v3893_v37 = vadd.f32 %v3892_v39, %v12792_v44  ;;  %v3981_v18 = vpop.f32.mrf.mxu3 }
 0x587   : > { %v3982_v41 = vadd.f32 %v3981_v18, %v12789_v14 }
 0x588   : > { %v4064_v25 = vadd.f32 %v13081_v42, %v3893_v37 }
 0x589   : > { %v4065_v24 = vadd.f32 %v13084_v1, %v3982_v41  ;;  %v9451_v41 = vld [vmem:[%s15609_s12 + $0xb8] sm:$0xf0] }
 0x58a   : > { %v4128_v17 = vmax.f32 %v4064_v25, 0.0  ;;  %3934 = vmatmul.bf16.gmra.mxu2 %v10619_v43 }
 0x58b   : > { %v4129_v10 = vmax.f32 %v4065_v24, 0.0  ;;  %4023 = vmatmul.bf16.gmra.mxu3 %v10619_v43 }
 0x58c   : > { %v13174_v44 = vpack.c.bf16 %v4128_v17, %v4126_v48  ;;  %v9454_v48 = vor.u32 %v10295_v20, %v9451_v41 }
 0x58d   : > { %v3895_v26 = vpop.f32.mrf.mxu2  ;;  %v13176_v57 = vpack.c.bf16 %v4129_v10, %v4127_v52  ;;  %v10277_v10 = vld [vmem:[%s15609_s12 + $0x24] sm:$0xf] }
 0x58e   : > { %v3984_v40 = vpop.f32.mrf.mxu3  ;;  %4431 = vmatmul.bf16.gmra.mxu0 %v13174_v44  ;;  %v3896_v14 = vadd.f32 %v3895_v26, %v12806_v4  ;;  %v9387_v4 = vld [vmem:[%s15609_s12 + $0x38] sm:$0xf0]  ;;  %4679 = vmatpush.bf16.msra.mxu3 %v9454_v48  ;;  %v9379_v26 = vld [vmem:[%s15609_s12 + $0x28] sm:$0xf0] }
 0x58f   : > { %4520 = vmatmul.bf16.gmra.mxu1 %v13176_v57  ;;  %v3985_v5 = vadd.f32 %v3984_v40, %v12794_v19  ;;  %v10279_v19 = vld [vmem:[%s15609_s12 + $0x34] sm:$0xf]  ;;  %v10293_v40 = vld [vmem:[%s15609_s12 + $0xa4] sm:$0xf] }
 0x590   : > { %v4066_v11 = vadd.f32 %v13081_v42, %v3896_v14  ;;  %v9390_v9 = vor.u32 %v10279_v19, %v9387_v4  ;;  %v9521_v19 = vld [vmem:[%s15611_s14 + $0x40] sm:$0xf]  ;;  %v10314_v4 = vld [vmem:[%s15611_s14 + $0x44] sm:$0xf0] }
 0x591   : > { %v4067_v45 = vadd.f32 %v13084_v1, %v3985_v5  ;;  %v9382_v5 = vor.u32 %v10277_v10, %v9379_v26 }
 0x592   : > { %v4130_v7 = vmax.f32 %v4066_v11, 0.0  ;;  %4590 = vmatpush.bf16.msra.mxu2 %v9390_v9  ;;  %v10275_v11 = vld [vmem:[%s15609_s12 + $0x14] sm:$0xf]  ;;  %v10289_v9 = vld [vmem:[%s15609_s12 + $0x84] sm:$0xf] }
 0x593   : > { %v4131_v25 = vmax.f32 %v4067_v45, 0.0 }
 0x595   : > { %v3897_v28 = vpop.f32.mrf.mxu2 }
 0x596   : > { %v3898_v39 = vadd.f32 %v3897_v28, %v12814_v27  ;;  %v3986_v31 = vpop.f32.mrf.mxu3  ;;  %4591 = vmatpush.bf16.msra.mxu2 %v9382_v5 }
 0x597   : > { %v3987_v56 = vadd.f32 %v3986_v31, %v3729_v36  ;;  %v9443_v36 = vld [vmem:[%s15609_s12 + $0xa8] sm:$0xf0]  ;;  %v10291_v31 = vld [vmem:[%s15609_s12 + $0x94] sm:$0xf] }
 0x598   : > { %v4068_v37 = vadd.f32 %v13081_v42, %v3898_v39  ;;  %v9446_v28 = vor.u32 %v10293_v40, %v9443_v36  ;;  %v9371_v39 = vld [vmem:[%s15609_s12 + $0x18] sm:$0xf0] }
 0x599   : > { %v4069_v18 = vadd.f32 %v13084_v1, %v3987_v56  ;;  %v9374_v56 = vor.u32 %v10275_v11, %v9371_v39 }
 0x59a   : > { %v4132_v27 = vmax.f32 %v4068_v37, 0.0  ;;  %3939 = vmatmul.bf16.gmra.mxu2 %v10620_v13  ;;  %4680 = vmatpush.bf16.msra.mxu3 %v9446_v28  ;;  %v9435_v37 = vld [vmem:[%s15609_s12 + $0x98] sm:$0xf0] }
 0x59b   : > { %v4133_v24 = vmax.f32 %v4069_v18, 0.0  ;;  %4028 = vmatmul.bf16.gmra.mxu3 %v10620_v13  ;;  %v9438_v20 = vor.u32 %v10291_v31, %v9435_v37  ;;  %4592 = vmatpush.bf16.msra.mxu2 %v9374_v56  ;;  %v9363_v13 = vld [vmem:[%s15609_s12 + $0x8] sm:$0xf0] }
 0x59c   : > { %v13202_v17 = vpack.c.bf16 %v4132_v27, %v4130_v7  ;;  %v9522_v7 = vor.u32 %v10314_v4, %v9521_v19  ;;  %v10336_v19 = vld [vmem:[%s15611_s14 + $0xf4] sm:$0xf0] }
 0x59d   : > { %v3900_v43 = vpop.f32.mrf.mxu2  ;;  %v13204_v52 = vpack.c.bf16 %v4133_v24, %v4131_v25  ;;  %v9427_v24 = vld [vmem:[%s15609_s12 + $0x88] sm:$0xf0] }
 0x59e   : > { %v3989_v14 = vpop.f32.mrf.mxu3  ;;  %4436 = vmatmul.bf16.gmra.mxu0 %v13202_v17  ;;  %v3901_v45 = vadd.f32 %v3900_v43, %v12834_v55  ;;  %v3734_v55 = vadd.f32 %v12844_v47, %v12836_v0  ;;  %4681 = vmatpush.bf16.msra.mxu3 %v9438_v20  ;;  %v9430_v10 = vor.u32 %v10289_v9, %v9427_v24 }
 0x59f   : > { %4525 = vmatmul.bf16.gmra.mxu1 %v13204_v52  ;;  %v3990_v18 = vadd.f32 %v3989_v14, %v12816_v58  ;;  %v10273_v58 = vld [vmem:[%s15609_s12 + $0x4] sm:$0xf]  ;;  %5061 = vmatpush.bf16.msra.mxu0 %v9522_v7  ;;  %v3739_v20 = vadd.f32 %v12872_v49, %v12870_v12 }
 0x5a0   : > { %v4070_v41 = vadd.f32 %v13081_v42, %v3901_v45  ;;  %v9366_v47 = vor.u32 %v10273_v58, %v9363_v13 }
 0x5a1   : > { %v4071_v48 = vadd.f32 %v13084_v1, %v3990_v18  ;;  %v9609_v18 = vld [vmem:[%s15611_s14 + $0xf0] sm:$0xf] }
 0x5a2   : > { %4593 = vmatpush.bf16.msra.mxu2 %v9366_v47  ;;  %4682 = vmatpush.bf16.msra.mxu3 %v9430_v10  ;;  %v4134_v14 = vmax.f32 %v4070_v41, 0.0  ;;  %v9610_v4 = vor.u32 %v10336_v19, %v9609_v18 }
 0x5a3   : > { %v4135_v36 = vmax.f32 %v4071_v48, 0.0 }
 0x5a4   : > { %5147 = vmatpush.bf16.msra.mxu1 %v9610_v4 }
 0x5a5   : > { %v3902_v27 = vpop.f32.mrf.mxu2 }
 0x5a6   : > { %v3903_v25 = vadd.f32 %v3902_v27, %v12860_v6  ;;  %v3991_v0 = vpop.f32.mrf.mxu3  ;;  %v10621_v6 = vld [vmem:[%s10892_s29 + $0x70] sm:$0xff] }
 0x5a7   : > { %v3992_v43 = vadd.f32 %v3991_v0, %v3734_v55  ;;  %v10622_v0 = vld [vmem:[%s10892_s29 + $0x78] sm:$0xff] }
 0x5a8   : > { %v4072_v26 = vadd.f32 %v13081_v42, %v3903_v25 }
 0x5a9   : > { %v4073_v40 = vadd.f32 %v13084_v1, %v3992_v43 }
 0x5aa   : > { %v4136_v5 = vmax.f32 %v4072_v26, 0.0  ;;  %3944 = vmatmul.bf16.gmra.mxu2 %v10621_v6  ;;  %v9513_v26 = vld [vmem:[%s15611_s14 + $0x30] sm:$0xf] }
 0x5ab   : > { %v4137_v28 = vmax.f32 %v4073_v40, 0.0  ;;  %4033 = vmatmul.bf16.gmra.mxu3 %v10621_v6  ;;  %v10312_v40 = vld [vmem:[%s15611_s14 + $0x34] sm:$0xf0] }
 0x5ac   : > { %v13260_v11 = vpack.c.bf16 %v4136_v5, %v4134_v14  ;;  %v9514_v14 = vor.u32 %v10312_v40, %v9513_v26  ;;  %v3744_v5 = vadd.f32 %v12898_v3, %v12890_v34 }
 0x5ad   : > { %v3905_v39 = vpop.f32.mrf.mxu2  ;;  %v13262_v31 = vpack.c.bf16 %v4137_v28, %v4135_v36 }
 0x5ae   : > { %v3994_v45 = vpop.f32.mrf.mxu3  ;;  %4441 = vmatmul.bf16.gmra.mxu0 %v13260_v11  ;;  %v3906_v56 = vadd.f32 %v3905_v39, %v12868_v63 }
 0x5af   : > { %4530 = vmatmul.bf16.gmra.mxu1 %v13262_v31  ;;  %v3995_v37 = vadd.f32 %v3994_v45, %v12862_v51  ;;  %5062 = vmatpush.bf16.msra.mxu0 %v9514_v14 }
 0x5b0   : > { %v4074_v55 = vadd.f32 %v13081_v42, %v3906_v56 }
 0x5b1   : > { %v4075_v51 = vadd.f32 %v13084_v1, %v3995_v37 }
 0x5b2   : > { %v4138_v41 = vmax.f32 %v4074_v55, 0.0  ;;  %v13312_v55 = vpop.f32.mrf.mxu0 }
 0x5b3   : > { %v4139_v47 = vmax.f32 %v4075_v51, 0.0 }
 0x5b5   : > { %v3907_v7 = vpop.f32.mrf.mxu2 }
 0x5b6   : > { %v3908_v63 = vadd.f32 %v3907_v7, %v12882_v23  ;;  %v3996_v27 = vpop.f32.mrf.mxu3 }
 0x5b7   : > { %v3997_v58 = vadd.f32 %v3996_v27, %v3739_v20  ;;  %v13321_v27 = vpop.f32.mrf.mxu1 }
 0x5b8   : > { %v4076_v13 = vadd.f32 %v13081_v42, %v3908_v63  ;;  %v10334_v63 = vld [vmem:[%s15611_s14 + $0xe4] sm:$0xf0] }
 0x5b9   : > { %v4077_v9 = vadd.f32 %v13084_v1, %v3997_v58  ;;  %v3749_v58 = vadd.f32 %v12909_v8, %v12907_v33 }
 0x5ba   : > { %v4140_v25 = vmax.f32 %v4076_v13, 0.0  ;;  %3949 = vmatmul.bf16.gmra.mxu2 %v10622_v0 }
 0x5bb   : > { %v4141_v12 = vmax.f32 %v4077_v9, 0.0  ;;  %4038 = vmatmul.bf16.gmra.mxu3 %v10622_v0 }
 0x5bc   : > { %v13282_v49 = vpack.c.bf16 %v4140_v25, %v4138_v41 }
 0x5bd   : > { %v3910_v24 = vpop.f32.mrf.mxu2  ;;  %v13284_v23 = vpack.c.bf16 %v4141_v12, %v4139_v47 }
 0x5be   : > { %v3999_v48 = vpop.f32.mrf.mxu3  ;;  %4446 = vmatmul.bf16.gmra.mxu0 %v13282_v49  ;;  %v3911_v43 = vadd.f32 %v3910_v24, %v12888_v32 }
 0x5bf   : > { %4535 = vmatmul.bf16.gmra.mxu1 %v13284_v23  ;;  %v4000_v10 = vadd.f32 %v3999_v48, %v12884_v16 }
 0x5c0   : > { %v4078_v36 = vadd.f32 %v13081_v42, %v3911_v43 }
 0x5c1   : > { %v4079_v16 = vadd.f32 %v13084_v1, %v4000_v10 }
 0x5c2   : > { %v4142_v37 = vmax.f32 %v4078_v36, 0.0 }
 0x5c3   : > { %v4143_v19 = vmax.f32 %v4079_v16, 0.0  ;;  %v10310_v16 = vld [vmem:[%s15611_s14 + $0x24] sm:$0xf0] }
 0x5c5   : > { %v3912_v6 = vpop.f32.mrf.mxu2 }
 0x5c6   : > { %v3913_v28 = vadd.f32 %v3912_v6, %v12900_v46  ;;  %v4001_v32 = vpop.f32.mrf.mxu3 }
 0x5c7   : > { %v4002_v39 = vadd.f32 %v4001_v32, %v3744_v5  ;;  %v9505_v32 = vld [vmem:[%s15611_s14 + $0x20] sm:$0xf] }
 0x5c8   : > { %v4080_v45 = vadd.f32 %v13081_v42, %v3913_v28 }
 0x5c9   : > { %v4081_v56 = vadd.f32 %v13084_v1, %v4002_v39 }
 0x5ca   : > { %v4144_v18 = vmax.f32 %v4080_v45, 0.0  ;;  %4594 = vmatmul.bf16.vlgmr.msra.gmra.mxu2 %v13093_v60 }
 0x5cb   : > { %v4145_v34 = vmax.f32 %v4081_v56, 0.0  ;;  %4683 = vmatmul.bf16.vlgmr.msra.gmra.mxu3 %v13095_v53  ;;  %v9601_v53 = vld [vmem:[%s15611_s14 + $0xe0] sm:$0xf]  ;;  %v9506_v56 = vor.u32 %v10310_v16, %v9505_v32 }
 0x5cc   : > { %v13305_v3 = vpack.c.bf16 %v4144_v18, %v4142_v37  ;;  %v9602_v51 = vor.u32 %v10334_v63, %v9601_v53  ;;  %v3754_v37 = vadd.f32 %v12932_v61, %v12924_v54 }
 0x5cd   : > { %v3915_v46 = vpop.f32.mrf.mxu2  ;;  %v13307_v4 = vpack.c.bf16 %v4145_v34, %v4143_v19  ;;  %5063 = vmatpush.bf16.msra.mxu0 %v9506_v56 }
 0x5ce   : > { %v4004_v20 = vpop.f32.mrf.mxu3  ;;  %4451 = vmatmul.bf16.gmra.mxu0 %v13305_v3  ;;  %v3916_v7 = vadd.f32 %v3915_v46, %v12905_v15  ;;  %v13328_v15 = vld [vmem:[%s15610_s13] sm:$0x3]  ;;  %5148 = vmatpush.bf16.msra.mxu1 %v9602_v51 }
 0x5cf   : > { %4540 = vmatmul.bf16.gmra.mxu1 %v13307_v4  ;;  %v4005_v60 = vadd.f32 %v4004_v20, %v12902_v50  ;;  %v13335_v12 = vperm.slane %v13328_v15, 0 }
 0x5d0   : > { %v4082_v50 = vadd.f32 %v13081_v42, %v3916_v7 }
 0x5d1   : > { %v4083_v25 = vadd.f32 %v13084_v1, %v4005_v60 }
 0x5d2   : > { %v4146_v8 = vmax.f32 %v4082_v50, 0.0 }
 0x5d3   : > { %v4147_v48 = vmax.f32 %v4083_v25, 0.0 }
 0x5d5   : > { %v3917_v13 = vpop.f32.mrf.mxu2 }
 0x5d6   : > { %v3918_v9 = vadd.f32 %v3917_v13, %v12917_v59  ;;  %v4006_v41 = vpop.f32.mrf.mxu3 }
 0x5d7   : > { %v4007_v0 = vadd.f32 %v4006_v41, %v3749_v58 }
 0x5d8   : > { %v4084_v47 = vadd.f32 %v13081_v42, %v3918_v9 }
 0x5d9   : > { %v4085_v33 = vadd.f32 %v13084_v1, %v4007_v0 }
 0x5da   : > { %v4148_v24 = vmax.f32 %v4084_v47, 0.0  ;;  %4599 = vmatmul.bf16.gmra.mxu2 %v13126_v30 }
 0x5db   : > { %v4149_v43 = vmax.f32 %v4085_v33, 0.0  ;;  %4688 = vmatmul.bf16.gmra.mxu3 %v13128_v22  ;;  %v4417_v59 = vpop.f32.mrf.mxu0 }
 0x5dc   : > { %v4418_v10 = vadd.f32 %v4417_v59, %v13335_v12  ;;  %v4506_v26 = vpop.f32.mrf.mxu1  ;;  %v13341_v40 = vpack.c.bf16 %v4148_v24, %v4146_v8  ;;  %v15693_v8 = vld [vmem:[#allocation3_spill] sm:$0xff] }
 0x5dd   : > { %v3920_v14 = vpop.f32.mrf.mxu2  ;;  %v13343_v5 = vpack.c.bf16 %v4149_v43, %v4147_v48  ;;  %v9593_v48 = vld [vmem:[%s15611_s14 + $0xd0] sm:$0xf]  ;;  %v10332_v43 = vld [vmem:[%s15611_s14 + $0xd4] sm:$0xf0] }
 0x5de   : > { %v4507_v6 = vadd.f32 %v4506_v26, %v4418_v10  ;;  %v4009_v36 = vpop.f32.mrf.mxu3  ;;  %4456 = vmatmul.bf16.gmra.mxu0 %v13341_v40  ;;  %v3921_v30 = vadd.f32 %v3920_v14, %v12922_v29  ;;  %v9594_v26 = vor.u32 %v10332_v43, %v9593_v48  ;;  %v15694_v14 = vld [vmem:[#allocation4_spill] sm:$0xff] }
 0x5df   : > { %4545 = vmatmul.bf16.gmra.mxu1 %v13343_v5  ;;  %v4010_v28 = vadd.f32 %v4009_v36, %v12919_v38 }
 0x5e0   : > { %v4086_v29 = vadd.f32 %v13081_v42, %v3921_v30  ;;  %v4764_v7 = vmax.f32 %v4507_v6, 0.0  ;;  %v15695_v6 = vld [vmem:[#allocation5_spill] sm:$0xff]  ;;  %5149 = vmatpush.bf16.msra.mxu1 %v9594_v26  ;;  %v15701_v26 = vld [vmem:[#allocation11_spill] sm:$0xff] }
 0x5e1   : > { %v4087_v46 = vadd.f32 %v13084_v1, %v4010_v28  ;;  %v3759_v36 = vadd.f32 %v15695_v6, %v15694_v14 }
 0x5e2   : > { %v4150_v51 = vmax.f32 %v4086_v29, 0.0 }
 0x5e3   : > { %v4419_v22 = vpop.f32.mrf.mxu0  ;;  %v4151_v61 = vmax.f32 %v4087_v46, 0.0 }
 0x5e4   : > { %v4420_v39 = vadd.f32 %v4419_v22, %v13335_v12  ;;  %v4508_v45 = vpop.f32.mrf.mxu1  ;;  %v15696_v22 = vld [vmem:[#allocation6_spill] sm:$0xff] }
 0x5e5   : > { %v3922_v18 = vpop.f32.mrf.mxu2 }
 0x5e6   : > { %v4509_v38 = vadd.f32 %v4508_v45, %v4420_v39  ;;  %v3923_v19 = vadd.f32 %v3922_v18, %v12934_v35  ;;  %v4011_v34 = vpop.f32.mrf.mxu3 }
 0x5e7   : > { %v4012_v20 = vadd.f32 %v4011_v34, %v3754_v37 }
 0x5e8   : > { %v4766_v60 = vmax.f32 %v4509_v38, 0.0  ;;  %v4088_v53 = vadd.f32 %v13081_v42, %v3923_v19 }
 0x5e9   : > { %v4089_v63 = vadd.f32 %v13084_v1, %v4012_v20 }
 0x5ea   : > { %v13363_v58 = vpack.c.bf16 %v4766_v60, %v4764_v7  ;;  %v4152_v54 = vmax.f32 %v4088_v53, 0.0  ;;  %4604 = vmatmul.bf16.gmra.mxu2 %v13141_v2 }
 0x5eb   : > { %v4153_v13 = vmax.f32 %v4089_v63, 0.0  ;;  %4693 = vmatmul.bf16.gmra.mxu3 %v13143_v21  ;;  %v4422_v35 = vpop.f32.mrf.mxu0 }
 0x5ec   : > { %v4423_v50 = vadd.f32 %v4422_v35, %v13335_v12  ;;  %v4511_v9 = vpop.f32.mrf.mxu1  ;;  %v13368_v41 = vpack.c.bf16 %v4152_v54, %v4150_v51 }
 0x5ed   : > { %v3925_v25 = vpop.f32.mrf.mxu2  ;;  %v13370_v0 = vpack.c.bf16 %v4153_v13, %v4151_v61 }
 0x5ee   : > { %v4512_v47 = vadd.f32 %v4511_v9, %v4423_v50  ;;  %v4014_v33 = vpop.f32.mrf.mxu3  ;;  %4461 = vmatmul.bf16.gmra.mxu0 %v13368_v41  ;;  %v3926_v2 = vadd.f32 %v3925_v25, %v12939_v62  ;;  %v15698_v50 = vld [vmem:[#allocation7_spill] sm:$0xff]  ;;  %v9497_v25 = vld [vmem:[%s15611_s14 + $0x10] sm:$0xf] }
 0x5ef   : > { %4550 = vmatmul.bf16.gmra.mxu1 %v13370_v0  ;;  %v4015_v24 = vadd.f32 %v4014_v33, %v15693_v8 }
 0x5f0   : > { %v4090_v62 = vadd.f32 %v13081_v42, %v3926_v2  ;;  %v4768_v56 = vmax.f32 %v4512_v47, 0.0  ;;  %v10308_v47 = vld [vmem:[%s15611_s14 + $0x14] sm:$0xf0] }
 0x5f1   : > { %v4091_v39 = vadd.f32 %v13084_v1, %v4015_v24  ;;  %v9498_v8 = vor.u32 %v10308_v47, %v9497_v25  ;;  %v15699_v24 = vld [vmem:[#allocation9_spill] sm:$0xff]  ;;  %v15705_v25 = vld [vmem:[#allocation15_spill] sm:$0xff] }
 0x5f2   : > { %v4154_v38 = vmax.f32 %v4090_v62, 0.0 }
 0x5f3   : > { %v4424_v21 = vpop.f32.mrf.mxu0  ;;  %v4155_v46 = vmax.f32 %v4091_v39, 0.0  ;;  %5064 = vmatpush.bf16.msra.mxu0 %v9498_v8 }
 0x5f4   : > { %v4425_v59 = vadd.f32 %v4424_v21, %v13335_v12  ;;  %v4513_v10 = vpop.f32.mrf.mxu1  ;;  %v15700_v21 = vld [vmem:[#allocation10_spill] sm:$0xff] }
 0x5f5   : > { %v3927_v30 = vpop.f32.mrf.mxu2  ;;  %v3764_v48 = vadd.f32 %v15700_v21, %v15699_v24  ;;  %v15706_v24 = vld [vmem:[#allocation16_spill] sm:$0xff] }
 0x5f6   : > { %v4514_v28 = vadd.f32 %v4513_v10, %v4425_v59  ;;  %v3928_v32 = vadd.f32 %v3927_v30, %v15696_v22  ;;  %v4016_v16 = vpop.f32.mrf.mxu3 }
 0x5f7   : > { %v4017_v45 = vadd.f32 %v4016_v16, %v3759_v36 }
 0x5f8   : > { %v4770_v37 = vmax.f32 %v4514_v28, 0.0  ;;  %v4092_v18 = vadd.f32 %v13081_v42, %v3928_v32 }
 0x5f9   : > { %v4093_v29 = vadd.f32 %v13084_v1, %v4017_v45 }
 0x5fa   : > { %v4156_v19 = vmax.f32 %v4092_v18, 0.0  ;;  %4609 = vmatmul.bf16.gmra.mxu2 %v13174_v44  ;;  %v13391_v34 = vpack.c.bf16 %v4770_v37, %v4768_v56  ;;  %v15697_v44 = vld [vmem:[#allocation8_spill] sm:$0xff] }
 0x5fb   : > { %v4157_v20 = vmax.f32 %v4093_v29, 0.0  ;;  %4698 = vmatmul.bf16.gmra.mxu3 %v13176_v57  ;;  %v4427_v7 = vpop.f32.mrf.mxu0 }
 0x5fc   : > { %v4428_v60 = vadd.f32 %v4427_v7, %v13335_v12  ;;  %v4516_v53 = vpop.f32.mrf.mxu1  ;;  %v13395_v63 = vpack.c.bf16 %v4156_v19, %v4154_v38 }
 0x5fd   : > { %v3930_v51 = vpop.f32.mrf.mxu2  ;;  %v13397_v54 = vpack.c.bf16 %v4157_v20, %v4155_v46 }
 0x5fe   : > { %v4517_v61 = vadd.f32 %v4516_v53, %v4428_v60  ;;  %v4019_v13 = vpop.f32.mrf.mxu3  ;;  %4466 = vmatmul.bf16.gmra.mxu0 %v13395_v63  ;;  %v3931_v35 = vadd.f32 %v3930_v51, %v15697_v44  ;;  %v15703_v51 = vld [vmem:[#allocation12_spill] sm:$0xff] }
 0x5ff   : > { %4555 = vmatmul.bf16.gmra.mxu1 %v13397_v54  ;;  %v4020_v9 = vadd.f32 %v4019_v13, %v15698_v50  ;;  %v9585_v13 = vld [vmem:[%s15611_s14 + $0xc0] sm:$0xf]  ;;  %v10330_v44 = vld [vmem:[%s15611_s14 + $0xc4] sm:$0xf0] }
 0x600   : > { %v4094_v59 = vadd.f32 %v13081_v42, %v3931_v35  ;;  %v4772_v62 = vmax.f32 %v4517_v61, 0.0 }
 0x601   : > { %v4095_v36 = vadd.f32 %v13084_v1, %v4020_v9  ;;  %v9586_v9 = vor.u32 %v10330_v44, %v9585_v13  ;;  %v10319_v13 = vld [vmem:[%s15611_s14 + $0x74] sm:$0xf]  ;;  %v9547_v44 = vld [vmem:[%s15611_s14 + $0x78] sm:$0xf0] }
 0x602   : > { %v4158_v16 = vmax.f32 %v4094_v59, 0.0 }
 0x603   : > { %v4429_v57 = vpop.f32.mrf.mxu0  ;;  %v4159_v56 = vmax.f32 %v4095_v36, 0.0  ;;  %5150 = vmatpush.bf16.msra.mxu1 %v9586_v9  ;;  %v15710_v9 = vld [vmem:[#allocation20_spill] sm:$0xff] }
 0x604   : > { %v4430_v33 = vadd.f32 %v4429_v57, %v13335_v12  ;;  %v4518_v2 = vpop.f32.mrf.mxu1  ;;  %v15704_v57 = vld [vmem:[#allocation14_spill] sm:$0xff] }
 0x605   : > { %v3932_v43 = vpop.f32.mrf.mxu2  ;;  %v3769_v47 = vadd.f32 %v15705_v25, %v15704_v57 }
 0x606   : > { %v4519_v10 = vadd.f32 %v4518_v2, %v4430_v33  ;;  %v3933_v14 = vadd.f32 %v3932_v43, %v15701_v26  ;;  %v4021_v6 = vpop.f32.mrf.mxu3 }
 0x607   : > { %v4022_v30 = vadd.f32 %v4021_v6, %v3764_v48 }
 0x608   : > { %v4774_v28 = vmax.f32 %v4519_v10, 0.0  ;;  %v4096_v22 = vadd.f32 %v13081_v42, %v3933_v14 }
 0x609   : > { %v4097_v32 = vadd.f32 %v13084_v1, %v4022_v30 }
 0x60a   : > { %v4160_v39 = vmax.f32 %v4096_v22, 0.0  ;;  %4614 = vmatmul.bf16.gmra.mxu2 %v13202_v17  ;;  %v13418_v45 = vpack.c.bf16 %v4774_v28, %v4772_v62  ;;  %v15702_v17 = vld [vmem:[#allocation13_spill] sm:$0xff] }
 0x60b   : > { %v4161_v37 = vmax.f32 %v4097_v32, 0.0  ;;  %4703 = vmatmul.bf16.gmra.mxu3 %v13204_v52  ;;  %v4432_v18 = vpop.f32.mrf.mxu0 }
 0x60c   : > { %v4433_v29 = vadd.f32 %v4432_v18, %v13335_v12  ;;  %v4521_v38 = vpop.f32.mrf.mxu1  ;;  %v13422_v19 = vpack.c.bf16 %v4160_v39, %v4158_v16 }
 0x60d   : > { %v3935_v46 = vpop.f32.mrf.mxu2  ;;  %v13424_v20 = vpack.c.bf16 %v4161_v37, %v4159_v56 }
 0x60e   : > { %v4522_v7 = vadd.f32 %v4521_v38, %v4433_v29  ;;  %v4024_v60 = vpop.f32.mrf.mxu3  ;;  %4471 = vmatmul.bf16.gmra.mxu0 %v13422_v19  ;;  %v3936_v53 = vadd.f32 %v3935_v46, %v15702_v17  ;;  %v9489_v17 = vld [vmem:[%s15611_s14] sm:$0xf] }
 0x60f   : > { %4560 = vmatmul.bf16.gmra.mxu1 %v13424_v20  ;;  %v4025_v61 = vadd.f32 %v4024_v60, %v15703_v51 }
 0x610   : > { %v4098_v2 = vadd.f32 %v13081_v42, %v3936_v53  ;;  %v4776_v10 = vmax.f32 %v4522_v7, 0.0  ;;  %v15708_v7 = vld [vmem:[#allocation17_spill] sm:$0xff]  ;;  %v10306_v53 = vld [vmem:[%s15611_s14 + $0x4] sm:$0xf0] }
 0x611   : > { %v4099_v43 = vadd.f32 %v13084_v1, %v4025_v61 }
 0x612   : > { %v4162_v36 = vmax.f32 %v4098_v2, 0.0 }
 0x613   : > { %v4434_v52 = vpop.f32.mrf.mxu0  ;;  %v4163_v28 = vmax.f32 %v4099_v43, 0.0 }
 0x614   : > { %v4435_v35 = vadd.f32 %v4434_v52, %v13335_v12  ;;  %v4523_v50 = vpop.f32.mrf.mxu1  ;;  %v9490_v52 = vor.u32 %v10306_v53, %v9489_v17  ;;  %v9569_v17 = vld [vmem:[%s15611_s14 + $0xa0] sm:$0xf]  ;;  %v10326_v53 = vld [vmem:[%s15611_s14 + $0xa4] sm:$0xf0] }
 0x615   : > { %v3937_v33 = vpop.f32.mrf.mxu2 }
 0x616   : > { %v4524_v8 = vadd.f32 %v4523_v50, %v4435_v35  ;;  %v3938_v21 = vadd.f32 %v3937_v33, %v15706_v24  ;;  %v4026_v48 = vpop.f32.mrf.mxu3  ;;  %v10335_v35 = vld [vmem:[%s15611_s14 + $0xf4] sm:$0xf]  ;;  %v15709_v50 = vld [vmem:[#allocation19_spill] sm:$0xff]  ;;  %v9611_v33 = vld [vmem:[%s15611_s14 + $0xf8] sm:$0xf0]  ;;  %5065 = vmatpush.bf16.msra.mxu0 %v9490_v52  ;;  %v9570_v52 = vor.u32 %v10326_v53, %v9569_v17 }
 0x617   : > { %v4027_v59 = vadd.f32 %v4026_v48, %v3769_v47  ;;  %v3774_v57 = vadd.f32 %v15710_v9, %v15709_v50  ;;  %v9550_v47 = vor.u32 %v10319_v13, %v9547_v44  ;;  %v15711_v24 = vld [vmem:[#allocation21_spill] sm:$0xff]  ;;  %v9614_v43 = vor.u32 %v10335_v35, %v9611_v33  ;;  %v15713_v13 = vld [vmem:[#allocation22_spill] sm:$0xff] }
 0x618   : > { %v4778_v26 = vmax.f32 %v4524_v8, 0.0  ;;  %v4100_v14 = vadd.f32 %v13081_v42, %v3938_v21 }
 0x619   : > { %v4101_v6 = vadd.f32 %v13084_v1, %v4027_v59  ;;  %5236 = vmatpush.bf16.msrb.mxu2 %v9550_v47  ;;  %5325 = vmatpush.bf16.msrb.mxu3 %v9614_v43 }
 0x61a   : > { %v4164_v30 = vmax.f32 %v4100_v14, 0.0  ;;  %4619 = vmatmul.bf16.gmra.mxu2 %v13260_v11  ;;  %v13445_v62 = vpack.c.bf16 %v4778_v26, %v4776_v10  ;;  %v15707_v11 = vld [vmem:[#allocation18_spill] sm:$0xff] }
 0x61b   : > { %v4165_v22 = vmax.f32 %v4101_v6, 0.0  ;;  %4708 = vmatmul.bf16.gmra.mxu3 %v13262_v31  ;;  %v4437_v32 = vpop.f32.mrf.mxu0 }
 0x61c   : > { %v4438_v16 = vadd.f32 %v4437_v32, %v13335_v12  ;;  %v4526_v39 = vpop.f32.mrf.mxu1  ;;  %v13449_v56 = vpack.c.bf16 %v4164_v30, %v4162_v36 }
 0x61d   : > { %v3940_v37 = vpop.f32.mrf.mxu2  ;;  %v13451_v18 = vpack.c.bf16 %v4165_v22, %v4163_v28 }
 0x61e   : > { %v4527_v29 = vadd.f32 %v4526_v39, %v4438_v16  ;;  %v4029_v38 = vpop.f32.mrf.mxu3  ;;  %4476 = vmatmul.bf16.gmra.mxu0 %v13449_v56  ;;  %v3941_v46 = vadd.f32 %v3940_v37, %v15707_v11 }
 0x61f   : > { %4565 = vmatmul.bf16.gmra.mxu1 %v13451_v18  ;;  %v4030_v60 = vadd.f32 %v4029_v38, %v15708_v7  ;;  %v9577_v7 = vld [vmem:[%s15611_s14 + $0xb0] sm:$0xf] }
 0x620   : > { %v4102_v2 = vadd.f32 %v13081_v42, %v3941_v46  ;;  %v4780_v26 = vmax.f32 %v4527_v29, 0.0 }
 0x621   : > { %v4103_v59 = vadd.f32 %v13084_v1, %v4030_v60 }
 0x622   : > { %v4166_v30 = vmax.f32 %v4102_v2, 0.0  ;;  %v9561_v2 = vld [vmem:[%s15611_s14 + $0x90] sm:$0xf] }
 0x623   : > { %v4439_v31 = vpop.f32.mrf.mxu0  ;;  %v4167_v32 = vmax.f32 %v4103_v59, 0.0 }
 0x624   : > { %v4440_v51 = vadd.f32 %v4439_v31, %v13335_v12  ;;  %v4528_v61 = vpop.f32.mrf.mxu1 }
 0x625   : > { %v3942_v25 = vpop.f32.mrf.mxu2 }
 0x626   : > { %v4529_v8 = vadd.f32 %v4528_v61, %v4440_v51  ;;  %v3943_v21 = vadd.f32 %v3942_v25, %v15711_v24  ;;  %v4031_v48 = vpop.f32.mrf.mxu3  ;;  %v15712_v51 = vld [vmem:[#allocation23_spill] sm:$0xff]  ;;  %v15715_v25 = vld [vmem:[#allocation25_spill] sm:$0xff] }
 0x627   : > { %v4032_v10 = vadd.f32 %v4031_v48, %v3774_v57  ;;  %v15714_v57 = vld [vmem:[#allocation24_spill] sm:$0xff]  ;;  %v15716_v48 = vld [vmem:[#allocation26_spill] sm:$0xff] }
 0x628   : > { %v4782_v14 = vmax.f32 %v4529_v8, 0.0  ;;  %v4104_v6 = vadd.f32 %v13081_v42, %v3943_v21  ;;  %v3779_v47 = vadd.f32 %v15715_v25, %v15714_v57  ;;  %v10324_v8 = vld [vmem:[%s15611_s14 + $0x94] sm:$0xf0]  ;;  %v9673_v25 = vld [vmem:[%s15613_s16 + $0x70] sm:$0xf] }
 0x629   : > { %v4105_v36 = vadd.f32 %v13084_v1, %v4032_v10  ;;  %v9562_v10 = vor.u32 %v10324_v8, %v9561_v2 }
 0x62a   : > { %v4168_v28 = vmax.f32 %v4104_v6, 0.0  ;;  %4624 = vmatmul.bf16.gmra.mxu2 %v13282_v49  ;;  %v13484_v22 = vpack.c.bf16 %v4782_v14, %v4780_v26  ;;  %v10328_v49 = vld [vmem:[%s15611_s14 + $0xb4] sm:$0xf0] }
 0x62b   : > { %v4169_v16 = vmax.f32 %v4105_v36, 0.0  ;;  %4713 = vmatmul.bf16.gmra.mxu3 %v13284_v23  ;;  %v4442_v39 = vpop.f32.mrf.mxu0  ;;  %v9578_v23 = vor.u32 %v10328_v49, %v9577_v7 }
 0x62c   : > { %v4443_v37 = vadd.f32 %v4442_v39, %v13335_v12  ;;  %v4531_v29 = vpop.f32.mrf.mxu1  ;;  %v13488_v38 = vpack.c.bf16 %v4168_v28, %v4166_v30 }
 0x62d   : > { %v3945_v11 = vpop.f32.mrf.mxu2  ;;  %v13490_v46 = vpack.c.bf16 %v4169_v16, %v4167_v32  ;;  %5151 = vmatpush.bf16.msra.mxu1 %v9578_v23  ;;  %v9553_v32 = vld [vmem:[%s15611_s14 + $0x80] sm:$0xf]  ;;  %v10322_v16 = vld [vmem:[%s15611_s14 + $0x84] sm:$0xf0] }
 0x62e   : > { %v4532_v60 = vadd.f32 %v4531_v29, %v4443_v37  ;;  %v4034_v31 = vpop.f32.mrf.mxu3  ;;  %4481 = vmatmul.bf16.gmra.mxu0 %v13488_v38  ;;  %v3946_v61 = vadd.f32 %v3945_v11, %v15712_v51  ;;  %v9554_v29 = vor.u32 %v10322_v16, %v9553_v32 }
 0x62f   : > { %4570 = vmatmul.bf16.gmra.mxu1 %v13490_v46  ;;  %v4035_v44 = vadd.f32 %v4034_v31, %v15713_v13 }
 0x630   : > { %v4106_v24 = vadd.f32 %v13081_v42, %v3946_v61  ;;  %v4784_v6 = vmax.f32 %v4532_v60, 0.0 }
 0x631   : > { %5152 = vmatpush.bf16.msra.mxu1 %v9570_v52  ;;  %v4107_v26 = vadd.f32 %v13084_v1, %v4035_v44  ;;  %v9539_v44 = vld [vmem:[%s15611_s14 + $0x68] sm:$0xf0] }
 0x632   : > { %v4170_v39 = vmax.f32 %v4106_v24, 0.0  ;;  %v10333_v24 = vld [vmem:[%s15611_s14 + $0xe4] sm:$0xf] }
 0x633   : > { %v4444_v35 = vpop.f32.mrf.mxu0  ;;  %v4171_v7 = vmax.f32 %v4107_v26, 0.0 }
 0x634   : > { %v4445_v50 = vadd.f32 %v4444_v35, %v13335_v12  ;;  %v4533_v9 = vpop.f32.mrf.mxu1  ;;  %v15718_v35 = vld [vmem:[#allocation27_spill] sm:$0xff] }
 0x635   : > { %v3947_v33 = vpop.f32.mrf.mxu2  ;;  %5153 = vmatpush.bf16.msra.mxu1 %v9562_v10 }
 0x636   : > { %v4534_v21 = vadd.f32 %v4533_v9, %v4445_v50  ;;  %v3948_v43 = vadd.f32 %v3947_v33, %v15716_v48  ;;  %v4036_v59 = vpop.f32.mrf.mxu3  ;;  %v3784_v48 = vadd.f32 %v13321_v27, %v13312_v55 }
 0x637   : > { %v4037_v14 = vadd.f32 %v4036_v59, %v3779_v47  ;;  %v10352_v47 = vld [vmem:[%s15613_s16 + $0x74] sm:$0xf0] }
 0x638   : > { %v4786_v36 = vmax.f32 %v4534_v21, 0.0  ;;  %v4108_v30 = vadd.f32 %v13081_v42, %v3948_v43  ;;  %v9674_v8 = vor.u32 %v10352_v47, %v9673_v25  ;;  %v9603_v21 = vld [vmem:[%s15611_s14 + $0xe8] sm:$0xf0] }
 0x639   : > { %v4109_v28 = vadd.f32 %v13084_v1, %v4037_v14  ;;  %5154 = vmatpush.bf16.msra.mxu1 %v9554_v29  ;;  %v9606_v59 = vor.u32 %v10333_v24, %v9603_v21  ;;  %v15719_v14 = vld [vmem:[#allocation29_spill] sm:$0xff] }
 0x63a   : > { %v4172_v37 = vmax.f32 %v4108_v30, 0.0  ;;  %4629 = vmatmul.bf16.gmra.mxu2 %v13305_v3  ;;  %v13529_v11 = vpack.c.bf16 %v4786_v36, %v4784_v6  ;;  %v15717_v3 = vld [vmem:[#allocation28_spill] sm:$0xff]  ;;  %5708 = vmatpush.bf16.msrb.mxu0 %v9674_v8 }
 0x63b   : > { %v4173_v49 = vmax.f32 %v4109_v28, 0.0  ;;  %4718 = vmatmul.bf16.gmra.mxu3 %v13307_v4  ;;  %v4447_v60 = vpop.f32.mrf.mxu0  ;;  %v10317_v4 = vld [vmem:[%s15611_s14 + $0x64] sm:$0xf] }
 0x63c   : > { %v4448_v31 = vadd.f32 %v4447_v60, %v13335_v12  ;;  %v4536_v23 = vpop.f32.mrf.mxu1  ;;  %v13533_v17 = vpack.c.bf16 %v4172_v37, %v4170_v39  ;;  %v9542_v57 = vor.u32 %v10317_v4, %v9539_v44  ;;  %5326 = vmatpush.bf16.msrb.mxu3 %v9606_v59 }
 0x63d   : > { %v3950_v53 = vpop.f32.mrf.mxu2  ;;  %v13535_v51 = vpack.c.bf16 %v4173_v49, %v4171_v7 }
 0x63e   : > { %v4537_v61 = vadd.f32 %v4536_v23, %v4448_v31  ;;  %v4039_v52 = vpop.f32.mrf.mxu3  ;;  %4486 = vmatmul.bf16.gmra.mxu0 %v13533_v17  ;;  %v3951_v13 = vadd.f32 %v3950_v53, %v15717_v3  ;;  %5237 = vmatpush.bf16.msrb.mxu2 %v9542_v57 }
 0x63f   : > { %4575 = vmatmul.bf16.gmra.mxu1 %v13535_v51  ;;  %v4040_v50 = vadd.f32 %v4039_v52, %v15718_v35  ;;  %v13577_v52 = vperm.slane %v13328_v15, 1 }
 0x640   : > { %v4110_v10 = vadd.f32 %v13081_v42, %v3951_v13  ;;  %v4788_v32 = vmax.f32 %v4537_v61, 0.0 }
 0x641   : > { %v4111_v30 = vadd.f32 %v13084_v1, %v4040_v50 }
 0x642   : > { %v4174_v27 = vmax.f32 %v4110_v10, 0.0 }
 0x643   : > { %v4449_v9 = vpop.f32.mrf.mxu0  ;;  %v4175_v7 = vmax.f32 %v4111_v30, 0.0  ;;  %v9665_v30 = vld [vmem:[%s15613_s16 + $0x60] sm:$0xf] }
 0x644   : > { %v4450_v33 = vadd.f32 %v4449_v9, %v13335_v12  ;;  %v4538_v2 = vpop.f32.mrf.mxu1 }
 0x645   : > { %v3952_v43 = vpop.f32.mrf.mxu2 }
 0x646   : > { %v4539_v26 = vadd.f32 %v4538_v2, %v4450_v33  ;;  %v3953_v6 = vadd.f32 %v3952_v43, %v15719_v14  ;;  %v4041_v36 = vpop.f32.mrf.mxu3 }
 0x647   : > { %v4042_v28 = vadd.f32 %v4041_v36, %v3784_v48 }
 0x648   : > { %v4790_v16 = vmax.f32 %v4539_v26, 0.0  ;;  %v4112_v39 = vadd.f32 %v13081_v42, %v3953_v6 }
 0x649   : > { %v4113_v55 = vadd.f32 %v13084_v1, %v4042_v28  ;;  %v10350_v28 = vld [vmem:[%s15613_s16 + $0x64] sm:$0xf0] }
 0x64a   : > { %v4176_v37 = vmax.f32 %v4112_v39, 0.0  ;;  %4634 = vmatmul.bf16.gmra.mxu2 %v13341_v40  ;;  %v13568_v29 = vpack.c.bf16 %v4790_v16, %v4788_v32  ;;  %v10331_v32 = vld [vmem:[%s15611_s14 + $0xd4] sm:$0xf] }
 0x64b   : > { %v4177_v49 = vmax.f32 %v4113_v55, 0.0  ;;  %4723 = vmatmul.bf16.gmra.mxu3 %v13343_v5  ;;  %v4452_v60 = vpop.f32.mrf.mxu0  ;;  %v9666_v55 = vor.u32 %v10350_v28, %v9665_v30 }
 0x64c   : > { %v4453_v31 = vadd.f32 %v4452_v60, %v13335_v12  ;;  %v4541_v23 = vpop.f32.mrf.mxu1  ;;  %v13572_v53 = vpack.c.bf16 %v4176_v37, %v4174_v27  ;;  %v9595_v27 = vld [vmem:[%s15611_s14 + $0xd8] sm:$0xf0] }
 0x64d   : > { %v4595_v61 = vpop.f32.mrf.mxu2  ;;  %v13574_v42 = vpack.c.bf16 %v4177_v49, %v4175_v7  ;;  %v9598_v7 = vor.u32 %v10331_v32, %v9595_v27  ;;  %5709 = vmatpush.bf16.msrb.mxu0 %v9666_v55 }
 0x64e   : > { %v4542_v1 = vadd.f32 %v4541_v23, %v4453_v31  ;;  %v4684_v40 = vpop.f32.mrf.mxu3  ;;  %4491 = vmatmul.bf16.gmra.mxu0 %v13572_v53  ;;  %v4596_v5 = vadd.f32 %v4595_v61, %v13577_v52 }
 0x64f   : > { %4580 = vmatmul.bf16.gmra.mxu1 %v13574_v42  ;;  %5327 = vmatpush.bf16.msrb.mxu3 %v9598_v7  ;;  %v9657_v7 = vld [vmem:[%s15613_s16 + $0x50] sm:$0xf] }
 0x650   : > { %v4685_v35 = vadd.f32 %v4684_v40, %v4596_v5  ;;  %v4792_v25 = vmax.f32 %v4542_v1, 0.0 }
 0x652   : > { %v4765_v33 = vmax.f32 %v4685_v35, 0.0 }
 0x653   : > { %v4454_v3 = vpop.f32.mrf.mxu0 }
 0x654   : > { %v4455_v13 = vadd.f32 %v4454_v3, %v13335_v12  ;;  %v4543_v4 = vpop.f32.mrf.mxu1 }
 0x655   : > { %v4597_v44 = vpop.f32.mrf.mxu2 }
 0x656   : > { %v4544_v50 = vadd.f32 %v4543_v4, %v4455_v13  ;;  %v4598_v9 = vadd.f32 %v4597_v44, %v13577_v52  ;;  %v4686_v57 = vpop.f32.mrf.mxu3 }
 0x658   : > { %v4794_v15 = vmax.f32 %v4544_v50, 0.0  ;;  %v4687_v47 = vadd.f32 %v4686_v57, %v4598_v9 }
 0x65a   : > { %v4767_v2 = vmax.f32 %v4687_v47, 0.0  ;;  %4639 = vmatmul.bf16.gmra.mxu2 %v13368_v41  ;;  %v13585_v8 = vpack.c.bf16 %v4794_v15, %v4792_v25  ;;  %v10315_v41 = vld [vmem:[%s15611_s14 + $0x54] sm:$0xf] }
 0x65b   : > { %4728 = vmatmul.bf16.gmra.mxu3 %v13370_v0  ;;  %v4457_v24 = vpop.f32.mrf.mxu0  ;;  %v9531_v0 = vld [vmem:[%s15611_s14 + $0x58] sm:$0xf0] }
 0x65c   : > { %v13588_v21 = vpack.c.bf16 %v4767_v2, %v4765_v33  ;;  %v4458_v48 = vadd.f32 %v4457_v24, %v13335_v12  ;;  %v4546_v43 = vpop.f32.mrf.mxu1  ;;  %v9534_v36 = vor.u32 %v10315_v41, %v9531_v0 }
 0x65d   : > { %v4600_v59 = vpop.f32.mrf.mxu2 }
 0x65e   : > { %v4547_v10 = vadd.f32 %v4546_v43, %v4458_v48  ;;  %v4689_v26 = vpop.f32.mrf.mxu3  ;;  %5066 = vmatmul.bf16.vlgmr.msra.gmra.mxu0 %v13363_v58  ;;  %v4601_v14 = vadd.f32 %v4600_v59, %v13577_v52  ;;  %5238 = vmatpush.bf16.msrb.mxu2 %v9534_v36 }
 0x65f   : > { %5155 = vmatmul.bf16.vlgmr.msra.gmra.mxu1 %v13588_v21 }
 0x660   : > { %v4690_v49 = vadd.f32 %v4689_v26, %v4601_v14  ;;  %v4796_v61 = vmax.f32 %v4547_v10, 0.0 }
 0x662   : > { %v4769_v5 = vmax.f32 %v4690_v49, 0.0  ;;  %v10348_v49 = vld [vmem:[%s15613_s16 + $0x54] sm:$0xf0] }
 0x663   : > { %v4459_v6 = vpop.f32.mrf.mxu0 }
 0x664   : > { %v4460_v16 = vadd.f32 %v4459_v6, %v13335_v12  ;;  %v4548_v39 = vpop.f32.mrf.mxu1 }
 0x665   : > { %v4602_v37 = vpop.f32.mrf.mxu2 }
 0x666   : > { %v4549_v60 = vadd.f32 %v4548_v39, %v4460_v16  ;;  %v4603_v31 = vadd.f32 %v4602_v37, %v13577_v52  ;;  %v4691_v23 = vpop.f32.mrf.mxu3 }
 0x668   : > { %v4798_v1 = vmax.f32 %v4549_v60, 0.0  ;;  %v4692_v40 = vadd.f32 %v4691_v23, %v4603_v31  ;;  %v10329_v60 = vld [vmem:[%s15611_s14 + $0xc4] sm:$0xf] }
 0x66a   : > { %v4771_v3 = vmax.f32 %v4692_v40, 0.0  ;;  %4644 = vmatmul.bf16.gmra.mxu2 %v13395_v63  ;;  %v13615_v13 = vpack.c.bf16 %v4798_v1, %v4796_v61  ;;  %v9658_v61 = vor.u32 %v10348_v49, %v9657_v7  ;;  %v9587_v1 = vld [vmem:[%s15611_s14 + $0xc8] sm:$0xf0]  ;;  %v9579_v49 = vld [vmem:[%s15611_s14 + $0xb8] sm:$0xf0] }
 0x66b   : > { %4733 = vmatmul.bf16.gmra.mxu3 %v13397_v54  ;;  %v4462_v4 = vpop.f32.mrf.mxu0 }
 0x66c   : > { %v4463_v44 = vadd.f32 %v4462_v4, %v13335_v12  ;;  %v4551_v35 = vpop.f32.mrf.mxu1  ;;  %v13619_v50 = vpack.c.bf16 %v4771_v3, %v4769_v5  ;;  %v9590_v5 = vor.u32 %v10329_v60, %v9587_v1  ;;  %5710 = vmatpush.bf16.msrb.mxu0 %v9658_v61 }
 0x66d   : > { %v4605_v9 = vpop.f32.mrf.mxu2 }
 0x66e   : > { %v4552_v57 = vadd.f32 %v4551_v35, %v4463_v44  ;;  %v4694_v25 = vpop.f32.mrf.mxu3  ;;  %5071 = vmatmul.bf16.gmra.mxu0 %v13391_v34  ;;  %v4606_v15 = vadd.f32 %v4605_v9, %v13577_v52  ;;  %5328 = vmatpush.bf16.msrb.mxu3 %v9590_v5 }
 0x66f   : > { %5160 = vmatmul.bf16.gmra.mxu1 %v13619_v50 }
 0x670   : > { %v4695_v2 = vadd.f32 %v4694_v25, %v4606_v15  ;;  %v4800_v59 = vmax.f32 %v4552_v57, 0.0 }
 0x672   : > { %v4773_v14 = vmax.f32 %v4695_v2, 0.0 }
 0x673   : > { %v4464_v63 = vpop.f32.mrf.mxu0 }
 0x674   : > { %v4465_v47 = vadd.f32 %v4464_v63, %v13335_v12  ;;  %v4553_v33 = vpop.f32.mrf.mxu1 }
 0x675   : > { %v4607_v54 = vpop.f32.mrf.mxu2 }
 0x676   : > { %v4554_v24 = vadd.f32 %v4553_v33, %v4465_v47  ;;  %v4608_v48 = vadd.f32 %v4607_v54, %v13577_v52  ;;  %v4696_v43 = vpop.f32.mrf.mxu3 }
 0x678   : > { %v4802_v10 = vmax.f32 %v4554_v24, 0.0  ;;  %v4697_v26 = vadd.f32 %v4696_v43, %v4608_v48 }
 0x67a   : > { %v4775_v41 = vmax.f32 %v4697_v26, 0.0  ;;  %4649 = vmatmul.bf16.gmra.mxu2 %v13422_v19  ;;  %v13627_v0 = vpack.c.bf16 %v4802_v10, %v4800_v59  ;;  %v10313_v19 = vld [vmem:[%s15611_s14 + $0x44] sm:$0xf] }
 0x67b   : > { %4738 = vmatmul.bf16.gmra.mxu3 %v13424_v20  ;;  %v4467_v6 = vpop.f32.mrf.mxu0  ;;  %v9523_v20 = vld [vmem:[%s15611_s14 + $0x48] sm:$0xf0] }
 0x67c   : > { %v4468_v36 = vadd.f32 %v4467_v6, %v13335_v12  ;;  %v4556_v30 = vpop.f32.mrf.mxu1  ;;  %v13631_v28 = vpack.c.bf16 %v4775_v41, %v4773_v14  ;;  %v9526_v37 = vor.u32 %v10313_v19, %v9523_v20  ;;  %v9515_v19 = vld [vmem:[%s15611_s14 + $0x38] sm:$0xf0]  ;;  %v10327_v20 = vld [vmem:[%s15611_s14 + $0xb4] sm:$0xf] }
 0x67d   : > { %v4610_v32 = vpop.f32.mrf.mxu2 }
 0x67e   : > { %v4557_v16 = vadd.f32 %v4556_v30, %v4468_v36  ;;  %v4699_v39 = vpop.f32.mrf.mxu3  ;;  %5076 = vmatmul.bf16.gmra.mxu0 %v13418_v45  ;;  %v4611_v55 = vadd.f32 %v4610_v32, %v13577_v52  ;;  %5239 = vmatpush.bf16.msrb.mxu2 %v9526_v37 }
 0x67f   : > { %5165 = vmatmul.bf16.gmra.mxu1 %v13631_v28 }
 0x680   : > { %v4700_v3 = vadd.f32 %v4699_v39, %v4611_v55  ;;  %v4804_v9 = vmax.f32 %v4557_v16, 0.0  ;;  %v10311_v55 = vld [vmem:[%s15611_s14 + $0x34] sm:$0xf] }
 0x681   : > { %v9518_v7 = vor.u32 %v10311_v55, %v9515_v19  ;;  %v9555_v19 = vld [vmem:[%s15611_s14 + $0x88] sm:$0xf0] }
 0x682   : > { %v4777_v15 = vmax.f32 %v4700_v3, 0.0  ;;  %v9507_v3 = vld [vmem:[%s15611_s14 + $0x28] sm:$0xf0] }
 0x683   : > { %v4469_v27 = vpop.f32.mrf.mxu0  ;;  %5240 = vmatpush.bf16.msrb.mxu2 %v9518_v7 }
 0x684   : > { %v4470_v31 = vadd.f32 %v4469_v27, %v13335_v12  ;;  %v4558_v23 = vpop.f32.mrf.mxu1 }
 0x685   : > { %v4612_v40 = vpop.f32.mrf.mxu2 }
 0x686   : > { %v4559_v4 = vadd.f32 %v4558_v23, %v4470_v31  ;;  %v4613_v44 = vadd.f32 %v4612_v40, %v13577_v52  ;;  %v4701_v35 = vpop.f32.mrf.mxu3  ;;  %v9582_v23 = vor.u32 %v10327_v20, %v9579_v49 }
 0x688   : > { %v4806_v57 = vmax.f32 %v4559_v4, 0.0  ;;  %v4702_v25 = vadd.f32 %v4701_v35, %v4613_v44  ;;  %5329 = vmatpush.bf16.msrb.mxu3 %v9582_v23 }
 0x68a   : > { %v4779_v63 = vmax.f32 %v4702_v25, 0.0  ;;  %4654 = vmatmul.bf16.gmra.mxu2 %v13449_v56  ;;  %v13657_v47 = vpack.c.bf16 %v4806_v57, %v4804_v9  ;;  %v9571_v9 = vld [vmem:[%s15611_s14 + $0xa8] sm:$0xf0]  ;;  %v10307_v25 = vld [vmem:[%s15611_s14 + $0x14] sm:$0xf] }
 0x68b   : > { %4743 = vmatmul.bf16.gmra.mxu3 %v13451_v18  ;;  %v4472_v33 = vpop.f32.mrf.mxu0 }
 0x68c   : > { %v4473_v54 = vadd.f32 %v4472_v33, %v13335_v12  ;;  %v4561_v2 = vpop.f32.mrf.mxu1  ;;  %v13661_v24 = vpack.c.bf16 %v4779_v63, %v4777_v15  ;;  %v9499_v15 = vld [vmem:[%s15611_s14 + $0x18] sm:$0xf0]  ;;  %v10323_v63 = vld [vmem:[%s15611_s14 + $0x94] sm:$0xf] }
 0x68d   : > { %v4615_v48 = vpop.f32.mrf.mxu2 }
 0x68e   : > { %v4562_v43 = vadd.f32 %v4561_v2, %v4473_v54  ;;  %v4704_v59 = vpop.f32.mrf.mxu3  ;;  %5081 = vmatmul.bf16.gmra.mxu0 %v13445_v62  ;;  %v4616_v10 = vadd.f32 %v4615_v48, %v13577_v52  ;;  %v9649_v54 = vld [vmem:[%s15613_s16 + $0x40] sm:$0xf]  ;;  %v10346_v2 = vld [vmem:[%s15613_s16 + $0x44] sm:$0xf0]  ;;  %v9502_v48 = vor.u32 %v10307_v25, %v9499_v15 }
 0x68f   : > { %5170 = vmatmul.bf16.gmra.mxu1 %v13661_v24 }
 0x690   : > { %v4705_v41 = vadd.f32 %v4704_v59, %v4616_v10  ;;  %v4808_v32 = vmax.f32 %v4562_v43, 0.0  ;;  %v9650_v59 = vor.u32 %v10346_v2, %v9649_v54  ;;  %v9563_v10 = vld [vmem:[%s15611_s14 + $0x98] sm:$0xf0] }
 0x692   : > { %v4781_v27 = vmax.f32 %v4705_v41, 0.0  ;;  %5711 = vmatpush.bf16.msrb.mxu0 %v9650_v59  ;;  %v10305_v41 = vld [vmem:[%s15611_s14 + $0x4] sm:$0xf] }
 0x693   : > { %v4474_v56 = vpop.f32.mrf.mxu0 }
 0x694   : > { %v4475_v26 = vadd.f32 %v4474_v56, %v13335_v12  ;;  %v4563_v14 = vpop.f32.mrf.mxu1 }
 0x695   : > { %v4617_v18 = vpop.f32.mrf.mxu2 }
 0x696   : > { %v4564_v6 = vadd.f32 %v4563_v14, %v4475_v26  ;;  %v4618_v36 = vadd.f32 %v4617_v18, %v13577_v52  ;;  %v4706_v30 = vpop.f32.mrf.mxu3  ;;  %v9566_v14 = vor.u32 %v10323_v63, %v9563_v10 }
 0x698   : > { %v4810_v16 = vmax.f32 %v4564_v6, 0.0  ;;  %v4707_v39 = vadd.f32 %v4706_v30, %v4618_v36  ;;  %v9491_v6 = vld [vmem:[%s15611_s14 + $0x8] sm:$0xf0]  ;;  %v10321_v36 = vld [vmem:[%s15611_s14 + $0x84] sm:$0xf] }
 0x699   : > { %v9494_v55 = vor.u32 %v10305_v41, %v9491_v6  ;;  %v9558_v20 = vor.u32 %v10321_v36, %v9555_v19 }
 0x69a   : > { %v4783_v37 = vmax.f32 %v4707_v39, 0.0  ;;  %4659 = vmatmul.bf16.gmra.mxu2 %v13488_v38  ;;  %v13681_v60 = vpack.c.bf16 %v4810_v16, %v4808_v32  ;;  %v10309_v38 = vld [vmem:[%s15611_s14 + $0x24] sm:$0xf] }
 0x69b   : > { %4748 = vmatmul.bf16.gmra.mxu3 %v13490_v46  ;;  %v4477_v31 = vpop.f32.mrf.mxu0  ;;  %v10325_v46 = vld [vmem:[%s15611_s14 + $0xa4] sm:$0xf]  ;;  %v9510_v35 = vor.u32 %v10309_v38, %v9507_v3 }
 0x69c   : > { %v4478_v61 = vadd.f32 %v4477_v31, %v13335_v12  ;;  %v4566_v1 = vpop.f32.mrf.mxu1  ;;  %v13685_v40 = vpack.c.bf16 %v4783_v37, %v4781_v27  ;;  %v9574_v57 = vor.u32 %v10325_v46, %v9571_v9 }
 0x69d   : > { %v4620_v5 = vpop.f32.mrf.mxu2  ;;  %5241 = vmatpush.bf16.msrb.mxu2 %v9510_v35 }
 0x69e   : > { %v4567_v4 = vadd.f32 %v4566_v1, %v4478_v61  ;;  %v4709_v44 = vpop.f32.mrf.mxu3  ;;  %5086 = vmatmul.bf16.gmra.mxu0 %v13484_v22  ;;  %5330 = vmatpush.bf16.msrb.mxu3 %v9574_v57  ;;  %v4621_v33 = vadd.f32 %v4620_v5, %v13577_v52 }
 0x69f   : > { %5175 = vmatmul.bf16.gmra.mxu1 %v13685_v40 }
 0x6a0   : > { %v4710_v30 = vadd.f32 %v4709_v44, %v4621_v33  ;;  %v4812_v27 = vmax.f32 %v4567_v4, 0.0  ;;  %v9737_v44 = vld [vmem:[%s15613_s16 + $0xf0] sm:$0xf] }
 0x6a1   : > { %5242 = vmatpush.bf16.msrb.mxu2 %v9502_v48 }
 0x6a2   : > { %5331 = vmatpush.bf16.msrb.mxu3 %v9566_v14  ;;  %v4785_v49 = vmax.f32 %v4710_v30, 0.0 }
 0x6a3   : > { %v4479_v43 = vpop.f32.mrf.mxu0 }
 0x6a4   : > { %v4480_v56 = vadd.f32 %v4479_v43, %v13335_v12  ;;  %v4568_v26 = vpop.f32.mrf.mxu1 }
 0x6a5   : > { %v4622_v18 = vpop.f32.mrf.mxu2  ;;  %5243 = vmatpush.bf16.msrb.mxu2 %v9494_v55 }
 0x6a6   : > { %v4569_v32 = vadd.f32 %v4568_v26, %v4480_v56  ;;  %v4623_v16 = vadd.f32 %v4622_v18, %v13577_v52  ;;  %v4711_v39 = vpop.f32.mrf.mxu3  ;;  %5332 = vmatpush.bf16.msrb.mxu3 %v9558_v20 }
 0x6a8   : > { %v4814_v37 = vmax.f32 %v4569_v32, 0.0  ;;  %v4712_v7 = vadd.f32 %v4711_v39, %v4623_v16 }
 0x6aa   : > { %v4787_v31 = vmax.f32 %v4712_v7, 0.0  ;;  %4664 = vmatmul.bf16.gmra.mxu2 %v13533_v17  ;;  %v13735_v23 = vpack.c.bf16 %v4814_v37, %v4812_v27 }
 0x6ab   : > { %4753 = vmatmul.bf16.gmra.mxu3 %v13535_v51  ;;  %v4482_v61 = vpop.f32.mrf.mxu0  ;;  %v10368_v51 = vld [vmem:[%s15613_s16 + $0xf4] sm:$0xf0] }
 0x6ac   : > { %v4483_v1 = vadd.f32 %v4482_v61, %v13335_v12  ;;  %v4571_v5 = vpop.f32.mrf.mxu1  ;;  %v13739_v38 = vpack.c.bf16 %v4787_v31, %v4785_v49  ;;  %v9738_v9 = vor.u32 %v10368_v51, %v9737_v44 }
 0x6ad   : > { %v4625_v3 = vpop.f32.mrf.mxu2 }
 0x6ae   : > { %v4572_v46 = vadd.f32 %v4571_v5, %v4483_v1  ;;  %v4714_v4 = vpop.f32.mrf.mxu3  ;;  %5091 = vmatmul.bf16.gmra.mxu0 %v13529_v11  ;;  %v4626_v17 = vadd.f32 %v4625_v3, %v13577_v52  ;;  %5797 = vmatpush.bf16.msrb.mxu1 %v9738_v9 }
 0x6af   : > { %5180 = vmatmul.bf16.gmra.mxu1 %v13739_v38 }
 0x6b0   : > { %v4715_v63 = vadd.f32 %v4714_v4, %v4626_v17  ;;  %v4816_v48 = vmax.f32 %v4572_v46, 0.0 }
 0x6b2   : > { %v4789_v10 = vmax.f32 %v4715_v63, 0.0 }
 0x6b3   : > { %v4484_v35 = vpop.f32.mrf.mxu0 }
 0x6b4   : > { %v4485_v57 = vadd.f32 %v4484_v35, %v13335_v12  ;;  %v4573_v25 = vpop.f32.mrf.mxu1 }
 0x6b5   : > { %v4627_v15 = vpop.f32.mrf.mxu2 }
 0x6b6   : > { %v4574_v33 = vadd.f32 %v4573_v25, %v4485_v57  ;;  %v4628_v54 = vadd.f32 %v4627_v15, %v13577_v52  ;;  %v4716_v2 = vpop.f32.mrf.mxu3 }
 0x6b8   : > { %v4818_v43 = vmax.f32 %v4574_v33, 0.0  ;;  %v4717_v59 = vadd.f32 %v4716_v2, %v4628_v54 }
 0x6ba   : > { %v4791_v56 = vmax.f32 %v4717_v59, 0.0  ;;  %4669 = vmatmul.bf16.gmra.mxu2 %v13572_v53  ;;  %v13753_v26 = vpack.c.bf16 %v4818_v43, %v4816_v48  ;;  %v9641_v53 = vld [vmem:[%s15613_s16 + $0x30] sm:$0xf]  ;;  %v13790_v43 = vld [vmem:[%s15612_s15] sm:$0x3] }
 0x6bb   : > { %4758 = vmatmul.bf16.gmra.mxu3 %v13574_v42  ;;  %v4487_v14 = vpop.f32.mrf.mxu0  ;;  %v10344_v42 = vld [vmem:[%s15613_s16 + $0x34] sm:$0xf0] }
 0x6bc   : > { %v4488_v18 = vadd.f32 %v4487_v14, %v13335_v12  ;;  %v4576_v41 = vpop.f32.mrf.mxu1  ;;  %v13757_v6 = vpack.c.bf16 %v4791_v56, %v4789_v10  ;;  %v9642_v55 = vor.u32 %v10344_v42, %v9641_v53 }
 0x6bd   : > { %v4630_v36 = vpop.f32.mrf.mxu2 }
 0x6be   : > { %v4577_v30 = vadd.f32 %v4576_v41, %v4488_v18  ;;  %v4719_v32 = vpop.f32.mrf.mxu3  ;;  %5096 = vmatmul.bf16.gmra.mxu0 %v13568_v29  ;;  %v4631_v16 = vadd.f32 %v4630_v36, %v13577_v52 }
 0x6bf   : > { %5185 = vmatmul.bf16.gmra.mxu1 %v13757_v6  ;;  %5712 = vmatpush.bf16.msrb.mxu0 %v9642_v55 }
 0x6c0   : > { %v4720_v37 = vadd.f32 %v4719_v32, %v4631_v16  ;;  %v4820_v61 = vmax.f32 %v4577_v30, 0.0  ;;  %v13794_v30 = vperm.slane %v13790_v43, 0 }
 0x6c2   : > { %v4793_v3 = vmax.f32 %v4720_v37, 0.0 }
 0x6c3   : > { %v4489_v39 = vpop.f32.mrf.mxu0 }
 0x6c4   : > { %v4490_v19 = vadd.f32 %v4489_v39, %v13335_v12  ;;  %v4578_v20 = vpop.f32.mrf.mxu1 }
 0x6c5   : > { %v4632_v27 = vpop.f32.mrf.mxu2 }
 0x6c6   : > { %v4579_v7 = vadd.f32 %v4578_v20, %v4490_v19  ;;  %v4633_v49 = vadd.f32 %v4632_v27, %v13577_v52  ;;  %v4721_v31 = vpop.f32.mrf.mxu3 }
 0x6c8   : > { %v4822_v1 = vmax.f32 %v4579_v7, 0.0  ;;  %v4722_v5 = vadd.f32 %v4721_v31, %v4633_v49 }
 0x6ca   : > { %v4795_v46 = vmax.f32 %v4722_v5, 0.0  ;;  %5244 = vmatmul.bf16.vlgmr.msrb.gmra.mxu2 %v13363_v58  ;;  %v13771_v4 = vpack.c.bf16 %v4822_v1, %v4820_v61  ;;  %v9729_v58 = vld [vmem:[%s15613_s16 + $0xe0] sm:$0xf] }
 0x6cb   : > { %5333 = vmatmul.bf16.vlgmr.msrb.gmra.mxu3 %v13588_v21  ;;  %v4492_v17 = vpop.f32.mrf.mxu0  ;;  %v10366_v21 = vld [vmem:[%s15613_s16 + $0xe4] sm:$0xf0] }
 0x6cc   : > { %v4493_v44 = vadd.f32 %v4492_v17, %v13335_v12  ;;  %v4581_v51 = vpop.f32.mrf.mxu1  ;;  %v13775_v35 = vpack.c.bf16 %v4795_v46, %v4793_v3  ;;  %v9730_v33 = vor.u32 %v10366_v21, %v9729_v58 }
 0x6cd   : > { %v4635_v9 = vpop.f32.mrf.mxu2 }
 0x6ce   : > { %v4582_v57 = vadd.f32 %v4581_v51, %v4493_v44  ;;  %v4724_v25 = vpop.f32.mrf.mxu3  ;;  %5101 = vmatmul.bf16.gmra.mxu0 %v13585_v8  ;;  %v4636_v15 = vadd.f32 %v4635_v9, %v13577_v52  ;;  %5798 = vmatpush.bf16.msrb.mxu1 %v9730_v33 }
 0x6cf   : > { %5190 = vmatmul.bf16.gmra.mxu1 %v13775_v35 }
 0x6d0   : > { %v4725_v59 = vadd.f32 %v4724_v25, %v4636_v15  ;;  %v4824_v18 = vmax.f32 %v4582_v57, 0.0 }
 0x6d3   : > { %v4494_v63 = vpop.f32.mrf.mxu0 }
 0x6d4   : > { %v4495_v54 = vadd.f32 %v4494_v63, %v13335_v12  ;;  %v4583_v2 = vpop.f32.mrf.mxu1  ;;  %v4797_v12 = vmax.f32 %v4725_v59, 0.0 }
 0x6d5   : > { %v4637_v48 = vpop.f32.mrf.mxu2 }
 0x6d6   : > { %v4584_v10 = vadd.f32 %v4583_v2, %v4495_v54  ;;  %v4638_v56 = vadd.f32 %v4637_v48, %v13577_v52  ;;  %v4726_v14 = vpop.f32.mrf.mxu3 }
 0x6d8   : > { %v4826_v41 = vmax.f32 %v4584_v10, 0.0  ;;  %v4727_v36 = vadd.f32 %v4726_v14, %v4638_v56 }
 0x6da   : > { %v4799_v32 = vmax.f32 %v4727_v36, 0.0  ;;  %5249 = vmatmul.bf16.gmra.mxu2 %v13391_v34  ;;  %v13797_v16 = vpack.c.bf16 %v4826_v41, %v4824_v18  ;;  %v9633_v34 = vld [vmem:[%s15613_s16 + $0x20] sm:$0xf] }
 0x6db   : > { %5338 = vmatmul.bf16.gmra.mxu3 %v13619_v50  ;;  %v5067_v53 = vpop.f32.mrf.mxu0  ;;  %v10342_v50 = vld [vmem:[%s15613_s16 + $0x24] sm:$0xf0] }
 0x6dc   : > { %v5068_v42 = vadd.f32 %v5067_v53, %v13794_v30  ;;  %v5156_v39 = vpop.f32.mrf.mxu1  ;;  %v13801_v55 = vpack.c.bf16 %v4799_v32, %v4797_v12  ;;  %v9634_v49 = vor.u32 %v10342_v50, %v9633_v34 }
 0x6dd   : > { %v4640_v19 = vpop.f32.mrf.mxu2 }
 0x6de   : > { %v5157_v20 = vadd.f32 %v5156_v39, %v5068_v42  ;;  %v4729_v27 = vpop.f32.mrf.mxu3  ;;  %5106 = vmatmul.bf16.gmra.mxu0 %v13615_v13  ;;  %v4641_v37 = vadd.f32 %v4640_v19, %v13577_v52 }
 0x6df   : > { %5195 = vmatmul.bf16.gmra.mxu1 %v13801_v55  ;;  %5713 = vmatpush.bf16.msrb.mxu0 %v9634_v49 }
 0x6e0   : > { %v4730_v5 = vadd.f32 %v4729_v27, %v4641_v37  ;;  %v5414_v44 = vmax.f32 %v5157_v20, 0.0 }
 0x6e2   : > { %v4801_v57 = vmax.f32 %v4730_v5, 0.0 }
 0x6e3   : > { %v5069_v7 = vpop.f32.mrf.mxu0 }
 0x6e4   : > { %v5070_v31 = vadd.f32 %v5069_v7, %v13794_v30  ;;  %v5158_v61 = vpop.f32.mrf.mxu1 }
 0x6e5   : > { %v4642_v1 = vpop.f32.mrf.mxu2 }
 0x6e6   : > { %v5159_v3 = vadd.f32 %v5158_v61, %v5070_v31  ;;  %v4643_v46 = vadd.f32 %v4642_v1, %v13577_v52  ;;  %v4731_v17 = vpop.f32.mrf.mxu3 }
 0x6e8   : > { %v5416_v51 = vmax.f32 %v5159_v3, 0.0  ;;  %v4732_v9 = vadd.f32 %v4731_v17, %v4643_v46 }
 0x6ea   : > { %v13814_v25 = vpack.c.bf16 %v5416_v51, %v5414_v44  ;;  %v4803_v15 = vmax.f32 %v4732_v9, 0.0  ;;  %5254 = vmatmul.bf16.gmra.mxu2 %v13418_v45  ;;  %v9721_v45 = vld [vmem:[%s15613_s16 + $0xd0] sm:$0xf] }
 0x6eb   : > { %5343 = vmatmul.bf16.gmra.mxu3 %v13631_v28  ;;  %v5072_v58 = vpop.f32.mrf.mxu0  ;;  %v10364_v28 = vld [vmem:[%s15613_s16 + $0xd4] sm:$0xf0] }
 0x6ec   : > { %v5073_v21 = vadd.f32 %v5072_v58, %v13794_v30  ;;  %v5161_v63 = vpop.f32.mrf.mxu1  ;;  %v13819_v33 = vpack.c.bf16 %v4803_v15, %v4801_v57  ;;  %v9722_v56 = vor.u32 %v10364_v28, %v9721_v45 }
 0x6ed   : > { %v4645_v54 = vpop.f32.mrf.mxu2 }
 0x6ee   : > { %v5162_v2 = vadd.f32 %v5161_v63, %v5073_v21  ;;  %v4734_v48 = vpop.f32.mrf.mxu3  ;;  %5111 = vmatmul.bf16.gmra.mxu0 %v13627_v0  ;;  %v4646_v59 = vadd.f32 %v4645_v54, %v13577_v52  ;;  %5799 = vmatpush.bf16.msrb.mxu1 %v9722_v56 }
 0x6ef   : > { %5200 = vmatmul.bf16.gmra.mxu1 %v13819_v33 }
 0x6f0   : > { %v4735_v36 = vadd.f32 %v4734_v48, %v4646_v59  ;;  %v5418_v42 = vmax.f32 %v5162_v2, 0.0 }
 0x6f2   : > { %v4805_v20 = vmax.f32 %v4735_v36, 0.0 }
 0x6f3   : > { %v5074_v10 = vpop.f32.mrf.mxu0 }
 0x6f4   : > { %v5075_v14 = vadd.f32 %v5074_v10, %v13794_v30  ;;  %v5163_v18 = vpop.f32.mrf.mxu1 }
 0x6f5   : > { %v4647_v41 = vpop.f32.mrf.mxu2 }
 0x6f6   : > { %v5164_v12 = vadd.f32 %v5163_v18, %v5075_v14  ;;  %v4648_v32 = vadd.f32 %v4647_v41, %v13577_v52  ;;  %v4736_v53 = vpop.f32.mrf.mxu3 }
 0x6f8   : > { %v5420_v39 = vmax.f32 %v5164_v12, 0.0  ;;  %v4737_v19 = vadd.f32 %v4736_v53, %v4648_v32 }
 0x6fa   : > { %v4807_v27 = vmax.f32 %v4737_v19, 0.0  ;;  %5259 = vmatmul.bf16.gmra.mxu2 %v13445_v62  ;;  %v13833_v37 = vpack.c.bf16 %v5420_v39, %v5418_v42  ;;  %v9625_v62 = vld [vmem:[%s15613_s16 + $0x10] sm:$0xf] }
 0x6fb   : > { %5348 = vmatmul.bf16.gmra.mxu3 %v13661_v24  ;;  %v5077_v34 = vpop.f32.mrf.mxu0  ;;  %v10340_v24 = vld [vmem:[%s15613_s16 + $0x14] sm:$0xf0] }
 0x6fc   : > { %v5078_v50 = vadd.f32 %v5077_v34, %v13794_v30  ;;  %v5166_v7 = vpop.f32.mrf.mxu1  ;;  %v13837_v49 = vpack.c.bf16 %v4807_v27, %v4805_v20  ;;  %v9626_v46 = vor.u32 %v10340_v24, %v9625_v62 }
 0x6fd   : > { %v4650_v31 = vpop.f32.mrf.mxu2 }
 0x6fe   : > { %v5167_v61 = vadd.f32 %v5166_v7, %v5078_v50  ;;  %v4739_v1 = vpop.f32.mrf.mxu3  ;;  %5116 = vmatmul.bf16.gmra.mxu0 %v13657_v47  ;;  %v4651_v5 = vadd.f32 %v4650_v31, %v13577_v52 }
 0x6ff   : > { %5205 = vmatmul.bf16.gmra.mxu1 %v13837_v49  ;;  %5714 = vmatpush.bf16.msrb.mxu0 %v9626_v46 }
 0x700   : > { %v4740_v9 = vadd.f32 %v4739_v1, %v4651_v5  ;;  %v5422_v21 = vmax.f32 %v5167_v61, 0.0 }
 0x702   : > { %v4809_v2 = vmax.f32 %v4740_v9, 0.0 }
 0x703   : > { %v5079_v3 = vpop.f32.mrf.mxu0 }
 0x704   : > { %v5080_v17 = vadd.f32 %v5079_v3, %v13794_v30  ;;  %v5168_v44 = vpop.f32.mrf.mxu1 }
 0x705   : > { %v4652_v51 = vpop.f32.mrf.mxu2 }
 0x706   : > { %v5169_v57 = vadd.f32 %v5168_v44, %v5080_v17  ;;  %v4653_v15 = vadd.f32 %v4652_v51, %v13577_v52  ;;  %v4741_v58 = vpop.f32.mrf.mxu3 }
 0x708   : > { %v5424_v63 = vmax.f32 %v5169_v57, 0.0  ;;  %v4742_v54 = vadd.f32 %v4741_v58, %v4653_v15 }
 0x70a   : > { %v4811_v48 = vmax.f32 %v4742_v54, 0.0  ;;  %5264 = vmatmul.bf16.gmra.mxu2 %v13484_v22  ;;  %v13851_v59 = vpack.c.bf16 %v5424_v63, %v5422_v21  ;;  %v9713_v22 = vld [vmem:[%s15613_s16 + $0xc0] sm:$0xf] }
 0x70b   : > { %5353 = vmatmul.bf16.gmra.mxu3 %v13685_v40  ;;  %v5082_v45 = vpop.f32.mrf.mxu0  ;;  %v10362_v40 = vld [vmem:[%s15613_s16 + $0xc4] sm:$0xf0] }
 0x70c   : > { %v5083_v28 = vadd.f32 %v5082_v45, %v13794_v30  ;;  %v5171_v10 = vpop.f32.mrf.mxu1  ;;  %v13855_v56 = vpack.c.bf16 %v4811_v48, %v4809_v2  ;;  %v9714_v32 = vor.u32 %v10362_v40, %v9713_v22 }
 0x70d   : > { %v4655_v14 = vpop.f32.mrf.mxu2 }
 0x70e   : > { %v5172_v18 = vadd.f32 %v5171_v10, %v5083_v28  ;;  %v4744_v41 = vpop.f32.mrf.mxu3  ;;  %5121 = vmatmul.bf16.gmra.mxu0 %v13681_v60  ;;  %v4656_v36 = vadd.f32 %v4655_v14, %v13577_v52  ;;  %5800 = vmatpush.bf16.msrb.mxu1 %v9714_v32 }
 0x70f   : > { %5210 = vmatmul.bf16.gmra.mxu1 %v13855_v56 }
 0x710   : > { %v4745_v19 = vadd.f32 %v4744_v41, %v4656_v36  ;;  %v5426_v50 = vmax.f32 %v5172_v18, 0.0 }
 0x712   : > { %v4813_v61 = vmax.f32 %v4745_v19, 0.0 }
 0x713   : > { %v5084_v12 = vpop.f32.mrf.mxu0 }
 0x714   : > { %v5085_v53 = vadd.f32 %v5084_v12, %v13794_v30  ;;  %v5173_v42 = vpop.f32.mrf.mxu1 }
 0x715   : > { %v4657_v39 = vpop.f32.mrf.mxu2 }
 0x716   : > { %v5174_v20 = vadd.f32 %v5173_v42, %v5085_v53  ;;  %v4658_v27 = vadd.f32 %v4657_v39, %v13577_v52  ;;  %v4746_v34 = vpop.f32.mrf.mxu3  ;;  %v9705_v42 = vld [vmem:[%s15613_s16 + $0xb0] sm:$0xf]  ;;  %v10360_v39 = vld [vmem:[%s15613_s16 + $0xb4] sm:$0xf0] }
 0x718   : > { %v5428_v7 = vmax.f32 %v5174_v20, 0.0  ;;  %v4747_v31 = vadd.f32 %v4746_v34, %v4658_v27  ;;  %v9697_v20 = vld [vmem:[%s15613_s16 + $0xa0] sm:$0xf]  ;;  %v10358_v27 = vld [vmem:[%s15613_s16 + $0xa4] sm:$0xf0] }
 0x71a   : > { %v4815_v1 = vmax.f32 %v4747_v31, 0.0  ;;  %5269 = vmatmul.bf16.gmra.mxu2 %v13529_v11  ;;  %v13869_v5 = vpack.c.bf16 %v5428_v7, %v5426_v50  ;;  %v9617_v11 = vld [vmem:[%s15613_s16] sm:$0xf]  ;;  %v9698_v50 = vor.u32 %v10358_v27, %v9697_v20 }
 0x71b   : > { %5358 = vmatmul.bf16.gmra.mxu3 %v13739_v38  ;;  %v5087_v62 = vpop.f32.mrf.mxu0  ;;  %v10338_v38 = vld [vmem:[%s15613_s16 + $0x4] sm:$0xf0] }
 0x71c   : > { %v5088_v24 = vadd.f32 %v5087_v62, %v13794_v30  ;;  %v5176_v3 = vpop.f32.mrf.mxu1  ;;  %v13873_v46 = vpack.c.bf16 %v4815_v1, %v4813_v61  ;;  %v9618_v15 = vor.u32 %v10338_v38, %v9617_v11  ;;  %v9689_v62 = vld [vmem:[%s15613_s16 + $0x90] sm:$0xf] }
 0x71d   : > { %v4660_v17 = vpop.f32.mrf.mxu2 }
 0x71e   : > { %v5177_v44 = vadd.f32 %v5176_v3, %v5088_v24  ;;  %v4749_v51 = vpop.f32.mrf.mxu3  ;;  %5126 = vmatmul.bf16.gmra.mxu0 %v13735_v23  ;;  %v4661_v9 = vadd.f32 %v4660_v17, %v13577_v52  ;;  %v10356_v24 = vld [vmem:[%s15613_s16 + $0x94] sm:$0xf0] }
 0x71f   : > { %5215 = vmatmul.bf16.gmra.mxu1 %v13873_v46  ;;  %5715 = vmatpush.bf16.msrb.mxu0 %v9618_v15  ;;  %v9681_v15 = vld [vmem:[%s15613_s16 + $0x80] sm:$0xf] }
 0x720   : > { %v4750_v54 = vadd.f32 %v4749_v51, %v4661_v9  ;;  %v5430_v28 = vmax.f32 %v5177_v44, 0.0  ;;  %v9690_v9 = vor.u32 %v10356_v24, %v9689_v62 }
 0x722   : > { %v4817_v18 = vmax.f32 %v4750_v54, 0.0 }
 0x723   : > { %v5089_v57 = vpop.f32.mrf.mxu0 }
 0x724   : > { %v5090_v58 = vadd.f32 %v5089_v57, %v13794_v30  ;;  %v5178_v21 = vpop.f32.mrf.mxu1 }
 0x725   : > { %v4662_v63 = vpop.f32.mrf.mxu2 }
 0x726   : > { %v5179_v2 = vadd.f32 %v5178_v21, %v5090_v58  ;;  %v4663_v48 = vadd.f32 %v4662_v63, %v13577_v52  ;;  %v4751_v45 = vpop.f32.mrf.mxu3  ;;  %v10354_v58 = vld [vmem:[%s15613_s16 + $0x84] sm:$0xf0] }
 0x727   : > { %v9682_v54 = vor.u32 %v10354_v58, %v9681_v15  ;;  %v13960_v15 = vperm.slane %v13790_v43, 1 }
 0x728   : > { %v5432_v10 = vmax.f32 %v5179_v2, 0.0  ;;  %v4752_v14 = vadd.f32 %v4751_v45, %v4663_v48 }
 0x72a   : > { %v4819_v41 = vmax.f32 %v4752_v14, 0.0  ;;  %5274 = vmatmul.bf16.gmra.mxu2 %v13568_v29  ;;  %v13887_v36 = vpack.c.bf16 %v5432_v10, %v5430_v28  ;;  %v10351_v14 = vld [vmem:[%s15613_s16 + $0x74] sm:$0xf] }
 0x72b   : > { %5363 = vmatmul.bf16.gmra.mxu3 %v13757_v6  ;;  %v5092_v22 = vpop.f32.mrf.mxu0  ;;  %v9706_v6 = vor.u32 %v10360_v39, %v9705_v42  ;;  %v9829_v39 = vld [vmem:[%s15615_s18 + $0xa8] sm:$0xf] }
 0x72c   : > { %v5093_v40 = vadd.f32 %v5092_v22, %v13794_v30  ;;  %v5181_v12 = vpop.f32.mrf.mxu1  ;;  %v13891_v32 = vpack.c.bf16 %v4819_v41, %v4817_v18  ;;  %v9675_v18 = vld [vmem:[%s15613_s16 + $0x78] sm:$0xf0] }
 0x72d   : > { %v4665_v53 = vpop.f32.mrf.mxu2  ;;  %5801 = vmatpush.bf16.msrb.mxu1 %v9706_v6  ;;  %v9678_v41 = vor.u32 %v10351_v14, %v9675_v18  ;;  %v9739_v22 = vld [vmem:[%s15613_s16 + $0xf8] sm:$0xf0] }
 0x72e   : > { %v5182_v29 = vadd.f32 %v5181_v12, %v5093_v40  ;;  %v4754_v19 = vpop.f32.mrf.mxu3  ;;  %5131 = vmatmul.bf16.gmra.mxu0 %v13753_v26  ;;  %v4666_v34 = vadd.f32 %v4665_v53, %v13577_v52 }
 0x72f   : > { %5220 = vmatmul.bf16.gmra.mxu1 %v13891_v32  ;;  %5886 = vmatpush.bf16.msra.mxu2 %v9678_v41 }
 0x730   : > { %v4755_v3 = vadd.f32 %v4754_v19, %v4666_v34  ;;  %v5434_v11 = vmax.f32 %v5182_v29, 0.0  ;;  %v10391_v29 = vld [vmem:[%s15615_s18 + $0xb0] sm:$0xf0] }
 0x731   : > { %5802 = vmatpush.bf16.msrb.mxu1 %v9698_v50  ;;  %v9830_v6 = vor.u32 %v10391_v29, %v9829_v39  ;;  %v10365_v39 = vld [vmem:[%s15613_s16 + $0xe4] sm:$0xf] }
 0x732   : > { %v4821_v21 = vmax.f32 %v4755_v3, 0.0 }
 0x733   : > { %v5094_v7 = vpop.f32.mrf.mxu0  ;;  %6488 = vmatpush.bf16.msra.mxu0 %v9830_v6 }
 0x734   : > { %v5095_v31 = vadd.f32 %v5094_v7, %v13794_v30  ;;  %v5183_v61 = vpop.f32.mrf.mxu1 }
 0x735   : > { %v4667_v1 = vpop.f32.mrf.mxu2  ;;  %5803 = vmatpush.bf16.msrb.mxu1 %v9690_v9 }
 0x736   : > { %v5184_v17 = vadd.f32 %v5183_v61, %v5095_v31  ;;  %v4668_v44 = vadd.f32 %v4667_v1, %v13577_v52  ;;  %v4756_v51 = vpop.f32.mrf.mxu3 }
 0x738   : > { %v5436_v38 = vmax.f32 %v5184_v17, 0.0  ;;  %v4757_v57 = vadd.f32 %v4756_v51, %v4668_v44 }
 0x739   : > { %5804 = vmatpush.bf16.msrb.mxu1 %v9682_v54 }
 0x73a   : > { %v4823_v63 = vmax.f32 %v4757_v57, 0.0  ;;  %5279 = vmatmul.bf16.gmra.mxu2 %v13585_v8  ;;  %v13923_v2 = vpack.c.bf16 %v5436_v38, %v5434_v11  ;;  %v10367_v8 = vld [vmem:[%s15613_s16 + $0xf4] sm:$0xf] }
 0x73b   : > { %5368 = vmatmul.bf16.gmra.mxu3 %v13775_v35  ;;  %v5097_v48 = vpop.f32.mrf.mxu0  ;;  %v9742_v53 = vor.u32 %v10367_v8, %v9739_v22  ;;  %v10349_v22 = vld [vmem:[%s15613_s16 + $0x64] sm:$0xf] }
 0x73c   : > { %v5098_v45 = vadd.f32 %v5097_v48, %v13794_v30  ;;  %v5186_v28 = vpop.f32.mrf.mxu1  ;;  %v13927_v10 = vpack.c.bf16 %v4823_v63, %v4821_v21 }
 0x73d   : > { %v4670_v35 = vpop.f32.mrf.mxu2  ;;  %5975 = vmatpush.bf16.msra.mxu3 %v9742_v53 }
 0x73e   : > { %v5187_v40 = vadd.f32 %v5186_v28, %v5098_v45  ;;  %v4759_v12 = vpop.f32.mrf.mxu3  ;;  %5136 = vmatmul.bf16.gmra.mxu0 %v13771_v4  ;;  %v4671_v42 = vadd.f32 %v4670_v35, %v13577_v52 }
 0x73f   : > { %5225 = vmatmul.bf16.gmra.mxu1 %v13927_v10 }
 0x740   : > { %v4760_v50 = vadd.f32 %v4759_v12, %v4671_v42  ;;  %v5438_v1 = vmax.f32 %v5187_v40, 0.0  ;;  %v9667_v40 = vld [vmem:[%s15613_s16 + $0x68] sm:$0xf0] }
 0x741   : > { %v9670_v42 = vor.u32 %v10349_v22, %v9667_v40 }
 0x742   : > { %v4825_v3 = vmax.f32 %v4760_v50, 0.0 }
 0x743   : > { %v5099_v19 = vpop.f32.mrf.mxu0  ;;  %5887 = vmatpush.bf16.msra.mxu2 %v9670_v42 }
 0x744   : > { %v5100_v20 = vadd.f32 %v5099_v19, %v13794_v30  ;;  %v5188_v27 = vpop.f32.mrf.mxu1 }
 0x745   : > { %v4672_v34 = vpop.f32.mrf.mxu2 }
 0x746   : > { %v5189_v7 = vadd.f32 %v5188_v27, %v5100_v20  ;;  %v4673_v31 = vadd.f32 %v4672_v34, %v13577_v52  ;;  %v4761_v61 = vpop.f32.mrf.mxu3 }
 0x748   : > { %v5440_v62 = vmax.f32 %v5189_v7, 0.0  ;;  %v4762_v24 = vadd.f32 %v4761_v61, %v4673_v31  ;;  %v9817_v7 = vld [vmem:[%s15615_s18 + $0x90] sm:$0xf]  ;;  %v10388_v31 = vld [vmem:[%s15615_s18 + $0x98] sm:$0xf0] }
 0x74a   : > { %v4827_v17 = vmax.f32 %v4762_v24, 0.0  ;;  %5284 = vmatmul.bf16.gmra.mxu2 %v13615_v13  ;;  %v13953_v44 = vpack.c.bf16 %v5440_v62, %v5438_v1  ;;  %v9818_v1 = vor.u32 %v10388_v31, %v9817_v7  ;;  %v10363_v7 = vld [vmem:[%s15613_s16 + $0xd4] sm:$0xf] }
 0x74b   : > { %5373 = vmatmul.bf16.gmra.mxu3 %v13801_v55  ;;  %v5102_v51 = vpop.f32.mrf.mxu0 }
 0x74c   : > { %v5103_v9 = vadd.f32 %v5102_v51, %v13794_v30  ;;  %v5191_v11 = vpop.f32.mrf.mxu1  ;;  %v13957_v38 = vpack.c.bf16 %v4827_v17, %v4825_v3  ;;  %6489 = vmatpush.bf16.msra.mxu0 %v9818_v1 }
 0x74d   : > { %v5245_v57 = vpop.f32.mrf.mxu2 }
 0x74e   : > { %v5192_v52 = vadd.f32 %v5191_v11, %v5103_v9  ;;  %v5334_v58 = vpop.f32.mrf.mxu3  ;;  %5141 = vmatmul.bf16.gmra.mxu0 %v13797_v16  ;;  %v5246_v13 = vadd.f32 %v5245_v57, %v13960_v15 }
 0x74f   : > { %5230 = vmatmul.bf16.gmra.mxu1 %v13957_v38 }
 0x750   : > { %v5335_v48 = vadd.f32 %v5334_v58, %v5246_v13  ;;  %v5442_v18 = vmax.f32 %v5192_v52, 0.0 }
 0x752   : > { %v5415_v35 = vmax.f32 %v5335_v48, 0.0 }
 0x753   : > { %v5104_v21 = vpop.f32.mrf.mxu0 }
 0x754   : > { %v5105_v55 = vadd.f32 %v5104_v21, %v13794_v30  ;;  %v5193_v63 = vpop.f32.mrf.mxu1 }
 0x755   : > { %v5247_v54 = vpop.f32.mrf.mxu2 }
 0x756   : > { %v5194_v45 = vadd.f32 %v5193_v63, %v5105_v55  ;;  %v5248_v28 = vadd.f32 %v5247_v54, %v13960_v15  ;;  %v5336_v14 = vpop.f32.mrf.mxu3 }
 0x758   : > { %v5444_v43 = vmax.f32 %v5194_v45, 0.0  ;;  %v5337_v8 = vadd.f32 %v5336_v14, %v5248_v28 }
 0x75a   : > { %v5417_v41 = vmax.f32 %v5337_v8, 0.0  ;;  %5289 = vmatmul.bf16.gmra.mxu2 %v13627_v0  ;;  %v13974_v12 = vpack.c.bf16 %v5444_v43, %v5442_v18  ;;  %v9731_v0 = vld [vmem:[%s15613_s16 + $0xe8] sm:$0xf0] }
 0x75b   : > { %5378 = vmatmul.bf16.gmra.mxu3 %v13819_v33  ;;  %v5107_v53 = vpop.f32.mrf.mxu0  ;;  %v9734_v20 = vor.u32 %v10365_v39, %v9731_v0 }
 0x75c   : > { %v13983_v29 = vpack.c.bf16 %v5417_v41, %v5415_v35  ;;  %v5108_v19 = vadd.f32 %v5107_v53, %v13794_v30  ;;  %v5196_v6 = vpop.f32.mrf.mxu1 }
 0x75d   : > { %v5250_v27 = vpop.f32.mrf.mxu2  ;;  %5976 = vmatpush.bf16.msra.mxu3 %v9734_v20  ;;  %v10347_v20 = vld [vmem:[%s15613_s16 + $0x54] sm:$0xf] }
 0x75e   : > { %v5197_v34 = vadd.f32 %v5196_v6, %v5108_v19  ;;  %v5339_v33 = vpop.f32.mrf.mxu3  ;;  %5716 = vmatmul.bf16.vlgmr.msrb.gmra.mxu0 %v13814_v25  ;;  %v5251_v50 = vadd.f32 %v5250_v27, %v13960_v15  ;;  %v9659_v27 = vld [vmem:[%s15613_s16 + $0x58] sm:$0xf0] }
 0x75f   : > { %5805 = vmatmul.bf16.vlgmr.msrb.gmra.mxu1 %v13983_v29 }
 0x760   : > { %v5340_v17 = vadd.f32 %v5339_v33, %v5251_v50  ;;  %v5446_v57 = vmax.f32 %v5197_v34, 0.0  ;;  %v9662_v50 = vor.u32 %v10347_v20, %v9659_v27  ;;  %v9651_v20 = vld [vmem:[%s15613_s16 + $0x48] sm:$0xf0]  ;;  %v10361_v27 = vld [vmem:[%s15613_s16 + $0xc4] sm:$0xf] }
 0x762   : > { %v5419_v13 = vmax.f32 %v5340_v17, 0.0  ;;  %5888 = vmatpush.bf16.msra.mxu2 %v9662_v50 }
 0x763   : > { %v5109_v61 = vpop.f32.mrf.mxu0 }
 0x764   : > { %v5110_v62 = vadd.f32 %v5109_v61, %v13794_v30  ;;  %v5198_v24 = vpop.f32.mrf.mxu1 }
 0x765   : > { %v5252_v3 = vpop.f32.mrf.mxu2 }
 0x766   : > { %v5199_v51 = vadd.f32 %v5198_v24, %v5110_v62  ;;  %v5253_v9 = vadd.f32 %v5252_v3, %v13960_v15  ;;  %v5341_v11 = vpop.f32.mrf.mxu3 }
 0x768   : > { %v5448_v52 = vmax.f32 %v5199_v51, 0.0  ;;  %v5342_v58 = vadd.f32 %v5341_v11, %v5253_v9  ;;  %v9805_v51 = vld [vmem:[%s15615_s18 + $0x78] sm:$0xf]  ;;  %v10385_v9 = vld [vmem:[%s15615_s18 + $0x80] sm:$0xf0] }
 0x76a   : > { %v5421_v21 = vmax.f32 %v5342_v58, 0.0  ;;  %5294 = vmatmul.bf16.gmra.mxu2 %v13657_v47  ;;  %v13998_v55 = vpack.c.bf16 %v5448_v52, %v5446_v57  ;;  %v9806_v57 = vor.u32 %v10385_v9, %v9805_v51  ;;  %v9643_v51 = vld [vmem:[%s15613_s16 + $0x38] sm:$0xf0]  ;;  %v10359_v9 = vld [vmem:[%s15613_s16 + $0xb4] sm:$0xf] }
 0x76b   : > { %5383 = vmatmul.bf16.gmra.mxu3 %v13837_v49  ;;  %v5112_v63 = vpop.f32.mrf.mxu0 }
 0x76c   : > { %v5113_v54 = vadd.f32 %v5112_v63, %v13794_v30  ;;  %v5201_v48 = vpop.f32.mrf.mxu1  ;;  %v14002_v45 = vpack.c.bf16 %v5421_v21, %v5419_v13  ;;  %6490 = vmatpush.bf16.msra.mxu0 %v9806_v57 }
 0x76d   : > { %v5255_v28 = vpop.f32.mrf.mxu2 }
 0x76e   : > { %v5202_v14 = vadd.f32 %v5201_v48, %v5113_v54  ;;  %v5344_v18 = vpop.f32.mrf.mxu3  ;;  %5721 = vmatmul.bf16.gmra.mxu0 %v13833_v37  ;;  %v5256_v43 = vadd.f32 %v5255_v28, %v13960_v15 }
 0x76f   : > { %5810 = vmatmul.bf16.gmra.mxu1 %v14002_v45 }
 0x770   : > { %v5345_v41 = vadd.f32 %v5344_v18, %v5256_v43  ;;  %v5450_v42 = vmax.f32 %v5202_v14, 0.0 }
 0x772   : > { %v5423_v19 = vmax.f32 %v5345_v41, 0.0 }
 0x773   : > { %v5114_v47 = vpop.f32.mrf.mxu0 }
 0x774   : > { %v5115_v8 = vadd.f32 %v5114_v47, %v13794_v30  ;;  %v5203_v35 = vpop.f32.mrf.mxu1 }
 0x775   : > { %v5257_v49 = vpop.f32.mrf.mxu2 }
 0x776   : > { %v5204_v22 = vadd.f32 %v5203_v35, %v5115_v8  ;;  %v5258_v40 = vadd.f32 %v5257_v49, %v13960_v15  ;;  %v5346_v53 = vpop.f32.mrf.mxu3 }
 0x778   : > { %v5452_v39 = vmax.f32 %v5204_v22, 0.0  ;;  %v5347_v0 = vadd.f32 %v5346_v53, %v5258_v40 }
 0x77a   : > { %v5425_v6 = vmax.f32 %v5347_v0, 0.0  ;;  %5299 = vmatmul.bf16.gmra.mxu2 %v13681_v60  ;;  %v14016_v34 = vpack.c.bf16 %v5452_v39, %v5450_v42  ;;  %v9723_v60 = vld [vmem:[%s15613_s16 + $0xd8] sm:$0xf0] }
 0x77b   : > { %5388 = vmatmul.bf16.gmra.mxu3 %v13855_v56  ;;  %v5117_v33 = vpop.f32.mrf.mxu0  ;;  %v9726_v62 = vor.u32 %v10363_v7, %v9723_v60 }
 0x77c   : > { %v5118_v31 = vadd.f32 %v5117_v33, %v13794_v30  ;;  %v5206_v61 = vpop.f32.mrf.mxu1  ;;  %v14026_v1 = vpack.c.bf16 %v5425_v6, %v5423_v19  ;;  %v10345_v6 = vld [vmem:[%s15613_s16 + $0x44] sm:$0xf] }
 0x77d   : > { %v5260_v24 = vpop.f32.mrf.mxu2  ;;  %5977 = vmatpush.bf16.msra.mxu3 %v9726_v62 }
 0x77e   : > { %v5207_v3 = vadd.f32 %v5206_v61, %v5118_v31  ;;  %v5349_v56 = vpop.f32.mrf.mxu3  ;;  %5726 = vmatmul.bf16.gmra.mxu0 %v13851_v59  ;;  %v5261_v17 = vadd.f32 %v5260_v24, %v13960_v15  ;;  %v9654_v31 = vor.u32 %v10345_v6, %v9651_v20  ;;  %v9715_v61 = vld [vmem:[%s15613_s16 + $0xc8] sm:$0xf0]  ;;  %v9691_v20 = vld [vmem:[%s15613_s16 + $0x98] sm:$0xf0] }
 0x77f   : > { %5815 = vmatmul.bf16.gmra.mxu1 %v14026_v1  ;;  %v9718_v62 = vor.u32 %v10361_v27, %v9715_v61  ;;  %v10353_v61 = vld [vmem:[%s15613_s16 + $0x84] sm:$0xf] }
 0x780   : > { %v5350_v21 = vadd.f32 %v5349_v56, %v5261_v17  ;;  %v5454_v28 = vmax.f32 %v5207_v3, 0.0  ;;  %5889 = vmatpush.bf16.msra.mxu2 %v9654_v31  ;;  %v10343_v17 = vld [vmem:[%s15613_s16 + $0x34] sm:$0xf]  ;;  %v9619_v31 = vld [vmem:[%s15613_s16 + $0x8] sm:$0xf0] }
 0x781   : > { %5978 = vmatpush.bf16.msra.mxu3 %v9718_v62 }
 0x782   : > { %v5427_v43 = vmax.f32 %v5350_v21, 0.0 }
 0x783   : > { %v5119_v11 = vpop.f32.mrf.mxu0 }
 0x784   : > { %v5120_v52 = vadd.f32 %v5119_v11, %v13794_v30  ;;  %v5208_v58 = vpop.f32.mrf.mxu1 }
 0x785   : > { %v5262_v13 = vpop.f32.mrf.mxu2 }
 0x786   : > { %v5209_v63 = vadd.f32 %v5208_v58, %v5120_v52  ;;  %v5263_v54 = vadd.f32 %v5262_v13, %v13960_v15  ;;  %v5351_v48 = vpop.f32.mrf.mxu3  ;;  %v9646_v52 = vor.u32 %v10343_v17, %v9643_v51  ;;  %v9707_v58 = vld [vmem:[%s15613_s16 + $0xb8] sm:$0xf0]  ;;  %v9683_v51 = vld [vmem:[%s15613_s16 + $0x88] sm:$0xf0] }
 0x788   : > { %v5456_v14 = vmax.f32 %v5209_v63, 0.0  ;;  %v5352_v18 = vadd.f32 %v5351_v48, %v5263_v54  ;;  %v9710_v63 = vor.u32 %v10359_v9, %v9707_v58  ;;  %5890 = vmatpush.bf16.msra.mxu2 %v9646_v52  ;;  %v9686_v9 = vor.u32 %v10353_v61, %v9683_v51 }
 0x78a   : > { %v5429_v47 = vmax.f32 %v5352_v18, 0.0  ;;  %5304 = vmatmul.bf16.gmra.mxu2 %v13735_v23  ;;  %v14040_v8 = vpack.c.bf16 %v5456_v14, %v5454_v28  ;;  %5979 = vmatpush.bf16.msra.mxu3 %v9710_v63  ;;  %v9635_v18 = vld [vmem:[%s15613_s16 + $0x28] sm:$0xf0] }
 0x78b   : > { %5393 = vmatmul.bf16.gmra.mxu3 %v13873_v46  ;;  %v5122_v35 = vpop.f32.mrf.mxu0 }
 0x78c   : > { %v5123_v49 = vadd.f32 %v5122_v35, %v13794_v30  ;;  %v5211_v41 = vpop.f32.mrf.mxu1  ;;  %v14044_v22 = vpack.c.bf16 %v5429_v47, %v5427_v43 }
 0x78d   : > { %v5265_v40 = vpop.f32.mrf.mxu2 }
 0x78e   : > { %v5212_v53 = vadd.f32 %v5211_v41, %v5123_v49  ;;  %v5354_v42 = vpop.f32.mrf.mxu3  ;;  %5731 = vmatmul.bf16.gmra.mxu0 %v13869_v5  ;;  %v5266_v39 = vadd.f32 %v5265_v40, %v13960_v15  ;;  %v9699_v49 = vld [vmem:[%s15613_s16 + $0xa8] sm:$0xf0]  ;;  %v10339_v40 = vld [vmem:[%s15613_s16 + $0x14] sm:$0xf] }
 0x78f   : > { %5820 = vmatmul.bf16.gmra.mxu1 %v14044_v22 }
 0x790   : > { %v5355_v33 = vadd.f32 %v5354_v42, %v5266_v39  ;;  %v5458_v24 = vmax.f32 %v5212_v53, 0.0  ;;  %v9627_v53 = vld [vmem:[%s15613_s16 + $0x18] sm:$0xf0]  ;;  %v10355_v42 = vld [vmem:[%s15613_s16 + $0x94] sm:$0xf] }
 0x792   : > { %v5431_v11 = vmax.f32 %v5355_v33, 0.0 }
 0x793   : > { %v5124_v23 = vpop.f32.mrf.mxu0 }
 0x794   : > { %v5125_v0 = vadd.f32 %v5124_v23, %v13794_v30  ;;  %v5213_v19 = vpop.f32.mrf.mxu1  ;;  %v9793_v23 = vld [vmem:[%s15615_s18 + $0x60] sm:$0xf] }
 0x795   : > { %v5267_v46 = vpop.f32.mrf.mxu2 }
 0x796   : > { %v5214_v50 = vadd.f32 %v5213_v19, %v5125_v0  ;;  %v5268_v7 = vadd.f32 %v5267_v46, %v13960_v15  ;;  %v5356_v60 = vpop.f32.mrf.mxu3  ;;  %v10382_v0 = vld [vmem:[%s15615_s18 + $0x68] sm:$0xf0]  ;;  %v9630_v19 = vor.u32 %v10339_v40, %v9627_v53 }
 0x797   : > { %v9794_v6 = vor.u32 %v10382_v0, %v9793_v23 }
 0x798   : > { %v5460_v3 = vmax.f32 %v5214_v50, 0.0  ;;  %v5357_v56 = vadd.f32 %v5356_v60, %v5268_v7  ;;  %v9694_v50 = vor.u32 %v10355_v42, %v9691_v20  ;;  %v10337_v60 = vld [vmem:[%s15613_s16 + $0x4] sm:$0xf] }
 0x799   : > { %6491 = vmatpush.bf16.msra.mxu0 %v9794_v6  ;;  %v9622_v17 = vor.u32 %v10337_v60, %v9619_v31 }
 0x79a   : > { %v5433_v57 = vmax.f32 %v5357_v56, 0.0  ;;  %5309 = vmatmul.bf16.gmra.mxu2 %v13753_v26  ;;  %v14076_v13 = vpack.c.bf16 %v5460_v3, %v5458_v24  ;;  %v10341_v26 = vld [vmem:[%s15613_s16 + $0x24] sm:$0xf] }
 0x79b   : > { %5398 = vmatmul.bf16.gmra.mxu3 %v13891_v32  ;;  %v5127_v21 = vpop.f32.mrf.mxu0  ;;  %v10357_v32 = vld [vmem:[%s15613_s16 + $0xa4] sm:$0xf]  ;;  %v9638_v35 = vor.u32 %v10341_v26, %v9635_v18 }
 0x79c   : > { %v5128_v54 = vadd.f32 %v5127_v21, %v13794_v30  ;;  %v5216_v48 = vpop.f32.mrf.mxu1  ;;  %v14080_v28 = vpack.c.bf16 %v5433_v57, %v5431_v11  ;;  %v9702_v41 = vor.u32 %v10357_v32, %v9699_v49 }
 0x79d   : > { %v5270_v14 = vpop.f32.mrf.mxu2  ;;  %5891 = vmatpush.bf16.msra.mxu2 %v9638_v35 }
 0x79e   : > { %v5217_v43 = vadd.f32 %v5216_v48, %v5128_v54  ;;  %v5359_v47 = vpop.f32.mrf.mxu3  ;;  %5736 = vmatmul.bf16.gmra.mxu0 %v13887_v36  ;;  %5980 = vmatpush.bf16.msra.mxu3 %v9702_v41  ;;  %v5271_v39 = vadd.f32 %v5270_v14, %v13960_v15 }
 0x79f   : > { %5825 = vmatmul.bf16.gmra.mxu1 %v14080_v28 }
 0x7a0   : > { %v5360_v62 = vadd.f32 %v5359_v47, %v5271_v39  ;;  %v5462_v11 = vmax.f32 %v5217_v43, 0.0 }
 0x7a1   : > { %5892 = vmatpush.bf16.msra.mxu2 %v9630_v19 }
 0x7a2   : > { %5981 = vmatpush.bf16.msra.mxu3 %v9694_v50  ;;  %v5435_v58 = vmax.f32 %v5360_v62, 0.0 }
 0x7a3   : > { %v5129_v46 = vpop.f32.mrf.mxu0 }
 0x7a4   : > { %v5130_v27 = vadd.f32 %v5129_v46, %v13794_v30  ;;  %v5218_v33 = vpop.f32.mrf.mxu1 }
 0x7a5   : > { %v5272_v7 = vpop.f32.mrf.mxu2  ;;  %5893 = vmatpush.bf16.msra.mxu2 %v9622_v17 }
 0x7a6   : > { %v5219_v24 = vadd.f32 %v5218_v33, %v5130_v27  ;;  %v5273_v3 = vadd.f32 %v5272_v7, %v13960_v15  ;;  %v5361_v56 = vpop.f32.mrf.mxu3  ;;  %5982 = vmatpush.bf16.msra.mxu3 %v9686_v9 }
 0x7a8   : > { %v5464_v57 = vmax.f32 %v5219_v24, 0.0  ;;  %v5362_v52 = vadd.f32 %v5361_v56, %v5273_v3 }
 0x7aa   : > { %v5437_v21 = vmax.f32 %v5362_v52, 0.0  ;;  %5314 = vmatmul.bf16.gmra.mxu2 %v13771_v4  ;;  %v14130_v63 = vpack.c.bf16 %v5464_v57, %v5462_v11 }
 0x7ab   : > { %5403 = vmatmul.bf16.gmra.mxu3 %v13927_v10  ;;  %v5132_v54 = vpop.f32.mrf.mxu0 }
 0x7ac   : > { %v5133_v48 = vadd.f32 %v5132_v54, %v13794_v30  ;;  %v5221_v14 = vpop.f32.mrf.mxu1  ;;  %v14134_v26 = vpack.c.bf16 %v5437_v21, %v5435_v58 }
 0x7ad   : > { %v5275_v18 = vpop.f32.mrf.mxu2 }
 0x7ae   : > { %v5222_v32 = vadd.f32 %v5221_v14, %v5133_v48  ;;  %v5364_v43 = vpop.f32.mrf.mxu3  ;;  %5741 = vmatmul.bf16.gmra.mxu0 %v13923_v2  ;;  %v5276_v4 = vadd.f32 %v5275_v18, %v13960_v15 }
 0x7af   : > { %5830 = vmatmul.bf16.gmra.mxu1 %v14134_v26 }
 0x7b0   : > { %v5365_v41 = vadd.f32 %v5364_v43, %v5276_v4  ;;  %v5466_v39 = vmax.f32 %v5222_v32, 0.0 }
 0x7b2   : > { %v5439_v19 = vmax.f32 %v5365_v41, 0.0 }
 0x7b3   : > { %v5134_v47 = vpop.f32.mrf.mxu0 }
 0x7b4   : > { %v5135_v35 = vadd.f32 %v5134_v47, %v13794_v30  ;;  %v5223_v49 = vpop.f32.mrf.mxu1 }
 0x7b5   : > { %v5277_v10 = vpop.f32.mrf.mxu2 }
 0x7b6   : > { %v5224_v40 = vadd.f32 %v5223_v49, %v5135_v35  ;;  %v5278_v53 = vadd.f32 %v5277_v10, %v13960_v15  ;;  %v5366_v42 = vpop.f32.mrf.mxu3 }
 0x7b8   : > { %v5468_v23 = vmax.f32 %v5224_v40, 0.0  ;;  %v5367_v0 = vadd.f32 %v5366_v42, %v5278_v53 }
 0x7ba   : > { %v5441_v46 = vmax.f32 %v5367_v0, 0.0  ;;  %5319 = vmatmul.bf16.gmra.mxu2 %v13797_v16  ;;  %v14142_v6 = vpack.c.bf16 %v5468_v23, %v5466_v39  ;;  %v9781_v16 = vld [vmem:[%s15615_s18 + $0x48] sm:$0xf]  ;;  %v14179_v23 = vld [vmem:[%s15614_s17] sm:$0x3] }
 0x7bb   : > { %5408 = vmatmul.bf16.gmra.mxu3 %v13957_v38  ;;  %v5137_v20 = vpop.f32.mrf.mxu0  ;;  %v10379_v38 = vld [vmem:[%s15615_s18 + $0x50] sm:$0xf0] }
 0x7bc   : > { %v5138_v27 = vadd.f32 %v5137_v20, %v13794_v30  ;;  %v5226_v33 = vpop.f32.mrf.mxu1  ;;  %v14146_v50 = vpack.c.bf16 %v5441_v46, %v5439_v19  ;;  %v9782_v24 = vor.u32 %v10379_v38, %v9781_v16 }
 0x7bd   : > { %v5280_v7 = vpop.f32.mrf.mxu2 }
 0x7be   : > { %v5227_v60 = vadd.f32 %v5226_v33, %v5138_v27  ;;  %v5369_v31 = vpop.f32.mrf.mxu3  ;;  %5746 = vmatmul.bf16.gmra.mxu0 %v13953_v44  ;;  %v5281_v61 = vadd.f32 %v5280_v7, %v13960_v15 }
 0x7bf   : > { %5835 = vmatmul.bf16.gmra.mxu1 %v14146_v50  ;;  %6492 = vmatpush.bf16.msra.mxu0 %v9782_v24 }
 0x7c0   : > { %v5370_v51 = vadd.f32 %v5369_v31, %v5281_v61  ;;  %v5470_v52 = vmax.f32 %v5227_v60, 0.0  ;;  %v14183_v60 = vperm.slane %v14179_v23, 0 }
 0x7c2   : > { %v5443_v54 = vmax.f32 %v5370_v51, 0.0 }
 0x7c3   : > { %v5139_v62 = vpop.f32.mrf.mxu0 }
 0x7c4   : > { %v5140_v3 = vadd.f32 %v5139_v62, %v13794_v30  ;;  %v5228_v56 = vpop.f32.mrf.mxu1 }
 0x7c5   : > { %v5282_v17 = vpop.f32.mrf.mxu2 }
 0x7c6   : > { %v5229_v9 = vadd.f32 %v5228_v56, %v5140_v3  ;;  %v5283_v11 = vadd.f32 %v5282_v17, %v13960_v15  ;;  %v5371_v57 = vpop.f32.mrf.mxu3 }
 0x7c8   : > { %v5472_v58 = vmax.f32 %v5229_v9, 0.0  ;;  %v5372_v21 = vadd.f32 %v5371_v57, %v5283_v11 }
 0x7ca   : > { %v5445_v48 = vmax.f32 %v5372_v21, 0.0  ;;  %5894 = vmatmul.bf16.vlgmr.msra.gmra.mxu2 %v13814_v25  ;;  %v14160_v14 = vpack.c.bf16 %v5472_v58, %v5470_v52  ;;  %v9925_v25 = vld [vmem:[%s15615_s18 + $0x168] sm:$0xf] }
 0x7cb   : > { %5983 = vmatmul.bf16.vlgmr.msra.gmra.mxu3 %v13983_v29  ;;  %v5142_v18 = vpop.f32.mrf.mxu0  ;;  %v10415_v29 = vld [vmem:[%s15615_s18 + $0x170] sm:$0xf0] }
 0x7cc   : > { %v5143_v32 = vadd.f32 %v5142_v18, %v13794_v30  ;;  %v5231_v43 = vpop.f32.mrf.mxu1  ;;  %v14164_v4 = vpack.c.bf16 %v5445_v48, %v5443_v54  ;;  %v9926_v10 = vor.u32 %v10415_v29, %v9925_v25 }
 0x7cd   : > { %v5285_v47 = vpop.f32.mrf.mxu2 }
 0x7ce   : > { %v5232_v35 = vadd.f32 %v5231_v43, %v5143_v32  ;;  %v5374_v49 = vpop.f32.mrf.mxu3  ;;  %5751 = vmatmul.bf16.gmra.mxu0 %v13974_v12  ;;  %v5286_v41 = vadd.f32 %v5285_v47, %v13960_v15  ;;  %6577 = vmatpush.bf16.msra.mxu1 %v9926_v10 }
 0x7cf   : > { %5840 = vmatmul.bf16.gmra.mxu1 %v14164_v4 }
 0x7d0   : > { %v5375_v0 = vadd.f32 %v5374_v49, %v5286_v41  ;;  %v5474_v27 = vmax.f32 %v5232_v35, 0.0 }
 0x7d2   : > { %v5447_v31 = vmax.f32 %v5375_v0, 0.0  ;;  %v9913_v0 = vld [vmem:[%s15615_s18 + $0x150] sm:$0xf] }
 0x7d3   : > { %v5144_v40 = vpop.f32.mrf.mxu0 }
 0x7d4   : > { %v5145_v53 = vadd.f32 %v5144_v40, %v13794_v30  ;;  %v5233_v42 = vpop.f32.mrf.mxu1 }
 0x7d5   : > { %v5287_v39 = vpop.f32.mrf.mxu2 }
 0x7d6   : > { %v5234_v19 = vadd.f32 %v5233_v42, %v5145_v53  ;;  %v5288_v46 = vadd.f32 %v5287_v39, %v13960_v15  ;;  %v5376_v20 = vpop.f32.mrf.mxu3 }
 0x7d8   : > { %v5476_v33 = vmax.f32 %v5234_v19, 0.0  ;;  %v5377_v7 = vadd.f32 %v5376_v20, %v5288_v46 }
 0x7da   : > { %v5449_v30 = vmax.f32 %v5377_v7, 0.0  ;;  %5899 = vmatmul.bf16.gmra.mxu2 %v13833_v37  ;;  %v14186_v61 = vpack.c.bf16 %v5476_v33, %v5474_v27  ;;  %v9769_v37 = vld [vmem:[%s15615_s18 + $0x30] sm:$0xf] }
 0x7db   : > { %5988 = vmatmul.bf16.gmra.mxu3 %v14002_v45  ;;  %v5717_v16 = vpop.f32.mrf.mxu0  ;;  %v10376_v45 = vld [vmem:[%s15615_s18 + $0x38] sm:$0xf0] }
 0x7dc   : > { %v5718_v38 = vadd.f32 %v5717_v16, %v14183_v60  ;;  %v5806_v62 = vpop.f32.mrf.mxu1  ;;  %v14190_v24 = vpack.c.bf16 %v5449_v30, %v5447_v31  ;;  %v9770_v11 = vor.u32 %v10376_v45, %v9769_v37 }
 0x7dd   : > { %v5290_v3 = vpop.f32.mrf.mxu2 }
 0x7de   : > { %v5807_v56 = vadd.f32 %v5806_v62, %v5718_v38  ;;  %v5379_v17 = vpop.f32.mrf.mxu3  ;;  %5756 = vmatmul.bf16.gmra.mxu0 %v13998_v55  ;;  %v5291_v51 = vadd.f32 %v5290_v3, %v13960_v15 }
 0x7df   : > { %5845 = vmatmul.bf16.gmra.mxu1 %v14190_v24  ;;  %6493 = vmatpush.bf16.msra.mxu0 %v9770_v11 }
 0x7e0   : > { %v5380_v21 = vadd.f32 %v5379_v17, %v5291_v51  ;;  %v6064_v32 = vmax.f32 %v5807_v56, 0.0 }
 0x7e2   : > { %v5451_v35 = vmax.f32 %v5380_v21, 0.0 }
 0x7e3   : > { %v5719_v9 = vpop.f32.mrf.mxu0 }
 0x7e4   : > { %v5720_v57 = vadd.f32 %v5719_v9, %v14183_v60  ;;  %v5808_v52 = vpop.f32.mrf.mxu1 }
 0x7e5   : > { %v5292_v58 = vpop.f32.mrf.mxu2 }
 0x7e6   : > { %v5809_v54 = vadd.f32 %v5808_v52, %v5720_v57  ;;  %v5293_v48 = vadd.f32 %v5292_v58, %v13960_v15  ;;  %v5381_v18 = vpop.f32.mrf.mxu3 }
 0x7e8   : > { %v6066_v43 = vmax.f32 %v5809_v54, 0.0  ;;  %v5382_v47 = vadd.f32 %v5381_v18, %v5293_v48 }
 0x7ea   : > { %v14203_v49 = vpack.c.bf16 %v6066_v43, %v6064_v32  ;;  %v5453_v25 = vmax.f32 %v5382_v47, 0.0  ;;  %5904 = vmatmul.bf16.gmra.mxu2 %v13851_v59  ;;  %v10412_v59 = vld [vmem:[%s15615_s18 + $0x158] sm:$0xf0] }
 0x7eb   : > { %5993 = vmatmul.bf16.gmra.mxu3 %v14026_v1  ;;  %v5722_v29 = vpop.f32.mrf.mxu0  ;;  %v9914_v1 = vor.u32 %v10412_v59, %v9913_v0 }
 0x7ec   : > { %v5723_v10 = vadd.f32 %v5722_v29, %v14183_v60  ;;  %v5811_v41 = vpop.f32.mrf.mxu1  ;;  %v14208_v40 = vpack.c.bf16 %v5453_v25, %v5451_v35 }
 0x7ed   : > { %v5295_v53 = vpop.f32.mrf.mxu2  ;;  %6578 = vmatpush.bf16.msra.mxu1 %v9914_v1 }
 0x7ee   : > { %v5812_v42 = vadd.f32 %v5811_v41, %v5723_v10  ;;  %v5384_v39 = vpop.f32.mrf.mxu3  ;;  %5761 = vmatmul.bf16.gmra.mxu0 %v14016_v34  ;;  %v5296_v19 = vadd.f32 %v5295_v53, %v13960_v15 }
 0x7ef   : > { %5850 = vmatmul.bf16.gmra.mxu1 %v14208_v40 }
 0x7f0   : > { %v5385_v7 = vadd.f32 %v5384_v39, %v5296_v19  ;;  %v6068_v38 = vmax.f32 %v5812_v42, 0.0 }
 0x7f2   : > { %v5455_v56 = vmax.f32 %v5385_v7, 0.0 }
 0x7f3   : > { %v5724_v46 = vpop.f32.mrf.mxu0 }
 0x7f4   : > { %v5725_v20 = vadd.f32 %v5724_v46, %v14183_v60  ;;  %v5813_v27 = vpop.f32.mrf.mxu1 }
 0x7f5   : > { %v5297_v33 = vpop.f32.mrf.mxu2 }
 0x7f6   : > { %v5814_v31 = vadd.f32 %v5813_v27, %v5725_v20  ;;  %v5298_v30 = vadd.f32 %v5297_v33, %v13960_v15  ;;  %v5386_v16 = vpop.f32.mrf.mxu3 }
 0x7f8   : > { %v6070_v62 = vmax.f32 %v5814_v31, 0.0  ;;  %v5387_v3 = vadd.f32 %v5386_v16, %v5298_v30 }
 0x7fa   : > { %v5457_v17 = vmax.f32 %v5387_v3, 0.0  ;;  %5909 = vmatmul.bf16.gmra.mxu2 %v13869_v5  ;;  %v14222_v51 = vpack.c.bf16 %v6070_v62, %v6068_v38  ;;  %v9757_v5 = vld [vmem:[%s15615_s18 + $0x18] sm:$0xf] }
 0x7fb   : > { %5998 = vmatmul.bf16.gmra.mxu3 %v14044_v22  ;;  %v5727_v37 = vpop.f32.mrf.mxu0  ;;  %v10373_v22 = vld [vmem:[%s15615_s18 + $0x20] sm:$0xf0] }
 0x7fc   : > { %v5728_v45 = vadd.f32 %v5727_v37, %v14183_v60  ;;  %v5816_v9 = vpop.f32.mrf.mxu1  ;;  %v14226_v11 = vpack.c.bf16 %v5457_v17, %v5455_v56  ;;  %v9758_v48 = vor.u32 %v10373_v22, %v9757_v5 }
 0x7fd   : > { %v5300_v57 = vpop.f32.mrf.mxu2 }
 0x7fe   : > { %v5817_v52 = vadd.f32 %v5816_v9, %v5728_v45  ;;  %v5389_v58 = vpop.f32.mrf.mxu3  ;;  %5766 = vmatmul.bf16.gmra.mxu0 %v14040_v8  ;;  %v5301_v21 = vadd.f32 %v5300_v57, %v13960_v15 }
 0x7ff   : > { %5855 = vmatmul.bf16.gmra.mxu1 %v14226_v11  ;;  %6494 = vmatpush.bf16.msra.mxu0 %v9758_v48 }
 0x800   : > { %v5390_v47 = vadd.f32 %v5389_v58, %v5301_v21  ;;  %v6072_v10 = vmax.f32 %v5817_v52, 0.0 }
 0x802   : > { %v5459_v42 = vmax.f32 %v5390_v47, 0.0 }
 0x803   : > { %v5729_v54 = vpop.f32.mrf.mxu0 }
 0x804   : > { %v5730_v18 = vadd.f32 %v5729_v54, %v14183_v60  ;;  %v5818_v32 = vpop.f32.mrf.mxu1 }
 0x805   : > { %v5302_v43 = vpop.f32.mrf.mxu2 }
 0x806   : > { %v5819_v35 = vadd.f32 %v5818_v32, %v5730_v18  ;;  %v5303_v25 = vadd.f32 %v5302_v43, %v13960_v15  ;;  %v5391_v29 = vpop.f32.mrf.mxu3 }
 0x808   : > { %v6074_v41 = vmax.f32 %v5819_v35, 0.0  ;;  %v5392_v53 = vadd.f32 %v5391_v29, %v5303_v25 }
 0x80a   : > { %v5461_v39 = vmax.f32 %v5392_v53, 0.0  ;;  %5914 = vmatmul.bf16.gmra.mxu2 %v13887_v36  ;;  %v14240_v0 = vpack.c.bf16 %v6074_v41, %v6072_v10  ;;  %v9901_v36 = vld [vmem:[%s15615_s18 + $0x138] sm:$0xf] }
 0x80b   : > { %6003 = vmatmul.bf16.gmra.mxu3 %v14080_v28  ;;  %v5732_v59 = vpop.f32.mrf.mxu0  ;;  %v10409_v28 = vld [vmem:[%s15615_s18 + $0x140] sm:$0xf0] }
 0x80c   : > { %v5733_v1 = vadd.f32 %v5732_v59, %v14183_v60  ;;  %v5821_v19 = vpop.f32.mrf.mxu1  ;;  %v14244_v46 = vpack.c.bf16 %v5461_v39, %v5459_v42  ;;  %v9902_v7 = vor.u32 %v10409_v28, %v9901_v36 }
 0x80d   : > { %v5305_v20 = vpop.f32.mrf.mxu2 }
 0x80e   : > { %v5822_v27 = vadd.f32 %v5821_v19, %v5733_v1  ;;  %v5394_v33 = vpop.f32.mrf.mxu3  ;;  %5771 = vmatmul.bf16.gmra.mxu0 %v14076_v13  ;;  %v5306_v31 = vadd.f32 %v5305_v20, %v13960_v15  ;;  %6579 = vmatpush.bf16.msra.mxu1 %v9902_v7 }
 0x80f   : > { %5860 = vmatmul.bf16.gmra.mxu1 %v14244_v46 }
 0x810   : > { %v5395_v3 = vadd.f32 %v5394_v33, %v5306_v31  ;;  %v6076_v45 = vmax.f32 %v5822_v27, 0.0  ;;  %v9889_v27 = vld [vmem:[%s15615_s18 + $0x120] sm:$0xf]  ;;  %v10406_v33 = vld [vmem:[%s15615_s18 + $0x128] sm:$0xf0] }
 0x811   : > { %v9890_v7 = vor.u32 %v10406_v33, %v9889_v27 }
 0x812   : > { %v5463_v52 = vmax.f32 %v5395_v3, 0.0 }
 0x813   : > { %v5734_v30 = vpop.f32.mrf.mxu0  ;;  %6580 = vmatpush.bf16.msra.mxu1 %v9890_v7 }
 0x814   : > { %v5735_v16 = vadd.f32 %v5734_v30, %v14183_v60  ;;  %v5823_v38 = vpop.f32.mrf.mxu1 }
 0x815   : > { %v5307_v62 = vpop.f32.mrf.mxu2 }
 0x816   : > { %v5824_v56 = vadd.f32 %v5823_v38, %v5735_v16  ;;  %v5308_v17 = vadd.f32 %v5307_v62, %v13960_v15  ;;  %v5396_v37 = vpop.f32.mrf.mxu3 }
 0x818   : > { %v6078_v9 = vmax.f32 %v5824_v56, 0.0  ;;  %v5397_v57 = vadd.f32 %v5396_v37, %v5308_v17  ;;  %v9877_v56 = vld [vmem:[%s15615_s18 + $0x108] sm:$0xf] }
 0x81a   : > { %v5465_v58 = vmax.f32 %v5397_v57, 0.0  ;;  %5919 = vmatmul.bf16.gmra.mxu2 %v13923_v2  ;;  %v14258_v21 = vpack.c.bf16 %v6078_v9, %v6076_v45  ;;  %v9745_v2 = vld [vmem:[%s15615_s18] sm:$0xf]  ;;  %v9865_v45 = vld [vmem:[%s15615_s18 + $0xf0] sm:$0xf] }
 0x81b   : > { %6008 = vmatmul.bf16.gmra.mxu3 %v14134_v26  ;;  %v5737_v5 = vpop.f32.mrf.mxu0  ;;  %v10370_v26 = vld [vmem:[%s15615_s18 + $0x8] sm:$0xf0]  ;;  %v10400_v9 = vld [vmem:[%s15615_s18 + $0xf8] sm:$0xf0] }
 0x81c   : > { %v5738_v22 = vadd.f32 %v5737_v5, %v14183_v60  ;;  %v5826_v54 = vpop.f32.mrf.mxu1  ;;  %v14262_v48 = vpack.c.bf16 %v5465_v58, %v5463_v52  ;;  %v9746_v25 = vor.u32 %v10370_v26, %v9745_v2  ;;  %v9866_v52 = vor.u32 %v10400_v9, %v9865_v45 }
 0x81d   : > { %v5310_v18 = vpop.f32.mrf.mxu2 }
 0x81e   : > { %v5827_v32 = vadd.f32 %v5826_v54, %v5738_v22  ;;  %v5399_v43 = vpop.f32.mrf.mxu3  ;;  %5776 = vmatmul.bf16.gmra.mxu0 %v14130_v63  ;;  %v5311_v47 = vadd.f32 %v5310_v18, %v13960_v15  ;;  %v9853_v18 = vld [vmem:[%s15615_s18 + $0xd8] sm:$0xf] }
 0x81f   : > { %5865 = vmatmul.bf16.gmra.mxu1 %v14262_v48  ;;  %6495 = vmatpush.bf16.msra.mxu0 %v9746_v25 }
 0x820   : > { %v5400_v53 = vadd.f32 %v5399_v43, %v5311_v47  ;;  %v6080_v1 = vmax.f32 %v5827_v32, 0.0  ;;  %v10397_v32 = vld [vmem:[%s15615_s18 + $0xe0] sm:$0xf0] }
 0x822   : > { %v5467_v36 = vmax.f32 %v5400_v53, 0.0  ;;  %v10394_v53 = vld [vmem:[%s15615_s18 + $0xc8] sm:$0xf0] }
 0x823   : > { %v5739_v35 = vpop.f32.mrf.mxu0 }
 0x824   : > { %v5740_v29 = vadd.f32 %v5739_v35, %v14183_v60  ;;  %v5828_v10 = vpop.f32.mrf.mxu1  ;;  %v9854_v35 = vor.u32 %v10397_v32, %v9853_v18 }
 0x825   : > { %v5312_v41 = vpop.f32.mrf.mxu2 }
 0x826   : > { %v5829_v42 = vadd.f32 %v5828_v10, %v5740_v29  ;;  %v5313_v39 = vadd.f32 %v5312_v41, %v13960_v15  ;;  %v5401_v59 = vpop.f32.mrf.mxu3  ;;  %v9841_v41 = vld [vmem:[%s15615_s18 + $0xc0] sm:$0xf] }
 0x828   : > { %v6082_v19 = vmax.f32 %v5829_v42, 0.0  ;;  %v5402_v20 = vadd.f32 %v5401_v59, %v5313_v39  ;;  %v9842_v59 = vor.u32 %v10394_v53, %v9841_v41  ;;  %v14355_v41 = vperm.slane %v14179_v23, 1 }
 0x82a   : > { %v5469_v28 = vmax.f32 %v5402_v20, 0.0  ;;  %5924 = vmatmul.bf16.gmra.mxu2 %v13953_v44  ;;  %v14282_v31 = vpack.c.bf16 %v6082_v19, %v6080_v1  ;;  %v10403_v44 = vld [vmem:[%s15615_s18 + $0x110] sm:$0xf0] }
 0x82b   : > { %6013 = vmatmul.bf16.gmra.mxu3 %v14146_v50  ;;  %v5742_v30 = vpop.f32.mrf.mxu0  ;;  %v9878_v50 = vor.u32 %v10403_v44, %v9877_v56  ;;  %v9837_v44 = vld [vmem:[%s15615_s18 + $0xb0] sm:$0xf] }
 0x82c   : > { %v5743_v16 = vadd.f32 %v5742_v30, %v14183_v60  ;;  %v5831_v38 = vpop.f32.mrf.mxu1  ;;  %v14286_v62 = vpack.c.bf16 %v5469_v28, %v5467_v36  ;;  %v10390_v36 = vld [vmem:[%s15615_s18 + $0xac] sm:$0xf]  ;;  %v9831_v28 = vld [vmem:[%s15615_s18 + $0xb4] sm:$0xf0] }
 0x82d   : > { %v5315_v3 = vpop.f32.mrf.mxu2  ;;  %6581 = vmatpush.bf16.msra.mxu1 %v9878_v50  ;;  %v9834_v7 = vor.u32 %v10390_v36, %v9831_v28  ;;  %v9927_v30 = vld [vmem:[%s15615_s18 + $0x174] sm:$0xf0] }
 0x82e   : > { %v5832_v17 = vadd.f32 %v5831_v38, %v5743_v16  ;;  %v5404_v37 = vpop.f32.mrf.mxu3  ;;  %5781 = vmatmul.bf16.gmra.mxu0 %v14142_v6  ;;  %v5316_v57 = vadd.f32 %v5315_v3, %v13960_v15 }
 0x82f   : > { %5870 = vmatmul.bf16.gmra.mxu1 %v14286_v62  ;;  %6666 = vmatpush.bf16.msrb.mxu2 %v9834_v7 }
 0x830   : > { %v5405_v43 = vadd.f32 %v5404_v37, %v5316_v57  ;;  %v6084_v25 = vmax.f32 %v5832_v17, 0.0  ;;  %v10392_v17 = vld [vmem:[%s15615_s18 + $0xb8] sm:$0xf0] }
 0x831   : > { %6582 = vmatpush.bf16.msra.mxu1 %v9866_v52  ;;  %v9838_v50 = vor.u32 %v10392_v17, %v9837_v44  ;;  %v10411_v44 = vld [vmem:[%s15615_s18 + $0x154] sm:$0xf] }
 0x832   : > { %v5471_v42 = vmax.f32 %v5405_v43, 0.0 }
 0x833   : > { %v5744_v58 = vpop.f32.mrf.mxu0  ;;  %6844 = vmatpush.bf16.msrb.mxu0 %v9838_v50 }
 0x834   : > { %v5745_v5 = vadd.f32 %v5744_v58, %v14183_v60  ;;  %v5833_v22 = vpop.f32.mrf.mxu1 }
 0x835   : > { %v5317_v54 = vpop.f32.mrf.mxu2  ;;  %6583 = vmatpush.bf16.msra.mxu1 %v9854_v35 }
 0x836   : > { %v5834_v47 = vadd.f32 %v5833_v22, %v5745_v5  ;;  %v5318_v2 = vadd.f32 %v5317_v54, %v13960_v15  ;;  %v5406_v26 = vpop.f32.mrf.mxu3 }
 0x838   : > { %v6086_v29 = vmax.f32 %v5834_v47, 0.0  ;;  %v5407_v10 = vadd.f32 %v5406_v26, %v5318_v2 }
 0x839   : > { %6584 = vmatpush.bf16.msra.mxu1 %v9842_v59 }
 0x83a   : > { %v5473_v39 = vmax.f32 %v5407_v10, 0.0  ;;  %5929 = vmatmul.bf16.gmra.mxu2 %v13974_v12  ;;  %v14318_v1 = vpack.c.bf16 %v6086_v29, %v6084_v25  ;;  %v10414_v12 = vld [vmem:[%s15615_s18 + $0x16c] sm:$0xf] }
 0x83b   : > { %6018 = vmatmul.bf16.gmra.mxu3 %v14164_v4  ;;  %v5747_v19 = vpop.f32.mrf.mxu0  ;;  %v9930_v3 = vor.u32 %v10414_v12, %v9927_v30  ;;  %v10387_v30 = vld [vmem:[%s15615_s18 + $0x94] sm:$0xf] }
 0x83c   : > { %v5748_v20 = vadd.f32 %v5747_v19, %v14183_v60  ;;  %v5836_v27 = vpop.f32.mrf.mxu1  ;;  %v14322_v33 = vpack.c.bf16 %v5473_v39, %v5471_v42 }
 0x83d   : > { %v5320_v4 = vpop.f32.mrf.mxu2  ;;  %6755 = vmatpush.bf16.msrb.mxu3 %v9930_v3 }
 0x83e   : > { %v5837_v16 = vadd.f32 %v5836_v27, %v5748_v20  ;;  %v5409_v38 = vpop.f32.mrf.mxu3  ;;  %5786 = vmatmul.bf16.gmra.mxu0 %v14160_v14  ;;  %v5321_v56 = vadd.f32 %v5320_v4, %v13960_v15 }
 0x83f   : > { %5875 = vmatmul.bf16.gmra.mxu1 %v14322_v33 }
 0x840   : > { %v5410_v52 = vadd.f32 %v5409_v38, %v5321_v56  ;;  %v6088_v54 = vmax.f32 %v5837_v16, 0.0  ;;  %v9819_v16 = vld [vmem:[%s15615_s18 + $0x9c] sm:$0xf0] }
 0x841   : > { %v9822_v56 = vor.u32 %v10387_v30, %v9819_v16 }
 0x842   : > { %v5475_v43 = vmax.f32 %v5410_v52, 0.0 }
 0x843   : > { %v5749_v37 = vpop.f32.mrf.mxu0  ;;  %6667 = vmatpush.bf16.msrb.mxu2 %v9822_v56 }
 0x844   : > { %v5750_v45 = vadd.f32 %v5749_v37, %v14183_v60  ;;  %v5838_v9 = vpop.f32.mrf.mxu1 }
 0x845   : > { %v5322_v57 = vpop.f32.mrf.mxu2 }
 0x846   : > { %v5839_v58 = vadd.f32 %v5838_v9, %v5750_v45  ;;  %v5323_v5 = vadd.f32 %v5322_v57, %v13960_v15  ;;  %v5411_v22 = vpop.f32.mrf.mxu3 }
 0x848   : > { %v6090_v18 = vmax.f32 %v5839_v58, 0.0  ;;  %v5412_v32 = vadd.f32 %v5411_v22, %v5323_v5  ;;  %v9825_v58 = vld [vmem:[%s15615_s18 + $0x98] sm:$0xf]  ;;  %v10389_v5 = vld [vmem:[%s15615_s18 + $0xa0] sm:$0xf0] }
 0x84a   : > { %v5477_v47 = vmax.f32 %v5412_v32, 0.0  ;;  %5934 = vmatmul.bf16.gmra.mxu2 %v13998_v55  ;;  %v14348_v2 = vpack.c.bf16 %v6090_v18, %v6088_v54  ;;  %v9826_v54 = vor.u32 %v10389_v5, %v9825_v58  ;;  %v10408_v58 = vld [vmem:[%s15615_s18 + $0x13c] sm:$0xf] }
 0x84b   : > { %6023 = vmatmul.bf16.gmra.mxu3 %v14190_v24  ;;  %v5752_v26 = vpop.f32.mrf.mxu0 }
 0x84c   : > { %v5753_v35 = vadd.f32 %v5752_v26, %v14183_v60  ;;  %v5841_v25 = vpop.f32.mrf.mxu1  ;;  %v14352_v29 = vpack.c.bf16 %v5477_v47, %v5475_v43  ;;  %6845 = vmatpush.bf16.msrb.mxu0 %v9826_v54 }
 0x84d   : > { %v5895_v10 = vpop.f32.mrf.mxu2 }
 0x84e   : > { %v5842_v15 = vadd.f32 %v5841_v25, %v5753_v35  ;;  %v5984_v53 = vpop.f32.mrf.mxu3  ;;  %5791 = vmatmul.bf16.gmra.mxu0 %v14186_v61  ;;  %v5896_v55 = vadd.f32 %v5895_v10, %v14355_v41 }
 0x84f   : > { %5880 = vmatmul.bf16.gmra.mxu1 %v14352_v29 }
 0x850   : > { %v5985_v19 = vadd.f32 %v5984_v53, %v5896_v55  ;;  %v6092_v28 = vmax.f32 %v5842_v15, 0.0 }
 0x852   : > { %v6065_v4 = vmax.f32 %v5985_v19, 0.0 }
 0x853   : > { %v5754_v42 = vpop.f32.mrf.mxu0 }
 0x854   : > { %v5755_v24 = vadd.f32 %v5754_v42, %v14183_v60  ;;  %v5843_v39 = vpop.f32.mrf.mxu1 }
 0x855   : > { %v5897_v59 = vpop.f32.mrf.mxu2 }
 0x856   : > { %v5844_v20 = vadd.f32 %v5843_v39, %v5755_v24  ;;  %v5898_v27 = vadd.f32 %v5897_v59, %v14355_v41  ;;  %v5986_v36 = vpop.f32.mrf.mxu3 }
 0x858   : > { %v6094_v23 = vmax.f32 %v5844_v20, 0.0  ;;  %v5987_v12 = vadd.f32 %v5986_v36, %v5898_v27 }
 0x85a   : > { %v6067_v7 = vmax.f32 %v5987_v12, 0.0  ;;  %5939 = vmatmul.bf16.gmra.mxu2 %v14016_v34  ;;  %v14369_v38 = vpack.c.bf16 %v6094_v23, %v6092_v28  ;;  %v9915_v34 = vld [vmem:[%s15615_s18 + $0x15c] sm:$0xf0] }
 0x85b   : > { %6028 = vmatmul.bf16.gmra.mxu3 %v14208_v40  ;;  %v5757_v3 = vpop.f32.mrf.mxu0  ;;  %v9918_v45 = vor.u32 %v10411_v44, %v9915_v34 }
 0x85c   : > { %v14378_v17 = vpack.c.bf16 %v6067_v7, %v6065_v4  ;;  %v5758_v37 = vadd.f32 %v5757_v3, %v14183_v60  ;;  %v5846_v50 = vpop.f32.mrf.mxu1 }
 0x85d   : > { %v5900_v9 = vpop.f32.mrf.mxu2  ;;  %6756 = vmatpush.bf16.msrb.mxu3 %v9918_v45  ;;  %v10384_v45 = vld [vmem:[%s15615_s18 + $0x7c] sm:$0xf] }
 0x85e   : > { %v5847_v57 = vadd.f32 %v5846_v50, %v5758_v37  ;;  %v5989_v40 = vpop.f32.mrf.mxu3  ;;  %6496 = vmatmul.bf16.vlgmr.msra.gmra.mxu0 %v14203_v49  ;;  %v5901_v52 = vadd.f32 %v5900_v9, %v14355_v41  ;;  %v9807_v9 = vld [vmem:[%s15615_s18 + $0x84] sm:$0xf0] }
 0x85f   : > { %6585 = vmatmul.bf16.vlgmr.msra.gmra.mxu1 %v14378_v17 }
 0x860   : > { %v5990_v47 = vadd.f32 %v5989_v40, %v5901_v52  ;;  %v6096_v10 = vmax.f32 %v5847_v57, 0.0  ;;  %v9810_v52 = vor.u32 %v10384_v45, %v9807_v9  ;;  %v9795_v45 = vld [vmem:[%s15615_s18 + $0x6c] sm:$0xf0]  ;;  %v10405_v9 = vld [vmem:[%s15615_s18 + $0x124] sm:$0xf] }
 0x862   : > { %v6069_v55 = vmax.f32 %v5990_v47, 0.0  ;;  %6668 = vmatpush.bf16.msrb.mxu2 %v9810_v52 }
 0x863   : > { %v5759_v22 = vpop.f32.mrf.mxu0 }
 0x864   : > { %v5760_v18 = vadd.f32 %v5759_v22, %v14183_v60  ;;  %v5848_v32 = vpop.f32.mrf.mxu1 }
 0x865   : > { %v5902_v43 = vpop.f32.mrf.mxu2 }
 0x866   : > { %v5849_v26 = vadd.f32 %v5848_v32, %v5760_v18  ;;  %v5903_v35 = vadd.f32 %v5902_v43, %v14355_v41  ;;  %v5991_v25 = vpop.f32.mrf.mxu3 }
 0x868   : > { %v6098_v15 = vmax.f32 %v5849_v26, 0.0  ;;  %v5992_v53 = vadd.f32 %v5991_v25, %v5903_v35  ;;  %v9813_v26 = vld [vmem:[%s15615_s18 + $0x80] sm:$0xf]  ;;  %v10386_v35 = vld [vmem:[%s15615_s18 + $0x88] sm:$0xf0] }
 0x86a   : > { %v6071_v42 = vmax.f32 %v5992_v53, 0.0  ;;  %5944 = vmatmul.bf16.gmra.mxu2 %v14040_v8  ;;  %v14393_v24 = vpack.c.bf16 %v6098_v15, %v6096_v10  ;;  %v9814_v10 = vor.u32 %v10386_v35, %v9813_v26  ;;  %v9783_v26 = vld [vmem:[%s15615_s18 + $0x54] sm:$0xf0]  ;;  %v10402_v35 = vld [vmem:[%s15615_s18 + $0x10c] sm:$0xf] }
 0x86b   : > { %6033 = vmatmul.bf16.gmra.mxu3 %v14226_v11  ;;  %v5762_v39 = vpop.f32.mrf.mxu0 }
 0x86c   : > { %v5763_v59 = vadd.f32 %v5762_v39, %v14183_v60  ;;  %v5851_v19 = vpop.f32.mrf.mxu1  ;;  %v14397_v20 = vpack.c.bf16 %v6071_v42, %v6069_v55  ;;  %6846 = vmatpush.bf16.msrb.mxu0 %v9814_v10 }
 0x86d   : > { %v5905_v27 = vpop.f32.mrf.mxu2 }
 0x86e   : > { %v5852_v36 = vadd.f32 %v5851_v19, %v5763_v59  ;;  %v5994_v28 = vpop.f32.mrf.mxu3  ;;  %6501 = vmatmul.bf16.gmra.mxu0 %v14222_v51  ;;  %v5906_v23 = vadd.f32 %v5905_v27, %v14355_v41 }
 0x86f   : > { %6590 = vmatmul.bf16.gmra.mxu1 %v14397_v20 }
 0x870   : > { %v5995_v7 = vadd.f32 %v5994_v28, %v5906_v23  ;;  %v6100_v56 = vmax.f32 %v5852_v36, 0.0 }
 0x872   : > { %v6073_v37 = vmax.f32 %v5995_v7, 0.0 }
 0x873   : > { %v5764_v8 = vpop.f32.mrf.mxu0 }
 0x874   : > { %v5765_v12 = vadd.f32 %v5764_v8, %v14183_v60  ;;  %v5853_v4 = vpop.f32.mrf.mxu1 }
 0x875   : > { %v5907_v11 = vpop.f32.mrf.mxu2 }
 0x876   : > { %v5854_v30 = vadd.f32 %v5853_v4, %v5765_v12  ;;  %v5908_v16 = vadd.f32 %v5907_v11, %v14355_v41  ;;  %v5996_v3 = vpop.f32.mrf.mxu3 }
 0x878   : > { %v6102_v44 = vmax.f32 %v5854_v30, 0.0  ;;  %v5997_v34 = vadd.f32 %v5996_v3, %v5908_v16 }
 0x87a   : > { %v6075_v50 = vmax.f32 %v5997_v34, 0.0  ;;  %5949 = vmatmul.bf16.gmra.mxu2 %v14076_v13  ;;  %v14411_v57 = vpack.c.bf16 %v6102_v44, %v6100_v56  ;;  %v9903_v13 = vld [vmem:[%s15615_s18 + $0x144] sm:$0xf0] }
 0x87b   : > { %6038 = vmatmul.bf16.gmra.mxu3 %v14244_v46  ;;  %v5767_v40 = vpop.f32.mrf.mxu0  ;;  %v9906_v18 = vor.u32 %v10408_v58, %v9903_v13 }
 0x87c   : > { %v5768_v5 = vadd.f32 %v5767_v40, %v14183_v60  ;;  %v5856_v22 = vpop.f32.mrf.mxu1  ;;  %v14421_v54 = vpack.c.bf16 %v6075_v50, %v6073_v37  ;;  %v10381_v50 = vld [vmem:[%s15615_s18 + $0x64] sm:$0xf] }
 0x87d   : > { %v5910_v32 = vpop.f32.mrf.mxu2  ;;  %6757 = vmatpush.bf16.msrb.mxu3 %v9906_v18 }
 0x87e   : > { %v5857_v43 = vadd.f32 %v5856_v22, %v5768_v5  ;;  %v5999_v46 = vpop.f32.mrf.mxu3  ;;  %6506 = vmatmul.bf16.gmra.mxu0 %v14240_v0  ;;  %v5911_v47 = vadd.f32 %v5910_v32, %v14355_v41  ;;  %v9798_v5 = vor.u32 %v10381_v50, %v9795_v45  ;;  %v9891_v22 = vld [vmem:[%s15615_s18 + $0x12c] sm:$0xf0]  ;;  %v9855_v45 = vld [vmem:[%s15615_s18 + $0xe4] sm:$0xf0] }
 0x87f   : > { %6595 = vmatmul.bf16.gmra.mxu1 %v14421_v54  ;;  %v9894_v18 = vor.u32 %v10405_v9, %v9891_v22  ;;  %v10393_v22 = vld [vmem:[%s15615_s18 + $0xc4] sm:$0xf] }
 0x880   : > { %v6000_v42 = vadd.f32 %v5999_v46, %v5911_v47  ;;  %v6104_v27 = vmax.f32 %v5857_v43, 0.0  ;;  %6669 = vmatpush.bf16.msrb.mxu2 %v9798_v5  ;;  %v10378_v47 = vld [vmem:[%s15615_s18 + $0x4c] sm:$0xf]  ;;  %v9747_v5 = vld [vmem:[%s15615_s18 + $0xc] sm:$0xf0] }
 0x881   : > { %6758 = vmatpush.bf16.msrb.mxu3 %v9894_v18 }
 0x882   : > { %v6077_v23 = vmax.f32 %v6000_v42, 0.0 }
 0x883   : > { %v5769_v25 = vpop.f32.mrf.mxu0 }
 0x884   : > { %v5770_v15 = vadd.f32 %v5769_v25, %v14183_v60  ;;  %v5858_v53 = vpop.f32.mrf.mxu1 }
 0x885   : > { %v5912_v55 = vpop.f32.mrf.mxu2 }
 0x886   : > { %v5859_v39 = vadd.f32 %v5858_v53, %v5770_v15  ;;  %v5913_v59 = vadd.f32 %v5912_v55, %v14355_v41  ;;  %v6001_v19 = vpop.f32.mrf.mxu3  ;;  %v9786_v15 = vor.u32 %v10378_v47, %v9783_v26  ;;  %v9879_v53 = vld [vmem:[%s15615_s18 + $0x114] sm:$0xf0]  ;;  %v9843_v26 = vld [vmem:[%s15615_s18 + $0xcc] sm:$0xf0] }
 0x888   : > { %v6106_v36 = vmax.f32 %v5859_v39, 0.0  ;;  %v6002_v28 = vadd.f32 %v6001_v19, %v5913_v59  ;;  %v9882_v39 = vor.u32 %v10402_v35, %v9879_v53  ;;  %6670 = vmatpush.bf16.msrb.mxu2 %v9786_v15  ;;  %v9846_v35 = vor.u32 %v10393_v22, %v9843_v26 }
 0x88a   : > { %v6079_v8 = vmax.f32 %v6002_v28, 0.0  ;;  %5954 = vmatmul.bf16.gmra.mxu2 %v14130_v63  ;;  %v14435_v12 = vpack.c.bf16 %v6106_v36, %v6104_v27  ;;  %6759 = vmatpush.bf16.msrb.mxu3 %v9882_v39  ;;  %v9771_v28 = vld [vmem:[%s15615_s18 + $0x3c] sm:$0xf0] }
 0x88b   : > { %6043 = vmatmul.bf16.gmra.mxu3 %v14262_v48  ;;  %v5772_v4 = vpop.f32.mrf.mxu0 }
 0x88c   : > { %v5773_v11 = vadd.f32 %v5772_v4, %v14183_v60  ;;  %v5861_v7 = vpop.f32.mrf.mxu1  ;;  %v14439_v30 = vpack.c.bf16 %v6079_v8, %v6077_v23 }
 0x88d   : > { %v5915_v16 = vpop.f32.mrf.mxu2 }
 0x88e   : > { %v5862_v3 = vadd.f32 %v5861_v7, %v5773_v11  ;;  %v6004_v56 = vpop.f32.mrf.mxu3  ;;  %6511 = vmatmul.bf16.gmra.mxu0 %v14258_v21  ;;  %v5916_v44 = vadd.f32 %v5915_v16, %v14355_v41  ;;  %v9867_v11 = vld [vmem:[%s15615_s18 + $0xfc] sm:$0xf0]  ;;  %v10372_v16 = vld [vmem:[%s15615_s18 + $0x1c] sm:$0xf] }
 0x88f   : > { %6600 = vmatmul.bf16.gmra.mxu1 %v14439_v30 }
 0x890   : > { %v6005_v40 = vadd.f32 %v6004_v56, %v5916_v44  ;;  %v6108_v32 = vmax.f32 %v5862_v3, 0.0  ;;  %v9759_v3 = vld [vmem:[%s15615_s18 + $0x24] sm:$0xf0]  ;;  %v10396_v56 = vld [vmem:[%s15615_s18 + $0xdc] sm:$0xf] }
 0x892   : > { %v6081_v25 = vmax.f32 %v6005_v40, 0.0 }
 0x893   : > { %v5774_v63 = vpop.f32.mrf.mxu0 }
 0x894   : > { %v5775_v34 = vadd.f32 %v5774_v63, %v14183_v60  ;;  %v5863_v37 = vpop.f32.mrf.mxu1  ;;  %v9801_v63 = vld [vmem:[%s15615_s18 + $0x68] sm:$0xf] }
 0x895   : > { %v5917_v48 = vpop.f32.mrf.mxu2 }
 0x896   : > { %v5864_v52 = vadd.f32 %v5863_v37, %v5775_v34  ;;  %v5918_v58 = vadd.f32 %v5917_v48, %v14355_v41  ;;  %v6006_v13 = vpop.f32.mrf.mxu3  ;;  %v10383_v34 = vld [vmem:[%s15615_s18 + $0x70] sm:$0xf0]  ;;  %v9762_v37 = vor.u32 %v10372_v16, %v9759_v3 }
 0x897   : > { %v9802_v50 = vor.u32 %v10383_v34, %v9801_v63 }
 0x898   : > { %v6110_v43 = vmax.f32 %v5864_v52, 0.0  ;;  %v6007_v46 = vadd.f32 %v6006_v13, %v5918_v58  ;;  %v9858_v52 = vor.u32 %v10396_v56, %v9855_v45  ;;  %v10369_v13 = vld [vmem:[%s15615_s18 + $0x4] sm:$0xf] }
 0x899   : > { %6847 = vmatpush.bf16.msrb.mxu0 %v9802_v50  ;;  %v9750_v47 = vor.u32 %v10369_v13, %v9747_v5 }
 0x89a   : > { %v6083_v10 = vmax.f32 %v6007_v46, 0.0  ;;  %5959 = vmatmul.bf16.gmra.mxu2 %v14142_v6  ;;  %v14471_v55 = vpack.c.bf16 %v6110_v43, %v6108_v32  ;;  %v10375_v6 = vld [vmem:[%s15615_s18 + $0x34] sm:$0xf] }
 0x89b   : > { %6048 = vmatmul.bf16.gmra.mxu3 %v14286_v62  ;;  %v5777_v42 = vpop.f32.mrf.mxu0  ;;  %v10399_v62 = vld [vmem:[%s15615_s18 + $0xf4] sm:$0xf]  ;;  %v9774_v4 = vor.u32 %v10375_v6, %v9771_v28 }
 0x89c   : > { %v5778_v59 = vadd.f32 %v5777_v42, %v14183_v60  ;;  %v5866_v19 = vpop.f32.mrf.mxu1  ;;  %v14475_v27 = vpack.c.bf16 %v6083_v10, %v6081_v25  ;;  %v9870_v7 = vor.u32 %v10399_v62, %v9867_v11 }
 0x89d   : > { %v5920_v36 = vpop.f32.mrf.mxu2  ;;  %6671 = vmatpush.bf16.msrb.mxu2 %v9774_v4 }
 0x89e   : > { %v5867_v23 = vadd.f32 %v5866_v19, %v5778_v59  ;;  %v6009_v8 = vpop.f32.mrf.mxu3  ;;  %6516 = vmatmul.bf16.gmra.mxu0 %v14282_v31  ;;  %6760 = vmatpush.bf16.msrb.mxu3 %v9870_v7  ;;  %v5921_v44 = vadd.f32 %v5920_v36, %v14355_v41 }
 0x89f   : > { %6605 = vmatmul.bf16.gmra.mxu1 %v14475_v27 }
 0x8a0   : > { %v6010_v18 = vadd.f32 %v6009_v8, %v5921_v44  ;;  %v6112_v25 = vmax.f32 %v5867_v23, 0.0 }
 0x8a1   : > { %6672 = vmatpush.bf16.msrb.mxu2 %v9762_v37 }
 0x8a2   : > { %6761 = vmatpush.bf16.msrb.mxu3 %v9858_v52  ;;  %v6085_v53 = vmax.f32 %v6010_v18, 0.0 }
 0x8a3   : > { %v5779_v48 = vpop.f32.mrf.mxu0 }
 0x8a4   : > { %v5780_v9 = vadd.f32 %v5779_v48, %v14183_v60  ;;  %v5868_v40 = vpop.f32.mrf.mxu1 }
 0x8a5   : > { %v5922_v58 = vpop.f32.mrf.mxu2  ;;  %6673 = vmatpush.bf16.msrb.mxu2 %v9750_v47 }
 0x8a6   : > { %v5869_v32 = vadd.f32 %v5868_v40, %v5780_v9  ;;  %v5923_v43 = vadd.f32 %v5922_v58, %v14355_v41  ;;  %v6011_v46 = vpop.f32.mrf.mxu3  ;;  %6762 = vmatpush.bf16.msrb.mxu3 %v9846_v35 }
 0x8a8   : > { %v6114_v10 = vmax.f32 %v5869_v32, 0.0  ;;  %v6012_v15 = vadd.f32 %v6011_v46, %v5923_v43 }
 0x8aa   : > { %v6087_v42 = vmax.f32 %v6012_v15, 0.0  ;;  %5964 = vmatmul.bf16.gmra.mxu2 %v14160_v14  ;;  %v14525_v39 = vpack.c.bf16 %v6114_v10, %v6112_v25 }
 0x8ab   : > { %6053 = vmatmul.bf16.gmra.mxu3 %v14322_v33  ;;  %v5782_v59 = vpop.f32.mrf.mxu0 }
 0x8ac   : > { %v5783_v19 = vadd.f32 %v5782_v59, %v14183_v60  ;;  %v5871_v36 = vpop.f32.mrf.mxu1  ;;  %v14529_v6 = vpack.c.bf16 %v6087_v42, %v6085_v53 }
 0x8ad   : > { %v5925_v28 = vpop.f32.mrf.mxu2 }
 0x8ae   : > { %v5872_v62 = vadd.f32 %v5871_v36, %v5783_v19  ;;  %v6014_v23 = vpop.f32.mrf.mxu3  ;;  %6521 = vmatmul.bf16.gmra.mxu0 %v14318_v1  ;;  %v5926_v14 = vadd.f32 %v5925_v28, %v14355_v41 }
 0x8af   : > { %6610 = vmatmul.bf16.gmra.mxu1 %v14529_v6 }
 0x8b0   : > { %v6015_v7 = vadd.f32 %v6014_v23, %v5926_v14  ;;  %v6116_v44 = vmax.f32 %v5872_v62, 0.0 }
 0x8b2   : > { %v6089_v37 = vmax.f32 %v6015_v7, 0.0  ;;  %v10416_v7 = vld [vmem:[%s15615_s18 + $0x178] sm:$0xf0] }
 0x8b3   : > { %v5784_v8 = vpop.f32.mrf.mxu0 }
 0x8b4   : > { %v5785_v4 = vadd.f32 %v5784_v8, %v14183_v60  ;;  %v5873_v11 = vpop.f32.mrf.mxu1 }
 0x8b5   : > { %v5927_v33 = vpop.f32.mrf.mxu2 }
 0x8b6   : > { %v5874_v16 = vadd.f32 %v5873_v11, %v5785_v4  ;;  %v5928_v3 = vadd.f32 %v5927_v33, %v14355_v41  ;;  %v6016_v56 = vpop.f32.mrf.mxu3  ;;  %v9933_v33 = vld [vmem:[%s15615_s18 + $0x170] sm:$0xf] }
 0x8b8   : > { %v6118_v63 = vmax.f32 %v5874_v16, 0.0  ;;  %v6017_v34 = vadd.f32 %v6016_v56, %v5928_v3  ;;  %v9934_v16 = vor.u32 %v10416_v7, %v9933_v33 }
 0x8ba   : > { %v6091_v48 = vmax.f32 %v6017_v34, 0.0  ;;  %5969 = vmatmul.bf16.gmra.mxu2 %v14186_v61  ;;  %v14537_v50 = vpack.c.bf16 %v6118_v63, %v6116_v44  ;;  %v9789_v61 = vld [vmem:[%s15615_s18 + $0x50] sm:$0xf]  ;;  %6933 = vmatpush.bf16.msrb.mxu1 %v9934_v16 }
 0x8bb   : > { %6058 = vmatmul.bf16.gmra.mxu3 %v14352_v29  ;;  %v5787_v45 = vpop.f32.mrf.mxu0  ;;  %v10380_v29 = vld [vmem:[%s15615_s18 + $0x58] sm:$0xf0] }
 0x8bc   : > { %v5788_v9 = vadd.f32 %v5787_v45, %v14183_v60  ;;  %v5876_v40 = vpop.f32.mrf.mxu1  ;;  %v14541_v52 = vpack.c.bf16 %v6091_v48, %v6089_v37  ;;  %v9790_v32 = vor.u32 %v10380_v29, %v9789_v61  ;;  %v14574_v37 = vld [vmem:[%s15616_s19] sm:$0x7] }
 0x8bd   : > { %v5930_v58 = vpop.f32.mrf.mxu2 }
 0x8be   : > { %v5877_v13 = vadd.f32 %v5876_v40, %v5788_v9  ;;  %v6019_v5 = vpop.f32.mrf.mxu3  ;;  %6526 = vmatmul.bf16.gmra.mxu0 %v14348_v2  ;;  %v5931_v22 = vadd.f32 %v5930_v58, %v14355_v41 }
 0x8bf   : > { %6615 = vmatmul.bf16.gmra.mxu1 %v14541_v52  ;;  %6848 = vmatpush.bf16.msrb.mxu0 %v9790_v32 }
 0x8c0   : > { %v6020_v26 = vadd.f32 %v6019_v5, %v5931_v22  ;;  %v6120_v15 = vmax.f32 %v5877_v13, 0.0  ;;  %v14578_v22 = vperm.slane %v14574_v37, 0 }
 0x8c2   : > { %v6093_v59 = vmax.f32 %v6020_v26, 0.0 }
 0x8c3   : > { %v5789_v18 = vpop.f32.mrf.mxu0 }
 0x8c4   : > { %v5790_v43 = vadd.f32 %v5789_v18, %v14183_v60  ;;  %v5878_v46 = vpop.f32.mrf.mxu1 }
 0x8c5   : > { %v5932_v47 = vpop.f32.mrf.mxu2 }
 0x8c6   : > { %v5879_v35 = vadd.f32 %v5878_v46, %v5790_v43  ;;  %v5933_v25 = vadd.f32 %v5932_v47, %v14355_v41  ;;  %v6021_v10 = vpop.f32.mrf.mxu3 }
 0x8c8   : > { %v6122_v53 = vmax.f32 %v5879_v35, 0.0  ;;  %v6022_v42 = vadd.f32 %v6021_v10, %v5933_v25  ;;  %v9777_v10 = vld [vmem:[%s15615_s18 + $0x38] sm:$0xf] }
 0x8ca   : > { %v6095_v19 = vmax.f32 %v6022_v42, 0.0  ;;  %6674 = vmatmul.bf16.vlgmr.msrb.gmra.mxu2 %v14203_v49  ;;  %v14555_v36 = vpack.c.bf16 %v6122_v53, %v6120_v15  ;;  %v10377_v15 = vld [vmem:[%s15615_s18 + $0x40] sm:$0xf0] }
 0x8cb   : > { %6763 = vmatmul.bf16.vlgmr.msrb.gmra.mxu3 %v14378_v17  ;;  %v5792_v28 = vpop.f32.mrf.mxu0  ;;  %v9778_v42 = vor.u32 %v10377_v15, %v9777_v10 }
 0x8cc   : > { %v5793_v62 = vadd.f32 %v5792_v28, %v14183_v60  ;;  %v5881_v23 = vpop.f32.mrf.mxu1  ;;  %v14559_v14 = vpack.c.bf16 %v6095_v19, %v6093_v59 }
 0x8cd   : > { %v5935_v8 = vpop.f32.mrf.mxu2  ;;  %6849 = vmatpush.bf16.msrb.mxu0 %v9778_v42 }
 0x8ce   : > { %v5882_v4 = vadd.f32 %v5881_v23, %v5793_v62  ;;  %v6024_v11 = vpop.f32.mrf.mxu3  ;;  %6531 = vmatmul.bf16.gmra.mxu0 %v14369_v38  ;;  %v5936_v3 = vadd.f32 %v5935_v8, %v14355_v41 }
 0x8cf   : > { %6620 = vmatmul.bf16.gmra.mxu1 %v14559_v14 }
 0x8d0   : > { %v6025_v48 = vadd.f32 %v6024_v11, %v5936_v3  ;;  %v6124_v58 = vmax.f32 %v5882_v4, 0.0  ;;  %v10431_v11 = vld [vmem:[%s15617_s20 + $0x70] sm:$0xff] }
 0x8d2   : > { %v6097_v61 = vmax.f32 %v6025_v48, 0.0 }
 0x8d3   : > { %v5794_v56 = vpop.f32.mrf.mxu0 }
 0x8d4   : > { %v5795_v44 = vadd.f32 %v5794_v56, %v14183_v60  ;;  %v5883_v63 = vpop.f32.mrf.mxu1 }
 0x8d5   : > { %v5937_v34 = vpop.f32.mrf.mxu2 }
 0x8d6   : > { %v5884_v45 = vadd.f32 %v5883_v63, %v5795_v44  ;;  %v5938_v9 = vadd.f32 %v5937_v34, %v14355_v41  ;;  %v6026_v40 = vpop.f32.mrf.mxu3 }
 0x8d8   : > { %v6126_v13 = vmax.f32 %v5884_v45, 0.0  ;;  %v6027_v5 = vadd.f32 %v6026_v40, %v5938_v9  ;;  %v9921_v9 = vld [vmem:[%s15615_s18 + $0x158] sm:$0xf]  ;;  %v10413_v40 = vld [vmem:[%s15615_s18 + $0x160] sm:$0xf0] }
 0x8da   : > { %v6099_v60 = vmax.f32 %v6027_v5, 0.0  ;;  %6679 = vmatmul.bf16.gmra.mxu2 %v14222_v51  ;;  %v14581_v29 = vpack.c.bf16 %v6126_v13, %v6124_v58  ;;  %v9922_v58 = vor.u32 %v10413_v40, %v9921_v9 }
 0x8db   : > { %6768 = vmatmul.bf16.gmra.mxu3 %v14397_v20  ;;  %v6497_v18 = vpop.f32.mrf.mxu0 }
 0x8dc   : > { %v6498_v32 = vadd.f32 %v6497_v18, %v14578_v22  ;;  %v6586_v43 = vpop.f32.mrf.mxu1  ;;  %v14585_v46 = vpack.c.bf16 %v6099_v60, %v6097_v61  ;;  %6934 = vmatpush.bf16.msrb.mxu1 %v9922_v58 }
 0x8dd   : > { %v5940_v47 = vpop.f32.mrf.mxu2 }
 0x8de   : > { %v14587_v26 = vadd.f32 %v6586_v43, %v6498_v32  ;;  %v6029_v35 = vpop.f32.mrf.mxu3  ;;  %6536 = vmatmul.bf16.gmra.mxu0 %v14393_v24  ;;  %v5941_v25 = vadd.f32 %v5940_v47, %v14355_v41 }
 0x8df   : > { %6625 = vmatmul.bf16.gmra.mxu1 %v14585_v46 }
 0x8e0   : > { %v6030_v62 = vadd.f32 %v6029_v35, %v5941_v25 }
 0x8e2   : > { %v6101_v7 = vmax.f32 %v6030_v62, 0.0 }
 0x8e3   : > { %v6499_v53 = vpop.f32.mrf.mxu0 }
 0x8e4   : > { %v6500_v59 = vadd.f32 %v6499_v53, %v14578_v22  ;;  %v6588_v19 = vpop.f32.mrf.mxu1 }
 0x8e5   : > { %v5942_v28 = vpop.f32.mrf.mxu2 }
 0x8e6   : > { %v14599_v23 = vadd.f32 %v6588_v19, %v6500_v59  ;;  %v5943_v8 = vadd.f32 %v5942_v28, %v14355_v41  ;;  %v6031_v4 = vpop.f32.mrf.mxu3 }
 0x8e8   : > { %v6032_v33 = vadd.f32 %v6031_v4, %v5943_v8 }
 0x8ea   : > { %v6103_v16 = vmax.f32 %v6032_v33, 0.0  ;;  %6684 = vmatmul.bf16.gmra.mxu2 %v14240_v0 }
 0x8eb   : > { %6773 = vmatmul.bf16.gmra.mxu3 %v14421_v54  ;;  %v6502_v3 = vpop.f32.mrf.mxu0 }
 0x8ec   : > { %v6503_v56 = vadd.f32 %v6502_v3, %v14578_v22  ;;  %v6591_v44 = vpop.f32.mrf.mxu1  ;;  %v14607_v63 = vpack.c.bf16 %v6103_v16, %v6101_v7  ;;  %v9765_v7 = vld [vmem:[%s15615_s18 + $0x20] sm:$0xf]  ;;  %v10374_v16 = vld [vmem:[%s15615_s18 + $0x28] sm:$0xf0] }
 0x8ed   : > { %v5945_v34 = vpop.f32.mrf.mxu2 }
 0x8ee   : > { %v14609_v48 = vadd.f32 %v6591_v44, %v6503_v56  ;;  %v6034_v45 = vpop.f32.mrf.mxu3  ;;  %6541 = vmatmul.bf16.gmra.mxu0 %v14411_v57  ;;  %v5946_v13 = vadd.f32 %v5945_v34, %v14355_v41  ;;  %v9766_v56 = vor.u32 %v10374_v16, %v9765_v7 }
 0x8ef   : > { %6630 = vmatmul.bf16.gmra.mxu1 %v14607_v63 }
 0x8f0   : > { %v6035_v32 = vadd.f32 %v6034_v45, %v5946_v13  ;;  %6850 = vmatpush.bf16.msrb.mxu0 %v9766_v56 }
 0x8f2   : > { %v6105_v15 = vmax.f32 %v6035_v32, 0.0 }
 0x8f3   : > { %v6504_v5 = vpop.f32.mrf.mxu0 }
 0x8f4   : > { %v6505_v61 = vadd.f32 %v6504_v5, %v14578_v22  ;;  %v6593_v60 = vpop.f32.mrf.mxu1 }
 0x8f5   : > { %v5947_v18 = vpop.f32.mrf.mxu2 }
 0x8f6   : > { %v14621_v43 = vadd.f32 %v6593_v60, %v6505_v61  ;;  %v5948_v47 = vadd.f32 %v5947_v18, %v14355_v41  ;;  %v6036_v35 = vpop.f32.mrf.mxu3 }
 0x8f8   : > { %v6037_v10 = vadd.f32 %v6036_v35, %v5948_v47 }
 0x8fa   : > { %v6107_v53 = vmax.f32 %v6037_v10, 0.0  ;;  %6689 = vmatmul.bf16.gmra.mxu2 %v14258_v21 }
 0x8fb   : > { %6778 = vmatmul.bf16.gmra.mxu3 %v14439_v30  ;;  %v6507_v42 = vpop.f32.mrf.mxu0 }
 0x8fc   : > { %v6508_v59 = vadd.f32 %v6507_v42, %v14578_v22  ;;  %v6596_v19 = vpop.f32.mrf.mxu1  ;;  %v14629_v28 = vpack.c.bf16 %v6107_v53, %v6105_v15 }
 0x8fd   : > { %v5950_v62 = vpop.f32.mrf.mxu2 }
 0x8fe   : > { %v14631_v8 = vadd.f32 %v6596_v19, %v6508_v59  ;;  %v6039_v4 = vpop.f32.mrf.mxu3  ;;  %6546 = vmatmul.bf16.gmra.mxu0 %v14435_v12  ;;  %v5951_v33 = vadd.f32 %v5950_v62, %v14355_v41  ;;  %v9909_v59 = vld [vmem:[%s15615_s18 + $0x140] sm:$0xf]  ;;  %v10410_v19 = vld [vmem:[%s15615_s18 + $0x148] sm:$0xf0] }
 0x8ff   : > { %6635 = vmatmul.bf16.gmra.mxu1 %v14629_v28  ;;  %v9910_v62 = vor.u32 %v10410_v19, %v9909_v59  ;;  %v9753_v19 = vld [vmem:[%s15615_s18 + $0x8] sm:$0xf] }
 0x900   : > { %v6040_v9 = vadd.f32 %v6039_v4, %v5951_v33 }
 0x901   : > { %6935 = vmatpush.bf16.msrb.mxu1 %v9910_v62  ;;  %v10371_v62 = vld [vmem:[%s15615_s18 + $0x10] sm:$0xf0] }
 0x902   : > { %v6109_v60 = vmax.f32 %v6040_v9, 0.0 }
 0x903   : > { %v6509_v3 = vpop.f32.mrf.mxu0 }
 0x904   : > { %v6510_v44 = vadd.f32 %v6509_v3, %v14578_v22  ;;  %v6598_v34 = vpop.f32.mrf.mxu1 }
 0x905   : > { %v5952_v45 = vpop.f32.mrf.mxu2 }
 0x906   : > { %v14643_v40 = vadd.f32 %v6598_v34, %v6510_v44  ;;  %v5953_v58 = vadd.f32 %v5952_v45, %v14355_v41  ;;  %v6041_v13 = vpop.f32.mrf.mxu3 }
 0x908   : > { %v6042_v61 = vadd.f32 %v6041_v13, %v5953_v58 }
 0x90a   : > { %v6111_v18 = vmax.f32 %v6042_v61, 0.0  ;;  %6694 = vmatmul.bf16.gmra.mxu2 %v14282_v31 }
 0x90b   : > { %6783 = vmatmul.bf16.gmra.mxu3 %v14475_v27  ;;  %v6512_v32 = vpop.f32.mrf.mxu0 }
 0x90c   : > { %v6513_v47 = vadd.f32 %v6512_v32, %v14578_v22  ;;  %v6601_v35 = vpop.f32.mrf.mxu1  ;;  %v14651_v10 = vpack.c.bf16 %v6111_v18, %v6109_v60 }
 0x90d   : > { %v5955_v15 = vpop.f32.mrf.mxu2 }
 0x90e   : > { %v14653_v53 = vadd.f32 %v6601_v35, %v6513_v47  ;;  %v6044_v42 = vpop.f32.mrf.mxu3  ;;  %6551 = vmatmul.bf16.gmra.mxu0 %v14471_v55  ;;  %v5956_v4 = vadd.f32 %v5955_v15, %v14355_v41 }
 0x90f   : > { %6640 = vmatmul.bf16.gmra.mxu1 %v14651_v10 }
 0x910   : > { %v6045_v56 = vadd.f32 %v6044_v42, %v5956_v4 }
 0x912   : > { %v6113_v13 = vmax.f32 %v6045_v56, 0.0 }
 0x913   : > { %v6514_v33 = vpop.f32.mrf.mxu0 }
 0x914   : > { %v6515_v7 = vadd.f32 %v6514_v33, %v14578_v22  ;;  %v6603_v16 = vpop.f32.mrf.mxu1  ;;  %v9754_v33 = vor.u32 %v10371_v62, %v9753_v19 }
 0x915   : > { %v5957_v3 = vpop.f32.mrf.mxu2 }
 0x916   : > { %v14665_v44 = vadd.f32 %v6603_v16, %v6515_v7  ;;  %v5958_v34 = vadd.f32 %v5957_v3, %v14355_v41  ;;  %v6046_v45 = vpop.f32.mrf.mxu3  ;;  %6851 = vmatpush.bf16.msrb.mxu0 %v9754_v33 }
 0x918   : > { %v6047_v58 = vadd.f32 %v6046_v45, %v5958_v34 }
 0x91a   : > { %v6115_v61 = vmax.f32 %v6047_v58, 0.0  ;;  %6699 = vmatmul.bf16.gmra.mxu2 %v14318_v1 }
 0x91b   : > { %6788 = vmatmul.bf16.gmra.mxu3 %v14529_v6  ;;  %v6517_v60 = vpop.f32.mrf.mxu0 }
 0x91c   : > { %v6518_v18 = vadd.f32 %v6517_v60, %v14578_v22  ;;  %v6606_v32 = vpop.f32.mrf.mxu1  ;;  %v14673_v47 = vpack.c.bf16 %v6115_v61, %v6113_v13  ;;  %v9897_v60 = vld [vmem:[%s15615_s18 + $0x128] sm:$0xf]  ;;  %v10395_v13 = vld [vmem:[%s15615_s18 + $0xd0] sm:$0xf0] }
 0x91d   : > { %v5960_v35 = vpop.f32.mrf.mxu2 }
 0x91e   : > { %v14675_v15 = vadd.f32 %v6606_v32, %v6518_v18  ;;  %v6049_v42 = vpop.f32.mrf.mxu3  ;;  %6556 = vmatmul.bf16.gmra.mxu0 %v14525_v39  ;;  %v5961_v59 = vadd.f32 %v5960_v35, %v14355_v41  ;;  %v10407_v18 = vld [vmem:[%s15615_s18 + $0x130] sm:$0xf0] }
 0x91f   : > { %6645 = vmatmul.bf16.gmra.mxu1 %v14673_v47 }
 0x920   : > { %v6050_v56 = vadd.f32 %v6049_v42, %v5961_v59  ;;  %v9898_v42 = vor.u32 %v10407_v18, %v9897_v60 }
 0x922   : > { %v6117_v32 = vmax.f32 %v6050_v56, 0.0  ;;  %6936 = vmatpush.bf16.msrb.mxu1 %v9898_v42 }
 0x923   : > { %v6519_v4 = vpop.f32.mrf.mxu0 }
 0x924   : > { %v6520_v7 = vadd.f32 %v6519_v4, %v14578_v22  ;;  %v6608_v16 = vpop.f32.mrf.mxu1 }
 0x925   : > { %v5962_v3 = vpop.f32.mrf.mxu2 }
 0x926   : > { %v14687_v34 = vadd.f32 %v6608_v16, %v6520_v7  ;;  %v5963_v45 = vadd.f32 %v5962_v3, %v14355_v41  ;;  %v6051_v58 = vpop.f32.mrf.mxu3  ;;  %v9885_v7 = vld [vmem:[%s15615_s18 + $0x110] sm:$0xf]  ;;  %v10404_v16 = vld [vmem:[%s15615_s18 + $0x118] sm:$0xf0] }
 0x928   : > { %v6052_v61 = vadd.f32 %v6051_v58, %v5963_v45  ;;  %v9886_v45 = vor.u32 %v10404_v16, %v9885_v7  ;;  %v9873_v58 = vld [vmem:[%s15615_s18 + $0xf8] sm:$0xf] }
 0x92a   : > { %v6119_v35 = vmax.f32 %v6052_v61, 0.0  ;;  %6704 = vmatmul.bf16.gmra.mxu2 %v14348_v2  ;;  %6937 = vmatpush.bf16.msrb.mxu1 %v9886_v45  ;;  %v10401_v61 = vld [vmem:[%s15615_s18 + $0x100] sm:$0xf0] }
 0x92b   : > { %6793 = vmatmul.bf16.gmra.mxu3 %v14541_v52  ;;  %v6522_v59 = vpop.f32.mrf.mxu0  ;;  %v9874_v18 = vor.u32 %v10401_v61, %v9873_v58 }
 0x92c   : > { %v6523_v19 = vadd.f32 %v6522_v59, %v14578_v22  ;;  %v6611_v62 = vpop.f32.mrf.mxu1  ;;  %v14701_v4 = vpack.c.bf16 %v6119_v35, %v6117_v32 }
 0x92d   : > { %v5965_v33 = vpop.f32.mrf.mxu2 }
 0x92e   : > { %v14709_v3 = vadd.f32 %v6611_v62, %v6523_v19  ;;  %v6054_v56 = vpop.f32.mrf.mxu3  ;;  %6561 = vmatmul.bf16.gmra.mxu0 %v14537_v50  ;;  %v5966_v60 = vadd.f32 %v5965_v33, %v14355_v41  ;;  %6938 = vmatpush.bf16.msrb.mxu1 %v9874_v18  ;;  %v9861_v19 = vld [vmem:[%s15615_s18 + $0xe0] sm:$0xf]  ;;  %v10398_v62 = vld [vmem:[%s15615_s18 + $0xe8] sm:$0xf0] }
 0x92f   : > { %6650 = vmatmul.bf16.gmra.mxu1 %v14701_v4  ;;  %v9862_v58 = vor.u32 %v10398_v62, %v9861_v19 }
 0x930   : > { %v6055_v7 = vadd.f32 %v6054_v56, %v5966_v60 }
 0x932   : > { %6939 = vmatpush.bf16.msrb.mxu1 %v9862_v58  ;;  %v6121_v56 = vmax.f32 %v6055_v7, 0.0 }
 0x933   : > { %v6524_v32 = vpop.f32.mrf.mxu0 }
 0x934   : > { %v6525_v35 = vadd.f32 %v6524_v32, %v14578_v22  ;;  %v6613_v42 = vpop.f32.mrf.mxu1  ;;  %v9849_v32 = vld [vmem:[%s15615_s18 + $0xc8] sm:$0xf] }
 0x935   : > { %v5967_v59 = vpop.f32.mrf.mxu2 }
 0x936   : > { %v14727_v16 = vadd.f32 %v6613_v42, %v6525_v35  ;;  %v5968_v33 = vadd.f32 %v5967_v59, %v14355_v41  ;;  %v6056_v45 = vpop.f32.mrf.mxu3  ;;  %v10440_v35 = vld [vmem:[%s15618_s21 + $0x38] sm:$0xff]  ;;  %v9850_v59 = vor.u32 %v10395_v13, %v9849_v32 }
 0x937   : > { %v10424_v42 = vld [vmem:[%s15617_s20 + $0x38] sm:$0xff]  ;;  %7150 = vmatpush.bf16.msra.mxu2 %v10440_v35 }
 0x938   : > { %v6057_v18 = vadd.f32 %v6056_v45, %v5968_v33  ;;  %7335 = vmatpush.bf16.msra.mxu3 %v10424_v42  ;;  %6940 = vmatpush.bf16.msrb.mxu1 %v9850_v59  ;;  %v10432_v13 = vld [vmem:[%s15617_s20 + $0x78] sm:$0xff] }
 0x939   : > { %7424 = vmatpush.bf16.msra.mxu0 %v10432_v13 }
 0x93a   : > { %v6123_v60 = vmax.f32 %v6057_v18, 0.0  ;;  %6709 = vmatmul.bf16.gmra.mxu2 %v14369_v38 }
 0x93b   : > { %6798 = vmatmul.bf16.gmra.mxu3 %v14559_v14  ;;  %v6527_v19 = vpop.f32.mrf.mxu0 }
 0x93c   : > { %v6528_v62 = vadd.f32 %v6527_v19, %v14578_v22  ;;  %v6616_v33 = vpop.f32.mrf.mxu1  ;;  %v14747_v45 = vpack.c.bf16 %v6123_v60, %v6121_v56 }
 0x93d   : > { %v5970_v7 = vpop.f32.mrf.mxu2  ;;  %7425 = vmatpush.bf16.msra.mxu0 %v10431_v11 }
 0x93e   : > { %v14749_v58 = vadd.f32 %v6616_v33, %v6528_v62  ;;  %v6059_v18 = vpop.f32.mrf.mxu3  ;;  %6566 = vmatmul.bf16.gmra.mxu0 %v14555_v36  ;;  %v5971_v32 = vadd.f32 %v5970_v7, %v14355_v41  ;;  %v14765_v7 = vperm.slane %v14574_v37, 1 }
 0x93f   : > { %6655 = vmatmul.bf16.gmra.mxu1 %v14747_v45 }
 0x940   : > { %v6060_v59 = vadd.f32 %v6059_v18, %v5971_v32 }
 0x942   : > { %v6125_v5 = vmax.f32 %v6060_v59, 0.0 }
 0x943   : > { %v6529_v56 = vpop.f32.mrf.mxu0 }
 0x944   : > { %v6530_v60 = vadd.f32 %v6529_v56, %v14578_v22  ;;  %v6618_v35 = vpop.f32.mrf.mxu1 }
 0x945   : > { %v5972_v42 = vpop.f32.mrf.mxu2 }
 0x946   : > { %v14758_v19 = vadd.f32 %v6618_v35, %v6530_v60  ;;  %v5973_v62 = vadd.f32 %v5972_v42, %v14355_v41  ;;  %v6061_v33 = vpop.f32.mrf.mxu3 }
 0x948   : > { %v6062_v9 = vadd.f32 %v6061_v33, %v5973_v62 }
 0x94a   : > { %v6127_v25 = vmax.f32 %v6062_v9, 0.0  ;;  %6714 = vmatmul.bf16.gmra.mxu2 %v14393_v24 }
 0x94b   : > { %6803 = vmatmul.bf16.gmra.mxu3 %v14585_v46  ;;  %v6532_v13 = vpop.f32.mrf.mxu0 }
 0x94c   : > { %v6533_v18 = vadd.f32 %v6532_v13, %v14578_v22  ;;  %v6621_v32 = vpop.f32.mrf.mxu1  ;;  %v14769_v56 = vpack.c.bf16 %v6127_v25, %v6125_v5 }
 0x94d   : > { %v6675_v41 = vpop.f32.mrf.mxu2 }
 0x94e   : > { %v14771_v60 = vadd.f32 %v6621_v32, %v6533_v18  ;;  %v6676_v35 = vadd.f32 %v6675_v41, %v14765_v7  ;;  %v6764_v42 = vpop.f32.mrf.mxu3  ;;  %6571 = vmatmul.bf16.gmra.mxu0 %v14581_v29 }
 0x94f   : > { %6660 = vmatmul.bf16.gmra.mxu1 %v14769_v56 }
 0x950   : > { %v14776_v9 = vadd.f32 %v6764_v42, %v6676_v35  ;;  %v10439_v35 = vld [vmem:[%s15618_s21 + $0x30] sm:$0xff] }
 0x951   : > { %v10423_v42 = vld [vmem:[%s15617_s20 + $0x30] sm:$0xff]  ;;  %7151 = vmatpush.bf16.msra.mxu2 %v10439_v35 }
 0x952   : > { %15720 = vst [vmem:[#allocation3_spill] sm:$0xff] %v14776_v9  ;;  %7336 = vmatpush.bf16.msra.mxu3 %v10423_v42 }
 0x953   : > { %v6534_v59 = vpop.f32.mrf.mxu0 }
 0x954   : > { %v6535_v62 = vadd.f32 %v6534_v59, %v14578_v22  ;;  %v6623_v33 = vpop.f32.mrf.mxu1 }
 0x955   : > { %v6677_v13 = vpop.f32.mrf.mxu2 }
 0x956   : > { %v14779_v61 = vadd.f32 %v6623_v33, %v6535_v62  ;;  %v6678_v25 = vadd.f32 %v6677_v13, %v14765_v7  ;;  %v6766_v5 = vpop.f32.mrf.mxu3 }
 0x958   : > { %v14784_v32 = vadd.f32 %v6766_v5, %v6678_v25 }
 0x95a   : > { %15721 = vst [vmem:[#allocation4_spill] sm:$0xff] %v14784_v32  ;;  %6719 = vmatmul.bf16.gmra.mxu2 %v14411_v57 }
 0x95b   : > { %6808 = vmatmul.bf16.gmra.mxu3 %v14607_v63  ;;  %v6537_v59 = vpop.f32.mrf.mxu0 }
 0x95c   : > { %v6538_v62 = vadd.f32 %v6537_v59, %v14578_v22  ;;  %v6626_v33 = vpop.f32.mrf.mxu1 }
 0x95d   : > { %v6680_v13 = vpop.f32.mrf.mxu2 }
 0x95e   : > { %v14797_v25 = vadd.f32 %v6626_v33, %v6538_v62  ;;  %v6681_v5 = vadd.f32 %v6680_v13, %v14765_v7  ;;  %v6769_v41 = vpop.f32.mrf.mxu3  ;;  %6852 = vmatmul.bf16.vlgmr.msrb.gmra.mxu0 %v14203_v49 }
 0x95f   : > { %6941 = vmatmul.bf16.vlgmr.msrb.gmra.mxu1 %v14378_v17 }
 0x960   : > { %v14802_v18 = vadd.f32 %v6769_v41, %v6681_v5 }
 0x962   : > { %15722 = vst [vmem:[#allocation5_spill] sm:$0xff] %v14802_v18 }
 0x963   : > { %v6539_v59 = vpop.f32.mrf.mxu0 }
 0x964   : > { %v6540_v35 = vadd.f32 %v6539_v59, %v14578_v22  ;;  %v6628_v42 = vpop.f32.mrf.mxu1 }
 0x965   : > { %v6682_v62 = vpop.f32.mrf.mxu2 }
 0x966   : > { %v14808_v33 = vadd.f32 %v6628_v42, %v6540_v35  ;;  %v6683_v13 = vadd.f32 %v6682_v62, %v14765_v7  ;;  %v6771_v9 = vpop.f32.mrf.mxu3 }
 0x968   : > { %v14813_v17 = vadd.f32 %v6771_v9, %v6683_v13 }
 0x96a   : > { %15723 = vst [vmem:[#allocation6_spill] sm:$0xff] %v14813_v17  ;;  %6724 = vmatmul.bf16.gmra.mxu2 %v14435_v12 }
 0x96b   : > { %6813 = vmatmul.bf16.gmra.mxu3 %v14629_v28  ;;  %v6542_v11 = vpop.f32.mrf.mxu0 }
 0x96c   : > { %v6543_v5 = vadd.f32 %v6542_v11, %v14578_v22  ;;  %v6631_v59 = vpop.f32.mrf.mxu1 }
 0x96d   : > { %v6685_v35 = vpop.f32.mrf.mxu2 }
 0x96e   : > { %v14820_v42 = vadd.f32 %v6631_v59, %v6543_v5  ;;  %v6686_v62 = vadd.f32 %v6685_v35, %v14765_v7  ;;  %v6774_v32 = vpop.f32.mrf.mxu3  ;;  %6857 = vmatmul.bf16.gmra.mxu0 %v14222_v51  ;;  %v10430_v59 = vld [vmem:[%s15617_s20 + $0x68] sm:$0xff] }
 0x96f   : > { %6946 = vmatmul.bf16.gmra.mxu1 %v14397_v20  ;;  %v10438_v20 = vld [vmem:[%s15618_s21 + $0x28] sm:$0xff]  ;;  %7426 = vmatpush.bf16.msra.mxu0 %v10430_v59 }
 0x970   : > { %v14825_v9 = vadd.f32 %v6774_v32, %v6686_v62  ;;  %v10422_v32 = vld [vmem:[%s15617_s20 + $0x28] sm:$0xff]  ;;  %7152 = vmatpush.bf16.msra.mxu2 %v10438_v20 }
 0x971   : > { %7337 = vmatpush.bf16.msra.mxu3 %v10422_v32 }
 0x972   : > { %15724 = vst [vmem:[#allocation8_spill] sm:$0xff] %v14825_v9 }
 0x973   : > { %v6544_v13 = vpop.f32.mrf.mxu0 }
 0x974   : > { %v6545_v41 = vadd.f32 %v6544_v13, %v14578_v22  ;;  %v6633_v49 = vpop.f32.mrf.mxu1 }
 0x975   : > { %v6687_v18 = vpop.f32.mrf.mxu2 }
 0x976   : > { %v14828_v17 = vadd.f32 %v6633_v49, %v6545_v41  ;;  %v6688_v11 = vadd.f32 %v6687_v18, %v14765_v7  ;;  %v6776_v5 = vpop.f32.mrf.mxu3 }
 0x978   : > { %v14833_v35 = vadd.f32 %v6776_v5, %v6688_v11 }
 0x97a   : > { %15725 = vst [vmem:[#allocation7_spill] sm:$0xff] %v14833_v35  ;;  %6729 = vmatmul.bf16.gmra.mxu2 %v14471_v55 }
 0x97b   : > { %6818 = vmatmul.bf16.gmra.mxu3 %v14651_v10  ;;  %v6547_v18 = vpop.f32.mrf.mxu0 }
 0x97c   : > { %v6548_v49 = vadd.f32 %v6547_v18, %v14578_v22  ;;  %v6636_v41 = vpop.f32.mrf.mxu1 }
 0x97d   : > { %v6690_v62 = vpop.f32.mrf.mxu2 }
 0x97e   : > { %v14846_v13 = vadd.f32 %v6636_v41, %v6548_v49  ;;  %v6691_v11 = vadd.f32 %v6690_v62, %v14765_v7  ;;  %v6779_v5 = vpop.f32.mrf.mxu3  ;;  %6862 = vmatmul.bf16.gmra.mxu0 %v14240_v0 }
 0x97f   : > { %6951 = vmatmul.bf16.gmra.mxu1 %v14421_v54 }
 0x980   : > { %v14851_v51 = vadd.f32 %v6779_v5, %v6691_v11 }
 0x982   : > { %15726 = vst [vmem:[#allocation9_spill] sm:$0xff] %v14851_v51 }
 0x983   : > { %v6549_v18 = vpop.f32.mrf.mxu0 }
 0x984   : > { %v6550_v20 = vadd.f32 %v6549_v18, %v14578_v22  ;;  %v6638_v32 = vpop.f32.mrf.mxu1 }
 0x985   : > { %v6692_v49 = vpop.f32.mrf.mxu2 }
 0x986   : > { %v14857_v41 = vadd.f32 %v6638_v32, %v6550_v20  ;;  %v6693_v62 = vadd.f32 %v6692_v49, %v14765_v7  ;;  %v6781_v9 = vpop.f32.mrf.mxu3 }
 0x988   : > { %v14862_v54 = vadd.f32 %v6781_v9, %v6693_v62 }
 0x98a   : > { %15727 = vst [vmem:[#allocation10_spill] sm:$0xff] %v14862_v54  ;;  %6734 = vmatmul.bf16.gmra.mxu2 %v14525_v39 }
 0x98b   : > { %6823 = vmatmul.bf16.gmra.mxu3 %v14673_v47  ;;  %v6552_v59 = vpop.f32.mrf.mxu0 }
 0x98c   : > { %v6553_v5 = vadd.f32 %v6552_v59, %v14578_v22  ;;  %v6641_v18 = vpop.f32.mrf.mxu1 }
 0x98d   : > { %v6695_v20 = vpop.f32.mrf.mxu2 }
 0x98e   : > { %v14869_v32 = vadd.f32 %v6641_v18, %v6553_v5  ;;  %v6696_v49 = vadd.f32 %v6695_v20, %v14765_v7  ;;  %v6784_v35 = vpop.f32.mrf.mxu3  ;;  %6867 = vmatmul.bf16.gmra.mxu0 %v14258_v21  ;;  %v10437_v18 = vld [vmem:[%s15618_s21 + $0x20] sm:$0xff] }
 0x98f   : > { %6956 = vmatmul.bf16.gmra.mxu1 %v14439_v30  ;;  %v10421_v21 = vld [vmem:[%s15617_s20 + $0x20] sm:$0xff]  ;;  %7153 = vmatpush.bf16.msra.mxu2 %v10437_v18  ;;  %v10419_v30 = vld [vmem:[%s15617_s20 + $0x10] sm:$0xff] }
 0x990   : > { %v14874_v9 = vadd.f32 %v6784_v35, %v6696_v49  ;;  %7338 = vmatpush.bf16.msra.mxu3 %v10421_v21 }
 0x992   : > { %15728 = vst [vmem:[#allocation11_spill] sm:$0xff] %v14874_v9 }
 0x993   : > { %v6554_v62 = vpop.f32.mrf.mxu0 }
 0x994   : > { %v6555_v11 = vadd.f32 %v6554_v62, %v14578_v22  ;;  %v6643_v0 = vpop.f32.mrf.mxu1 }
 0x995   : > { %v6697_v51 = vpop.f32.mrf.mxu2 }
 0x996   : > { %v14877_v54 = vadd.f32 %v6643_v0, %v6555_v11  ;;  %v6698_v59 = vadd.f32 %v6697_v51, %v14765_v7  ;;  %v6786_v5 = vpop.f32.mrf.mxu3  ;;  %v10436_v51 = vld [vmem:[%s15618_s21 + $0x18] sm:$0xff]  ;;  %v10435_v0 = vld [vmem:[%s15618_s21 + $0x10] sm:$0xff] }
 0x997   : > { %v10420_v11 = vld [vmem:[%s15617_s20 + $0x18] sm:$0xff]  ;;  %7154 = vmatpush.bf16.msra.mxu2 %v10436_v51 }
 0x998   : > { %v14888_v35 = vadd.f32 %v6786_v5, %v6698_v59  ;;  %7339 = vmatpush.bf16.msra.mxu3 %v10420_v11  ;;  %v10429_v11 = vld [vmem:[%s15617_s20 + $0x60] sm:$0xff] }
 0x999   : > { %7427 = vmatpush.bf16.msra.mxu0 %v10429_v11  ;;  %v10417_v11 = vld [vmem:[%s15617_s20] sm:$0xff] }
 0x99a   : > { %15729 = vst [vmem:[#allocation13_spill] sm:$0xff] %v14888_v35  ;;  %6739 = vmatmul.bf16.gmra.mxu2 %v14537_v50 }
 0x99b   : > { %6828 = vmatmul.bf16.gmra.mxu3 %v14701_v4  ;;  %v6557_v20 = vpop.f32.mrf.mxu0  ;;  %7155 = vmatpush.bf16.msra.mxu2 %v10435_v0 }
 0x99c   : > { %v6558_v49 = vadd.f32 %v6557_v20, %v14578_v22  ;;  %v6646_v62 = vpop.f32.mrf.mxu1  ;;  %7340 = vmatpush.bf16.msra.mxu3 %v10419_v30  ;;  %v10418_v20 = vld [vmem:[%s15617_s20 + $0x8] sm:$0xff] }
 0x99d   : > { %v6700_v59 = vpop.f32.mrf.mxu2 }
 0x99e   : > { %v14901_v5 = vadd.f32 %v6646_v62, %v6558_v49  ;;  %v6701_v18 = vadd.f32 %v6700_v59, %v14765_v7  ;;  %v6789_v21 = vpop.f32.mrf.mxu3  ;;  %6872 = vmatmul.bf16.gmra.mxu0 %v14282_v31  ;;  %v10434_v31 = vld [vmem:[%s15618_s21 + $0x8] sm:$0xff] }
 0x99f   : > { %6961 = vmatmul.bf16.gmra.mxu1 %v14475_v27  ;;  %7156 = vmatpush.bf16.msra.mxu2 %v10434_v31 }
 0x9a0   : > { %v14912_v51 = vadd.f32 %v6789_v21, %v6701_v18  ;;  %7341 = vmatpush.bf16.msra.mxu3 %v10418_v20  ;;  %v10433_v21 = vld [vmem:[%s15618_s21] sm:$0xff] }
 0x9a2   : > { %15730 = vst [vmem:[#allocation12_spill] sm:$0xff] %v14912_v51 }
 0x9a3   : > { %v6559_v49 = vpop.f32.mrf.mxu0  ;;  %7157 = vmatpush.bf16.msra.mxu2 %v10433_v21 }
 0x9a4   : > { %v6560_v27 = vadd.f32 %v6559_v49, %v14578_v22  ;;  %v6648_v62 = vpop.f32.mrf.mxu1  ;;  %7342 = vmatpush.bf16.msra.mxu3 %v10417_v11 }
 0x9a5   : > { %v6702_v59 = vpop.f32.mrf.mxu2 }
 0x9a6   : > { %v14924_v18 = vadd.f32 %v6648_v62, %v6560_v27  ;;  %v6703_v30 = vadd.f32 %v6702_v59, %v14765_v7  ;;  %v6791_v0 = vpop.f32.mrf.mxu3 }
 0x9a8   : > { %v14935_v9 = vadd.f32 %v6791_v0, %v6703_v30 }
 0x9aa   : > { %15731 = vst [vmem:[#allocation14_spill] sm:$0xff] %v14935_v9  ;;  %6744 = vmatmul.bf16.gmra.mxu2 %v14555_v36 }
 0x9ab   : > { %6833 = vmatmul.bf16.gmra.mxu3 %v14747_v45  ;;  %v6562_v20 = vpop.f32.mrf.mxu0 }
 0x9ac   : > { %v6563_v27 = vadd.f32 %v6562_v20, %v14578_v22  ;;  %v6651_v62 = vpop.f32.mrf.mxu1 }
 0x9ad   : > { %v6705_v59 = vpop.f32.mrf.mxu2 }
 0x9ae   : > { %v14942_v35 = vadd.f32 %v6651_v62, %v6563_v27  ;;  %v6706_v49 = vadd.f32 %v6705_v59, %v14765_v7  ;;  %v6794_v30 = vpop.f32.mrf.mxu3  ;;  %6877 = vmatmul.bf16.gmra.mxu0 %v14318_v1  ;;  %v10649_v1 = vmov 0  }
 0x9af   : > { %6966 = vmatmul.bf16.gmra.mxu1 %v14529_v6  ;;  %10474 = vset.pattern.permute.xlu0 %v10649_v1 }
 0x9b0   : > { %v14947_v0 = vadd.f32 %v6794_v30, %v6706_v49  ;;  %10475 = vset.pattern.permute.xlu1 %v10649_v1  ;;  %10476 = vset.pattern.permute.xlu2 %v10649_v1  ;;  %v10623_v1 = vld [vmem:[%s10892_s29] sm:$0xff] }
 0x9b2   : > { %15732 = vst [vmem:[#allocation15_spill] sm:$0xff] %v14947_v0 }
 0x9b3   : > { %v6564_v21 = vpop.f32.mrf.mxu0 }
 0x9b4   : > { %v6565_v11 = vadd.f32 %v6564_v21, %v14578_v22  ;;  %v6653_v31 = vpop.f32.mrf.mxu1 }
 0x9b5   : > { %v6707_v51 = vpop.f32.mrf.mxu2 }
 0x9b6   : > { %v14950_v9 = vadd.f32 %v6653_v31, %v6565_v11  ;;  %v6708_v20 = vadd.f32 %v6707_v51, %v14765_v7  ;;  %v6796_v27 = vpop.f32.mrf.mxu3 }
 0x9b8   : > { %v14955_v59 = vadd.f32 %v6796_v27, %v6708_v20  ;;  %v10428_v27 = vld [vmem:[%s15617_s20 + $0x58] sm:$0xff] }
 0x9b9   : > { %7428 = vmatpush.bf16.msra.mxu0 %v10428_v27  ;;  %v15734_v27 = vpack.c.bf16 %v14599_v23, %v14587_v26 }
 0x9ba   : > { %15733 = vst [vmem:[#allocation16_spill] sm:$0xff] %v14955_v59  ;;  %6749 = vmatmul.bf16.gmra.mxu2 %v14581_v29 }
 0x9bb   : > { %6838 = vmatmul.bf16.gmra.mxu3 %v14769_v56  ;;  %v6567_v6 = vpop.f32.mrf.mxu0 }
 0x9bc   : > { %v6568_v49 = vadd.f32 %v6567_v6, %v14578_v22  ;;  %v6656_v31 = vpop.f32.mrf.mxu1 }
 0x9bd   : > { %v6710_v30 = vpop.f32.mrf.mxu2 }
 0x9be   : > { %v14962_v21 = vadd.f32 %v6656_v31, %v6568_v49  ;;  %v6711_v51 = vadd.f32 %v6710_v30, %v14765_v7  ;;  %v6799_v11 = vpop.f32.mrf.mxu3  ;;  %6882 = vmatmul.bf16.gmra.mxu0 %v14348_v2 }
 0x9bf   : > { %6971 = vmatmul.bf16.gmra.mxu1 %v14541_v52 }
 0x9c0   : > { %v14967_v20 = vadd.f32 %v6799_v11, %v6711_v51 }
 0x9c3   : > { %v6569_v6 = vpop.f32.mrf.mxu0 }
 0x9c4   : > { %v6570_v49 = vadd.f32 %v6569_v6, %v14578_v22  ;;  %v6658_v31 = vpop.f32.mrf.mxu1 }
 0x9c5   : > { %v6712_v30 = vpop.f32.mrf.mxu2 }
 0x9c6   : > { %v14973_v2 = vadd.f32 %v6658_v31, %v6570_v49  ;;  %v6713_v52 = vadd.f32 %v6712_v30, %v14765_v7  ;;  %v6801_v51 = vpop.f32.mrf.mxu3 }
 0x9c8   : > { %v14978_v62 = vadd.f32 %v6801_v51, %v6713_v52  ;;  %v10448_v51 = vld [vmem:[%s15620_s23 + $0x38] sm:$0xff] }
 0x9c9   : > { %7665 = vmatpush.bf16.msra.mxu1 %v10448_v51 }
 0x9ca   : > { %7158 = vmatmul.bf16.vlgmr.msra.gmra.mxu2 %v10623_v1 }
 0x9cb   : > { %7343 = vmatmul.bf16.vlgmr.msra.gmra.mxu3 %v15734_v27  ;;  %v6572_v6 = vpop.f32.mrf.mxu0 }
 0x9cc   : > { %v6573_v49 = vadd.f32 %v6572_v6, %v14578_v22  ;;  %v6661_v31 = vpop.f32.mrf.mxu1 }
 0x9cd   : > { %v6715_v30 = vpop.f32.mrf.mxu2 }
 0x9ce   : > { %v14987_v59 = vadd.f32 %v6661_v31, %v6573_v49  ;;  %v6716_v11 = vadd.f32 %v6715_v30, %v14765_v7  ;;  %v6804_v52 = vpop.f32.mrf.mxu3  ;;  %6887 = vmatmul.bf16.gmra.mxu0 %v14369_v38 }
 0x9cf   : > { %6976 = vmatmul.bf16.gmra.mxu1 %v14559_v14  ;;  %v15006_v14 = vperm.slane %v14574_v37, 2 }
 0x9d0   : > { %v14995_v26 = vadd.f32 %v6804_v52, %v6716_v11  ;;  %v10624_v52 = vld [vmem:[%s10892_s29 + $0x8] sm:$0xff] }
 0x9d3   : > { %v6574_v23 = vpop.f32.mrf.mxu0 }
 0x9d4   : > { %v6575_v1 = vadd.f32 %v6574_v23, %v14578_v22  ;;  %v6663_v27 = vpop.f32.mrf.mxu1  ;;  %v15735_v22 = vpack.c.bf16 %v14621_v43, %v14609_v48  ;;  %v10427_v48 = vld [vmem:[%s15617_s20 + $0x50] sm:$0xff] }
 0x9d5   : > { %v6717_v6 = vpop.f32.mrf.mxu2  ;;  %7429 = vmatpush.bf16.msra.mxu0 %v10427_v48 }
 0x9d6   : > { %v14998_v49 = vadd.f32 %v6663_v27, %v6575_v1  ;;  %v6718_v31 = vadd.f32 %v6717_v6, %v14765_v7  ;;  %v6806_v38 = vpop.f32.mrf.mxu3 }
 0x9d8   : > { %v7052_v30 = vpack.c.bf16 %v14998_v49, %v14987_v59  ;;  %v15003_v0 = vadd.f32 %v6806_v38, %v6718_v31 }
 0x9da   : > { %v7039_v11 = vpack.c.bf16 %v15003_v0, %v14995_v26  ;;  %7163 = vmatmul.bf16.gmra.mxu2 %v10624_v52 }
 0x9db   : > { %7348 = vmatmul.bf16.gmra.mxu3 %v15735_v22  ;;  %v6853_v51 = vpop.f32.mrf.mxu0 }
 0x9dc   : > { %v6854_v23 = vadd.f32 %v6853_v51, %v15006_v14  ;;  %v6942_v1 = vpop.f32.mrf.mxu1 }
 0x9dd   : > { %v6720_v27 = vpop.f32.mrf.mxu2 }
 0x9de   : > { %v6943_v6 = vadd.f32 %v6942_v1, %v6854_v23  ;;  %v6721_v31 = vadd.f32 %v6720_v27, %v14765_v7  ;;  %v6809_v38 = vpop.f32.mrf.mxu3  ;;  %6892 = vmatmul.bf16.gmra.mxu0 %v14393_v24 }
 0x9df   : > { %6981 = vmatmul.bf16.gmra.mxu1 %v14585_v46 }
 0x9e0   : > { %v15018_v37 = vadd.f32 %v6809_v38, %v6721_v31  ;;  %8367 = vperm.xlu0 %10474, %v6943_v6   ;;  %v10625_v6 = vld [vmem:[%s10892_s29 + $0x10] sm:$0xff]  ;;  %v15736_v31 = vpack.c.bf16 %v14643_v40, %v14631_v8 }
 0x9e3   : > { %v6855_v43 = vpop.f32.mrf.mxu0 }
 0x9e4   : > { %v6856_v52 = vadd.f32 %v6855_v43, %v15006_v14  ;;  %v6944_v22 = vpop.f32.mrf.mxu1 }
 0x9e5   : > { %v6722_v51 = vpop.f32.mrf.mxu2 }
 0x9e6   : > { %v6945_v23 = vadd.f32 %v6944_v22, %v6856_v52  ;;  %v6723_v1 = vadd.f32 %v6722_v51, %v14765_v7  ;;  %v6811_v24 = vpop.f32.mrf.mxu3 }
 0x9e8   : > { %v15025_v27 = vadd.f32 %v6811_v24, %v6723_v1  ;;  %8372 = vperm.xlu0 %10474, %v6945_v23   ;;  %v10447_v23 = vld [vmem:[%s15620_s23 + $0x30] sm:$0xff] }
 0x9e9   : > { %7666 = vmatpush.bf16.msra.mxu1 %v10447_v23 }
 0x9ea   : > { %v7041_v46 = vpack.c.bf16 %v15025_v27, %v15018_v37  ;;  %7168 = vmatmul.bf16.gmra.mxu2 %v10625_v6 }
 0x9eb   : > { %7353 = vmatmul.bf16.gmra.mxu3 %v15736_v31  ;;  %v6858_v38 = vpop.f32.mrf.mxu0 }
 0x9ec   : > { %v6859_v48 = vadd.f32 %v6858_v38, %v15006_v14  ;;  %v6947_v43 = vpop.f32.mrf.mxu1 }
 0x9ed   : > { %v6725_v52 = vpop.f32.mrf.mxu2 }
 0x9ee   : > { %v6948_v22 = vadd.f32 %v6947_v43, %v6859_v48  ;;  %v6726_v51 = vadd.f32 %v6725_v52, %v14765_v7  ;;  %v6814_v1 = vpop.f32.mrf.mxu3  ;;  %6897 = vmatmul.bf16.gmra.mxu0 %v14411_v57 }
 0x9ef   : > { %6986 = vmatmul.bf16.gmra.mxu1 %v14607_v63  ;;  %v10626_v63 = vld [vmem:[%s10892_s29 + $0x18] sm:$0xff] }
 0x9f0   : > { %v15040_v8 = vadd.f32 %v6814_v1, %v6726_v51  ;;  %8377 = vperm.xlu1 %10475, %v6948_v22   ;;  %v15737_v22 = vpack.c.bf16 %v14665_v44, %v14653_v53  ;;  %v10426_v53 = vld [vmem:[%s15617_s20 + $0x48] sm:$0xff] }
 0x9f1   : > { %7430 = vmatpush.bf16.msra.mxu0 %v10426_v53 }
 0x9f3   : > { %v6860_v40 = vpop.f32.mrf.mxu0 }
 0x9f4   : > { %v6861_v24 = vadd.f32 %v6860_v40, %v15006_v14  ;;  %v6949_v6 = vpop.f32.mrf.mxu1 }
 0x9f5   : > { %v6727_v31 = vpop.f32.mrf.mxu2 }
 0x9f6   : > { %v6950_v38 = vadd.f32 %v6949_v6, %v6861_v24  ;;  %v6728_v48 = vadd.f32 %v6727_v31, %v14765_v7  ;;  %v6816_v57 = vpop.f32.mrf.mxu3 }
 0x9f8   : > { %v15044_v43 = vadd.f32 %v6816_v57, %v6728_v48  ;;  %8382 = vperm.xlu1 %10475, %v6950_v38  }
 0x9fa   : > { %v7043_v52 = vpack.c.bf16 %v15044_v43, %v15040_v8  ;;  %7173 = vmatmul.bf16.gmra.mxu2 %v10626_v63 }
 0x9fb   : > { %7358 = vmatmul.bf16.gmra.mxu3 %v15737_v22  ;;  %v6863_v51 = vpop.f32.mrf.mxu0 }
 0x9fc   : > { %v6864_v1 = vadd.f32 %v6863_v51, %v15006_v14  ;;  %v6952_v23 = vpop.f32.mrf.mxu1 }
 0x9fd   : > { %v6730_v40 = vpop.f32.mrf.mxu2 }
 0x9fe   : > { %v6953_v24 = vadd.f32 %v6952_v23, %v6864_v1  ;;  %v6731_v6 = vadd.f32 %v6730_v40, %v14765_v7  ;;  %v6819_v31 = vpop.f32.mrf.mxu3  ;;  %6902 = vmatmul.bf16.gmra.mxu0 %v14435_v12  ;;  %v10627_v23 = vld [vmem:[%s10892_s29 + $0x20] sm:$0xff]  ;;  %v15738_v40 = vpack.c.bf16 %v14687_v34, %v14675_v15 }
 0x9ff   : > { %6991 = vmatmul.bf16.gmra.mxu1 %v14629_v28 }
 0xa00   : > { %v15056_v38 = vadd.f32 %v6819_v31, %v6731_v6  ;;  %8387 = vperm.xlu2 %10476, %v6953_v24  }
 0xa03   : > { %v6865_v44 = vpop.f32.mrf.mxu0 }
 0xa04   : > { %v6866_v48 = vadd.f32 %v6865_v44, %v15006_v14  ;;  %v6954_v57 = vpop.f32.mrf.mxu1 }
 0xa05   : > { %v6732_v63 = vpop.f32.mrf.mxu2 }
 0xa06   : > { %v6955_v22 = vadd.f32 %v6954_v57, %v6866_v48  ;;  %v6733_v51 = vadd.f32 %v6732_v63, %v14765_v7  ;;  %v6821_v12 = vpop.f32.mrf.mxu3  ;;  %v10446_v63 = vld [vmem:[%s15620_s23 + $0x28] sm:$0xff] }
 0xa07   : > { %7667 = vmatpush.bf16.msra.mxu1 %v10446_v63 }
 0xa08   : > { %v15063_v1 = vadd.f32 %v6821_v12, %v6733_v51  ;;  %8392 = vperm.xlu2 %10476, %v6955_v22  }
 0xa0a   : > { %v7045_v28 = vpack.c.bf16 %v15063_v1, %v15056_v38  ;;  %7178 = vmatmul.bf16.gmra.mxu2 %v10627_v23 }
 0xa0b   : > { %7363 = vmatmul.bf16.gmra.mxu3 %v15738_v40  ;;  %v6868_v24 = vpop.f32.mrf.mxu0 }
 0xa0c   : > { %v6869_v6 = vadd.f32 %v6868_v24, %v15006_v14  ;;  %v6957_v31 = vpop.f32.mrf.mxu1 }
 0xa0d   : > { %v6735_v53 = vpop.f32.mrf.mxu2 }
 0xa0e   : > { %v6958_v44 = vadd.f32 %v6957_v31, %v6869_v6  ;;  %v6736_v48 = vadd.f32 %v6735_v53, %v14765_v7  ;;  %v6824_v57 = vpop.f32.mrf.mxu3  ;;  %6907 = vmatmul.bf16.gmra.mxu0 %v14471_v55  ;;  %v15739_v31 = vpack.c.bf16 %v14727_v16, %v14709_v3  ;;  %v10425_v3 = vld [vmem:[%s15617_s20 + $0x40] sm:$0xff] }
 0xa0f   : > { %6996 = vmatmul.bf16.gmra.mxu1 %v14651_v10  ;;  %v10628_v10 = vld [vmem:[%s10892_s29 + $0x28] sm:$0xff]  ;;  %7431 = vmatpush.bf16.msra.mxu0 %v10425_v3 }
 0xa10   : > { %v15078_v15 = vadd.f32 %v6824_v57, %v6736_v48  ;;  %8397 = vperm.xlu0 %10474, %v6958_v44  }
 0xa13   : > { %v6870_v34 = vpop.f32.mrf.mxu0 }
 0xa14   : > { %v6871_v22 = vadd.f32 %v6870_v34, %v15006_v14  ;;  %v6959_v51 = vpop.f32.mrf.mxu1 }
 0xa15   : > { %v6737_v12 = vpop.f32.mrf.mxu2 }
 0xa16   : > { %v6960_v23 = vadd.f32 %v6959_v51, %v6871_v22  ;;  %v6738_v40 = vadd.f32 %v6737_v12, %v14765_v7  ;;  %v6826_v55 = vpop.f32.mrf.mxu3 }
 0xa18   : > { %v15082_v24 = vadd.f32 %v6826_v55, %v6738_v40  ;;  %8402 = vperm.xlu1 %10475, %v6960_v23  }
 0xa1a   : > { %v7047_v6 = vpack.c.bf16 %v15082_v24, %v15078_v15  ;;  %7183 = vmatmul.bf16.gmra.mxu2 %v10628_v10 }
 0xa1b   : > { %7368 = vmatmul.bf16.gmra.mxu3 %v15739_v31  ;;  %v6873_v53 = vpop.f32.mrf.mxu0 }
 0xa1c   : > { %v6874_v44 = vadd.f32 %v6873_v53, %v15006_v14  ;;  %v6962_v48 = vpop.f32.mrf.mxu1  ;;  %v10629_v53 = vld [vmem:[%s10892_s29 + $0x30] sm:$0xff] }
 0xa1d   : > { %v6740_v57 = vpop.f32.mrf.mxu2 }
 0xa1e   : > { %v6963_v63 = vadd.f32 %v6962_v48, %v6874_v44  ;;  %v6741_v34 = vadd.f32 %v6740_v57, %v14765_v7  ;;  %v6829_v22 = vpop.f32.mrf.mxu3  ;;  %6912 = vmatmul.bf16.gmra.mxu0 %v14525_v39  ;;  %v15740_v44 = vpack.c.bf16 %v14758_v19, %v14749_v58 }
 0xa1f   : > { %7001 = vmatmul.bf16.gmra.mxu1 %v14673_v47 }
 0xa20   : > { %v15094_v51 = vadd.f32 %v6829_v22, %v6741_v34  ;;  %8407 = vperm.xlu2 %10476, %v6963_v63  }
 0xa23   : > { %v6875_v16 = vpop.f32.mrf.mxu0 }
 0xa24   : > { %v6876_v12 = vadd.f32 %v6875_v16, %v15006_v14  ;;  %v6964_v23 = vpop.f32.mrf.mxu1 }
 0xa25   : > { %v6742_v40 = vpop.f32.mrf.mxu2 }
 0xa26   : > { %v6965_v55 = vadd.f32 %v6964_v23, %v6876_v12  ;;  %v6743_v10 = vadd.f32 %v6742_v40, %v14765_v7  ;;  %v6831_v39 = vpop.f32.mrf.mxu3  ;;  %v10445_v12 = vld [vmem:[%s15620_s23 + $0x20] sm:$0xff] }
 0xa27   : > { %7668 = vmatpush.bf16.msra.mxu1 %v10445_v12 }
 0xa28   : > { %v15101_v31 = vadd.f32 %v6831_v39, %v6743_v10  ;;  %8412 = vperm.xlu0 %10474, %v6965_v55  }
 0xa2a   : > { %v7049_v47 = vpack.c.bf16 %v15101_v31, %v15094_v51  ;;  %7188 = vmatmul.bf16.gmra.mxu2 %v10629_v53 }
 0xa2b   : > { %7373 = vmatmul.bf16.gmra.mxu3 %v15740_v44  ;;  %v6878_v48 = vpop.f32.mrf.mxu0 }
 0xa2c   : > { %v6879_v57 = vadd.f32 %v6878_v48, %v15006_v14  ;;  %v6967_v63 = vpop.f32.mrf.mxu1  ;;  %v15741_v48 = vpack.c.bf16 %v14779_v61, %v14771_v60 }
 0xa2d   : > { %v6745_v34 = vpop.f32.mrf.mxu2 }
 0xa2e   : > { %v6968_v22 = vadd.f32 %v6967_v63, %v6879_v57  ;;  %v6746_v3 = vadd.f32 %v6745_v34, %v14765_v7  ;;  %v6834_v16 = vpop.f32.mrf.mxu3  ;;  %6917 = vmatmul.bf16.gmra.mxu0 %v14537_v50 }
 0xa2f   : > { %7006 = vmatmul.bf16.gmra.mxu1 %v14701_v4  ;;  %v10630_v4 = vld [vmem:[%s10892_s29 + $0x38] sm:$0xff] }
 0xa30   : > { %v15116_v58 = vadd.f32 %v6834_v16, %v6746_v3  ;;  %8417 = vperm.xlu1 %10475, %v6968_v22  }
 0xa33   : > { %v6880_v19 = vpop.f32.mrf.mxu0 }
 0xa34   : > { %v6881_v23 = vadd.f32 %v6880_v19, %v15006_v14  ;;  %v6969_v40 = vpop.f32.mrf.mxu1 }
 0xa35   : > { %v6747_v55 = vpop.f32.mrf.mxu2 }
 0xa36   : > { %v6970_v10 = vadd.f32 %v6969_v40, %v6881_v23  ;;  %v6748_v39 = vadd.f32 %v6747_v55, %v14765_v7  ;;  %v6836_v50 = vpop.f32.mrf.mxu3 }
 0xa38   : > { %v15120_v53 = vadd.f32 %v6836_v50, %v6748_v39  ;;  %8422 = vperm.xlu2 %10476, %v6970_v10  }
 0xa3a   : > { %v7051_v44 = vpack.c.bf16 %v15120_v53, %v15116_v58  ;;  %7193 = vmatmul.bf16.gmra.mxu2 %v10630_v4  ;;  %v10631_v4 = vld [vmem:[%s10892_s29 + $0x40] sm:$0xff] }
 0xa3b   : > { %7378 = vmatmul.bf16.gmra.mxu3 %v15741_v48  ;;  %v6883_v57 = vpop.f32.mrf.mxu0 }
 0xa3c   : > { %v6884_v63 = vadd.f32 %v6883_v57, %v15006_v14  ;;  %v6972_v34 = vpop.f32.mrf.mxu1 }
 0xa3d   : > { %v6750_v22 = vpop.f32.mrf.mxu2 }
 0xa3e   : > { %v6973_v3 = vadd.f32 %v6972_v34, %v6884_v63  ;;  %v6751_v16 = vadd.f32 %v6750_v22, %v14765_v7  ;;  %v6839_v12 = vpop.f32.mrf.mxu3  ;;  %6922 = vmatmul.bf16.gmra.mxu0 %v14555_v36 }
 0xa3f   : > { %7011 = vmatmul.bf16.gmra.mxu1 %v14747_v45  ;;  %v15742_v45 = vpack.c.bf16 %v14808_v33, %v14797_v25 }
 0xa40   : > { %v15132_v19 = vadd.f32 %v6839_v12, %v6751_v16  ;;  %8427 = vperm.xlu0 %10474, %v6973_v3   ;;  %v10444_v3 = vld [vmem:[%s15620_s23 + $0x18] sm:$0xff] }
 0xa41   : > { %7669 = vmatpush.bf16.msra.mxu1 %v10444_v3 }
 0xa43   : > { %v6885_v23 = vpop.f32.mrf.mxu0 }
 0xa44   : > { %v6886_v61 = vadd.f32 %v6885_v23, %v15006_v14  ;;  %v6974_v60 = vpop.f32.mrf.mxu1 }
 0xa45   : > { %v6752_v40 = vpop.f32.mrf.mxu2 }
 0xa46   : > { %v6975_v55 = vadd.f32 %v6974_v60, %v6886_v61  ;;  %v6753_v10 = vadd.f32 %v6752_v40, %v14765_v7  ;;  %v6841_v39 = vpop.f32.mrf.mxu3 }
 0xa48   : > { %v15136_v50 = vadd.f32 %v6841_v39, %v6753_v10  ;;  %8432 = vperm.xlu1 %10475, %v6975_v55   ;;  %v15743_v55 = vpack.c.bf16 %v14828_v17, %v14820_v42 }
 0xa4a   : > { %v7053_v36 = vpack.c.bf16 %v15136_v50, %v15132_v19  ;;  %7198 = vmatmul.bf16.gmra.mxu2 %v10631_v4 }
 0xa4b   : > { %7383 = vmatmul.bf16.gmra.mxu3 %v15742_v45  ;;  %v6888_v48 = vpop.f32.mrf.mxu0 }
 0xa4c   : > { %v6889_v57 = vadd.f32 %v6888_v48, %v15006_v14  ;;  %v6977_v63 = vpop.f32.mrf.mxu1 }
 0xa4d   : > { %v7159_v34 = vpop.f32.mrf.mxu2 }
 0xa4e   : > { %v6978_v22 = vadd.f32 %v6977_v63, %v6889_v57  ;;  %v7344_v7 = vpop.f32.mrf.mxu3  ;;  %6927 = vmatmul.bf16.gmra.mxu0 %v14581_v29  ;;  %v10632_v29 = vld [vmem:[%s10892_s29 + $0x48] sm:$0xff]  ;;  %v15745_v63 = vld [vmem:[#allocation3_spill] sm:$0xff] }
 0xa4f   : > { %v15149_v16 = vadd.f32 %v7344_v7, %v7159_v34  ;;  %7016 = vmatmul.bf16.gmra.mxu1 %v14769_v56  ;;  %v15744_v57 = vld [vmem:[#allocation4_spill] sm:$0xff] }
 0xa50   : > { %8437 = vperm.xlu2 %10476, %v6978_v22   ;;  %v15746_v34 = vpack.c.bf16 %v15744_v57, %v15745_v63  ;;  %v10443_v57 = vld [vmem:[%s15620_s23 + $0x10] sm:$0xff] }
 0xa51   : > { %7670 = vmatpush.bf16.msra.mxu1 %v10443_v57 }
 0xa53   : > { %v6890_v25 = vpop.f32.mrf.mxu0 }
 0xa54   : > { %v6891_v33 = vadd.f32 %v6890_v25, %v15006_v14  ;;  %v6979_v12 = vpop.f32.mrf.mxu1 }
 0xa55   : > { %v7161_v23 = vpop.f32.mrf.mxu2 }
 0xa56   : > { %v6980_v61 = vadd.f32 %v6979_v12, %v6891_v33  ;;  %v7346_v60 = vpop.f32.mrf.mxu3 }
 0xa57   : > { %v15153_v40 = vadd.f32 %v7346_v60, %v7161_v23  ;;  %v10633_v23 = vld [vmem:[%s10892_s29 + $0x50] sm:$0xff] }
 0xa58   : > { %8442 = vperm.xlu0 %10474, %v6980_v61   ;;  %v15747_v61 = vpack.c.bf16 %v14857_v41, %v14846_v13 }
 0xa5a   : > { %7203 = vmatmul.bf16.gmra.mxu2 %v10632_v29 }
 0xa5b   : > { %7388 = vmatmul.bf16.gmra.mxu3 %v15743_v55  ;;  %v6893_v10 = vpop.f32.mrf.mxu0 }
 0xa5c   : > { %v6894_v56 = vadd.f32 %v6893_v10, %v15006_v14  ;;  %v6982_v39 = vpop.f32.mrf.mxu1 }
 0xa5d   : > { %v7164_v4 = vpop.f32.mrf.mxu2 }
 0xa5e   : > { %v6983_v45 = vadd.f32 %v6982_v39, %v6894_v56  ;;  %v7349_v48 = vpop.f32.mrf.mxu3  ;;  %7432 = vmatmul.bf16.vlgmr.msra.gmra.mxu0 %v15746_v34 }
 0xa5f   : > { %v15163_v22 = vadd.f32 %v7349_v48, %v7164_v4  ;;  %v15748_v4 = vld [vmem:[#allocation6_spill] sm:$0xff] }
 0xa60   : > { %8447 = vperm.xlu1 %10475, %v6983_v45   ;;  %v15749_v45 = vld [vmem:[#allocation5_spill] sm:$0xff] }
 0xa61   : > { %v15750_v48 = vpack.c.bf16 %v15748_v4, %v15749_v45 }
 0xa63   : > { %v6895_v7 = vpop.f32.mrf.mxu0 }
 0xa64   : > { %v6896_v3 = vadd.f32 %v6895_v7, %v15006_v14  ;;  %v6984_v17 = vpop.f32.mrf.mxu1 }
 0xa65   : > { %v7166_v42 = vpop.f32.mrf.mxu2 }
 0xa66   : > { %v6985_v25 = vadd.f32 %v6984_v17, %v6896_v3  ;;  %v7351_v33 = vpop.f32.mrf.mxu3 }
 0xa67   : > { %v15166_v12 = vadd.f32 %v7351_v33, %v7166_v42  ;;  %v15751_v33 = vpack.c.bf16 %v14877_v54, %v14869_v32 }
 0xa68   : > { %8452 = vperm.xlu2 %10476, %v6985_v25   ;;  %v10634_v25 = vld [vmem:[%s10892_s29 + $0x58] sm:$0xff] }
 0xa6a   : > { %7208 = vmatmul.bf16.gmra.mxu2 %v10633_v23 }
 0xa6b   : > { %7393 = vmatmul.bf16.gmra.mxu3 %v15747_v61  ;;  %v6898_v60 = vpop.f32.mrf.mxu0 }
 0xa6c   : > { %v6899_v29 = vadd.f32 %v6898_v60, %v15006_v14  ;;  %v6987_v55 = vpop.f32.mrf.mxu1 }
 0xa6d   : > { %v7169_v10 = vpop.f32.mrf.mxu2 }
 0xa6e   : > { %v6988_v56 = vadd.f32 %v6987_v55, %v6899_v29  ;;  %v7354_v39 = vpop.f32.mrf.mxu3  ;;  %7437 = vmatmul.bf16.gmra.mxu0 %v15750_v48 }
 0xa6f   : > { %v15179_v63 = vadd.f32 %v7354_v39, %v7169_v10  ;;  %v15753_v39 = vld [vmem:[#allocation8_spill] sm:$0xff] }
 0xa70   : > { %8457 = vperm.xlu0 %10474, %v6988_v56   ;;  %v15752_v56 = vld [vmem:[#allocation7_spill] sm:$0xff] }
 0xa71   : > { %v15754_v4 = vpack.c.bf16 %v15752_v56, %v15753_v39  ;;  %v10636_v39 = vld [vmem:[%s10892_s29 + $0x68] sm:$0xff] }
 0xa73   : > { %v6900_v13 = vpop.f32.mrf.mxu0 }
 0xa74   : > { %v6901_v41 = vadd.f32 %v6900_v13, %v15006_v14  ;;  %v6989_v34 = vpop.f32.mrf.mxu1 }
 0xa75   : > { %v7171_v7 = vpop.f32.mrf.mxu2 }
 0xa76   : > { %v6990_v3 = vadd.f32 %v6989_v34, %v6901_v41  ;;  %v7356_v17 = vpop.f32.mrf.mxu3 }
 0xa77   : > { %v15182_v42 = vadd.f32 %v7356_v17, %v7171_v7  ;;  %v10635_v7 = vld [vmem:[%s10892_s29 + $0x60] sm:$0xff] }
 0xa78   : > { %8462 = vperm.xlu1 %10475, %v6990_v3   ;;  %v15755_v3 = vpack.c.bf16 %v14924_v18, %v14901_v5 }
 0xa7a   : > { %7213 = vmatmul.bf16.gmra.mxu2 %v10634_v25 }
 0xa7b   : > { %7398 = vmatmul.bf16.gmra.mxu3 %v15751_v33  ;;  %v6903_v23 = vpop.f32.mrf.mxu0 }
 0xa7c   : > { %v6904_v61 = vadd.f32 %v6903_v23, %v15006_v14  ;;  %v6992_v60 = vpop.f32.mrf.mxu1 }
 0xa7d   : > { %v7174_v29 = vpop.f32.mrf.mxu2 }
 0xa7e   : > { %v6993_v55 = vadd.f32 %v6992_v60, %v6904_v61  ;;  %v7359_v10 = vpop.f32.mrf.mxu3  ;;  %7442 = vmatmul.bf16.gmra.mxu0 %v15754_v4  ;;  %v15756_v61 = vld [vmem:[#allocation10_spill] sm:$0xff]  ;;  %v15757_v60 = vld [vmem:[#allocation9_spill] sm:$0xff]  ;;  %v15759_v4 = vpack.c.bf16 %v14950_v9, %v14942_v35  ;;  %v15763_v9 = vpack.c.bf16 %v14973_v2, %v14962_v21 }
 0xa7f   : > { %v15192_v45 = vadd.f32 %v7359_v10, %v7174_v29  ;;  %v15758_v29 = vpack.c.bf16 %v15756_v61, %v15757_v60 }
 0xa80   : > { %8467 = vperm.xlu2 %10476, %v6993_v55   ;;  %v10442_v55 = vld [vmem:[%s15620_s23 + $0x8] sm:$0xff] }
 0xa81   : > { %7671 = vmatpush.bf16.msra.mxu1 %v10442_v55  ;;  %v15764_v55 = vld [vmem:[#allocation14_spill] sm:$0xff] }
 0xa83   : > { %v6905_v48 = vpop.f32.mrf.mxu0 }
 0xa84   : > { %v6906_v57 = vadd.f32 %v6905_v48, %v15006_v14  ;;  %v6994_v54 = vpop.f32.mrf.mxu1 }
 0xa85   : > { %v7176_v32 = vpop.f32.mrf.mxu2 }
 0xa86   : > { %v6995_v13 = vadd.f32 %v6994_v54, %v6906_v57  ;;  %v7361_v41 = vpop.f32.mrf.mxu3 }
 0xa87   : > { %v15195_v34 = vadd.f32 %v7361_v41, %v7176_v32  ;;  %v15761_v41 = vld [vmem:[#allocation11_spill] sm:$0xff] }
 0xa88   : > { %8472 = vperm.xlu0 %10474, %v6995_v13   ;;  %v15760_v13 = vld [vmem:[#allocation13_spill] sm:$0xff] }
 0xa8a   : > { %7218 = vmatmul.bf16.gmra.mxu2 %v10635_v7  ;;  %v15762_v7 = vpack.c.bf16 %v15760_v13, %v15761_v41  ;;  %v15767_v13 = vld [vmem:[#allocation16_spill] sm:$0xff]  ;;  %v15768_v41 = vld [vmem:[#allocation15_spill] sm:$0xff] }
 0xa8b   : > { %7403 = vmatmul.bf16.gmra.mxu3 %v15755_v3  ;;  %v6908_v17 = vpop.f32.mrf.mxu0 }
 0xa8c   : > { %v6909_v25 = vadd.f32 %v6908_v17, %v15006_v14  ;;  %v6997_v33 = vpop.f32.mrf.mxu1 }
 0xa8e   : > { %v6998_v23 = vadd.f32 %v6997_v33, %v6909_v25  ;;  %7447 = vmatmul.bf16.gmra.mxu0 %v15758_v29 }
 0xa90   : > { %8477 = vperm.xlu1 %10475, %v6998_v23   ;;  %v10637_v23 = vld [vmem:[%s10892_s29 + $0x70] sm:$0xff] }
 0xa93   : > { %v6910_v10 = vpop.f32.mrf.mxu0 }
 0xa94   : > { %v6911_v56 = vadd.f32 %v6910_v10, %v15006_v14  ;;  %v6999_v5 = vpop.f32.mrf.mxu1  ;;  %v15765_v10 = vld [vmem:[#allocation12_spill] sm:$0xff] }
 0xa96   : > { %v7000_v18 = vadd.f32 %v6999_v5, %v6911_v56  ;;  %v15766_v56 = vpack.c.bf16 %v15764_v55, %v15765_v10  ;;  %v10441_v5 = vld [vmem:[%s15620_s23] sm:$0xff] }
 0xa97   : > { %7672 = vmatpush.bf16.msra.mxu1 %v10441_v5 }
 0xa98   : > { %8482 = vperm.xlu2 %10476, %v7000_v18  }
 0xa9a   : > { %7223 = vmatmul.bf16.gmra.mxu2 %v10636_v39 }
 0xa9b   : > { %7408 = vmatmul.bf16.gmra.mxu3 %v15759_v4  ;;  %v6913_v48 = vpop.f32.mrf.mxu0  ;;  %v10638_v4 = vld [vmem:[%s10892_s29 + $0x78] sm:$0xff] }
 0xa9c   : > { %v6914_v57 = vadd.f32 %v6913_v48, %v15006_v14  ;;  %v7002_v54 = vpop.f32.mrf.mxu1 }
 0xa9e   : > { %v7003_v32 = vadd.f32 %v7002_v54, %v6914_v57  ;;  %7452 = vmatmul.bf16.gmra.mxu0 %v15762_v7  ;;  %v15769_v7 = vpack.c.bf16 %v15767_v13, %v15768_v41 }
 0xaa0   : > { %8487 = vperm.xlu0 %10474, %v7003_v32  }
 0xaa3   : > { %v6915_v3 = vpop.f32.mrf.mxu0 }
 0xaa4   : > { %v6916_v17 = vadd.f32 %v6915_v3, %v15006_v14  ;;  %v7004_v25 = vpop.f32.mrf.mxu1 }
 0xaa6   : > { %v7005_v33 = vadd.f32 %v7004_v25, %v6916_v17 }
 0xaa8   : > { %8492 = vperm.xlu1 %10475, %v7005_v33  }
 0xaaa   : > { %7228 = vmatmul.bf16.gmra.mxu2 %v10637_v23 }
 0xaab   : > { %7413 = vmatmul.bf16.gmra.mxu3 %v15763_v9  ;;  %v6918_v35 = vpop.f32.mrf.mxu0  ;;  %v15770_v9 = vpack.c.bf16 %v14978_v62, %v14967_v20 }
 0xaac   : > { %v6919_v61 = vadd.f32 %v6918_v35, %v15006_v14  ;;  %v7007_v60 = vpop.f32.mrf.mxu1 }
 0xaae   : > { %v7008_v29 = vadd.f32 %v7007_v60, %v6919_v61  ;;  %7457 = vmatmul.bf16.gmra.mxu0 %v15766_v56  ;;  %v15251_v56 = vld [vmem:[%s15619_s22] ss:$0 sm:$0xff] }
 0xab0   : > { %8497 = vperm.xlu2 %10476, %v7008_v29  }
 0xab3   : > { %v6920_v18 = vpop.f32.mrf.mxu0 }
 0xab4   : > { %v6921_v39 = vadd.f32 %v6920_v18, %v15006_v14  ;;  %v7009_v21 = vpop.f32.mrf.mxu1  ;;  %v7179_v18 = vpop.f32.mrf.mxu2 }
 0xab6   : > { %v7010_v2 = vadd.f32 %v7009_v21, %v6921_v39  ;;  %v7364_v39 = vpop.f32.mrf.mxu3 }
 0xab7   : > { %v7365_v38 = vadd.f32 %v7364_v39, %v7179_v18 }
 0xab8   : > { %8502 = vperm.xlu0 %10474, %v7010_v2  }
 0xaba   : > { %7233 = vmatmul.bf16.gmra.mxu2 %v10638_v4 }
 0xabb   : > { %7418 = vmatmul.bf16.gmra.mxu3 %v7052_v30  ;;  %v6923_v48 = vpop.f32.mrf.mxu0 }
 0xabc   : > { %v6924_v57 = vadd.f32 %v6923_v48, %v15006_v14  ;;  %v7012_v54 = vpop.f32.mrf.mxu1 }
 0xabe   : > { %v7013_v32 = vadd.f32 %v7012_v54, %v6924_v57  ;;  %7462 = vmatmul.bf16.gmra.mxu0 %v15769_v7  ;;  %v7366_v4 = vpop.f32.mrf.mxu3 }
 0xac0   : > { %8507 = vperm.xlu1 %10475, %v7013_v32  }
 0xac3   : > { %v6925_v3 = vpop.f32.mrf.mxu0 }
 0xac4   : > { %v6926_v17 = vadd.f32 %v6925_v3, %v15006_v14  ;;  %v7014_v25 = vpop.f32.mrf.mxu1 }
 0xac6   : > { %v7015_v33 = vadd.f32 %v7014_v25, %v6926_v17  ;;  %v7369_v17 = vpop.f32.mrf.mxu3 }
 0xac8   : > { %8512 = vperm.xlu2 %10476, %v7015_v33  }
 0xacb   : > { %v6928_v23 = vpop.f32.mrf.mxu0 }
 0xacc   : > { %v6929_v59 = vadd.f32 %v6928_v23, %v15006_v14  ;;  %v7017_v49 = vpop.f32.mrf.mxu1 }
 0xace   : > { %v7018_v30 = vadd.f32 %v7017_v49, %v6929_v59  ;;  %7467 = vmatmul.bf16.gmra.mxu0 %v15770_v9  ;;  %v7371_v25 = vpop.f32.mrf.mxu3 }
 0xad0   : > { %8517 = vperm.xlu0 %10474, %v7018_v30  }
 0xad3   : > { %v6930_v35 = vpop.f32.mrf.mxu0 }
 0xad4   : > { %v6931_v61 = vadd.f32 %v6930_v35, %v15006_v14  ;;  %v7019_v60 = vpop.f32.mrf.mxu1 }
 0xad6   : > { %v7020_v29 = vadd.f32 %v7019_v60, %v6931_v61  ;;  %v7374_v43 = vpop.f32.mrf.mxu3 }
 0xad8   : > { %8522 = vperm.xlu1 %10475, %v7020_v29  }
 0xadb   : > { %v7433_v55 = vpop.f32.mrf.mxu0 }
 0xadc   : > { %v7434_v10 = vadd.f32 %v7433_v55, %v15149_v16  ;;  %v7181_v16 = vpop.f32.mrf.mxu2 }
 0xade   : > { %7472 = vmatmul.bf16.gmra.mxu0 %v7039_v11  ;;  %v7517_v20 = vadd.f32 %v15251_v56, %v7434_v10  ;;  %v7376_v55 = vpop.f32.mrf.mxu3 }
 0xae0   : > { %v7549_v21 = vmax.f32 %v7517_v20, 0.0 }
 0xae3   : > { %v7435_v62 = vpop.f32.mrf.mxu0 }
 0xae4   : > { %v7436_v14 = vadd.f32 %v7435_v62, %v15153_v40  ;;  %v7184_v3 = vpop.f32.mrf.mxu2 }
 0xae5   : > { %v7370_v18 = vadd.f32 %v7369_v17, %v7184_v3 }
 0xae6   : > { %v7518_v5 = vadd.f32 %v15251_v56, %v7436_v14  ;;  %v7379_v14 = vpop.f32.mrf.mxu3 }
 0xae8   : > { %v7550_v2 = vmax.f32 %v7518_v5, 0.0 }
 0xaea   : > { %v7581_v0 = vpack.c.bf16 %v7550_v2, %v7549_v21 }
 0xaeb   : > { %v7438_v26 = vpop.f32.mrf.mxu0 }
 0xaec   : > { %7673 = vmatmul.bf16.vlgmr.msra.gmra.mxu1 %v7581_v0  ;;  %v7439_v11 = vadd.f32 %v7438_v26, %v15163_v22 }
 0xaee   : > { %7477 = vmatmul.bf16.gmra.mxu0 %v7041_v46  ;;  %v7519_v40 = vadd.f32 %v15251_v56, %v7439_v11 }
 0xaf0   : > { %v7551_v32 = vmax.f32 %v7519_v40, 0.0 }
 0xaf3   : > { %v7440_v48 = vpop.f32.mrf.mxu0 }
 0xaf4   : > { %v7441_v57 = vadd.f32 %v7440_v48, %v15166_v12  ;;  %v7186_v12 = vpop.f32.mrf.mxu2  ;;  %v7381_v48 = vpop.f32.mrf.mxu3 }
 0xaf5   : > { %v7372_v24 = vadd.f32 %v7371_v25, %v7186_v12 }
 0xaf6   : > { %v7520_v54 = vadd.f32 %v15251_v56, %v7441_v57 }
 0xaf8   : > { %v7552_v13 = vmax.f32 %v7520_v54, 0.0 }
 0xafa   : > { %v7582_v41 = vpack.c.bf16 %v7552_v13, %v7551_v32 }
 0xafb   : > { %v7443_v7 = vpop.f32.mrf.mxu0 }
 0xafc   : > { %7678 = vmatmul.bf16.gmra.mxu1 %v7582_v41  ;;  %v7444_v37 = vadd.f32 %v7443_v7, %v15179_v63  ;;  %v7189_v8 = vpop.f32.mrf.mxu2  ;;  %v7384_v54 = vpop.f32.mrf.mxu3 }
 0xafd   : > { %v7375_v3 = vadd.f32 %v7374_v43, %v7189_v8 }
 0xafe   : > { %7482 = vmatmul.bf16.gmra.mxu0 %v7043_v52  ;;  %v7521_v46 = vadd.f32 %v15251_v56, %v7444_v37 }
 0xb00   : > { %v7553_v23 = vmax.f32 %v7521_v46, 0.0 }
 0xb03   : > { %v7445_v27 = vpop.f32.mrf.mxu0 }
 0xb04   : > { %v7446_v22 = vadd.f32 %v7445_v27, %v15182_v42  ;;  %v7191_v29 = vpop.f32.mrf.mxu2  ;;  %v7386_v17 = vpop.f32.mrf.mxu3 }
 0xb05   : > { %v7377_v31 = vadd.f32 %v7376_v55, %v7191_v29 }
 0xb06   : > { %v7522_v33 = vadd.f32 %v15251_v56, %v7446_v22 }
 0xb08   : > { %v7554_v59 = vmax.f32 %v7522_v33, 0.0 }
 0xb0a   : > { %v7583_v49 = vpack.c.bf16 %v7554_v59, %v7553_v23 }
 0xb0b   : > { %v7448_v30 = vpop.f32.mrf.mxu0 }
 0xb0c   : > { %7683 = vmatmul.bf16.gmra.mxu1 %v7583_v49  ;;  %v7449_v52 = vadd.f32 %v7448_v30, %v15192_v45  ;;  %v7194_v20 = vpop.f32.mrf.mxu2  ;;  %v7389_v49 = vpop.f32.mrf.mxu3 }
 0xb0d   : > { %v7380_v30 = vadd.f32 %v7379_v14, %v7194_v20 }
 0xb0e   : > { %7487 = vmatmul.bf16.gmra.mxu0 %v7045_v28  ;;  %v7523_v42 = vadd.f32 %v15251_v56, %v7449_v52  ;;  %v7367_v28 = vadd.f32 %v7366_v4, %v7181_v16 }
 0xb10   : > { %v7555_v61 = vmax.f32 %v7523_v42, 0.0 }
 0xb13   : > { %v7450_v63 = vpop.f32.mrf.mxu0 }
 0xb14   : > { %v7451_v9 = vadd.f32 %v7450_v63, %v15195_v34  ;;  %v7196_v39 = vpop.f32.mrf.mxu2  ;;  %v7391_v63 = vpop.f32.mrf.mxu3 }
 0xb15   : > { %v7382_v53 = vadd.f32 %v7381_v48, %v7196_v39 }
 0xb16   : > { %v7524_v35 = vadd.f32 %v15251_v56, %v7451_v9 }
 0xb18   : > { %v7556_v60 = vmax.f32 %v7524_v35, 0.0 }
 0xb1a   : > { %v7584_v10 = vpack.c.bf16 %v7556_v60, %v7555_v61 }
 0xb1b   : > { %v7453_v62 = vpop.f32.mrf.mxu0 }
 0xb1c   : > { %7688 = vmatmul.bf16.gmra.mxu1 %v7584_v10  ;;  %v7454_v1 = vadd.f32 %v7453_v62, %v7365_v38  ;;  %v7199_v57 = vpop.f32.mrf.mxu2  ;;  %v7394_v10 = vpop.f32.mrf.mxu3 }
 0xb1d   : > { %v7385_v29 = vadd.f32 %v7384_v54, %v7199_v57 }
 0xb1e   : > { %7492 = vmatmul.bf16.gmra.mxu0 %v7047_v6  ;;  %v7525_v34 = vadd.f32 %v15251_v56, %v7454_v1 }
 0xb20   : > { %v7557_v2 = vmax.f32 %v7525_v34, 0.0 }
 0xb23   : > { %v7455_v45 = vpop.f32.mrf.mxu0 }
 0xb24   : > { %v7456_v5 = vadd.f32 %v7455_v45, %v7367_v28  ;;  %v15302_v28 = vld [vmem:[%s15621_s24] ss:$0 sm:$0xff] }
 0xb26   : > { %v7526_v21 = vadd.f32 %v15251_v56, %v7456_v5  ;;  %v7396_v5 = vpop.f32.mrf.mxu3 }
 0xb28   : > { %v7558_v0 = vmax.f32 %v7526_v21, 0.0 }
 0xb2a   : > { %v7585_v26 = vpack.c.bf16 %v7558_v0, %v7557_v2 }
 0xb2b   : > { %v7458_v11 = vpop.f32.mrf.mxu0 }
 0xb2c   : > { %7693 = vmatmul.bf16.gmra.mxu1 %v7585_v26  ;;  %v7459_v15 = vadd.f32 %v7458_v11, %v7370_v18 }
 0xb2e   : > { %7497 = vmatmul.bf16.gmra.mxu0 %v7049_v47  ;;  %v7527_v16 = vadd.f32 %v15251_v56, %v7459_v15  ;;  %v7201_v47 = vpop.f32.mrf.mxu2 }
 0xb2f   : > { %v7387_v50 = vadd.f32 %v7386_v17, %v7201_v47  ;;  %v8362_v47 = vlaneseq }
 0xb30   : > { %v7559_v32 = vmax.f32 %v7527_v16, 0.0 }
 0xb33   : > { %v7460_v6 = vpop.f32.mrf.mxu0 }
 0xb34   : > { %v7461_v4 = vadd.f32 %v7460_v6, %v7372_v24 }
 0xb36   : > { %v7528_v40 = vadd.f32 %v15251_v56, %v7461_v4  ;;  %v7204_v59 = vpop.f32.mrf.mxu2  ;;  %v15308_v4 = vpop.f32.mrf.mxu3 }
 0xb37   : > { %v7390_v11 = vadd.f32 %v7389_v49, %v7204_v59  ;;  %v15319_v59 = vand.u32 127, %v8362_v47 }
 0xb38   : > { %v7560_v13 = vmax.f32 %v7528_v40, 0.0 }
 0xb39   : > { %vm8364_vm1 = vcmp.eq.s32.totalorder %v15319_v59, 3 }
 0xb3a   : > { %v7586_v41 = vpack.c.bf16 %v7560_v13, %v7559_v32 }
 0xb3b   : > { %v7463_v7 = vpop.f32.mrf.mxu0 }
 0xb3c   : > { %7698 = vmatmul.bf16.gmra.mxu1 %v7586_v41  ;;  %v7464_v51 = vadd.f32 %v7463_v7, %v7375_v3 }
 0xb3e   : > { %7502 = vmatmul.bf16.gmra.mxu0 %v7051_v44  ;;  %v7529_v27 = vadd.f32 %v15251_v56, %v7464_v51  ;;  %v7206_v52 = vpop.f32.mrf.mxu2 }
 0xb3f   : > { %v7392_v48 = vadd.f32 %v7391_v63, %v7206_v52 }
 0xb40   : > { %v7561_v12 = vmax.f32 %v7529_v27, 0.0 }
 0xb43   : > { %v7465_v37 = vpop.f32.mrf.mxu0 }
 0xb44   : > { %v7466_v46 = vadd.f32 %v7465_v37, %v7377_v31 }
 0xb46   : > { %v7530_v22 = vadd.f32 %v15251_v56, %v7466_v46  ;;  %v7209_v55 = vpop.f32.mrf.mxu2 }
 0xb48   : > { %v7562_v25 = vmax.f32 %v7530_v22, 0.0 }
 0xb4a   : > { %v7587_v33 = vpack.c.bf16 %v7562_v25, %v7561_v12  ;;  %v15317_v25 = vpop.f32.mrf.mxu3 }
 0xb4b   : > { %v7468_v23 = vpop.f32.mrf.mxu0 }
 0xb4c   : > { %7703 = vmatmul.bf16.gmra.mxu1 %v7587_v33  ;;  %v7469_v58 = vadd.f32 %v7468_v23, %v7380_v30  ;;  %v7395_v23 = vadd.f32 %v7394_v10, %v7209_v55 }
 0xb4e   : > { %7507 = vmatmul.bf16.gmra.mxu0 %v7053_v36  ;;  %v7531_v8 = vadd.f32 %v15251_v56, %v7469_v58  ;;  %v7211_v34 = vpop.f32.mrf.mxu2 }
 0xb4f   : > { %v7397_v30 = vadd.f32 %v7396_v5, %v7211_v34 }
 0xb50   : > { %v7563_v9 = vmax.f32 %v7531_v8, 0.0 }
 0xb53   : > { %v7470_v44 = vpop.f32.mrf.mxu0 }
 0xb54   : > { %v7471_v43 = vadd.f32 %v7470_v44, %v7382_v53 }
 0xb56   : > { %v7532_v42 = vadd.f32 %v15251_v56, %v7471_v43  ;;  %v15306_v16 = vpop.f32.mrf.mxu2 }
 0xb58   : > { %v7564_v35 = vmax.f32 %v7532_v42, 0.0 }
 0xb5a   : > { %v7588_v61 = vpack.c.bf16 %v7564_v35, %v7563_v9 }
 0xb5b   : > { %v7473_v60 = vpop.f32.mrf.mxu0 }
 0xb5c   : > { %7708 = vmatmul.bf16.gmra.mxu1 %v7588_v61  ;;  %v7474_v19 = vadd.f32 %v7473_v60, %v7385_v29  ;;  %v8368_v29 = vpop.permute.xlu0 %8367 }
 0xb5e   : > { %v7533_v62 = vadd.f32 %v15251_v56, %v7474_v19  ;;  %v15315_v12 = vpop.f32.mrf.mxu2 }
 0xb60   : > { %v7565_v45 = vmax.f32 %v7533_v62, 0.0 }
 0xb63   : > { %v7475_v36 = vpop.f32.mrf.mxu0 }
 0xb64   : > { %v7476_v38 = vadd.f32 %v7475_v36, %v7387_v50 }
 0xb66   : > { %v7534_v1 = vadd.f32 %v15251_v56, %v7476_v38  ;;  %v15335_v38 = vpop.f32.mrf.mxu2 }
 0xb68   : > { %v7566_v20 = vmax.f32 %v7534_v1, 0.0  ;;  %v15337_v1 = vpop.f32.mrf.mxu3 }
 0xb69   : > { %v7674_v14 = vpop.f32.mrf.mxu1 }
 0xb6a   : > { %v7675_v21 = vadd.f32 %v15302_v28, %v7674_v14  ;;  %v7589_v2 = vpack.c.bf16 %v7566_v20, %v7565_v45 }
 0xb6b   : > { %v7478_v0 = vpop.f32.mrf.mxu0 }
 0xb6c   : > { %v10063_v26 = vmul.f32 -1.442695, %v7675_v21  ;;  %7713 = vmatmul.bf16.gmra.mxu1 %v7589_v2  ;;  %v7479_v18 = vadd.f32 %v7478_v0, %v7390_v11 }
 0xb6e   : > { %10479 = vpow2.f32 %v10063_v26  ;;  %v7535_v40 = vadd.f32 %v15251_v56, %v7479_v18 }
 0xb70   : > { %v7567_v41 = vmax.f32 %v7535_v40, 0.0 }
 0xb71   : > { %v7676_v39 = vpop.f32.mrf.mxu1 }
 0xb72   : > { %v7677_v15 = vadd.f32 %v15302_v28, %v7676_v39 }
 0xb73   : > { %v7480_v24 = vpop.f32.mrf.mxu0 }
 0xb74   : > { %v10480_v6 = vpop.eup %10479  ;;  %v10064_v57 = vmul.f32 -1.442695, %v7677_v15  ;;  %v7481_v54 = vadd.f32 %v7480_v24, %v7392_v48 }
 0xb75   : > { %v7850_v32 = vadd.f32 1.0, %v10480_v6 }
 0xb76   : > { %10481 = vpow2.f32 %v10064_v57  ;;  %v7536_v13 = vadd.f32 %v15251_v56, %v7481_v54 }
 0xb77   : > { %10483 = vrcp.f32 %v7850_v32  ;;  %v7893_v58 = vand.u32 2147483648, %v7850_v32  ;;  %v7891_v43 = vand.u32 2147483647, %v7850_v32  ;;  %vm7887_vm2 = vweird.f32 %v7850_v32 }
 0xb78   : > { %v7568_v7 = vmax.f32 %v7536_v13, 0.0  ;;  %v8373_v13 = vpop.permute.xlu0 %8372 }
 0xb79   : > { %v7679_v3 = vpop.f32.mrf.mxu1  ;;  %v7894_v55 = vor.u32 1.1754944e-38, %v7893_v58  ;;  %vm7892_vm5 = vcmp.eq.f32.partialorder %v7891_v43, 8.507059e+37  ;;  %v8378_v58 = vpop.permute.xlu1 %8377 }
 0xb7a   : > { %v7680_v51 = vadd.f32 %v15302_v28, %v7679_v3  ;;  %v7590_v31 = vpack.c.bf16 %v7568_v7, %v7567_v41  ;;  %v7400_v41 = vadd.f32 %v15308_v4, %v15306_v16 }
 0xb7b   : > { %v7483_v17 = vpop.f32.mrf.mxu0 }
 0xb7c   : > { %v10482_v37 = vpop.eup %10481  ;;  %v10065_v27 = vmul.f32 -1.442695, %v7680_v51  ;;  %7718 = vmatmul.bf16.gmra.mxu1 %v7590_v31  ;;  %v7484_v53 = vadd.f32 %v7483_v17, %v7395_v23  ;;  %v7402_v31 = vadd.f32 %v15317_v25, %v15315_v12 }
 0xb7d   : > { %v10484_v46 = vpop.eup %10483  ;;  %v15313_v22 = vadd.f32 1.0, %v10482_v37 }
 0xb7e   : > { %v7883_v33 = vmul.f32 %v10484_v46, %v7850_v32  ;;  %10485 = vpow2.f32 %v10065_v27  ;;  %vm7888_vm0 = vweird.f32 %v10484_v46  ;;  %v7537_v19 = vadd.f32 %v15251_v56, %v7484_v53  ;;  %v7221_v27 = vpop.f32.mrf.mxu2 }
 0xb7f   : > { %10487 = vrcp.f32 %v15313_v22  ;;  %vm7889_vm3 = vmor %vm7887_vm2, %vm7888_vm0  ;;  %v7906_v34 = vand.u32 2147483647, %v15313_v22  ;;  %v7908_v5 = vand.u32 2147483648, %v15313_v22  ;;  %vm7902_vm7 = vweird.f32 %v15313_v22 }
 0xb80   : > { %v7884_v49 = vsub.f32 1.0, %v7883_v33  ;;  %v7569_v21 = vmax.f32 %v7537_v19, 0.0 }
 0xb81   : > { %v7681_v44 = vpop.f32.mrf.mxu1  ;;  %v7909_v40 = vor.u32 1.1754944e-38, %v7908_v5  ;;  %vm7907_vm9 = vcmp.eq.f32.partialorder %v7906_v34, 8.507059e+37 }
 0xb82   : > { %v7885_v8 = vmul.f32 %v10484_v46, %v7884_v49  ;;  %v7682_v52 = vadd.f32 %v15302_v28, %v7681_v44 }
 0xb83   : > { %v7485_v63 = vpop.f32.mrf.mxu0 }
 0xb84   : > { %v10486_v42 = vpop.eup %10485  ;;  %v7886_v9 = vadd.f32 %v10484_v46, %v7885_v8  ;;  %v10066_v35 = vmul.f32 -1.442695, %v7682_v52  ;;  %v7486_v61 = vadd.f32 %v7485_v63, %v7397_v30 }
 0xb85   : > { %v10488_v60 = vpop.eup %10487  ;;  %v15325_v10 = vadd.f32 1.0, %v10486_v42 }
 0xb86   : > { %v7890_v50 = vsel %vm7889_vm3, %v10484_v46, %v7886_v9  ;;  %v7898_v36 = vmul.f32 %v10488_v60, %v15313_v22  ;;  %10489 = vpow2.f32 %v10066_v35  ;;  %v7538_v14 = vadd.f32 %v15251_v56, %v7486_v61  ;;  %v7406_v46 = vpop.f32.mrf.mxu3 }
 0xb87   : > { %v7895_v62 = vsel %vm7892_vm5, %v7894_v55, %v7890_v50  ;;  %10491 = vrcp.f32 %v15325_v10  ;;  %vm7903_vm6 = vweird.f32 %v10488_v60  ;;  %v7923_v47 = vand.u32 2147483648, %v15325_v10 }
 0xb88   : > { %v8525_v45 = vsel %vm8364_vm1, %v8368_v29, %v7895_v62  ;;  %v7899_v20 = vsub.f32 1.0, %v7898_v36  ;;  %v7570_v26 = vmax.f32 %v7538_v14, 0.0  ;;  %vm7904_vm8 = vmor %vm7902_vm7, %vm7903_vm6  ;;  %v7921_v16 = vand.u32 2147483647, %v15325_v10 }
 0xb89   : > { %8558 = vst.msk [vmem:[%s15331_s0] sm:$0xff] %vm8557_vm4, %v8525_v45  ;;  %v7684_v2 = vpop.f32.mrf.mxu1  ;;  %vm7917_vm11 = vweird.f32 %v15325_v10  ;;  %v7924_v53 = vor.u32 1.1754944e-38, %v7923_v47  ;;  %v15377_v45 = vpop.f32.mrf.mxu2 }
 0xb8a   : > { %v7900_v0 = vmul.f32 %v10488_v60, %v7899_v20  ;;  %v7685_v11 = vadd.f32 %v15302_v28, %v7684_v2  ;;  %v7591_v24 = vpack.c.bf16 %v7570_v26, %v7569_v21  ;;  %vm7922_vm13 = vcmp.eq.f32.partialorder %v7921_v16, 8.507059e+37  ;;  %v8388_v47 = vpop.permute.xlu2 %8387 }
 0xb8b   : > { %v7488_v18 = vpop.f32.mrf.mxu0 }
 0xb8c   : > { %v10490_v39 = vpop.eup %10489  ;;  %v7901_v48 = vadd.f32 %v10488_v60, %v7900_v0  ;;  %v10067_v15 = vmul.f32 -1.442695, %v7685_v11  ;;  %7723 = vmatmul.bf16.gmra.mxu1 %v7591_v24  ;;  %v7489_v17 = vadd.f32 %v7488_v18, %v7400_v41  ;;  %v8383_v18 = vpop.permute.xlu1 %8382 }
 0xb8d   : > { %v10492_v6 = vpop.eup %10491  ;;  %v15348_v57 = vadd.f32 1.0, %v10490_v39  ;;  %v7405_v39 = vadd.f32 %v15337_v1, %v15335_v38 }
 0xb8e   : > { %v7905_v54 = vsel %vm7904_vm8, %v10488_v60, %v7901_v48  ;;  %v7913_v32 = vmul.f32 %v10492_v6, %v15325_v10  ;;  %10493 = vpow2.f32 %v10067_v15  ;;  %vm7918_vm10 = vweird.f32 %v10492_v6  ;;  %v15379_v20 = vpop.f32.mrf.mxu3 }
 0xb8f   : > { %v7910_v7 = vsel %vm7907_vm9, %v7909_v40, %v7905_v54  ;;  %10495 = vrcp.f32 %v15348_v57  ;;  %vm7919_vm12 = vmor %vm7917_vm11, %vm7918_vm10  ;;  %v7539_v8 = vadd.f32 %v15251_v56, %v7489_v17  ;;  %v7936_v61 = vand.u32 2147483647, %v15348_v57 }
 0xb90   : > { %v8526_v3 = vsel %vm8364_vm1, %v8373_v13, %v7910_v7  ;;  %v7914_v51 = vsub.f32 1.0, %v7913_v32  ;;  %v7938_v60 = vand.u32 2147483648, %v15348_v57  ;;  %vm7932_vm15 = vweird.f32 %v15348_v57 }
 0xb91   : > { %8559 = vst.msk [vmem:[%s15331_s0 + $0x8] sm:$0xff] %vm8557_vm4, %v8526_v3  ;;  %v7686_v37 = vpop.f32.mrf.mxu1  ;;  %v7571_v29 = vmax.f32 %v7539_v8, 0.0  ;;  %vm7937_vm2 = vcmp.eq.f32.partialorder %v7936_v61, 8.507059e+37 }
 0xb92   : > { %v7915_v22 = vmul.f32 %v10492_v6, %v7914_v51  ;;  %v7687_v4 = vadd.f32 %v15302_v28, %v7686_v37  ;;  %v7939_v2 = vor.u32 1.1754944e-38, %v7938_v60 }
 0xb93   : > { %v7490_v33 = vpop.f32.mrf.mxu0 }
 0xb94   : > { %v10494_v23 = vpop.eup %10493  ;;  %v7916_v49 = vadd.f32 %v10492_v6, %v7915_v22  ;;  %v10068_v12 = vmul.f32 -1.442695, %v7687_v4  ;;  %v7491_v25 = vadd.f32 %v7490_v33, %v7402_v31 }
 0xb95   : > { %v10496_v30 = vpop.eup %10495  ;;  %v15364_v44 = vadd.f32 1.0, %v10494_v23 }
 0xb96   : > { %v7920_v43 = vsel %vm7919_vm12, %v10492_v6, %v7916_v49  ;;  %v7928_v52 = vmul.f32 %v10496_v30, %v15348_v57  ;;  %10497 = vpow2.f32 %v10068_v12  ;;  %v7540_v35 = vadd.f32 %v15251_v56, %v7491_v25  ;;  %v7411_v22 = vpop.f32.mrf.mxu3 }
 0xb97   : > { %v7925_v63 = vsel %vm7922_vm13, %v7924_v53, %v7920_v43  ;;  %10499 = vrcp.f32 %v15364_v44  ;;  %vm7933_vm14 = vweird.f32 %v10496_v30  ;;  %v7407_v6 = vadd.f32 %v7406_v46, %v7221_v27  ;;  %v7226_v46 = vpop.f32.mrf.mxu2 }
 0xb98   : > { %v8527_v42 = vsel %vm8364_vm1, %v8378_v58, %v7925_v63  ;;  %v7929_v9 = vsub.f32 1.0, %v7928_v52  ;;  %v7572_v19 = vmax.f32 %v7540_v35, 0.0  ;;  %vm7934_vm0 = vmor %vm7932_vm15, %vm7933_vm14  ;;  %v7953_v40 = vand.u32 2147483648, %v15364_v44 }
 0xb99   : > { %8560 = vst.msk [vmem:[%s15331_s0 + $0x10] sm:$0xff] %vm8557_vm4, %v8527_v42  ;;  %v7689_v55 = vpop.f32.mrf.mxu1  ;;  %v7951_v13 = vand.u32 2147483647, %v15364_v44  ;;  %vm7947_vm5 = vweird.f32 %v15364_v44 }
 0xb9a   : > { %v7930_v10 = vmul.f32 %v10496_v30, %v7929_v9  ;;  %v7690_v50 = vadd.f32 %v15302_v28, %v7689_v55  ;;  %v7592_v5 = vpack.c.bf16 %v7572_v19, %v7571_v29  ;;  %v7954_v17 = vor.u32 1.1754944e-38, %v7953_v40  ;;  %v8393_v19 = vpop.permute.xlu2 %8392 }
 0xb9b   : > { %v7493_v36 = vpop.f32.mrf.mxu0  ;;  %vm7952_vm7 = vcmp.eq.f32.partialorder %v7951_v13, 8.507059e+37 }
 0xb9c   : > { %v10498_v62 = vpop.eup %10497  ;;  %v7931_v14 = vadd.f32 %v10496_v30, %v7930_v10  ;;  %v10069_v34 = vmul.f32 -1.442695, %v7690_v50  ;;  %7728 = vmatmul.bf16.gmra.mxu1 %v7592_v5  ;;  %v7494_v57 = vadd.f32 %v7493_v36, %v7405_v39  ;;  %v7410_v50 = vadd.f32 %v15379_v20, %v15377_v45 }
 0xb9d   : > { %v10500_v21 = vpop.eup %10499  ;;  %v15382_v0 = vadd.f32 1.0, %v10498_v62 }
 0xb9e   : > { %v7935_v26 = vsel %vm7934_vm0, %v10496_v30, %v7931_v14  ;;  %v7943_v11 = vmul.f32 %v10500_v21, %v15364_v44  ;;  %10501 = vpow2.f32 %v10069_v34  ;;  %vm7948_vm3 = vweird.f32 %v10500_v21  ;;  %v7414_v14 = vpop.f32.mrf.mxu3 }
 0xb9f   : > { %v7940_v48 = vsel %vm7937_vm2, %v7939_v2, %v7935_v26  ;;  %10503 = vrcp.f32 %v15382_v0  ;;  %vm7949_vm6 = vmor %vm7947_vm5, %vm7948_vm3  ;;  %v7541_v27 = vadd.f32 %v15251_v56, %v7494_v57  ;;  %v7966_v25 = vand.u32 2147483647, %v15382_v0  ;;  %v7229_v62 = vpop.f32.mrf.mxu2 }
 0xba0   : > { %v8528_v15 = vsel %vm8364_vm1, %v8383_v18, %v7940_v48  ;;  %v7944_v24 = vsub.f32 1.0, %v7943_v11  ;;  %v7968_v30 = vand.u32 2147483648, %v15382_v0  ;;  %vm7962_vm9 = vweird.f32 %v15382_v0 }
 0xba1   : > { %8561 = vst.msk [vmem:[%s15331_s0 + $0x18] sm:$0xff] %vm8557_vm4, %v8528_v15  ;;  %v7691_v54 = vpop.f32.mrf.mxu1  ;;  %v7573_v58 = vmax.f32 %v7541_v27, 0.0  ;;  %vm7967_vm11 = vcmp.eq.f32.partialorder %v7966_v25, 8.507059e+37 }
 0xba2   : > { %v7945_v32 = vmul.f32 %v10500_v21, %v7944_v24  ;;  %v7692_v38 = vadd.f32 %v15302_v28, %v7691_v54  ;;  %v7969_v60 = vor.u32 1.1754944e-38, %v7968_v30 }
 0xba3   : > { %v7495_v1 = vpop.f32.mrf.mxu0 }
 0xba4   : > { %v10502_v41 = vpop.eup %10501  ;;  %v7946_v7 = vadd.f32 %v10500_v21, %v7945_v32  ;;  %v10070_v3 = vmul.f32 -1.442695, %v7692_v38  ;;  %v7496_v51 = vadd.f32 %v7495_v1, %v7407_v6  ;;  %v8398_v38 = vpop.permute.xlu0 %8397 }
 0xba5   : > { %v10504_v31 = vpop.eup %10503  ;;  %v15396_v37 = vadd.f32 1.0, %v10502_v41 }
 0xba6   : > { %v7950_v16 = vsel %vm7949_vm6, %v10500_v21, %v7946_v7  ;;  %v7958_v4 = vmul.f32 %v10504_v31, %v15382_v0  ;;  %10505 = vpow2.f32 %v10070_v3  ;;  %v7542_v12 = vadd.f32 %v15251_v56, %v7496_v51  ;;  %v7416_v27 = vpop.f32.mrf.mxu3 }
 0xba7   : > { %v7955_v33 = vsel %vm7952_vm7, %v7954_v17, %v7950_v16  ;;  %10507 = vrcp.f32 %v15396_v37  ;;  %vm7963_vm8 = vweird.f32 %v10504_v31  ;;  %v7412_v21 = vadd.f32 %v7411_v22, %v7226_v46 }
 0xba8   : > { %v8529_v23 = vsel %vm8364_vm1, %v8388_v47, %v7955_v33  ;;  %v7959_v49 = vsub.f32 1.0, %v7958_v4  ;;  %v7574_v8 = vmax.f32 %v7542_v12, 0.0  ;;  %vm7964_vm10 = vmor %vm7962_vm9, %vm7963_vm8  ;;  %v7983_v2 = vand.u32 2147483648, %v15396_v37 }
 0xba9   : > { %8562 = vst.msk [vmem:[%s15331_s0 + $0x20] sm:$0xff] %vm8557_vm4, %v8529_v23  ;;  %v7694_v53 = vpop.f32.mrf.mxu1  ;;  %v7981_v45 = vand.u32 2147483647, %v15396_v37  ;;  %vm7977_vm13 = vweird.f32 %v15396_v37 }
 0xbaa   : > { %v7960_v44 = vmul.f32 %v10504_v31, %v7959_v49  ;;  %v7695_v43 = vadd.f32 %v15302_v28, %v7694_v53  ;;  %v7593_v35 = vpack.c.bf16 %v7574_v8, %v7573_v58  ;;  %v7984_v40 = vor.u32 1.1754944e-38, %v7983_v2  ;;  %v8403_v8 = vpop.permute.xlu1 %8402 }
 0xbab   : > { %v7498_v52 = vpop.f32.mrf.mxu0  ;;  %vm7982_vm15 = vcmp.eq.f32.partialorder %v7981_v45, 8.507059e+37 }
 0xbac   : > { %v10506_v63 = vpop.eup %10505  ;;  %v7961_v42 = vadd.f32 %v10504_v31, %v7960_v44  ;;  %v10071_v9 = vmul.f32 -1.442695, %v7695_v43  ;;  %7733 = vmatmul.bf16.gmra.mxu1 %v7593_v35  ;;  %v7499_v0 = vadd.f32 %v7498_v52, %v7410_v50  ;;  %v7415_v43 = vadd.f32 %v7414_v14, %v7229_v62 }
 0xbad   : > { %v10508_v61 = vpop.eup %10507  ;;  %v15410_v29 = vadd.f32 1.0, %v10506_v63 }
 0xbae   : > { %v7965_v55 = vsel %vm7964_vm10, %v10504_v31, %v7961_v42  ;;  %v7973_v10 = vmul.f32 %v10508_v61, %v15396_v37  ;;  %10509 = vpow2.f32 %v10071_v9  ;;  %vm7978_vm12 = vweird.f32 %v10508_v61  ;;  %v7231_v37 = vpop.f32.mrf.mxu2  ;;  %v7419_v62 = vpop.f32.mrf.mxu3 }
 0xbaf   : > { %v7970_v36 = vsel %vm7967_vm11, %v7969_v60, %v7965_v55  ;;  %10511 = vrcp.f32 %v15410_v29  ;;  %vm7979_vm14 = vmor %vm7977_vm13, %vm7978_vm12  ;;  %v7543_v54 = vadd.f32 %v15251_v56, %v7499_v0  ;;  %v7996_v51 = vand.u32 2147483647, %v15410_v29 }
 0xbb0   : > { %v8530_v34 = vsel %vm8364_vm1, %v8393_v19, %v7970_v36  ;;  %v7974_v5 = vsub.f32 1.0, %v7973_v10  ;;  %v7998_v31 = vand.u32 2147483648, %v15410_v29  ;;  %vm7992_vm2 = vweird.f32 %v15410_v29 }
 0xbb1   : > { %8563 = vst.msk [vmem:[%s15331_s0 + $0x28] sm:$0xff] %vm8557_vm4, %v8530_v34  ;;  %v7696_v26 = vpop.f32.mrf.mxu1  ;;  %v7575_v47 = vmax.f32 %v7543_v54, 0.0  ;;  %vm7997_vm5 = vcmp.eq.f32.partialorder %v7996_v51, 8.507059e+37  ;;  %v7417_v9 = vadd.f32 %v7416_v27, %v7231_v37 }
 0xbb2   : > { %v7975_v11 = vmul.f32 %v10508_v61, %v7974_v5  ;;  %v7697_v20 = vadd.f32 %v15302_v28, %v7696_v26  ;;  %v7999_v30 = vor.u32 1.1754944e-38, %v7998_v31 }
 0xbb3   : > { %v7500_v18 = vpop.f32.mrf.mxu0 }
 0xbb4   : > { %v10510_v39 = vpop.eup %10509  ;;  %v7976_v48 = vadd.f32 %v10508_v61, %v7975_v11  ;;  %v10072_v15 = vmul.f32 -1.442695, %v7697_v20  ;;  %v7501_v24 = vadd.f32 %v7500_v18, %v7412_v21  ;;  %v8408_v20 = vpop.permute.xlu2 %8407 }
 0xbb5   : > { %v10512_v6 = vpop.eup %10511  ;;  %v15424_v57 = vadd.f32 1.0, %v10510_v39 }
 0xbb6   : > { %v7980_v32 = vsel %vm7979_vm14, %v10508_v61, %v7976_v48  ;;  %v7988_v13 = vmul.f32 %v10512_v6, %v15410_v29  ;;  %10513 = vpow2.f32 %v10072_v15  ;;  %v7544_v3 = vadd.f32 %v15251_v56, %v7501_v24  ;;  %v7234_v36 = vpop.f32.mrf.mxu2 }
 0xbb7   : > { %v7985_v1 = vsel %vm7982_vm15, %v7984_v40, %v7980_v32  ;;  %10515 = vrcp.f32 %v15424_v57  ;;  %vm7993_vm0 = vweird.f32 %v10512_v6  ;;  %v8013_v35 = vand.u32 2147483648, %v15424_v57 }
 0xbb8   : > { %v8531_v41 = vsel %vm8364_vm1, %v8398_v38, %v7985_v1  ;;  %v7989_v7 = vsub.f32 1.0, %v7988_v13  ;;  %v7576_v22 = vmax.f32 %v7544_v3, 0.0  ;;  %vm7994_vm3 = vmor %vm7992_vm2, %vm7993_vm0  ;;  %v8011_v55 = vand.u32 2147483647, %v15424_v57 }
 0xbb9   : > { %8564 = vst.msk [vmem:[%s15331_s0 + $0x30] sm:$0xff] %vm8557_vm4, %v8531_v41  ;;  %v7699_v17 = vpop.f32.mrf.mxu1  ;;  %vm8007_vm7 = vweird.f32 %v15424_v57  ;;  %v8014_v2 = vor.u32 1.1754944e-38, %v8013_v35 }
 0xbba   : > { %v7990_v46 = vmul.f32 %v10512_v6, %v7989_v7  ;;  %v7700_v16 = vadd.f32 %v15302_v28, %v7699_v17  ;;  %v7594_v12 = vpack.c.bf16 %v7576_v22, %v7575_v47  ;;  %vm8012_vm9 = vcmp.eq.f32.partialorder %v8011_v55, 8.507059e+37  ;;  %v7421_v17 = vpop.f32.mrf.mxu3 }
 0xbbb   : > { %v7503_v4 = vpop.f32.mrf.mxu0  ;;  %v7420_v22 = vadd.f32 %v7419_v62, %v7234_v36 }
 0xbbc   : > { %v10514_v33 = vpop.eup %10513  ;;  %v7991_v23 = vadd.f32 %v10512_v6, %v7990_v46  ;;  %v10073_v49 = vmul.f32 -1.442695, %v7700_v16  ;;  %7738 = vmatmul.bf16.gmra.mxu1 %v7594_v12  ;;  %v7504_v61 = vadd.f32 %v7503_v4, %v7415_v43  ;;  %v8413_v46 = vpop.permute.xlu0 %8412 }
 0xbbd   : > { %v10516_v25 = vpop.eup %10515  ;;  %v15438_v58 = vadd.f32 1.0, %v10514_v33 }
 0xbbe   : > { %v7995_v53 = vsel %vm7994_vm3, %v10512_v6, %v7991_v23  ;;  %v8003_v44 = vmul.f32 %v10516_v25, %v15424_v57  ;;  %10517 = vpow2.f32 %v10073_v49  ;;  %vm8008_vm6 = vweird.f32 %v10516_v25  ;;  %v7236_v47 = vpop.f32.mrf.mxu2 }
 0xbbf   : > { %v8000_v52 = vsel %vm7997_vm5, %v7999_v30, %v7995_v53  ;;  %10519 = vrcp.f32 %v15438_v58  ;;  %vm8009_vm8 = vmor %vm8007_vm7, %vm8008_vm6  ;;  %v7545_v26 = vadd.f32 %v15251_v56, %v7504_v61  ;;  %v8026_v24 = vand.u32 2147483647, %v15438_v58  ;;  %v10639_v61 = vld [vmem:[%s15619_s22] ss:$0 sm:$0xff] }
 0xbc0   : > { %v8532_v63 = vsel %vm8364_vm1, %v8403_v8, %v8000_v52  ;;  %v8004_v42 = vsub.f32 1.0, %v8003_v44  ;;  %v8028_v6 = vand.u32 2147483648, %v15438_v58  ;;  %vm8022_vm11 = vweird.f32 %v15438_v58 }
 0xbc1   : > { %8565 = vst.msk [vmem:[%s15331_s0 + $0x38] sm:$0xff] %vm8557_vm4, %v8532_v63  ;;  %v7701_v60 = vpop.f32.mrf.mxu1  ;;  %v7577_v40 = vmax.f32 %v7545_v26, 0.0  ;;  %vm8027_vm13 = vcmp.eq.f32.partialorder %v8026_v24, 8.507059e+37  ;;  %v7422_v23 = vadd.f32 %v7421_v17, %v7236_v47 }
 0xbc2   : > { %v8005_v29 = vmul.f32 %v10516_v25, %v8004_v42  ;;  %v7702_v10 = vadd.f32 %v15302_v28, %v7701_v60  ;;  %v8029_v51 = vor.u32 1.1754944e-38, %v8028_v6 }
 0xbc3   : > { %v7505_v19 = vpop.f32.mrf.mxu0 }
 0xbc4   : > { %v10518_v50 = vpop.eup %10517  ;;  %v8006_v14 = vadd.f32 %v10516_v25, %v8005_v29  ;;  %v10074_v34 = vmul.f32 -1.442695, %v7702_v10  ;;  %v7506_v5 = vadd.f32 %v7505_v19, %v7417_v9  ;;  %v8418_v10 = vpop.permute.xlu1 %8417 }
 0xbc5   : > { %v10520_v21 = vpop.eup %10519  ;;  %v15450_v0 = vadd.f32 1.0, %v10518_v50 }
 0xbc6   : > { %v8010_v11 = vsel %vm8009_vm8, %v10516_v25, %v8006_v14  ;;  %v8018_v45 = vmul.f32 %v10520_v21, %v15438_v58  ;;  %10521 = vpow2.f32 %v10074_v34  ;;  %v7546_v15 = vadd.f32 %v15251_v56, %v7506_v5 }
 0xbc7   : > { %v8015_v18 = vsel %vm8012_vm9, %v8014_v2, %v8010_v11  ;;  %10523 = vrcp.f32 %v15450_v0  ;;  %vm8023_vm10 = vweird.f32 %v10520_v21  ;;  %v8043_v49 = vand.u32 2147483648, %v15450_v0 }
 0xbc8   : > { %v8533_v39 = vsel %vm8364_vm1, %v8408_v20, %v8015_v18  ;;  %v8019_v48 = vsub.f32 1.0, %v8018_v45  ;;  %v7578_v32 = vmax.f32 %v7546_v15, 0.0  ;;  %vm8024_vm12 = vmor %vm8022_vm11, %vm8023_vm10  ;;  %v8041_v58 = vand.u32 2147483647, %v15450_v0 }
 0xbc9   : > { %8566 = vst.msk [vmem:[%s15331_s0 + $0x40] sm:$0xff] %vm8557_vm4, %v8533_v39  ;;  %v7704_v57 = vpop.f32.mrf.mxu1  ;;  %vm8037_vm15 = vweird.f32 %v15450_v0  ;;  %v8044_v9 = vor.u32 1.1754944e-38, %v8043_v49 }
 0xbca   : > { %v8020_v54 = vmul.f32 %v10520_v21, %v8019_v48  ;;  %v7705_v13 = vadd.f32 %v15302_v28, %v7704_v57  ;;  %v7595_v56 = vpack.c.bf16 %v7578_v32, %v7577_v40  ;;  %vm8042_vm2 = vcmp.eq.f32.partialorder %v8041_v58, 8.507059e+37  ;;  %v8423_v40 = vpop.permute.xlu2 %8422 }
 0xbcb   : > { %v7508_v38 = vpop.f32.mrf.mxu0 }
 0xbcc   : > { %v10522_v1 = vpop.eup %10521  ;;  %v8021_v41 = vadd.f32 %v10520_v21, %v8020_v54  ;;  %v10075_v7 = vmul.f32 -1.442695, %v7705_v13  ;;  %7743 = vmatmul.bf16.gmra.mxu1 %v7595_v56  ;;  %v7509_v12 = vadd.f32 %v7508_v38, %v7420_v22 }
 0xbcd   : > { %v10524_v3 = vpop.eup %10523  ;;  %v15464_v31 = vadd.f32 1.0, %v10522_v1 }
 0xbce   : > { %v8025_v37 = vsel %vm8024_vm12, %v10520_v21, %v8021_v41  ;;  %v8033_v27 = vmul.f32 %v10524_v3, %v15450_v0  ;;  %10525 = vpow2.f32 %v10075_v7  ;;  %vm8038_vm14 = vweird.f32 %v10524_v3 }
 0xbcf   : > { %v8030_v16 = vsel %vm8027_vm13, %v8029_v51, %v8025_v37  ;;  %10527 = vrcp.f32 %v15464_v31  ;;  %vm8039_vm0 = vmor %vm8037_vm15, %vm8038_vm14  ;;  %v7547_v60 = vadd.f32 %v10639_v61, %v7509_v12  ;;  %v8056_v14 = vand.u32 2147483647, %v15464_v31 }
 0xbd0   : > { %v8534_v4 = vsel %vm8364_vm1, %v8413_v46, %v8030_v16  ;;  %v8034_v33 = vsub.f32 1.0, %v8033_v27  ;;  %v8058_v34 = vand.u32 2147483648, %v15464_v31  ;;  %vm8052_vm5 = vweird.f32 %v15464_v31  ;;  %v8428_v46 = vpop.permute.xlu0 %8427 }
 0xbd1   : > { %8567 = vst.msk [vmem:[%s15331_s0 + $0x48] sm:$0xff] %vm8557_vm4, %v8534_v4  ;;  %v7706_v25 = vpop.f32.mrf.mxu1  ;;  %v7579_v5 = vmax.f32 %v7547_v60, 0.0  ;;  %vm8057_vm7 = vcmp.eq.f32.partialorder %v8056_v14, 8.507059e+37 }
 0xbd2   : > { %v8035_v30 = vmul.f32 %v10524_v3, %v8034_v33  ;;  %v7707_v53 = vadd.f32 %v15302_v28, %v7706_v25  ;;  %v8059_v48 = vor.u32 1.1754944e-38, %v8058_v34 }
 0xbd3   : > { %v7510_v44 = vpop.f32.mrf.mxu0 }
 0xbd4   : > { %v10526_v8 = vpop.eup %10525  ;;  %v8036_v43 = vadd.f32 %v10524_v3, %v8035_v30  ;;  %v10076_v52 = vmul.f32 -1.442695, %v7707_v53  ;;  %v7511_v63 = vadd.f32 %v7510_v44, %v7422_v23 }
 0xbd5   : > { %v10528_v42 = vpop.eup %10527  ;;  %v7862_v35 = vadd.f32 1.0, %v10526_v8 }
 0xbd6   : > { %v8040_v29 = vsel %vm8039_vm0, %v10524_v3, %v8036_v43  ;;  %v8048_v55 = vmul.f32 %v10528_v42, %v15464_v31  ;;  %10529 = vpow2.f32 %v10076_v52  ;;  %v7548_v62 = vadd.f32 %v10639_v61, %v7511_v63 }
 0xbd7   : > { %v8045_v19 = vsel %vm8042_vm2, %v8044_v9, %v8040_v29  ;;  %10531 = vrcp.f32 %v7862_v35  ;;  %vm8053_vm3 = vweird.f32 %v10528_v42  ;;  %v8073_v13 = vand.u32 2147483648, %v7862_v35 }
 0xbd8   : > { %v8535_v50 = vsel %vm8364_vm1, %v8418_v10, %v8045_v19  ;;  %v8049_v36 = vsub.f32 1.0, %v8048_v55  ;;  %v7580_v0 = vmax.f32 %v7548_v62, 0.0  ;;  %vm8054_vm6 = vmor %vm8052_vm5, %vm8053_vm3  ;;  %v8071_v41 = vand.u32 2147483647, %v7862_v35 }
 0xbd9   : > { %8568 = vst.msk [vmem:[%s15331_s0 + $0x50] sm:$0xff] %vm8557_vm4, %v8535_v50  ;;  %v7709_v21 = vpop.f32.mrf.mxu1  ;;  %vm8067_vm9 = vweird.f32 %v7862_v35  ;;  %v8074_v47 = vor.u32 1.1754944e-38, %v8073_v13 }
 0xbda   : > { %v8050_v2 = vmul.f32 %v10528_v42, %v8049_v36  ;;  %v7710_v26 = vadd.f32 %v15302_v28, %v7709_v21  ;;  %v7596_v18 = vpack.c.bf16 %v7580_v0, %v7579_v5  ;;  %vm8072_vm11 = vcmp.eq.f32.partialorder %v8071_v41, 8.507059e+37  ;;  %v8438_v0 = vpop.permute.xlu2 %8437 }
 0xbdc   : > { %v10530_v11 = vpop.eup %10529  ;;  %v8051_v45 = vadd.f32 %v10528_v42, %v8050_v2  ;;  %v10077_v20 = vmul.f32 -1.442695, %v7710_v26  ;;  %7748 = vmatmul.bf16.gmra.mxu1 %v7596_v18 }
 0xbdd   : > { %v10532_v39 = vpop.eup %10531  ;;  %v7863_v15 = vadd.f32 1.0, %v10530_v11 }
 0xbde   : > { %v8055_v24 = vsel %vm8054_vm6, %v10528_v42, %v8051_v45  ;;  %v8063_v6 = vmul.f32 %v10532_v39, %v7862_v35  ;;  %10533 = vpow2.f32 %v10077_v20  ;;  %vm8068_vm8 = vweird.f32 %v10532_v39  ;;  %v8433_v42 = vpop.permute.xlu1 %8432 }
 0xbdf   : > { %v8060_v57 = vsel %vm8057_vm7, %v8059_v48, %v8055_v24  ;;  %10535 = vrcp.f32 %v7863_v15  ;;  %vm8069_vm10 = vmor %vm8067_vm9, %vm8068_vm8  ;;  %v8088_v33 = vand.u32 2147483648, %v7863_v15  ;;  %v8086_v12 = vand.u32 2147483647, %v7863_v15 }
 0xbe0   : > { %v8536_v54 = vsel %vm8364_vm1, %v8423_v40, %v8060_v57  ;;  %v8064_v32 = vsub.f32 1.0, %v8063_v6  ;;  %vm8082_vm13 = vweird.f32 %v7863_v15 }
 0xbe1   : > { %8569 = vst.msk [vmem:[%s15331_s0 + $0x58] sm:$0xff] %vm8557_vm4, %v8536_v54  ;;  %v7711_v38 = vpop.f32.mrf.mxu1  ;;  %v8089_v8 = vor.u32 1.1754944e-38, %v8088_v33  ;;  %vm8087_vm15 = vcmp.eq.f32.partialorder %v8086_v12, 8.507059e+37 }
 0xbe2   : > { %v8065_v1 = vmul.f32 %v10532_v39, %v8064_v32  ;;  %v7712_v7 = vadd.f32 %v15302_v28, %v7711_v38 }
 0xbe4   : > { %v10534_v56 = vpop.eup %10533  ;;  %v8066_v3 = vadd.f32 %v10532_v39, %v8065_v1  ;;  %v10078_v51 = vmul.f32 -1.442695, %v7712_v7  ;;  %v8443_v1 = vpop.permute.xlu0 %8442 }
 0xbe5   : > { %v10536_v31 = vpop.eup %10535  ;;  %v7864_v17 = vadd.f32 1.0, %v10534_v56 }
 0xbe6   : > { %v8070_v37 = vsel %vm8069_vm10, %v10532_v39, %v8066_v3  ;;  %v8078_v27 = vmul.f32 %v10536_v31, %v7863_v15  ;;  %10537 = vpow2.f32 %v10078_v51  ;;  %vm8083_vm12 = vweird.f32 %v10536_v31 }
 0xbe7   : > { %v8075_v22 = vsel %vm8072_vm11, %v8074_v47, %v8070_v37  ;;  %10539 = vrcp.f32 %v7864_v17  ;;  %vm8084_vm14 = vmor %vm8082_vm13, %vm8083_vm12  ;;  %v8103_v60 = vand.u32 2147483648, %v7864_v17  ;;  %v8101_v10 = vand.u32 2147483647, %v7864_v17  ;;  %v15515_v47 = vld [vmem:[%s15621_s24] ss:$0 sm:$0xff] }
 0xbe8   : > { %v8537_v16 = vsel %vm8364_vm1, %v8428_v46, %v8075_v22  ;;  %v8079_v4 = vsub.f32 1.0, %v8078_v27  ;;  %vm8097_vm2 = vweird.f32 %v7864_v17 }
 0xbe9   : > { %8570 = vst.msk [vmem:[%s15331_s0 + $0x60] sm:$0xff] %vm8557_vm4, %v8537_v16  ;;  %v7714_v23 = vpop.f32.mrf.mxu1  ;;  %v8104_v34 = vor.u32 1.1754944e-38, %v8103_v60  ;;  %vm8102_vm5 = vcmp.eq.f32.partialorder %v8101_v10, 8.507059e+37 }
 0xbea   : > { %v8080_v49 = vmul.f32 %v10536_v31, %v8079_v4  ;;  %v7715_v25 = vadd.f32 %v15302_v28, %v7714_v23 }
 0xbec   : > { %v10538_v30 = vpop.eup %10537  ;;  %v8081_v58 = vadd.f32 %v10536_v31, %v8080_v49  ;;  %v10079_v53 = vmul.f32 -1.442695, %v7715_v25  ;;  %v8448_v49 = vpop.permute.xlu1 %8447 }
 0xbed   : > { %v10540_v44 = vpop.eup %10539  ;;  %v7865_v43 = vadd.f32 1.0, %v10538_v30 }
 0xbee   : > { %v8085_v52 = vsel %vm8084_vm14, %v10536_v31, %v8081_v58  ;;  %v8093_v63 = vmul.f32 %v10540_v44, %v7864_v17  ;;  %10541 = vpow2.f32 %v10079_v53  ;;  %vm8098_vm0 = vweird.f32 %v10540_v44 }
 0xbef   : > { %v8090_v9 = vsel %vm8087_vm15, %v8089_v8, %v8085_v52  ;;  %10543 = vrcp.f32 %v7865_v43  ;;  %vm8099_vm3 = vmor %vm8097_vm2, %vm8098_vm0  ;;  %v8118_v20 = vand.u32 2147483648, %v7865_v43  ;;  %v8116_v48 = vand.u32 2147483647, %v7865_v43 }
 0xbf0   : > { %v8538_v35 = vsel %vm8364_vm1, %v8433_v42, %v8090_v9  ;;  %v8094_v61 = vsub.f32 1.0, %v8093_v63  ;;  %vm8112_vm7 = vweird.f32 %v7865_v43 }
 0xbf1   : > { %8571 = vst.msk [vmem:[%s15331_s0 + $0x68] sm:$0xff] %vm8557_vm4, %v8538_v35  ;;  %v7716_v29 = vpop.f32.mrf.mxu1  ;;  %v8119_v54 = vor.u32 1.1754944e-38, %v8118_v20  ;;  %vm8117_vm9 = vcmp.eq.f32.partialorder %v8116_v48, 8.507059e+37 }
 0xbf2   : > { %v8095_v55 = vmul.f32 %v10540_v44, %v8094_v61  ;;  %v7717_v19 = vadd.f32 %v15302_v28, %v7716_v29 }
 0xbf4   : > { %v10542_v50 = vpop.eup %10541  ;;  %v8096_v36 = vadd.f32 %v10540_v44, %v8095_v55  ;;  %v10080_v62 = vmul.f32 -1.442695, %v7717_v19  ;;  %v8453_v55 = vpop.permute.xlu2 %8452 }
 0xbf5   : > { %v10544_v14 = vpop.eup %10543  ;;  %v7866_v5 = vadd.f32 1.0, %v10542_v50 }
 0xbf6   : > { %v8100_v21 = vsel %vm8099_vm3, %v10540_v44, %v8096_v36  ;;  %v8108_v2 = vmul.f32 %v10544_v14, %v7865_v43  ;;  %10545 = vpow2.f32 %v10080_v62  ;;  %vm8113_vm6 = vweird.f32 %v10544_v14 }
 0xbf7   : > { %v8105_v26 = vsel %vm8102_vm5, %v8104_v34, %v8100_v21  ;;  %10547 = vrcp.f32 %v7866_v5  ;;  %vm8114_vm8 = vmor %vm8112_vm7, %vm8113_vm6  ;;  %v8133_v56 = vand.u32 2147483648, %v7866_v5  ;;  %v8131_v31 = vand.u32 2147483647, %v7866_v5 }
 0xbf8   : > { %v8539_v11 = vsel %vm8364_vm1, %v8438_v0, %v8105_v26  ;;  %v8109_v45 = vsub.f32 1.0, %v8108_v2  ;;  %vm8127_vm11 = vweird.f32 %v7866_v5 }
 0xbf9   : > { %8572 = vst.msk [vmem:[%s15331_s0 + $0x70] sm:$0xff] %vm8557_vm4, %v8539_v11  ;;  %v7719_v18 = vpop.f32.mrf.mxu1  ;;  %v8134_v16 = vor.u32 1.1754944e-38, %v8133_v56  ;;  %vm8132_vm13 = vcmp.eq.f32.partialorder %v8131_v31, 8.507059e+37  ;;  %v8463_v56 = vpop.permute.xlu1 %8462 }
 0xbfa   : > { %v8110_v39 = vmul.f32 %v10544_v14, %v8109_v45  ;;  %v7720_v15 = vadd.f32 %v15302_v28, %v7719_v18  ;;  %v8458_v18 = vpop.permute.xlu0 %8457 }
 0xbfc   : > { %v10546_v24 = vpop.eup %10545  ;;  %v8111_v6 = vadd.f32 %v10544_v14, %v8110_v39  ;;  %v10081_v40 = vmul.f32 -1.442695, %v7720_v15 }
 0xbfd   : > { %v10548_v57 = vpop.eup %10547  ;;  %v7867_v32 = vadd.f32 1.0, %v10546_v24 }
 0xbfe   : > { %v8115_v13 = vsel %vm8114_vm8, %v10544_v14, %v8111_v6  ;;  %v8123_v38 = vmul.f32 %v10548_v57, %v7866_v5  ;;  %10549 = vpow2.f32 %v10081_v40  ;;  %vm8128_vm10 = vweird.f32 %v10548_v57 }
 0xbff   : > { %v8120_v41 = vsel %vm8117_vm9, %v8119_v54, %v8115_v13  ;;  %10551 = vrcp.f32 %v7867_v32  ;;  %vm8129_vm12 = vmor %vm8127_vm11, %vm8128_vm10  ;;  %v8148_v58 = vand.u32 2147483648, %v7867_v32  ;;  %v8146_v44 = vand.u32 2147483647, %v7867_v32 }
 0xc00   : > { %v8540_v7 = vsel %vm8364_vm1, %v8443_v1, %v8120_v41  ;;  %v8124_v28 = vsub.f32 1.0, %v8123_v38  ;;  %vm8142_vm15 = vweird.f32 %v7867_v32 }
 0xc01   : > { %8573 = vst.msk [vmem:[%s15331_s0 + $0x78] sm:$0xff] %vm8557_vm4, %v8540_v7  ;;  %v7721_v3 = vpop.f32.mrf.mxu1  ;;  %v8149_v9 = vor.u32 1.1754944e-38, %v8148_v58  ;;  %vm8147_vm2 = vcmp.eq.f32.partialorder %v8146_v44, 8.507059e+37  ;;  %v8468_v44 = vpop.permute.xlu2 %8467 }
 0xc02   : > { %v8125_v51 = vmul.f32 %v10548_v57, %v8124_v28  ;;  %v7722_v17 = vadd.f32 %v15515_v47, %v7721_v3 }
 0xc04   : > { %v10550_v37 = vpop.eup %10549  ;;  %v8126_v27 = vadd.f32 %v10548_v57, %v8125_v51  ;;  %v10082_v46 = vmul.f32 -1.442695, %v7722_v17 }
 0xc05   : > { %v10552_v22 = vpop.eup %10551  ;;  %v7868_v4 = vadd.f32 1.0, %v10550_v37 }
 0xc06   : > { %v8130_v33 = vsel %vm8129_vm12, %v10548_v57, %v8126_v27  ;;  %v8138_v23 = vmul.f32 %v10552_v22, %v7867_v32  ;;  %10553 = vpow2.f32 %v10082_v46  ;;  %vm8143_vm14 = vweird.f32 %v10552_v22 }
 0xc07   : > { %v8135_v12 = vsel %vm8132_vm13, %v8134_v16, %v8130_v33  ;;  %10555 = vrcp.f32 %v7868_v4  ;;  %vm8144_vm0 = vmor %vm8142_vm15, %vm8143_vm14  ;;  %v8163_v36 = vand.u32 2147483648, %v7868_v4  ;;  %v8161_v14 = vand.u32 2147483647, %v7868_v4 }
 0xc08   : > { %v8541_v25 = vsel %vm8364_vm1, %v8448_v49, %v8135_v12  ;;  %v8139_v30 = vsub.f32 1.0, %v8138_v23  ;;  %vm8157_vm5 = vweird.f32 %v7868_v4 }
 0xc09   : > { %8574 = vst.msk [vmem:[%s15331_s0 + $0x80] sm:$0xff] %vm8557_vm4, %v8541_v25  ;;  %v7724_v8 = vpop.f32.mrf.mxu1  ;;  %v8164_v0 = vor.u32 1.1754944e-38, %v8163_v36  ;;  %vm8162_vm7 = vcmp.eq.f32.partialorder %v8161_v14, 8.507059e+37  ;;  %v8473_v14 = vpop.permute.xlu0 %8472 }
 0xc0a   : > { %v8140_v53 = vmul.f32 %v10552_v22, %v8139_v30  ;;  %v7725_v63 = vadd.f32 %v15515_v47, %v7724_v8 }
 0xc0c   : > { %v10554_v43 = vpop.eup %10553  ;;  %v8141_v52 = vadd.f32 %v10552_v22, %v8140_v53  ;;  %v10083_v29 = vmul.f32 -1.442695, %v7725_v63 }
 0xc0d   : > { %v10556_v42 = vpop.eup %10555  ;;  %v7869_v35 = vadd.f32 1.0, %v10554_v43 }
 0xc0e   : > { %v8145_v61 = vsel %vm8144_vm0, %v10552_v22, %v8141_v52  ;;  %v8153_v60 = vmul.f32 %v10556_v42, %v7868_v4  ;;  %vm8158_vm3 = vweird.f32 %v10556_v42 }
 0xc0f   : > { %v8150_v10 = vsel %vm8147_vm2, %v8149_v9, %v8145_v61  ;;  %10557 = vrcp.f32 %v7869_v35  ;;  %vm8159_vm6 = vmor %vm8157_vm5, %vm8158_vm3  ;;  %v8178_v6 = vand.u32 2147483648, %v7869_v35  ;;  %v8176_v57 = vand.u32 2147483647, %v7869_v35 }
 0xc10   : > { %v8542_v19 = vsel %vm8364_vm1, %v8453_v55, %v8150_v10  ;;  %v8154_v50 = vsub.f32 1.0, %v8153_v60  ;;  %10559 = vpow2.f32 %v10083_v29  ;;  %vm8172_vm9 = vweird.f32 %v7869_v35 }
 0xc11   : > { %8575 = vst.msk [vmem:[%s15331_s0 + $0x88] sm:$0xff] %vm8557_vm4, %v8542_v19  ;;  %v7726_v34 = vpop.f32.mrf.mxu1  ;;  %v8179_v38 = vor.u32 1.1754944e-38, %v8178_v6  ;;  %vm8177_vm11 = vcmp.eq.f32.partialorder %v8176_v57, 8.507059e+37  ;;  %v8478_v57 = vpop.permute.xlu1 %8477 }
 0xc12   : > { %v8155_v62 = vmul.f32 %v10556_v42, %v8154_v50  ;;  %v7727_v21 = vadd.f32 %v15515_v47, %v7726_v34 }
 0xc14   : > { %v8156_v5 = vadd.f32 %v10556_v42, %v8155_v62  ;;  %v10084_v20 = vmul.f32 -1.442695, %v7727_v21 }
 0xc15   : > { %v10558_v2 = vpop.eup %10557 }
 0xc16   : > { %v10560_v26 = vpop.eup %10559  ;;  %v8160_v11 = vsel %vm8159_vm6, %v10556_v42, %v8156_v5  ;;  %v8168_v45 = vmul.f32 %v10558_v2, %v7869_v35  ;;  %10561 = vpow2.f32 %v10084_v20  ;;  %vm8173_vm8 = vweird.f32 %v10558_v2 }
 0xc17   : > { %v8165_v39 = vsel %vm8162_vm7, %v8164_v0, %v8160_v11  ;;  %v7870_v48 = vadd.f32 1.0, %v10560_v26  ;;  %vm8174_vm10 = vmor %vm8172_vm9, %vm8173_vm8 }
 0xc18   : > { %v8543_v15 = vsel %vm8364_vm1, %v8458_v18, %v8165_v39  ;;  %v8169_v24 = vsub.f32 1.0, %v8168_v45 }
 0xc19   : > { %8576 = vst.msk [vmem:[%s15331_s0 + $0x90] sm:$0xff] %vm8557_vm4, %v8543_v15  ;;  %10563 = vrcp.f32 %v7870_v48  ;;  %v7729_v54 = vpop.f32.mrf.mxu1  ;;  %v8193_v27 = vand.u32 2147483648, %v7870_v48  ;;  %v8191_v16 = vand.u32 2147483647, %v7870_v48  ;;  %vm8187_vm13 = vweird.f32 %v7870_v48 }
 0xc1a   : > { %v8170_v40 = vmul.f32 %v10558_v2, %v8169_v24  ;;  %v7730_v13 = vadd.f32 %v15515_v47, %v7729_v54 }
 0xc1b   : > { %v8194_v25 = vor.u32 1.1754944e-38, %v8193_v27  ;;  %vm8192_vm15 = vcmp.eq.f32.partialorder %v8191_v16, 8.507059e+37 }
 0xc1c   : > { %v8171_v32 = vadd.f32 %v10558_v2, %v8170_v40  ;;  %v10562_v1 = vpop.eup %10561  ;;  %v10085_v7 = vmul.f32 -1.442695, %v7730_v13 }
 0xc1d   : > { %v7871_v51 = vadd.f32 1.0, %v10562_v1 }
 0xc1e   : > { %v8175_v41 = vsel %vm8174_vm10, %v10558_v2, %v8171_v32  ;;  %10565 = vpow2.f32 %v10085_v7 }
 0xc1f   : > { %v10564_v28 = vpop.eup %10563  ;;  %v8180_v3 = vsel %vm8177_vm11, %v8179_v38, %v8175_v41  ;;  %10567 = vrcp.f32 %v7871_v51  ;;  %v8208_v63 = vand.u32 2147483648, %v7871_v51  ;;  %v8206_v35 = vand.u32 2147483647, %v7871_v51 }
 0xc20   : > { %v8544_v31 = vsel %vm8364_vm1, %v8463_v56, %v8180_v3  ;;  %v8183_v17 = vmul.f32 %v10564_v28, %v7870_v48  ;;  %vm8188_vm12 = vweird.f32 %v10564_v28  ;;  %vm8202_vm2 = vweird.f32 %v7871_v51 }
 0xc21   : > { %8577 = vst.msk [vmem:[%s15331_s0 + $0x98] sm:$0xff] %vm8557_vm4, %v8544_v31  ;;  %v7731_v46 = vpop.f32.mrf.mxu1  ;;  %vm8189_vm14 = vmor %vm8187_vm13, %vm8188_vm12  ;;  %v8209_v19 = vor.u32 1.1754944e-38, %v8208_v63  ;;  %vm8207_vm5 = vcmp.eq.f32.partialorder %v8206_v35, 8.507059e+37 }
 0xc22   : > { %v8184_v37 = vsub.f32 1.0, %v8183_v17  ;;  %v7732_v4 = vadd.f32 %v15515_v47, %v7731_v46 }
 0xc24   : > { %v8185_v22 = vmul.f32 %v10564_v28, %v8184_v37  ;;  %v10566_v33 = vpop.eup %10565  ;;  %v10086_v49 = vmul.f32 -1.442695, %v7732_v4 }
 0xc25   : > { %v10568_v12 = vpop.eup %10567  ;;  %v7872_v30 = vadd.f32 1.0, %v10566_v33 }
 0xc26   : > { %v8186_v23 = vadd.f32 %v10564_v28, %v8185_v22  ;;  %v8198_v53 = vmul.f32 %v10568_v12, %v7871_v51  ;;  %10569 = vpow2.f32 %v10086_v49  ;;  %vm8203_vm0 = vweird.f32 %v10568_v12  ;;  %v8483_v22 = vpop.permute.xlu2 %8482 }
 0xc27   : > { %10571 = vrcp.f32 %v7872_v30  ;;  %vm8204_vm3 = vmor %vm8202_vm2, %vm8203_vm0  ;;  %v8223_v2 = vand.u32 2147483648, %v7872_v30  ;;  %v8221_v11 = vand.u32 2147483647, %v7872_v30  ;;  %vm8217_vm7 = vweird.f32 %v7872_v30 }
 0xc28   : > { %v8190_v58 = vsel %vm8189_vm14, %v10564_v28, %v8186_v23  ;;  %v8199_v52 = vsub.f32 1.0, %v8198_v53 }
 0xc29   : > { %v8195_v8 = vsel %vm8192_vm15, %v8194_v25, %v8190_v58  ;;  %v7734_v42 = vpop.f32.mrf.mxu1  ;;  %v8224_v15 = vor.u32 1.1754944e-38, %v8223_v2  ;;  %vm8222_vm9 = vcmp.eq.f32.partialorder %v8221_v11, 8.507059e+37 }
 0xc2a   : > { %v8545_v43 = vsel %vm8364_vm1, %v8468_v44, %v8195_v8  ;;  %v8200_v9 = vmul.f32 %v10568_v12, %v8199_v52  ;;  %v7735_v61 = vadd.f32 %v15515_v47, %v7734_v42 }
 0xc2b   : > { %8578 = vst.msk [vmem:[%s15331_s0 + $0xa0] sm:$0xff] %vm8557_vm4, %v8545_v43 }
 0xc2c   : > { %v10570_v60 = vpop.eup %10569  ;;  %v8201_v29 = vadd.f32 %v10568_v12, %v8200_v9  ;;  %v10087_v55 = vmul.f32 -1.442695, %v7735_v61  ;;  %v8488_v9 = vpop.permute.xlu0 %8487 }
 0xc2d   : > { %v10572_v10 = vpop.eup %10571  ;;  %v7873_v50 = vadd.f32 1.0, %v10570_v60 }
 0xc2e   : > { %v8205_v36 = vsel %vm8204_vm3, %v10568_v12, %v8201_v29  ;;  %v8213_v62 = vmul.f32 %v10572_v10, %v7872_v30  ;;  %10573 = vpow2.f32 %v10087_v55  ;;  %vm8218_vm6 = vweird.f32 %v10572_v10 }
 0xc2f   : > { %v8210_v34 = vsel %vm8207_vm5, %v8209_v19, %v8205_v36  ;;  %10575 = vrcp.f32 %v7873_v50  ;;  %vm8219_vm8 = vmor %vm8217_vm7, %vm8218_vm6  ;;  %v8238_v38 = vand.u32 2147483648, %v7873_v50  ;;  %v8236_v7 = vand.u32 2147483647, %v7873_v50 }
 0xc30   : > { %v8546_v5 = vsel %vm8364_vm1, %v8473_v14, %v8210_v34  ;;  %v8214_v21 = vsub.f32 1.0, %v8213_v62  ;;  %vm8232_vm11 = vweird.f32 %v7873_v50 }
 0xc31   : > { %8579 = vst.msk [vmem:[%s15331_s0 + $0xa8] sm:$0xff] %vm8557_vm4, %v8546_v5  ;;  %v7736_v0 = vpop.f32.mrf.mxu1  ;;  %v8239_v17 = vor.u32 1.1754944e-38, %v8238_v38  ;;  %vm8237_vm13 = vcmp.eq.f32.partialorder %v8236_v7, 8.507059e+37 }
 0xc32   : > { %v8215_v26 = vmul.f32 %v10572_v10, %v8214_v21  ;;  %v7737_v45 = vadd.f32 %v15515_v47, %v7736_v0 }
 0xc34   : > { %v10574_v20 = vpop.eup %10573  ;;  %v8216_v18 = vadd.f32 %v10572_v10, %v8215_v26  ;;  %v10088_v39 = vmul.f32 -1.442695, %v7737_v45  ;;  %v8493_v26 = vpop.permute.xlu1 %8492 }
 0xc35   : > { %v10576_v48 = vpop.eup %10575  ;;  %v7874_v24 = vadd.f32 1.0, %v10574_v20 }
 0xc36   : > { %v8220_v6 = vsel %vm8219_vm8, %v10572_v10, %v8216_v18  ;;  %v8228_v40 = vmul.f32 %v10576_v48, %v7873_v50  ;;  %10577 = vpow2.f32 %v10088_v39  ;;  %vm8233_vm10 = vweird.f32 %v10576_v48 }
 0xc37   : > { %v8225_v54 = vsel %vm8222_vm9, %v8224_v15, %v8220_v6  ;;  %10579 = vrcp.f32 %v7874_v24  ;;  %vm8234_vm12 = vmor %vm8232_vm11, %vm8233_vm10  ;;  %v8253_v23 = vand.u32 2147483648, %v7874_v24  ;;  %v8251_v25 = vand.u32 2147483647, %v7874_v24 }
 0xc38   : > { %v8547_v32 = vsel %vm8364_vm1, %v8478_v57, %v8225_v54  ;;  %v8229_v13 = vsub.f32 1.0, %v8228_v40  ;;  %vm8247_vm15 = vweird.f32 %v7874_v24 }
 0xc39   : > { %8580 = vst.msk [vmem:[%s15331_s0 + $0xb0] sm:$0xff] %vm8557_vm4, %v8547_v32  ;;  %v7739_v1 = vpop.f32.mrf.mxu1  ;;  %v8254_v43 = vor.u32 1.1754944e-38, %v8253_v23  ;;  %vm8252_vm2 = vcmp.eq.f32.partialorder %v8251_v25, 8.507059e+37 }
 0xc3a   : > { %v8230_v41 = vmul.f32 %v10576_v48, %v8229_v13  ;;  %v7740_v28 = vadd.f32 %v15515_v47, %v7739_v1 }
 0xc3c   : > { %v10578_v56 = vpop.eup %10577  ;;  %v8231_v3 = vadd.f32 %v10576_v48, %v8230_v41  ;;  %v10089_v51 = vmul.f32 -1.442695, %v7740_v28  ;;  %v8498_v41 = vpop.permute.xlu2 %8497 }
 0xc3d   : > { %v10580_v31 = vpop.eup %10579  ;;  %v7875_v37 = vadd.f32 1.0, %v10578_v56 }
 0xc3e   : > { %v8235_v27 = vsel %vm8234_vm12, %v10576_v48, %v8231_v3  ;;  %v8243_v46 = vmul.f32 %v10580_v31, %v7874_v24  ;;  %10581 = vpow2.f32 %v10089_v51  ;;  %vm8248_vm14 = vweird.f32 %v10580_v31 }
 0xc3f   : > { %v8240_v16 = vsel %vm8237_vm13, %v8239_v17, %v8235_v27  ;;  %10583 = vrcp.f32 %v7875_v37  ;;  %vm8249_vm0 = vmor %vm8247_vm15, %vm8248_vm14  ;;  %v8268_v29 = vand.u32 2147483648, %v7875_v37  ;;  %v8266_v19 = vand.u32 2147483647, %v7875_v37 }
 0xc40   : > { %v8548_v4 = vsel %vm8364_vm1, %v8483_v22, %v8240_v16  ;;  %v8244_v33 = vsub.f32 1.0, %v8243_v46  ;;  %vm8262_vm5 = vweird.f32 %v7875_v37 }
 0xc41   : > { %8581 = vst.msk [vmem:[%s15331_s0 + $0xb8] sm:$0xff] %vm8557_vm4, %v8548_v4  ;;  %v7741_v49 = vpop.f32.mrf.mxu1  ;;  %v8269_v5 = vor.u32 1.1754944e-38, %v8268_v29  ;;  %vm8267_vm7 = vcmp.eq.f32.partialorder %v8266_v19, 8.507059e+37 }
 0xc42   : > { %v8245_v12 = vmul.f32 %v10580_v31, %v8244_v33  ;;  %v7742_v30 = vadd.f32 %v15515_v47, %v7741_v49 }
 0xc44   : > { %v10582_v58 = vpop.eup %10581  ;;  %v8246_v53 = vadd.f32 %v10580_v31, %v8245_v12  ;;  %v10090_v44 = vmul.f32 -1.442695, %v7742_v30  ;;  %v8503_v12 = vpop.permute.xlu0 %8502 }
 0xc45   : > { %v10584_v8 = vpop.eup %10583  ;;  %v7876_v52 = vadd.f32 1.0, %v10582_v58 }
 0xc46   : > { %v8250_v63 = vsel %vm8249_vm0, %v10580_v31, %v8246_v53  ;;  %v8258_v42 = vmul.f32 %v10584_v8, %v7875_v37  ;;  %10585 = vpow2.f32 %v10090_v44  ;;  %vm8263_vm3 = vweird.f32 %v10584_v8 }
 0xc47   : > { %v8255_v35 = vsel %vm8252_vm2, %v8254_v43, %v8250_v63  ;;  %10587 = vrcp.f32 %v7876_v52  ;;  %vm8264_vm6 = vmor %vm8262_vm5, %vm8263_vm3  ;;  %v8283_v18 = vand.u32 2147483648, %v7876_v52  ;;  %v8281_v15 = vand.u32 2147483647, %v7876_v52 }
 0xc48   : > { %v8549_v61 = vsel %vm8364_vm1, %v8488_v9, %v8255_v35  ;;  %v8259_v60 = vsub.f32 1.0, %v8258_v42  ;;  %vm8277_vm9 = vweird.f32 %v7876_v52 }
 0xc49   : > { %8582 = vst.msk [vmem:[%s15331_s0 + $0xc0] sm:$0xff] %vm8557_vm4, %v8549_v61  ;;  %v7744_v55 = vpop.f32.mrf.mxu1  ;;  %v8284_v32 = vor.u32 1.1754944e-38, %v8283_v18  ;;  %vm8282_vm11 = vcmp.eq.f32.partialorder %v8281_v15, 8.507059e+37 }
 0xc4a   : > { %v8260_v10 = vmul.f32 %v10584_v8, %v8259_v60  ;;  %v7745_v50 = vadd.f32 %v15515_v47, %v7744_v55 }
 0xc4c   : > { %v10586_v36 = vpop.eup %10585  ;;  %v8261_v62 = vadd.f32 %v10584_v8, %v8260_v10  ;;  %v10091_v14 = vmul.f32 -1.442695, %v7745_v50  ;;  %v8508_v10 = vpop.permute.xlu1 %8507 }
 0xc4d   : > { %v10588_v34 = vpop.eup %10587  ;;  %v7877_v21 = vadd.f32 1.0, %v10586_v36 }
 0xc4e   : > { %v8265_v2 = vsel %vm8264_vm6, %v10584_v8, %v8261_v62  ;;  %v8273_v0 = vmul.f32 %v10588_v34, %v7876_v52  ;;  %10589 = vpow2.f32 %v10091_v14  ;;  %vm8278_vm8 = vweird.f32 %v10588_v34 }
 0xc4f   : > { %v8270_v11 = vsel %vm8267_vm7, %v8269_v5, %v8265_v2  ;;  %10591 = vrcp.f32 %v7877_v21  ;;  %vm8279_vm10 = vmor %vm8277_vm9, %vm8278_vm8  ;;  %v8298_v3 = vand.u32 2147483648, %v7877_v21  ;;  %v8296_v17 = vand.u32 2147483647, %v7877_v21 }
 0xc50   : > { %v8550_v45 = vsel %vm8364_vm1, %v8493_v26, %v8270_v11  ;;  %v8274_v20 = vsub.f32 1.0, %v8273_v0  ;;  %vm8292_vm13 = vweird.f32 %v7877_v21 }
 0xc51   : > { %8583 = vst.msk [vmem:[%s15331_s0 + $0xc8] sm:$0xff] %vm8557_vm4, %v8550_v45  ;;  %v7746_v39 = vpop.f32.mrf.mxu1  ;;  %v8299_v4 = vor.u32 1.1754944e-38, %v8298_v3  ;;  %vm8297_vm15 = vcmp.eq.f32.partialorder %v8296_v17, 8.507059e+37  ;;  %v8513_v45 = vpop.permute.xlu2 %8512 }
 0xc52   : > { %v8275_v48 = vmul.f32 %v10588_v34, %v8274_v20  ;;  %v7747_v24 = vadd.f32 %v15515_v47, %v7746_v39 }
 0xc54   : > { %v10590_v6 = vpop.eup %10589  ;;  %v8276_v40 = vadd.f32 %v10588_v34, %v8275_v48  ;;  %v10092_v57 = vmul.f32 -1.442695, %v7747_v24  ;;  %v8523_v17 = vpop.permute.xlu1 %8522 }
 0xc55   : > { %v10592_v54 = vpop.eup %10591  ;;  %v7878_v13 = vadd.f32 1.0, %v10590_v6 }
 0xc56   : > { %v8280_v38 = vsel %vm8279_vm10, %v10588_v34, %v8276_v40  ;;  %v8288_v1 = vmul.f32 %v10592_v54, %v7877_v21  ;;  %10593 = vpow2.f32 %v10092_v57  ;;  %vm8293_vm12 = vweird.f32 %v10592_v54 }
 0xc57   : > { %v8285_v7 = vsel %vm8282_vm11, %v8284_v32, %v8280_v38  ;;  %10595 = vrcp.f32 %v7878_v13  ;;  %vm8294_vm14 = vmor %vm8292_vm13, %vm8293_vm12  ;;  %v8313_v53 = vand.u32 2147483648, %v7878_v13  ;;  %v8311_v43 = vand.u32 2147483647, %v7878_v13 }
 0xc58   : > { %v8551_v28 = vsel %vm8364_vm1, %v8498_v41, %v8285_v7  ;;  %v8289_v56 = vsub.f32 1.0, %v8288_v1  ;;  %vm8307_vm2 = vweird.f32 %v7878_v13 }
 0xc59   : > { %8584 = vst.msk [vmem:[%s15331_s0 + $0xd0] sm:$0xff] %vm8557_vm4, %v8551_v28  ;;  %v7749_v51 = vpop.f32.mrf.mxu1  ;;  %v8314_v61 = vor.u32 1.1754944e-38, %v8313_v53  ;;  %vm8312_vm5 = vcmp.eq.f32.partialorder %v8311_v43, 8.507059e+37 }
 0xc5a   : > { %v8290_v31 = vmul.f32 %v10592_v54, %v8289_v56  ;;  %v7750_v37 = vadd.f32 %v15515_v47, %v7749_v51 }
 0xc5c   : > { %v10594_v27 = vpop.eup %10593  ;;  %v8291_v46 = vadd.f32 %v10592_v54, %v8290_v31  ;;  %v10093_v22 = vmul.f32 -1.442695, %v7750_v37 }
 0xc5d   : > { %v10596_v16 = vpop.eup %10595  ;;  %v7879_v33 = vadd.f32 1.0, %v10594_v27 }
 0xc5e   : > { %v8295_v23 = vsel %vm8294_vm14, %v10592_v54, %v8291_v46  ;;  %v8303_v49 = vmul.f32 %v10596_v16, %v7878_v13  ;;  %10597 = vpow2.f32 %v10093_v22  ;;  %vm8308_vm0 = vweird.f32 %v10596_v16  ;;  %v8518_v13 = vpop.permute.xlu0 %8517 }
 0xc5f   : > { %v8300_v25 = vsel %vm8297_vm15, %v8299_v4, %v8295_v23  ;;  %10599 = vrcp.f32 %v7879_v33  ;;  %vm8309_vm3 = vmor %vm8307_vm2, %vm8308_vm0  ;;  %v8328_v36 = vand.u32 2147483648, %v7879_v33  ;;  %v8326_v14 = vand.u32 2147483647, %v7879_v33 }
 0xc60   : > { %v8552_v30 = vsel %vm8364_vm1, %v8503_v12, %v8300_v25  ;;  %v8304_v58 = vsub.f32 1.0, %v8303_v49  ;;  %vm8322_vm7 = vweird.f32 %v7879_v33 }
 0xc61   : > { %8585 = vst.msk [vmem:[%s15331_s0 + $0xd8] sm:$0xff] %vm8557_vm4, %v8552_v30  ;;  %v7751_v44 = vpop.f32.mrf.mxu1  ;;  %v8329_v2 = vor.u32 1.1754944e-38, %v8328_v36  ;;  %vm8327_vm9 = vcmp.eq.f32.partialorder %v8326_v14, 8.507059e+37 }
 0xc62   : > { %v8305_v8 = vmul.f32 %v10596_v16, %v8304_v58  ;;  %v7752_v52 = vadd.f32 %v15515_v47, %v7751_v44 }
 0xc64   : > { %v10598_v63 = vpop.eup %10597  ;;  %v8306_v42 = vadd.f32 %v10596_v16, %v8305_v8  ;;  %v10094_v9 = vmul.f32 -1.442695, %v7752_v52 }
 0xc65   : > { %v10600_v35 = vpop.eup %10599  ;;  %v7880_v60 = vadd.f32 1.0, %v10598_v63 }
 0xc66   : > { %v8310_v29 = vsel %vm8309_vm3, %v10596_v16, %v8306_v42  ;;  %v8318_v55 = vmul.f32 %v10600_v35, %v7879_v33  ;;  %10601 = vpow2.f32 %v10094_v9  ;;  %vm8323_vm6 = vweird.f32 %v10600_v35 }
 0xc67   : > { %v8315_v19 = vsel %vm8312_vm5, %v8314_v61, %v8310_v29  ;;  %10603 = vrcp.f32 %v7880_v60  ;;  %vm8324_vm8 = vmor %vm8322_vm7, %vm8323_vm6  ;;  %v8343_v48 = vand.u32 2147483648, %v7880_v60  ;;  %v8341_v24 = vand.u32 2147483647, %v7880_v60 }
 0xc68   : > { %v8553_v50 = vsel %vm8364_vm1, %v8508_v10, %v8315_v19  ;;  %v8319_v47 = vsub.f32 1.0, %v8318_v55  ;;  %vm8337_vm11 = vweird.f32 %v7880_v60 }
 0xc69   : > { %8586 = vst.msk [vmem:[%s15331_s0 + $0xe0] sm:$0xff] %vm8557_vm4, %v8553_v50  ;;  %v8344_v57 = vor.u32 1.1754944e-38, %v8343_v48  ;;  %vm8342_vm13 = vcmp.eq.f32.partialorder %v8341_v24, 8.507059e+37 }
 0xc6a   : > { %v8320_v62 = vmul.f32 %v10600_v35, %v8319_v47 }
 0xc6c   : > { %v10602_v34 = vpop.eup %10601  ;;  %v8321_v5 = vadd.f32 %v10600_v35, %v8320_v62 }
 0xc6d   : > { %v10604_v21 = vpop.eup %10603  ;;  %v7881_v0 = vadd.f32 1.0, %v10602_v34 }
 0xc6e   : > { %v8325_v26 = vsel %vm8324_vm8, %v10600_v35, %v8321_v5  ;;  %v8333_v11 = vmul.f32 %v10604_v21, %v7880_v60  ;;  %vm8338_vm10 = vweird.f32 %v10604_v21 }
 0xc6f   : > { %v8330_v20 = vsel %vm8327_vm9, %v8329_v2, %v8325_v26  ;;  %10605 = vrcp.f32 %v7881_v0  ;;  %vm8339_vm12 = vmor %vm8337_vm11, %vm8338_vm10  ;;  %v8358_v7 = vand.u32 2147483648, %v7881_v0  ;;  %v8356_v56 = vand.u32 2147483647, %v7881_v0 }
 0xc70   : > { %v8554_v18 = vsel %vm8364_vm1, %v8513_v45, %v8330_v20  ;;  %v8334_v39 = vsub.f32 1.0, %v8333_v11  ;;  %vm8352_vm15 = vweird.f32 %v7881_v0 }
 0xc71   : > { %8587 = vst.msk [vmem:[%s15331_s0 + $0xe8] sm:$0xff] %vm8557_vm4, %v8554_v18  ;;  %v8359_v51 = vor.u32 1.1754944e-38, %v8358_v7  ;;  %vm8357_vm2 = vcmp.eq.f32.partialorder %v8356_v56, 8.507059e+37 }
 0xc72   : > { %v8335_v15 = vmul.f32 %v10604_v21, %v8334_v39 }
 0xc74   : > { %v8336_v6 = vadd.f32 %v10604_v21, %v8335_v15 }
 0xc75   : > { %v10606_v40 = vpop.eup %10605 }
 0xc76   : > { %v8340_v54 = vsel %vm8339_vm12, %v10604_v21, %v8336_v6  ;;  %v8348_v32 = vmul.f32 %v10606_v40, %v7881_v0  ;;  %vm8353_vm14 = vweird.f32 %v10606_v40 }
 0xc77   : > { %v8345_v38 = vsel %vm8342_vm13, %v8344_v57, %v8340_v54  ;;  %vm8354_vm0 = vmor %vm8352_vm15, %vm8353_vm14 }
 0xc78   : > { %v8555_v1 = vsel %vm8364_vm1, %v8518_v13, %v8345_v38  ;;  %v8349_v41 = vsub.f32 1.0, %v8348_v32 }
 0xc79   : > { %8588 = vst.msk [vmem:[%s15331_s0 + $0xf0] sm:$0xff] %vm8557_vm4, %v8555_v1 }
 0xc7a   : > { %v8350_v28 = vmul.f32 %v10606_v40, %v8349_v41 }
 0xc7c   : > { %v8351_v3 = vadd.f32 %v10606_v40, %v8350_v28 }
 0xc7e   : > { %v8355_v31 = vsel %vm8354_vm0, %v10606_v40, %v8351_v3 }
 0xc7f   : > { %v8360_v37 = vsel %vm8357_vm2, %v8359_v51, %v8355_v31 }
 0xc80   : > { %v8556_v27 = vsel %vm8364_vm1, %v8523_v17, %v8360_v37 }
 0xc81   : > { %8589 = vst.msk [vmem:[%s15331_s0 + $0xf8] sm:$0xff] %vm8557_vm4, %v8556_v27 }
 0xc82 PF: > { %s15772_s26 = sld [smem:[#allocation2_spill]] }
 0xc88   : > { %s35_s29 = sadd.s32 1, %s15772_s26  }
 0xc89   : > { %p32_p4 = scmp.ge.s32.totalorder %s35_s29, 4  }
 0xc8b   :  { %34 = sbr.rel (!%p32_p4) target bundleno = 12 (0xc), region = 150 }

</bundles_post_ra>
